<compile_context>
chip_gen: v6e
topology: v6e:2x2x1
jax: 0.10.0
libtpu: 0.0.40
codegen_flags: <defaults>
</compile_context>

<pallas_src>
import jax
import jax.numpy as jnp
from jax import lax
from jax.experimental import pallas as pl
from jax.experimental.pallas import tpu as pltpu

LRELU_SLOPE = 0.1
BN_EPS = 1e-5
CF = 64 + 64 + 128 + 256 + 512  # 1024 concatenated channels


# ------------------------------------------------------------------ kernel ---
def _finet_encoder_kernel(
    # inputs
    x_ref,                                   # (1, N, 3)   f32
    w1_ref,                                  # (3, 128)    bf16  [wR1*s | wt1*s]
    w2_ref,                                  # (128, 128)  bf16  blockdiag
    w3m_ref,                                 # (128, 256)  bf16  blockdiag (main rows)
    w3g_ref,                                 # (128, 256)  bf16  anti-diag (global rows)
    w4R_ref, w4t_ref,                        # (128, 256)  bf16
    w5Rm_ref, w5Rg_ref, w5tm_ref, w5tg_ref,  # (256, 512)  bf16
    shift_ref,                               # (8, 512)    f32, one stage per row
    # outputs
    R_feat_ref, t_feat_ref,                  # (1, 1024, N) f32  channel-major
    R_glob_ref, t_glob_ref,                  # (1, 1, 1024) f32
    R_idx_ref, t_idx_ref,                    # (1, 1, 1024) i32
    R_val_ref, t_val_ref,                    # (1, 1, N)    f32  lane-dense norm
):
    N = x_ref.shape[1]
    x = x_ref[0].astype(jnp.bfloat16)        # (N, 3)

    def mm(h, w):
        # bf16 x bf16 MXU matmul, f32 accumulation
        return jnp.dot(h.astype(jnp.bfloat16), w, preferred_element_type=jnp.float32)

    def act(y, row, width):
        # BN scale already folded into the weights; only shift + LeakyReLU(0.1),
        # all f32 (v5e VPU has no bf16 elementwise).
        y = y + shift_ref[row:row + 1, 0:width]
        return jnp.where(y > 0, y, LRELU_SLOPE * y)

    def max_argmax(h):
        # h: (N, C) f32; reductions over the point (sublane) axis -> (1, C)
        m = jnp.max(h, axis=0, keepdims=True)
        iota = lax.broadcasted_iota(jnp.int32, h.shape, 0)
        idx = jnp.min(jnp.where(h == m, iota, N), axis=0, keepdims=True)
        return m, idx

    def emit_fused(y, c_lo, c_hi):
        # y: (N, 2w) fused [R|t] stage activation; store channel range
        # [c_lo, c_hi) of both branches; return (ssq_R, ssq_t, max_row)
        w = c_hi - c_lo
        yT = y.T                                        # (2w, N) via XLU
        R_feat_ref[0, c_lo:c_hi, :] = yT[0:w]
        t_feat_ref[0, c_lo:c_hi, :] = yT[w:2 * w]
        m, idx = max_argmax(y)
        R_glob_ref[0, :, c_lo:c_hi] = m[:, 0:w]
        t_glob_ref[0, :, c_lo:c_hi] = m[:, w:2 * w]
        R_idx_ref[0, :, c_lo:c_hi] = idx[:, 0:w]
        t_idx_ref[0, :, c_lo:c_hi] = idx[:, w:2 * w]
        sq = yT * yT
        return (jnp.sum(sq[0:w], axis=0, keepdims=True),
                jnp.sum(sq[w:2 * w], axis=0, keepdims=True), m)

    def emit_branch(h, feat_ref, glob_ref, idx_ref, c_lo, c_hi):
        hT = h.T
        feat_ref[0, c_lo:c_hi, :] = hT
        m, idx = max_argmax(h)
        glob_ref[0, :, c_lo:c_hi] = m
        idx_ref[0, :, c_lo:c_hi] = idx
        return jnp.sum(hT * hT, axis=0, keepdims=True), m

    # ----- stage 1: both branches in one (N,3)@(3,128) matmul -----
    y1 = act(mm(x, w1_ref[...]), 0, 128)                # (N,128) = [R1 | t1]
    R_ssq, t_ssq, _ = emit_fused(y1, 0, 64)

    # ----- stage 2: block-diagonal fused (N,128)@(128,128) -----
    y2 = act(mm(y1, w2_ref[...]), 1, 128)               # (N,128) = [R2 | t2]
    r2, t2s, g2 = emit_fused(y2, 64, 128)               # g2 = [Rg2 | tg2]
    R_ssq += r2
    t_ssq += t2s

    # ----- stage 3: pfi[0]=='self' exchange -----
    # block-diagonal main term + anti-diagonal global-bias row; back-to-back
    # dots so the MXU result buffer (MRB on v7x) can accumulate them.
    y3 = act(mm(y2, w3m_ref[...]) + mm(g2, w3g_ref[...]), 2, 256)   # [R3 | t3]
    r3, t3s, _ = emit_fused(y3, 128, 256)
    R_ssq += r3
    t_ssq += t3s

    # ----- stage 4: per-branch (widths already fill an MXU tile) -----
    R4 = act(mm(y3[:, 0:128], w4R_ref[...]), 3, 256)    # (N,256)
    t4 = act(mm(y3[:, 128:256], w4t_ref[...]), 4, 256)
    r4, Rg4 = emit_branch(R4, R_feat_ref, R_glob_ref, R_idx_ref, 256, 512)
    t4s, tg4 = emit_branch(t4, t_feat_ref, t_glob_ref, t_idx_ref, 256, 512)
    R_ssq += r4
    t_ssq += t4s

    # ----- stage 5: pfi[1]=='self' split-weight exchange -----
    R5 = act(mm(R4, w5Rm_ref[...]) + mm(tg4, w5Rg_ref[...]), 5, 512)   # (N,512)
    t5 = act(mm(t4, w5tm_ref[...]) + mm(Rg4, w5tg_ref[...]), 6, 512)
    r5, _ = emit_branch(R5, R_feat_ref, R_glob_ref, R_idx_ref, 512, 1024)
    t5s, _ = emit_branch(t5, t_feat_ref, t_glob_ref, t_idx_ref, 512, 1024)
    R_ssq += r5
    t_ssq += t5s

    # ----- per-point feature norm, lane-dense (1, N) -----
    R_val_ref[0] = jnp.sqrt(R_ssq)
    t_val_ref[0] = jnp.sqrt(t_ssq)


# ----------------------------------------------------------------- wrapper ---
@jax.jit
def finet_encoder_pallas(x_ncn, packed):
    """x_ncn: (B, 3, N) float32 (PyTorch Conv1d layout). packed: packed params.
    Returns the 8-output list of FINetEncoder.forward (dropout=False, mask=None)."""
    B, C_in, N = x_ncn.shape
    assert C_in == 3
    # f32 sublane tile; in-kernel transposes are cleanest when N % 128 == 0.
    assert N % 8 == 0, "N must be a multiple of 8 (pad the point cloud)"
    x = jnp.transpose(x_ncn, (0, 2, 1))                 # (B, N, 3), tiny

    inputs = [
        x, packed["w1"], packed["w2"], packed["w3m"], packed["w3g"],
        packed["w4R"], packed["w4t"],
        packed["w5Rm"], packed["w5Rg"], packed["w5tm"], packed["w5tg"],
        packed["shift"],
    ]
    in_specs = [pl.BlockSpec((1, N, 3), lambda b: (b, 0, 0))]
    # grid-invariant params: constant block index -> no re-DMA across the B grid
    in_specs += [pl.BlockSpec(a.shape, lambda b: (0, 0)) for a in inputs[1:]]

    out_shapes = (
        jax.ShapeDtypeStruct((B, CF, N), jnp.float32),   # R feature (channel-major)
        jax.ShapeDtypeStruct((B, CF, N), jnp.float32),   # t feature
        jax.ShapeDtypeStruct((B, 1, CF), jnp.float32),   # R glob feat
        jax.ShapeDtypeStruct((B, 1, CF), jnp.float32),   # t glob feat
        jax.ShapeDtypeStruct((B, 1, CF), jnp.int32),     # R glob idx
        jax.ShapeDtypeStruct((B, 1, CF), jnp.int32),     # t glob idx
        jax.ShapeDtypeStruct((B, 1, N), jnp.float32),    # R per-point norm (lane-dense)
        jax.ShapeDtypeStruct((B, 1, N), jnp.float32),    # t per-point norm
    )
    out_specs = (
        pl.BlockSpec((1, CF, N), lambda b: (b, 0, 0)),
        pl.BlockSpec((1, CF, N), lambda b: (b, 0, 0)),
        pl.BlockSpec((1, 1, CF), lambda b: (b, 0, 0)),
        pl.BlockSpec((1, 1, CF), lambda b: (b, 0, 0)),
        pl.BlockSpec((1, 1, CF), lambda b: (b, 0, 0)),
        pl.BlockSpec((1, 1, CF), lambda b: (b, 0, 0)),
        pl.BlockSpec((1, 1, N), lambda b: (b, 0, 0)),
        pl.BlockSpec((1, 1, N), lambda b: (b, 0, 0)),
    )

    # Single-block-over-N design costs ~26 KiB of VMEM per point (double-buffered
    # channel-major f32 feature outputs for both branches + live activations).
    # The 32 MiB default scoped limit covers N up to ~1K; beyond that raise it,
    # staying clear of the physical cap (64 MiB on v7x, 128 MiB on v5e/v6e).
    # TODO(synk): for N >~ 2.5K on v7x this needs an N-tiled multi-pass structure
    # (stages 1-2 / 3-4 / 5 with running global-max accumulators), which would
    # also give v7x's two TensorCores parallel work when B == 1.
    vmem_needed = 6 * 2**20 + 26 * 1024 * N
    vmem_limit_bytes = None if vmem_needed <= 32 * 2**20 else min(vmem_needed, 120 * 2**20)

    (R_feat, t_feat, R_glob, t_glob, R_idx, t_idx, R_val, t_val) = pl.pallas_call(
        _finet_encoder_kernel,
        out_shape=out_shapes,
        grid_spec=pltpu.PrefetchScalarGridSpec(
            num_scalar_prefetch=0,
            grid=(B,),
            in_specs=in_specs,
            out_specs=out_specs,
        ),
        compiler_params=pltpu.CompilerParams(
            dimension_semantics=("parallel",),
            vmem_limit_bytes=vmem_limit_bytes,
        ),
    )(*inputs)

    # PyTorch output conventions -- all remaining ops are free reshapes/slices.
    R_final_glob_feat = R_glob[:, 0, :]                  # (B, 1024)
    t_final_glob_feat = t_glob[:, 0, :]
    R_final_glob_idx = R_idx[:, 0, :]                    # (B, 1024)
    t_final_glob_idx = t_idx[:, 0, :]
    R_point_feat_value = R_val[:, 0, :]                  # (B, N)
    t_point_feat_value = t_val[:, 0, :]
    R_final_feat_output = R_feat                         # (B, 1024, N), no transpose
    t_final_feat_output = t_feat

    return [R_final_glob_feat, t_final_glob_feat,
            R_final_glob_idx, t_final_glob_idx,
            R_point_feat_value, t_point_feat_value,
            R_final_feat_output, t_final_feat_output]


# ------------------------------------------------------------------ params ---
def init_params(key):
    """Per-layer synthetic params: Conv1d weights as (C_in, C_out), eval-mode
    BatchNorm folded into (scale, shift)."""
    dims = [(3, 64), (64, 64), (128, 128), (128, 256), (512, 512)]
    params = {}
    for branch in ("R", "t"):
        for i, (cin, cout) in enumerate(dims, start=1):
            key, k1, k2, k3, k4, k5 = jax.random.split(key, 6)
            w = jax.random.normal(k1, (cin, cout), jnp.float32) * (1.0 / jnp.sqrt(cin))
            gamma = 1.0 + 0.1 * jax.random.normal(k2, (1, cout), jnp.float32)
            beta = 0.1 * jax.random.normal(k3, (1, cout), jnp.float32)
            rmean = 0.1 * jax.random.normal(k4, (1, cout), jnp.float32)
            rvar = jnp.abs(1.0 + 0.1 * jax.random.normal(k5, (1, cout), jnp.float32))
            scale = gamma / jnp.sqrt(rvar + BN_EPS)
            shift = beta - rmean * scale
            params[f"w_{branch}{i}"] = w
            params[f"s_{branch}{i}"] = scale
            params[f"b_{branch}{i}"] = shift
    return params


def pack_params(params):
    """Pack params for the kernel: BN scale folded into the weights (in f32,
    then cast to bf16), branch-fused / block-diagonal weights for stages 1-3,
    split main/global weights for stages 3/5, and 128-lane-aligned shift rows."""
    def fold(br, i):
        return params[f"w_{br}{i}"] * params[f"s_{br}{i}"]        # f32 (cin, cout)

    def blockdiag(a, b):
        ka, na = a.shape
        kb, nb = b.shape
        top = jnp.concatenate([a, jnp.zeros((ka, nb), a.dtype)], axis=1)
        bot = jnp.concatenate([jnp.zeros((kb, na), b.dtype), b], axis=1)
        return jnp.concatenate([top, bot], axis=0)

    wR1, wt1 = fold("R", 1), fold("t", 1)
    wR2, wt2 = fold("R", 2), fold("t", 2)
    wR3, wt3 = fold("R", 3), fold("t", 3)
    wR4, wt4 = fold("R", 4), fold("t", 4)
    wR5, wt5 = fold("R", 5), fold("t", 5)

    # stage-3 global rows: [Rg2 | tg2] @ w3g must give [tg2@wR3_g | Rg2@wt3_g]
    w3g = jnp.concatenate([
        jnp.concatenate([jnp.zeros((64, 128), jnp.float32), wt3[64:128]], axis=1),
        jnp.concatenate([wR3[64:128], jnp.zeros((64, 128), jnp.float32)], axis=1),
    ], axis=0)

    packed = {
        "w1": jnp.concatenate([wR1, wt1], axis=1).astype(jnp.bfloat16),     # (3,128)
        "w2": blockdiag(wR2, wt2).astype(jnp.bfloat16),                     # (128,128)
        "w3m": blockdiag(wR3[0:64], wt3[0:64]).astype(jnp.bfloat16),        # (128,256)
        "w3g": w3g.astype(jnp.bfloat16),                                    # (128,256)
        "w4R": wR4.astype(jnp.bfloat16), "w4t": wt4.astype(jnp.bfloat16),   # (128,256)
        "w5Rm": wR5[0:256].astype(jnp.bfloat16),
        "w5Rg": wR5[256:512].astype(jnp.bfloat16),
        "w5tm": wt5[0:256].astype(jnp.bfloat16),
        "w5tg": wt5[256:512].astype(jnp.bfloat16),                          # (256,512)
    }

    # shift rows: one stage per row, padded to 512 lanes (each stage slice
    # starts at lane 0 -> 128-lane aligned loads)
    def row(vals, width=512):
        v = jnp.concatenate(vals, axis=-1)
        return jnp.pad(v, ((0, 0), (0, width - v.shape[-1])))

    packed["shift"] = jnp.concatenate([
        row([params["b_R1"], params["b_t1"]]),
        row([params["b_R2"], params["b_t2"]]),
        row([params["b_R3"], params["b_t3"]]),
        row([params["b_R4"]]),
        row([params["b_t4"]]),
        row([params["b_R5"]]),
        row([params["b_t5"]]),
        jnp.zeros((1, 512), jnp.float32),
    ], axis=0)                                                              # (8,512)
    return packed


# --------------------------------------------------------------- reference ---
def finet_encoder_ref(x_ncn, params):
    """Pure-JAX reference following the original module structure (concat-based
    'self' exchange).  BN scale is folded into the weights before the bf16 cast
    exactly as the kernel does (mathematically identical to conv -> BN scale)."""
    x = jnp.transpose(x_ncn, (0, 2, 1))  # (B, N, 3)

    def block(h, br, i):
        w = (params[f"w_{br}{i}"] * params[f"s_{br}{i}"]).astype(jnp.bfloat16)
        y = jnp.einsum("bnc,cd->bnd", h.astype(jnp.bfloat16), w,
                       preferred_element_type=jnp.float32)
        y = y + params[f"b_{br}{i}"][None]
        return jnp.where(y > 0, y, LRELU_SLOPE * y)

    R1 = block(x, "R", 1); R2 = block(R1, "R", 2)
    t1 = block(x, "t", 1); t2 = block(t1, "t", 2)
    Rg2 = jnp.max(R2, axis=1, keepdims=True)
    tg2 = jnp.max(t2, axis=1, keepdims=True)
    eR = jnp.concatenate([R2, jnp.broadcast_to(tg2, R2.shape[:2] + (tg2.shape[-1],))], -1)
    et = jnp.concatenate([t2, jnp.broadcast_to(Rg2, t2.shape[:2] + (Rg2.shape[-1],))], -1)
    R3 = block(eR, "R", 3); R4 = block(R3, "R", 4)
    t3 = block(et, "t", 3); t4 = block(t3, "t", 4)
    Rg4 = jnp.max(R4, axis=1, keepdims=True)
    tg4 = jnp.max(t4, axis=1, keepdims=True)
    eR4 = jnp.concatenate([R4, jnp.broadcast_to(tg4, R4.shape[:2] + (tg4.shape[-1],))], -1)
    et4 = jnp.concatenate([t4, jnp.broadcast_to(Rg4, t4.shape[:2] + (Rg4.shape[-1],))], -1)
    R5 = block(eR4, "R", 5)
    t5 = block(et4, "t", 5)
    Rf = jnp.concatenate([R1, R2, R3, R4, R5], -1)  # (B, N, 1024)
    tf = jnp.concatenate([t1, t2, t3, t4, t5], -1)
    return (jnp.max(Rf, axis=1), jnp.max(tf, axis=1),
            jnp.sqrt(jnp.sum(Rf * Rf, -1)), jnp.sqrt(jnp.sum(tf * tf, -1)),
            jnp.transpose(Rf, (0, 2, 1)), jnp.transpose(tf, (0, 2, 1)))


# -------------------------------------------------------------------- main ---
if __name__ == "__main__":
    key = jax.random.PRNGKey(0)
    kx, kp = jax.random.split(key)

    B, N = 2, 128
    x = jax.random.normal(kx, (B, 3, N), jnp.float32)   # PyTorch Conv1d layout
    params = init_params(kp)
    packed = pack_params(params)

    outs = jax.block_until_ready(finet_encoder_pallas(x, packed))
    (R_glob, t_glob, R_idx, t_idx, R_val, t_val, R_feat, t_feat) = outs

    # ---- validation against pure-JAX reference ----
    rg_ref, tg_ref, rv_ref, tv_ref, rf_ref, tf_ref = finet_encoder_ref(x, params)
    assert jnp.allclose(R_feat, rf_ref, rtol=1e-2, atol=1e-2)
    assert jnp.allclose(t_feat, tf_ref, rtol=1e-2, atol=1e-2)
    assert jnp.allclose(R_glob, rg_ref, rtol=1e-2, atol=1e-2)
    assert jnp.allclose(t_glob, tg_ref, rtol=1e-2, atol=1e-2)
    assert jnp.allclose(R_val, rv_ref, rtol=1e-2, atol=1e-2)
    assert jnp.allclose(t_val, tv_ref, rtol=1e-2, atol=1e-2)

    # argmax: indices in range and gathering at them reproduces the global max
    assert R_idx.dtype == jnp.int32 and jnp.all((R_idx >= 0) & (R_idx < N))
    assert t_idx.dtype == jnp.int32 and jnp.all((t_idx >= 0) & (t_idx < N))
    gR = jnp.take_along_axis(R_feat, R_idx[:, :, None], axis=2)[..., 0]
    gt = jnp.take_along_axis(t_feat, t_idx[:, :, None], axis=2)[..., 0]
    assert jnp.array_equal(gR, R_glob)
    assert jnp.array_equal(gt, t_glob)

    # shape checks vs PyTorch conventions
    assert R_glob.shape == (B, CF) and R_idx.shape == (B, CF)
    assert R_val.shape == (B, N) and R_feat.shape == (B, CF, N)

    print("KERNEL_OK")
</pallas_src>

<mosaic_0001>
module attributes {stable_mosaic.version = 11 : i64} {
  func.func @_finet_encoder_kernel(%arg0: i32, %arg1: memref<1x128x3xf32, #tpu.memory_space<vmem>>, %arg2: memref<3x128xbf16, #tpu.memory_space<vmem>>, %arg3: memref<128x128xbf16, #tpu.memory_space<vmem>>, %arg4: memref<128x256xbf16, #tpu.memory_space<vmem>>, %arg5: memref<128x256xbf16, #tpu.memory_space<vmem>>, %arg6: memref<128x256xbf16, #tpu.memory_space<vmem>>, %arg7: memref<128x256xbf16, #tpu.memory_space<vmem>>, %arg8: memref<256x512xbf16, #tpu.memory_space<vmem>>, %arg9: memref<256x512xbf16, #tpu.memory_space<vmem>>, %arg10: memref<256x512xbf16, #tpu.memory_space<vmem>>, %arg11: memref<256x512xbf16, #tpu.memory_space<vmem>>, %arg12: memref<8x512xf32, #tpu.memory_space<vmem>>, %arg13: memref<1x1024x128xf32, #tpu.memory_space<vmem>>, %arg14: memref<1x1024x128xf32, #tpu.memory_space<vmem>>, %arg15: memref<1x1x1024xf32, #tpu.memory_space<vmem>>, %arg16: memref<1x1x1024xf32, #tpu.memory_space<vmem>>, %arg17: memref<1x1x1024xi32, #tpu.memory_space<vmem>>, %arg18: memref<1x1x1024xi32, #tpu.memory_space<vmem>>, %arg19: memref<1x1x128xf32, #tpu.memory_space<vmem>>, %arg20: memref<1x1x128xf32, #tpu.memory_space<vmem>>) attributes {dimension_semantics = [#tpu.dimension_semantics<parallel>], iteration_bounds = array<i64: 2>, scalar_prefetch = 0 : i64, scratch_operands = 0 : i64, tpu.core_type = #tpu.core_type<tc>, window_params = [{transform_indices = @transform_0, window_bounds = array<i64: 1, 128, 3>}, {pipeline_mode = #tpu.pipeline_mode<synchronous>, transform_indices = @transform_1, window_bounds = array<i64: 3, 128>}, {pipeline_mode = #tpu.pipeline_mode<synchronous>, transform_indices = @transform_2, window_bounds = array<i64: 128, 128>}, {pipeline_mode = #tpu.pipeline_mode<synchronous>, transform_indices = @transform_3, window_bounds = array<i64: 128, 256>}, {pipeline_mode = #tpu.pipeline_mode<synchronous>, transform_indices = @transform_4, window_bounds = array<i64: 128, 256>}, {pipeline_mode = #tpu.pipeline_mode<synchronous>, transform_indices = @transform_5, window_bounds = array<i64: 128, 256>}, {pipeline_mode = #tpu.pipeline_mode<synchronous>, transform_indices = @transform_6, window_bounds = array<i64: 128, 256>}, {pipeline_mode = #tpu.pipeline_mode<synchronous>, transform_indices = @transform_7, window_bounds = array<i64: 256, 512>}, {pipeline_mode = #tpu.pipeline_mode<synchronous>, transform_indices = @transform_8, window_bounds = array<i64: 256, 512>}, {pipeline_mode = #tpu.pipeline_mode<synchronous>, transform_indices = @transform_9, window_bounds = array<i64: 256, 512>}, {pipeline_mode = #tpu.pipeline_mode<synchronous>, transform_indices = @transform_10, window_bounds = array<i64: 256, 512>}, {pipeline_mode = #tpu.pipeline_mode<synchronous>, transform_indices = @transform_11, window_bounds = array<i64: 8, 512>}, {transform_indices = @transform_12, window_bounds = array<i64: 1, 1024, 128>}, {transform_indices = @transform_13, window_bounds = array<i64: 1, 1024, 128>}, {transform_indices = @transform_14, window_bounds = array<i64: 1, 1, 1024>}, {transform_indices = @transform_15, window_bounds = array<i64: 1, 1, 1024>}, {transform_indices = @transform_16, window_bounds = array<i64: 1, 1, 1024>}, {transform_indices = @transform_17, window_bounds = array<i64: 1, 1, 1024>}, {transform_indices = @transform_18, window_bounds = array<i64: 1, 1, 128>}, {transform_indices = @transform_19, window_bounds = array<i64: 1, 1, 128>}]} {
    %c0 = arith.constant 0 : index
    %c0_0 = arith.constant 0 : index
    %c0_1 = arith.constant 0 : index
    %0 = vector.load %arg1[%c0, %c0_0, %c0_1] : memref<1x128x3xf32, #tpu.memory_space<vmem>>, vector<1x128x3xf32>
    %1 = vector.shape_cast %0 : vector<1x128x3xf32> to vector<128x3xf32>
    %2 = arith.truncf %1 : vector<128x3xf32> to vector<128x3xbf16>
    %c0_2 = arith.constant 0 : index
    %c0_3 = arith.constant 0 : index
    %3 = vector.load %arg2[%c0_2, %c0_3] : memref<3x128xbf16, #tpu.memory_space<vmem>>, vector<3x128xbf16>
    %cst = arith.constant dense<0.000000e+00> : vector<128x128xf32>
    %4 = tpu.matmul %2, %3, %cst {dimension_numbers = #tpu.dot_dimension_numbers<[1], [0], [0], [1], [0, 0, 1, 1], [], []>} : vector<128x3xbf16>, vector<3x128xbf16>, vector<128x128xf32> -> vector<128x128xf32>
    %c0_4 = arith.constant 0 : index
    %c0_5 = arith.constant 0 : index
    %5 = vector.load %arg12[%c0_4, %c0_5] : memref<8x512xf32, #tpu.memory_space<vmem>>, vector<1x128xf32>
    %6 = vector.broadcast %5 : vector<1x128xf32> to vector<128x128xf32>
    %7 = arith.addf %4, %6 : vector<128x128xf32>
    %cst_6 = arith.constant 0.000000e+00 : f32
    %8 = vector.broadcast %cst_6 : f32 to vector<128x128xf32>
    %9 = arith.cmpf ogt, %7, %8 : vector<128x128xf32>
    %cst_7 = arith.constant 1.000000e-01 : f32
    %10 = vector.broadcast %cst_7 : f32 to vector<128x128xf32>
    %11 = arith.mulf %10, %7 : vector<128x128xf32>
    %12 = arith.select %9, %7, %11 : vector<128x128xi1>, vector<128x128xf32>
    %13 = tpu.transpose %12, [1, 0] : vector<128x128xf32> -> vector<128x128xf32>
    %14 = vector.extract_strided_slice %13 {offsets = [0, 0], sizes = [64, 128], strides = [1, 1]} : vector<128x128xf32> to vector<64x128xf32>
    %c0_8 = arith.constant 0 : index
    %c0_9 = arith.constant 0 : index
    %c0_10 = arith.constant 0 : index
    %15 = vector.load %arg13[%c0_8, %c0_9, %c0_10] : memref<1x1024x128xf32, #tpu.memory_space<vmem>>, vector<1x64x128xf32>
    %16 = vector.shape_cast %15 : vector<1x64x128xf32> to vector<64x128xf32>
    %17 = vector.shape_cast %14 : vector<64x128xf32> to vector<1x64x128xf32>
    tpu.vector_store %arg13[%c0_8, %c0_9, %c0_10], %17 {strides = array<i32>} : memref<1x1024x128xf32, #tpu.memory_space<vmem>>, vector<1x64x128xf32>,
    %18 = vector.extract_strided_slice %13 {offsets = [64, 0], sizes = [64, 128], strides = [1, 1]} : vector<128x128xf32> to vector<64x128xf32>
    %c0_11 = arith.constant 0 : index
    %c0_12 = arith.constant 0 : index
    %c0_13 = arith.constant 0 : index
    %19 = vector.load %arg14[%c0_11, %c0_12, %c0_13] : memref<1x1024x128xf32, #tpu.memory_space<vmem>>, vector<1x64x128xf32>
    %20 = vector.shape_cast %19 : vector<1x64x128xf32> to vector<64x128xf32>
    %21 = vector.shape_cast %18 : vector<64x128xf32> to vector<1x64x128xf32>
    tpu.vector_store %arg14[%c0_11, %c0_12, %c0_13], %21 {strides = array<i32>} : memref<1x1024x128xf32, #tpu.memory_space<vmem>>, vector<1x64x128xf32>,
    %cst_14 = arith.constant dense<0xFF800000> : vector<128xf32>
    %22 = vector.multi_reduction <maximumf>, %12, %cst_14 [0] : vector<128x128xf32> to vector<128xf32>
    %23 = vector.shape_cast %22 : vector<128xf32> to vector<1x128xf32>
    %24 = tpu.iota {dimensions = array<i32: 0>} : vector<128x128xi32>
    %25 = vector.broadcast %23 : vector<1x128xf32> to vector<128x128xf32>
    %26 = arith.cmpf oeq, %12, %25 : vector<128x128xf32>
    %c128_i32 = arith.constant 128 : i32
    %27 = vector.broadcast %c128_i32 : i32 to vector<128x128xi32>
    %28 = arith.select %26, %24, %27 : vector<128x128xi1>, vector<128x128xi32>
    %cst_15 = arith.constant dense<2147483647> : vector<128xi32>
    %29 = vector.multi_reduction <minsi>, %28, %cst_15 [0] : vector<128x128xi32> to vector<128xi32>
    %30 = vector.shape_cast %29 : vector<128xi32> to vector<1x128xi32>
    %31 = vector.extract_strided_slice %23 {offsets = [0, 0], sizes = [1, 64], strides = [1, 1]} : vector<1x128xf32> to vector<1x64xf32>
    %c0_16 = arith.constant 0 : index
    %c0_17 = arith.constant 0 : index
    %c0_18 = arith.constant 0 : index
    %32 = vector.load %arg15[%c0_16, %c0_17, %c0_18] : memref<1x1x1024xf32, #tpu.memory_space<vmem>>, vector<1x1x64xf32>
    %33 = vector.shape_cast %32 : vector<1x1x64xf32> to vector<1x64xf32>
    %34 = vector.shape_cast %31 : vector<1x64xf32> to vector<1x1x64xf32>
    tpu.vector_store %arg15[%c0_16, %c0_17, %c0_18], %34 {strides = array<i32>} : memref<1x1x1024xf32, #tpu.memory_space<vmem>>, vector<1x1x64xf32>,
    %35 = vector.extract_strided_slice %23 {offsets = [0, 64], sizes = [1, 64], strides = [1, 1]} : vector<1x128xf32> to vector<1x64xf32>
    %c0_19 = arith.constant 0 : index
    %c0_20 = arith.constant 0 : index
    %c0_21 = arith.constant 0 : index
    %36 = vector.load %arg16[%c0_19, %c0_20, %c0_21] : memref<1x1x1024xf32, #tpu.memory_space<vmem>>, vector<1x1x64xf32>
    %37 = vector.shape_cast %36 : vector<1x1x64xf32> to vector<1x64xf32>
    %38 = vector.shape_cast %35 : vector<1x64xf32> to vector<1x1x64xf32>
    tpu.vector_store %arg16[%c0_19, %c0_20, %c0_21], %38 {strides = array<i32>} : memref<1x1x1024xf32, #tpu.memory_space<vmem>>, vector<1x1x64xf32>,
    %39 = vector.extract_strided_slice %30 {offsets = [0, 0], sizes = [1, 64], strides = [1, 1]} : vector<1x128xi32> to vector<1x64xi32>
    %c0_22 = arith.constant 0 : index
    %c0_23 = arith.constant 0 : index
    %c0_24 = arith.constant 0 : index
    %40 = vector.load %arg17[%c0_22, %c0_23, %c0_24] : memref<1x1x1024xi32, #tpu.memory_space<vmem>>, vector<1x1x64xi32>
    %41 = vector.shape_cast %40 : vector<1x1x64xi32> to vector<1x64xi32>
    %42 = vector.shape_cast %39 : vector<1x64xi32> to vector<1x1x64xi32>
    tpu.vector_store %arg17[%c0_22, %c0_23, %c0_24], %42 {strides = array<i32>} : memref<1x1x1024xi32, #tpu.memory_space<vmem>>, vector<1x1x64xi32>,
    %43 = vector.extract_strided_slice %30 {offsets = [0, 64], sizes = [1, 64], strides = [1, 1]} : vector<1x128xi32> to vector<1x64xi32>
    %c0_25 = arith.constant 0 : index
    %c0_26 = arith.constant 0 : index
    %c0_27 = arith.constant 0 : index
    %44 = vector.load %arg18[%c0_25, %c0_26, %c0_27] : memref<1x1x1024xi32, #tpu.memory_space<vmem>>, vector<1x1x64xi32>
    %45 = vector.shape_cast %44 : vector<1x1x64xi32> to vector<1x64xi32>
    %46 = vector.shape_cast %43 : vector<1x64xi32> to vector<1x1x64xi32>
    tpu.vector_store %arg18[%c0_25, %c0_26, %c0_27], %46 {strides = array<i32>} : memref<1x1x1024xi32, #tpu.memory_space<vmem>>, vector<1x1x64xi32>,
    %47 = arith.mulf %13, %13 : vector<128x128xf32>
    %48 = vector.extract_strided_slice %47 {offsets = [0, 0], sizes = [64, 128], strides = [1, 1]} : vector<128x128xf32> to vector<64x128xf32>
    %cst_28 = arith.constant dense<0.000000e+00> : vector<128xf32>
    %49 = vector.multi_reduction <add>, %48, %cst_28 [0] : vector<64x128xf32> to vector<128xf32>
    %50 = vector.shape_cast %49 : vector<128xf32> to vector<1x128xf32>
    %51 = vector.extract_strided_slice %47 {offsets = [64, 0], sizes = [64, 128], strides = [1, 1]} : vector<128x128xf32> to vector<64x128xf32>
    %cst_29 = arith.constant dense<0.000000e+00> : vector<128xf32>
    %52 = vector.multi_reduction <add>, %51, %cst_29 [0] : vector<64x128xf32> to vector<128xf32>
    %53 = vector.shape_cast %52 : vector<128xf32> to vector<1x128xf32>
    %c0_30 = arith.constant 0 : index
    %c0_31 = arith.constant 0 : index
    %54 = vector.load %arg3[%c0_30, %c0_31] : memref<128x128xbf16, #tpu.memory_space<vmem>>, vector<128x128xbf16>
    %55 = arith.truncf %12 : vector<128x128xf32> to vector<128x128xbf16>
    %cst_32 = arith.constant dense<0.000000e+00> : vector<128x128xf32>
    %56 = tpu.matmul %55, %54, %cst_32 {dimension_numbers = #tpu.dot_dimension_numbers<[1], [0], [0], [1], [0, 0, 1, 1], [], []>} : vector<128x128xbf16>, vector<128x128xbf16>, vector<128x128xf32> -> vector<128x128xf32>
    %c1 = arith.constant 1 : index
    %c0_33 = arith.constant 0 : index
    %57 = vector.load %arg12[%c1, %c0_33] : memref<8x512xf32, #tpu.memory_space<vmem>>, vector<1x128xf32>
    %58 = vector.broadcast %57 : vector<1x128xf32> to vector<128x128xf32>
    %59 = arith.addf %56, %58 : vector<128x128xf32>
    %cst_34 = arith.constant 0.000000e+00 : f32
    %60 = vector.broadcast %cst_34 : f32 to vector<128x128xf32>
    %61 = arith.cmpf ogt, %59, %60 : vector<128x128xf32>
    %cst_35 = arith.constant 1.000000e-01 : f32
    %62 = vector.broadcast %cst_35 : f32 to vector<128x128xf32>
    %63 = arith.mulf %62, %59 : vector<128x128xf32>
    %64 = arith.select %61, %59, %63 : vector<128x128xi1>, vector<128x128xf32>
    %65 = tpu.transpose %64, [1, 0] : vector<128x128xf32> -> vector<128x128xf32>
    %66 = vector.extract_strided_slice %65 {offsets = [0, 0], sizes = [64, 128], strides = [1, 1]} : vector<128x128xf32> to vector<64x128xf32>
    %c0_36 = arith.constant 0 : index
    %c64 = arith.constant 64 : index
    %c0_37 = arith.constant 0 : index
    %67 = vector.load %arg13[%c0_36, %c64, %c0_37] : memref<1x1024x128xf32, #tpu.memory_space<vmem>>, vector<1x64x128xf32>
    %68 = vector.shape_cast %67 : vector<1x64x128xf32> to vector<64x128xf32>
    %69 = vector.shape_cast %66 : vector<64x128xf32> to vector<1x64x128xf32>
    tpu.vector_store %arg13[%c0_36, %c64, %c0_37], %69 {strides = array<i32>} : memref<1x1024x128xf32, #tpu.memory_space<vmem>>, vector<1x64x128xf32>,
    %70 = vector.extract_strided_slice %65 {offsets = [64, 0], sizes = [64, 128], strides = [1, 1]} : vector<128x128xf32> to vector<64x128xf32>
    %c0_38 = arith.constant 0 : index
    %c64_39 = arith.constant 64 : index
    %c0_40 = arith.constant 0 : index
    %71 = vector.load %arg14[%c0_38, %c64_39, %c0_40] : memref<1x1024x128xf32, #tpu.memory_space<vmem>>, vector<1x64x128xf32>
    %72 = vector.shape_cast %71 : vector<1x64x128xf32> to vector<64x128xf32>
    %73 = vector.shape_cast %70 : vector<64x128xf32> to vector<1x64x128xf32>
    tpu.vector_store %arg14[%c0_38, %c64_39, %c0_40], %73 {strides = array<i32>} : memref<1x1024x128xf32, #tpu.memory_space<vmem>>, vector<1x64x128xf32>,
    %cst_41 = arith.constant dense<0xFF800000> : vector<128xf32>
    %74 = vector.multi_reduction <maximumf>, %64, %cst_41 [0] : vector<128x128xf32> to vector<128xf32>
    %75 = vector.shape_cast %74 : vector<128xf32> to vector<1x128xf32>
    %76 = tpu.iota {dimensions = array<i32: 0>} : vector<128x128xi32>
    %77 = vector.broadcast %75 : vector<1x128xf32> to vector<128x128xf32>
    %78 = arith.cmpf oeq, %64, %77 : vector<128x128xf32>
    %c128_i32_42 = arith.constant 128 : i32
    %79 = vector.broadcast %c128_i32_42 : i32 to vector<128x128xi32>
    %80 = arith.select %78, %76, %79 : vector<128x128xi1>, vector<128x128xi32>
    %cst_43 = arith.constant dense<2147483647> : vector<128xi32>
    %81 = vector.multi_reduction <minsi>, %80, %cst_43 [0] : vector<128x128xi32> to vector<128xi32>
    %82 = vector.shape_cast %81 : vector<128xi32> to vector<1x128xi32>
    %83 = vector.extract_strided_slice %75 {offsets = [0, 0], sizes = [1, 64], strides = [1, 1]} : vector<1x128xf32> to vector<1x64xf32>
    %c0_44 = arith.constant 0 : index
    %c0_45 = arith.constant 0 : index
    %c64_46 = arith.constant 64 : index
    %84 = vector.load %arg15[%c0_44, %c0_45, %c64_46] : memref<1x1x1024xf32, #tpu.memory_space<vmem>>, vector<1x1x64xf32>
    %85 = vector.shape_cast %84 : vector<1x1x64xf32> to vector<1x64xf32>
    %86 = vector.shape_cast %83 : vector<1x64xf32> to vector<1x1x64xf32>
    tpu.vector_store %arg15[%c0_44, %c0_45, %c64_46], %86 {strides = array<i32>} : memref<1x1x1024xf32, #tpu.memory_space<vmem>>, vector<1x1x64xf32>,
    %87 = vector.extract_strided_slice %75 {offsets = [0, 64], sizes = [1, 64], strides = [1, 1]} : vector<1x128xf32> to vector<1x64xf32>
    %c0_47 = arith.constant 0 : index
    %c0_48 = arith.constant 0 : index
    %c64_49 = arith.constant 64 : index
    %88 = vector.load %arg16[%c0_47, %c0_48, %c64_49] : memref<1x1x1024xf32, #tpu.memory_space<vmem>>, vector<1x1x64xf32>
    %89 = vector.shape_cast %88 : vector<1x1x64xf32> to vector<1x64xf32>
    %90 = vector.shape_cast %87 : vector<1x64xf32> to vector<1x1x64xf32>
    tpu.vector_store %arg16[%c0_47, %c0_48, %c64_49], %90 {strides = array<i32>} : memref<1x1x1024xf32, #tpu.memory_space<vmem>>, vector<1x1x64xf32>,
    %91 = vector.extract_strided_slice %82 {offsets = [0, 0], sizes = [1, 64], strides = [1, 1]} : vector<1x128xi32> to vector<1x64xi32>
    %c0_50 = arith.constant 0 : index
    %c0_51 = arith.constant 0 : index
    %c64_52 = arith.constant 64 : index
    %92 = vector.load %arg17[%c0_50, %c0_51, %c64_52] : memref<1x1x1024xi32, #tpu.memory_space<vmem>>, vector<1x1x64xi32>
    %93 = vector.shape_cast %92 : vector<1x1x64xi32> to vector<1x64xi32>
    %94 = vector.shape_cast %91 : vector<1x64xi32> to vector<1x1x64xi32>
    tpu.vector_store %arg17[%c0_50, %c0_51, %c64_52], %94 {strides = array<i32>} : memref<1x1x1024xi32, #tpu.memory_space<vmem>>, vector<1x1x64xi32>,
    %95 = vector.extract_strided_slice %82 {offsets = [0, 64], sizes = [1, 64], strides = [1, 1]} : vector<1x128xi32> to vector<1x64xi32>
    %c0_53 = arith.constant 0 : index
    %c0_54 = arith.constant 0 : index
    %c64_55 = arith.constant 64 : index
    %96 = vector.load %arg18[%c0_53, %c0_54, %c64_55] : memref<1x1x1024xi32, #tpu.memory_space<vmem>>, vector<1x1x64xi32>
    %97 = vector.shape_cast %96 : vector<1x1x64xi32> to vector<1x64xi32>
    %98 = vector.shape_cast %95 : vector<1x64xi32> to vector<1x1x64xi32>
    tpu.vector_store %arg18[%c0_53, %c0_54, %c64_55], %98 {strides = array<i32>} : memref<1x1x1024xi32, #tpu.memory_space<vmem>>, vector<1x1x64xi32>,
    %99 = arith.mulf %65, %65 : vector<128x128xf32>
    %100 = vector.extract_strided_slice %99 {offsets = [0, 0], sizes = [64, 128], strides = [1, 1]} : vector<128x128xf32> to vector<64x128xf32>
    %cst_56 = arith.constant dense<0.000000e+00> : vector<128xf32>
    %101 = vector.multi_reduction <add>, %100, %cst_56 [0] : vector<64x128xf32> to vector<128xf32>
    %102 = vector.shape_cast %101 : vector<128xf32> to vector<1x128xf32>
    %103 = vector.extract_strided_slice %99 {offsets = [64, 0], sizes = [64, 128], strides = [1, 1]} : vector<128x128xf32> to vector<64x128xf32>
    %cst_57 = arith.constant dense<0.000000e+00> : vector<128xf32>
    %104 = vector.multi_reduction <add>, %103, %cst_57 [0] : vector<64x128xf32> to vector<128xf32>
    %105 = vector.shape_cast %104 : vector<128xf32> to vector<1x128xf32>
    %106 = arith.addf %50, %102 : vector<1x128xf32>
    %107 = arith.addf %53, %105 : vector<1x128xf32>
    %c0_58 = arith.constant 0 : index
    %c0_59 = arith.constant 0 : index
    %108 = vector.load %arg4[%c0_58, %c0_59] : memref<128x256xbf16, #tpu.memory_space<vmem>>, vector<128x256xbf16>
    %109 = arith.truncf %64 : vector<128x128xf32> to vector<128x128xbf16>
    %cst_60 = arith.constant dense<0.000000e+00> : vector<128x256xf32>
    %110 = tpu.matmul %109, %108, %cst_60 {dimension_numbers = #tpu.dot_dimension_numbers<[1], [0], [0], [1], [0, 0, 1, 1], [], []>} : vector<128x128xbf16>, vector<128x256xbf16>, vector<128x256xf32> -> vector<128x256xf32>
    %c0_61 = arith.constant 0 : index
    %c0_62 = arith.constant 0 : index
    %111 = vector.load %arg5[%c0_61, %c0_62] : memref<128x256xbf16, #tpu.memory_space<vmem>>, vector<128x256xbf16>
    %112 = arith.truncf %75 : vector<1x128xf32> to vector<1x128xbf16>
    %cst_63 = arith.constant dense<0.000000e+00> : vector<1x256xf32>
    %113 = tpu.matmul %112, %111, %cst_63 {dimension_numbers = #tpu.dot_dimension_numbers<[1], [0], [0], [1], [0, 0, 1, 1], [], []>} : vector<1x128xbf16>, vector<128x256xbf16>, vector<1x256xf32> -> vector<1x256xf32>
    %114 = vector.broadcast %113 : vector<1x256xf32> to vector<128x256xf32>
    %115 = arith.addf %110, %114 : vector<128x256xf32>
    %c2 = arith.constant 2 : index
    %c0_64 = arith.constant 0 : index
    %116 = vector.load %arg12[%c2, %c0_64] : memref<8x512xf32, #tpu.memory_space<vmem>>, vector<1x256xf32>
    %117 = vector.broadcast %116 : vector<1x256xf32> to vector<128x256xf32>
    %118 = arith.addf %115, %117 : vector<128x256xf32>
    %cst_65 = arith.constant 0.000000e+00 : f32
    %119 = vector.broadcast %cst_65 : f32 to vector<128x256xf32>
    %120 = arith.cmpf ogt, %118, %119 : vector<128x256xf32>
    %cst_66 = arith.constant 1.000000e-01 : f32
    %121 = vector.broadcast %cst_66 : f32 to vector<128x256xf32>
    %122 = arith.mulf %121, %118 : vector<128x256xf32>
    %123 = arith.select %120, %118, %122 : vector<128x256xi1>, vector<128x256xf32>
    %124 = tpu.transpose %123, [1, 0] : vector<128x256xf32> -> vector<256x128xf32>
    %125 = vector.extract_strided_slice %124 {offsets = [0, 0], sizes = [128, 128], strides = [1, 1]} : vector<256x128xf32> to vector<128x128xf32>
    %c0_67 = arith.constant 0 : index
    %c128 = arith.constant 128 : index
    %c0_68 = arith.constant 0 : index
    %126 = vector.load %arg13[%c0_67, %c128, %c0_68] : memref<1x1024x128xf32, #tpu.memory_space<vmem>>, vector<1x128x128xf32>
    %127 = vector.shape_cast %126 : vector<1x128x128xf32> to vector<128x128xf32>
    %128 = vector.shape_cast %125 : vector<128x128xf32> to vector<1x128x128xf32>
    tpu.vector_store %arg13[%c0_67, %c128, %c0_68], %128 {strides = array<i32>} : memref<1x1024x128xf32, #tpu.memory_space<vmem>>, vector<1x128x128xf32>,
    %129 = vector.extract_strided_slice %124 {offsets = [128, 0], sizes = [128, 128], strides = [1, 1]} : vector<256x128xf32> to vector<128x128xf32>
    %c0_69 = arith.constant 0 : index
    %c128_70 = arith.constant 128 : index
    %c0_71 = arith.constant 0 : index
    %130 = vector.load %arg14[%c0_69, %c128_70, %c0_71] : memref<1x1024x128xf32, #tpu.memory_space<vmem>>, vector<1x128x128xf32>
    %131 = vector.shape_cast %130 : vector<1x128x128xf32> to vector<128x128xf32>
    %132 = vector.shape_cast %129 : vector<128x128xf32> to vector<1x128x128xf32>
    tpu.vector_store %arg14[%c0_69, %c128_70, %c0_71], %132 {strides = array<i32>} : memref<1x1024x128xf32, #tpu.memory_space<vmem>>, vector<1x128x128xf32>,
    %cst_72 = arith.constant dense<0xFF800000> : vector<256xf32>
    %133 = vector.multi_reduction <maximumf>, %123, %cst_72 [0] : vector<128x256xf32> to vector<256xf32>
    %134 = vector.shape_cast %133 : vector<256xf32> to vector<1x256xf32>
    %135 = tpu.iota {dimensions = array<i32: 0>} : vector<128x256xi32>
    %136 = vector.broadcast %134 : vector<1x256xf32> to vector<128x256xf32>
    %137 = arith.cmpf oeq, %123, %136 : vector<128x256xf32>
    %c128_i32_73 = arith.constant 128 : i32
    %138 = vector.broadcast %c128_i32_73 : i32 to vector<128x256xi32>
    %139 = arith.select %137, %135, %138 : vector<128x256xi1>, vector<128x256xi32>
    %cst_74 = arith.constant dense<2147483647> : vector<256xi32>
    %140 = vector.multi_reduction <minsi>, %139, %cst_74 [0] : vector<128x256xi32> to vector<256xi32>
    %141 = vector.shape_cast %140 : vector<256xi32> to vector<1x256xi32>
    %142 = vector.extract_strided_slice %134 {offsets = [0, 0], sizes = [1, 128], strides = [1, 1]} : vector<1x256xf32> to vector<1x128xf32>
    %c0_75 = arith.constant 0 : index
    %c0_76 = arith.constant 0 : index
    %c128_77 = arith.constant 128 : index
    %143 = vector.load %arg15[%c0_75, %c0_76, %c128_77] : memref<1x1x1024xf32, #tpu.memory_space<vmem>>, vector<1x1x128xf32>
    %144 = vector.shape_cast %143 : vector<1x1x128xf32> to vector<1x128xf32>
    %145 = vector.shape_cast %142 : vector<1x128xf32> to vector<1x1x128xf32>
    tpu.vector_store %arg15[%c0_75, %c0_76, %c128_77], %145 {strides = array<i32>} : memref<1x1x1024xf32, #tpu.memory_space<vmem>>, vector<1x1x128xf32>,
    %146 = vector.extract_strided_slice %134 {offsets = [0, 128], sizes = [1, 128], strides = [1, 1]} : vector<1x256xf32> to vector<1x128xf32>
    %c0_78 = arith.constant 0 : index
    %c0_79 = arith.constant 0 : index
    %c128_80 = arith.constant 128 : index
    %147 = vector.load %arg16[%c0_78, %c0_79, %c128_80] : memref<1x1x1024xf32, #tpu.memory_space<vmem>>, vector<1x1x128xf32>
    %148 = vector.shape_cast %147 : vector<1x1x128xf32> to vector<1x128xf32>
    %149 = vector.shape_cast %146 : vector<1x128xf32> to vector<1x1x128xf32>
    tpu.vector_store %arg16[%c0_78, %c0_79, %c128_80], %149 {strides = array<i32>} : memref<1x1x1024xf32, #tpu.memory_space<vmem>>, vector<1x1x128xf32>,
    %150 = vector.extract_strided_slice %141 {offsets = [0, 0], sizes = [1, 128], strides = [1, 1]} : vector<1x256xi32> to vector<1x128xi32>
    %c0_81 = arith.constant 0 : index
    %c0_82 = arith.constant 0 : index
    %c128_83 = arith.constant 128 : index
    %151 = vector.load %arg17[%c0_81, %c0_82, %c128_83] : memref<1x1x1024xi32, #tpu.memory_space<vmem>>, vector<1x1x128xi32>
    %152 = vector.shape_cast %151 : vector<1x1x128xi32> to vector<1x128xi32>
    %153 = vector.shape_cast %150 : vector<1x128xi32> to vector<1x1x128xi32>
    tpu.vector_store %arg17[%c0_81, %c0_82, %c128_83], %153 {strides = array<i32>} : memref<1x1x1024xi32, #tpu.memory_space<vmem>>, vector<1x1x128xi32>,
    %154 = vector.extract_strided_slice %141 {offsets = [0, 128], sizes = [1, 128], strides = [1, 1]} : vector<1x256xi32> to vector<1x128xi32>
    %c0_84 = arith.constant 0 : index
    %c0_85 = arith.constant 0 : index
    %c128_86 = arith.constant 128 : index
    %155 = vector.load %arg18[%c0_84, %c0_85, %c128_86] : memref<1x1x1024xi32, #tpu.memory_space<vmem>>, vector<1x1x128xi32>
    %156 = vector.shape_cast %155 : vector<1x1x128xi32> to vector<1x128xi32>
    %157 = vector.shape_cast %154 : vector<1x128xi32> to vector<1x1x128xi32>
    tpu.vector_store %arg18[%c0_84, %c0_85, %c128_86], %157 {strides = array<i32>} : memref<1x1x1024xi32, #tpu.memory_space<vmem>>, vector<1x1x128xi32>,
    %158 = arith.mulf %124, %124 : vector<256x128xf32>
    %159 = vector.extract_strided_slice %158 {offsets = [0, 0], sizes = [128, 128], strides = [1, 1]} : vector<256x128xf32> to vector<128x128xf32>
    %cst_87 = arith.constant dense<0.000000e+00> : vector<128xf32>
    %160 = vector.multi_reduction <add>, %159, %cst_87 [0] : vector<128x128xf32> to vector<128xf32>
    %161 = vector.shape_cast %160 : vector<128xf32> to vector<1x128xf32>
    %162 = vector.extract_strided_slice %158 {offsets = [128, 0], sizes = [128, 128], strides = [1, 1]} : vector<256x128xf32> to vector<128x128xf32>
    %cst_88 = arith.constant dense<0.000000e+00> : vector<128xf32>
    %163 = vector.multi_reduction <add>, %162, %cst_88 [0] : vector<128x128xf32> to vector<128xf32>
    %164 = vector.shape_cast %163 : vector<128xf32> to vector<1x128xf32>
    %165 = arith.addf %106, %161 : vector<1x128xf32>
    %166 = arith.addf %107, %164 : vector<1x128xf32>
    %167 = vector.extract_strided_slice %123 {offsets = [0, 0], sizes = [128, 128], strides = [1, 1]} : vector<128x256xf32> to vector<128x128xf32>
    %c0_89 = arith.constant 0 : index
    %c0_90 = arith.constant 0 : index
    %168 = vector.load %arg6[%c0_89, %c0_90] : memref<128x256xbf16, #tpu.memory_space<vmem>>, vector<128x256xbf16>
    %169 = arith.truncf %167 : vector<128x128xf32> to vector<128x128xbf16>
    %cst_91 = arith.constant dense<0.000000e+00> : vector<128x256xf32>
    %170 = tpu.matmul %169, %168, %cst_91 {dimension_numbers = #tpu.dot_dimension_numbers<[1], [0], [0], [1], [0, 0, 1, 1], [], []>} : vector<128x128xbf16>, vector<128x256xbf16>, vector<128x256xf32> -> vector<128x256xf32>
    %c3 = arith.constant 3 : index
    %c0_92 = arith.constant 0 : index
    %171 = vector.load %arg12[%c3, %c0_92] : memref<8x512xf32, #tpu.memory_space<vmem>>, vector<1x256xf32>
    %172 = vector.broadcast %171 : vector<1x256xf32> to vector<128x256xf32>
    %173 = arith.addf %170, %172 : vector<128x256xf32>
    %cst_93 = arith.constant 0.000000e+00 : f32
    %174 = vector.broadcast %cst_93 : f32 to vector<128x256xf32>
    %175 = arith.cmpf ogt, %173, %174 : vector<128x256xf32>
    %cst_94 = arith.constant 1.000000e-01 : f32
    %176 = vector.broadcast %cst_94 : f32 to vector<128x256xf32>
    %177 = arith.mulf %176, %173 : vector<128x256xf32>
    %178 = arith.select %175, %173, %177 : vector<128x256xi1>, vector<128x256xf32>
    %179 = vector.extract_strided_slice %123 {offsets = [0, 128], sizes = [128, 128], strides = [1, 1]} : vector<128x256xf32> to vector<128x128xf32>
    %c0_95 = arith.constant 0 : index
    %c0_96 = arith.constant 0 : index
    %180 = vector.load %arg7[%c0_95, %c0_96] : memref<128x256xbf16, #tpu.memory_space<vmem>>, vector<128x256xbf16>
    %181 = arith.truncf %179 : vector<128x128xf32> to vector<128x128xbf16>
    %cst_97 = arith.constant dense<0.000000e+00> : vector<128x256xf32>
    %182 = tpu.matmul %181, %180, %cst_97 {dimension_numbers = #tpu.dot_dimension_numbers<[1], [0], [0], [1], [0, 0, 1, 1], [], []>} : vector<128x128xbf16>, vector<128x256xbf16>, vector<128x256xf32> -> vector<128x256xf32>
    %c4 = arith.constant 4 : index
    %c0_98 = arith.constant 0 : index
    %183 = vector.load %arg12[%c4, %c0_98] : memref<8x512xf32, #tpu.memory_space<vmem>>, vector<1x256xf32>
    %184 = vector.broadcast %183 : vector<1x256xf32> to vector<128x256xf32>
    %185 = arith.addf %182, %184 : vector<128x256xf32>
    %cst_99 = arith.constant 0.000000e+00 : f32
    %186 = vector.broadcast %cst_99 : f32 to vector<128x256xf32>
    %187 = arith.cmpf ogt, %185, %186 : vector<128x256xf32>
    %cst_100 = arith.constant 1.000000e-01 : f32
    %188 = vector.broadcast %cst_100 : f32 to vector<128x256xf32>
    %189 = arith.mulf %188, %185 : vector<128x256xf32>
    %190 = arith.select %187, %185, %189 : vector<128x256xi1>, vector<128x256xf32>
    %191 = tpu.transpose %178, [1, 0] : vector<128x256xf32> -> vector<256x128xf32>
    %c0_101 = arith.constant 0 : index
    %c256 = arith.constant 256 : index
    %c0_102 = arith.constant 0 : index
    %192 = vector.load %arg13[%c0_101, %c256, %c0_102] : memref<1x1024x128xf32, #tpu.memory_space<vmem>>, vector<1x256x128xf32>
    %193 = vector.shape_cast %192 : vector<1x256x128xf32> to vector<256x128xf32>
    %194 = vector.shape_cast %191 : vector<256x128xf32> to vector<1x256x128xf32>
    tpu.vector_store %arg13[%c0_101, %c256, %c0_102], %194 {strides = array<i32>} : memref<1x1024x128xf32, #tpu.memory_space<vmem>>, vector<1x256x128xf32>,
    %cst_103 = arith.constant dense<0xFF800000> : vector<256xf32>
    %195 = vector.multi_reduction <maximumf>, %178, %cst_103 [0] : vector<128x256xf32> to vector<256xf32>
    %196 = vector.shape_cast %195 : vector<256xf32> to vector<1x256xf32>
    %197 = tpu.iota {dimensions = array<i32: 0>} : vector<128x256xi32>
    %198 = vector.broadcast %196 : vector<1x256xf32> to vector<128x256xf32>
    %199 = arith.cmpf oeq, %178, %198 : vector<128x256xf32>
    %c128_i32_104 = arith.constant 128 : i32
    %200 = vector.broadcast %c128_i32_104 : i32 to vector<128x256xi32>
    %201 = arith.select %199, %197, %200 : vector<128x256xi1>, vector<128x256xi32>
    %cst_105 = arith.constant dense<2147483647> : vector<256xi32>
    %202 = vector.multi_reduction <minsi>, %201, %cst_105 [0] : vector<128x256xi32> to vector<256xi32>
    %203 = vector.shape_cast %202 : vector<256xi32> to vector<1x256xi32>
    %c0_106 = arith.constant 0 : index
    %c0_107 = arith.constant 0 : index
    %c256_108 = arith.constant 256 : index
    %204 = vector.load %arg15[%c0_106, %c0_107, %c256_108] : memref<1x1x1024xf32, #tpu.memory_space<vmem>>, vector<1x1x256xf32>
    %205 = vector.shape_cast %204 : vector<1x1x256xf32> to vector<1x256xf32>
    %206 = vector.shape_cast %196 : vector<1x256xf32> to vector<1x1x256xf32>
    tpu.vector_store %arg15[%c0_106, %c0_107, %c256_108], %206 {strides = array<i32>} : memref<1x1x1024xf32, #tpu.memory_space<vmem>>, vector<1x1x256xf32>,
    %c0_109 = arith.constant 0 : index
    %c0_110 = arith.constant 0 : index
    %c256_111 = arith.constant 256 : index
    %207 = vector.load %arg17[%c0_109, %c0_110, %c256_111] : memref<1x1x1024xi32, #tpu.memory_space<vmem>>, vector<1x1x256xi32>
    %208 = vector.shape_cast %207 : vector<1x1x256xi32> to vector<1x256xi32>
    %209 = vector.shape_cast %203 : vector<1x256xi32> to vector<1x1x256xi32>
    tpu.vector_store %arg17[%c0_109, %c0_110, %c256_111], %209 {strides = array<i32>} : memref<1x1x1024xi32, #tpu.memory_space<vmem>>, vector<1x1x256xi32>,
    %210 = arith.mulf %191, %191 : vector<256x128xf32>
    %cst_112 = arith.constant dense<0.000000e+00> : vector<128xf32>
    %211 = vector.multi_reduction <add>, %210, %cst_112 [0] : vector<256x128xf32> to vector<128xf32>
    %212 = vector.shape_cast %211 : vector<128xf32> to vector<1x128xf32>
    %213 = tpu.transpose %190, [1, 0] : vector<128x256xf32> -> vector<256x128xf32>
    %c0_113 = arith.constant 0 : index
    %c256_114 = arith.constant 256 : index
    %c0_115 = arith.constant 0 : index
    %214 = vector.load %arg14[%c0_113, %c256_114, %c0_115] : memref<1x1024x128xf32, #tpu.memory_space<vmem>>, vector<1x256x128xf32>
    %215 = vector.shape_cast %214 : vector<1x256x128xf32> to vector<256x128xf32>
    %216 = vector.shape_cast %213 : vector<256x128xf32> to vector<1x256x128xf32>
    tpu.vector_store %arg14[%c0_113, %c256_114, %c0_115], %216 {strides = array<i32>} : memref<1x1024x128xf32, #tpu.memory_space<vmem>>, vector<1x256x128xf32>,
    %cst_116 = arith.constant dense<0xFF800000> : vector<256xf32>
    %217 = vector.multi_reduction <maximumf>, %190, %cst_116 [0] : vector<128x256xf32> to vector<256xf32>
    %218 = vector.shape_cast %217 : vector<256xf32> to vector<1x256xf32>
    %219 = tpu.iota {dimensions = array<i32: 0>} : vector<128x256xi32>
    %220 = vector.broadcast %218 : vector<1x256xf32> to vector<128x256xf32>
    %221 = arith.cmpf oeq, %190, %220 : vector<128x256xf32>
    %c128_i32_117 = arith.constant 128 : i32
    %222 = vector.broadcast %c128_i32_117 : i32 to vector<128x256xi32>
    %223 = arith.select %221, %219, %222 : vector<128x256xi1>, vector<128x256xi32>
    %cst_118 = arith.constant dense<2147483647> : vector<256xi32>
    %224 = vector.multi_reduction <minsi>, %223, %cst_118 [0] : vector<128x256xi32> to vector<256xi32>
    %225 = vector.shape_cast %224 : vector<256xi32> to vector<1x256xi32>
    %c0_119 = arith.constant 0 : index
    %c0_120 = arith.constant 0 : index
    %c256_121 = arith.constant 256 : index
    %226 = vector.load %arg16[%c0_119, %c0_120, %c256_121] : memref<1x1x1024xf32, #tpu.memory_space<vmem>>, vector<1x1x256xf32>
    %227 = vector.shape_cast %226 : vector<1x1x256xf32> to vector<1x256xf32>
    %228 = vector.shape_cast %218 : vector<1x256xf32> to vector<1x1x256xf32>
    tpu.vector_store %arg16[%c0_119, %c0_120, %c256_121], %228 {strides = array<i32>} : memref<1x1x1024xf32, #tpu.memory_space<vmem>>, vector<1x1x256xf32>,
    %c0_122 = arith.constant 0 : index
    %c0_123 = arith.constant 0 : index
    %c256_124 = arith.constant 256 : index
    %229 = vector.load %arg18[%c0_122, %c0_123, %c256_124] : memref<1x1x1024xi32, #tpu.memory_space<vmem>>, vector<1x1x256xi32>
    %230 = vector.shape_cast %229 : vector<1x1x256xi32> to vector<1x256xi32>
    %231 = vector.shape_cast %225 : vector<1x256xi32> to vector<1x1x256xi32>
    tpu.vector_store %arg18[%c0_122, %c0_123, %c256_124], %231 {strides = array<i32>} : memref<1x1x1024xi32, #tpu.memory_space<vmem>>, vector<1x1x256xi32>,
    %232 = arith.mulf %213, %213 : vector<256x128xf32>
    %cst_125 = arith.constant dense<0.000000e+00> : vector<128xf32>
    %233 = vector.multi_reduction <add>, %232, %cst_125 [0] : vector<256x128xf32> to vector<128xf32>
    %234 = vector.shape_cast %233 : vector<128xf32> to vector<1x128xf32>
    %235 = arith.addf %165, %212 : vector<1x128xf32>
    %236 = arith.addf %166, %234 : vector<1x128xf32>
    %c0_126 = arith.constant 0 : index
    %c0_127 = arith.constant 0 : index
    %237 = vector.load %arg8[%c0_126, %c0_127] : memref<256x512xbf16, #tpu.memory_space<vmem>>, vector<256x512xbf16>
    %238 = arith.truncf %178 : vector<128x256xf32> to vector<128x256xbf16>
    %cst_128 = arith.constant dense<0.000000e+00> : vector<128x512xf32>
    %239 = tpu.matmul %238, %237, %cst_128 {dimension_numbers = #tpu.dot_dimension_numbers<[1], [0], [0], [1], [0, 0, 1, 1], [], []>} : vector<128x256xbf16>, vector<256x512xbf16>, vector<128x512xf32> -> vector<128x512xf32>
    %c0_129 = arith.constant 0 : index
    %c0_130 = arith.constant 0 : index
    %240 = vector.load %arg9[%c0_129, %c0_130] : memref<256x512xbf16, #tpu.memory_space<vmem>>, vector<256x512xbf16>
    %241 = arith.truncf %218 : vector<1x256xf32> to vector<1x256xbf16>
    %cst_131 = arith.constant dense<0.000000e+00> : vector<1x512xf32>
    %242 = tpu.matmul %241, %240, %cst_131 {dimension_numbers = #tpu.dot_dimension_numbers<[1], [0], [0], [1], [0, 0, 1, 1], [], []>} : vector<1x256xbf16>, vector<256x512xbf16>, vector<1x512xf32> -> vector<1x512xf32>
    %243 = vector.broadcast %242 : vector<1x512xf32> to vector<128x512xf32>
    %244 = arith.addf %239, %243 : vector<128x512xf32>
    %c5 = arith.constant 5 : index
    %c0_132 = arith.constant 0 : index
    %245 = vector.load %arg12[%c5, %c0_132] : memref<8x512xf32, #tpu.memory_space<vmem>>, vector<1x512xf32>
    %246 = vector.broadcast %245 : vector<1x512xf32> to vector<128x512xf32>
    %247 = arith.addf %244, %246 : vector<128x512xf32>
    %cst_133 = arith.constant 0.000000e+00 : f32
    %248 = vector.broadcast %cst_133 : f32 to vector<128x512xf32>
    %249 = arith.cmpf ogt, %247, %248 : vector<128x512xf32>
    %cst_134 = arith.constant 1.000000e-01 : f32
    %250 = vector.broadcast %cst_134 : f32 to vector<128x512xf32>
    %251 = arith.mulf %250, %247 : vector<128x512xf32>
    %252 = arith.select %249, %247, %251 : vector<128x512xi1>, vector<128x512xf32>
    %c0_135 = arith.constant 0 : index
    %c0_136 = arith.constant 0 : index
    %253 = vector.load %arg10[%c0_135, %c0_136] : memref<256x512xbf16, #tpu.memory_space<vmem>>, vector<256x512xbf16>
    %254 = arith.truncf %190 : vector<128x256xf32> to vector<128x256xbf16>
    %cst_137 = arith.constant dense<0.000000e+00> : vector<128x512xf32>
    %255 = tpu.matmul %254, %253, %cst_137 {dimension_numbers = #tpu.dot_dimension_numbers<[1], [0], [0], [1], [0, 0, 1, 1], [], []>} : vector<128x256xbf16>, vector<256x512xbf16>, vector<128x512xf32> -> vector<128x512xf32>
    %c0_138 = arith.constant 0 : index
    %c0_139 = arith.constant 0 : index
    %256 = vector.load %arg11[%c0_138, %c0_139] : memref<256x512xbf16, #tpu.memory_space<vmem>>, vector<256x512xbf16>
    %257 = arith.truncf %196 : vector<1x256xf32> to vector<1x256xbf16>
    %cst_140 = arith.constant dense<0.000000e+00> : vector<1x512xf32>
    %258 = tpu.matmul %257, %256, %cst_140 {dimension_numbers = #tpu.dot_dimension_numbers<[1], [0], [0], [1], [0, 0, 1, 1], [], []>} : vector<1x256xbf16>, vector<256x512xbf16>, vector<1x512xf32> -> vector<1x512xf32>
    %259 = vector.broadcast %258 : vector<1x512xf32> to vector<128x512xf32>
    %260 = arith.addf %255, %259 : vector<128x512xf32>
    %c6 = arith.constant 6 : index
    %c0_141 = arith.constant 0 : index
    %261 = vector.load %arg12[%c6, %c0_141] : memref<8x512xf32, #tpu.memory_space<vmem>>, vector<1x512xf32>
    %262 = vector.broadcast %261 : vector<1x512xf32> to vector<128x512xf32>
    %263 = arith.addf %260, %262 : vector<128x512xf32>
    %cst_142 = arith.constant 0.000000e+00 : f32
    %264 = vector.broadcast %cst_142 : f32 to vector<128x512xf32>
    %265 = arith.cmpf ogt, %263, %264 : vector<128x512xf32>
    %cst_143 = arith.constant 1.000000e-01 : f32
    %266 = vector.broadcast %cst_143 : f32 to vector<128x512xf32>
    %267 = arith.mulf %266, %263 : vector<128x512xf32>
    %268 = arith.select %265, %263, %267 : vector<128x512xi1>, vector<128x512xf32>
    %269 = tpu.transpose %252, [1, 0] : vector<128x512xf32> -> vector<512x128xf32>
    %c0_144 = arith.constant 0 : index
    %c512 = arith.constant 512 : index
    %c0_145 = arith.constant 0 : index
    %270 = vector.load %arg13[%c0_144, %c512, %c0_145] : memref<1x1024x128xf32, #tpu.memory_space<vmem>>, vector<1x512x128xf32>
    %271 = vector.shape_cast %270 : vector<1x512x128xf32> to vector<512x128xf32>
    %272 = vector.shape_cast %269 : vector<512x128xf32> to vector<1x512x128xf32>
    tpu.vector_store %arg13[%c0_144, %c512, %c0_145], %272 {strides = array<i32>} : memref<1x1024x128xf32, #tpu.memory_space<vmem>>, vector<1x512x128xf32>,
    %cst_146 = arith.constant dense<0xFF800000> : vector<512xf32>
    %273 = vector.multi_reduction <maximumf>, %252, %cst_146 [0] : vector<128x512xf32> to vector<512xf32>
    %274 = vector.shape_cast %273 : vector<512xf32> to vector<1x512xf32>
    %275 = tpu.iota {dimensions = array<i32: 0>} : vector<128x512xi32>
    %276 = vector.broadcast %274 : vector<1x512xf32> to vector<128x512xf32>
    %277 = arith.cmpf oeq, %252, %276 : vector<128x512xf32>
    %c128_i32_147 = arith.constant 128 : i32
    %278 = vector.broadcast %c128_i32_147 : i32 to vector<128x512xi32>
    %279 = arith.select %277, %275, %278 : vector<128x512xi1>, vector<128x512xi32>
    %cst_148 = arith.constant dense<2147483647> : vector<512xi32>
    %280 = vector.multi_reduction <minsi>, %279, %cst_148 [0] : vector<128x512xi32> to vector<512xi32>
    %281 = vector.shape_cast %280 : vector<512xi32> to vector<1x512xi32>
    %c0_149 = arith.constant 0 : index
    %c0_150 = arith.constant 0 : index
    %c512_151 = arith.constant 512 : index
    %282 = vector.load %arg15[%c0_149, %c0_150, %c512_151] : memref<1x1x1024xf32, #tpu.memory_space<vmem>>, vector<1x1x512xf32>
    %283 = vector.shape_cast %282 : vector<1x1x512xf32> to vector<1x512xf32>
    %284 = vector.shape_cast %274 : vector<1x512xf32> to vector<1x1x512xf32>
    tpu.vector_store %arg15[%c0_149, %c0_150, %c512_151], %284 {strides = array<i32>} : memref<1x1x1024xf32, #tpu.memory_space<vmem>>, vector<1x1x512xf32>,
    %c0_152 = arith.constant 0 : index
    %c0_153 = arith.constant 0 : index
    %c512_154 = arith.constant 512 : index
    %285 = vector.load %arg17[%c0_152, %c0_153, %c512_154] : memref<1x1x1024xi32, #tpu.memory_space<vmem>>, vector<1x1x512xi32>
    %286 = vector.shape_cast %285 : vector<1x1x512xi32> to vector<1x512xi32>
    %287 = vector.shape_cast %281 : vector<1x512xi32> to vector<1x1x512xi32>
    tpu.vector_store %arg17[%c0_152, %c0_153, %c512_154], %287 {strides = array<i32>} : memref<1x1x1024xi32, #tpu.memory_space<vmem>>, vector<1x1x512xi32>,
    %288 = arith.mulf %269, %269 : vector<512x128xf32>
    %cst_155 = arith.constant dense<0.000000e+00> : vector<128xf32>
    %289 = vector.multi_reduction <add>, %288, %cst_155 [0] : vector<512x128xf32> to vector<128xf32>
    %290 = vector.shape_cast %289 : vector<128xf32> to vector<1x128xf32>
    %291 = tpu.transpose %268, [1, 0] : vector<128x512xf32> -> vector<512x128xf32>
    %c0_156 = arith.constant 0 : index
    %c512_157 = arith.constant 512 : index
    %c0_158 = arith.constant 0 : index
    %292 = vector.load %arg14[%c0_156, %c512_157, %c0_158] : memref<1x1024x128xf32, #tpu.memory_space<vmem>>, vector<1x512x128xf32>
    %293 = vector.shape_cast %292 : vector<1x512x128xf32> to vector<512x128xf32>
    %294 = vector.shape_cast %291 : vector<512x128xf32> to vector<1x512x128xf32>
    tpu.vector_store %arg14[%c0_156, %c512_157, %c0_158], %294 {strides = array<i32>} : memref<1x1024x128xf32, #tpu.memory_space<vmem>>, vector<1x512x128xf32>,
    %cst_159 = arith.constant dense<0xFF800000> : vector<512xf32>
    %295 = vector.multi_reduction <maximumf>, %268, %cst_159 [0] : vector<128x512xf32> to vector<512xf32>
    %296 = vector.shape_cast %295 : vector<512xf32> to vector<1x512xf32>
    %297 = tpu.iota {dimensions = array<i32: 0>} : vector<128x512xi32>
    %298 = vector.broadcast %296 : vector<1x512xf32> to vector<128x512xf32>
    %299 = arith.cmpf oeq, %268, %298 : vector<128x512xf32>
    %c128_i32_160 = arith.constant 128 : i32
    %300 = vector.broadcast %c128_i32_160 : i32 to vector<128x512xi32>
    %301 = arith.select %299, %297, %300 : vector<128x512xi1>, vector<128x512xi32>
    %cst_161 = arith.constant dense<2147483647> : vector<512xi32>
    %302 = vector.multi_reduction <minsi>, %301, %cst_161 [0] : vector<128x512xi32> to vector<512xi32>
    %303 = vector.shape_cast %302 : vector<512xi32> to vector<1x512xi32>
    %c0_162 = arith.constant 0 : index
    %c0_163 = arith.constant 0 : index
    %c512_164 = arith.constant 512 : index
    %304 = vector.load %arg16[%c0_162, %c0_163, %c512_164] : memref<1x1x1024xf32, #tpu.memory_space<vmem>>, vector<1x1x512xf32>
    %305 = vector.shape_cast %304 : vector<1x1x512xf32> to vector<1x512xf32>
    %306 = vector.shape_cast %296 : vector<1x512xf32> to vector<1x1x512xf32>
    tpu.vector_store %arg16[%c0_162, %c0_163, %c512_164], %306 {strides = array<i32>} : memref<1x1x1024xf32, #tpu.memory_space<vmem>>, vector<1x1x512xf32>,
    %c0_165 = arith.constant 0 : index
    %c0_166 = arith.constant 0 : index
    %c512_167 = arith.constant 512 : index
    %307 = vector.load %arg18[%c0_165, %c0_166, %c512_167] : memref<1x1x1024xi32, #tpu.memory_space<vmem>>, vector<1x1x512xi32>
    %308 = vector.shape_cast %307 : vector<1x1x512xi32> to vector<1x512xi32>
    %309 = vector.shape_cast %303 : vector<1x512xi32> to vector<1x1x512xi32>
    tpu.vector_store %arg18[%c0_165, %c0_166, %c512_167], %309 {strides = array<i32>} : memref<1x1x1024xi32, #tpu.memory_space<vmem>>, vector<1x1x512xi32>,
    %310 = arith.mulf %291, %291 : vector<512x128xf32>
    %cst_168 = arith.constant dense<0.000000e+00> : vector<128xf32>
    %311 = vector.multi_reduction <add>, %310, %cst_168 [0] : vector<512x128xf32> to vector<128xf32>
    %312 = vector.shape_cast %311 : vector<128xf32> to vector<1x128xf32>
    %313 = arith.addf %235, %290 : vector<1x128xf32>
    %314 = arith.addf %236, %312 : vector<1x128xf32>
    %315 = math.sqrt %313 : vector<1x128xf32>
    %c0_169 = arith.constant 0 : index
    %c0_170 = arith.constant 0 : index
    %c0_171 = arith.constant 0 : index
    %316 = vector.load %arg19[%c0_169, %c0_170, %c0_171] : memref<1x1x128xf32, #tpu.memory_space<vmem>>, vector<1x1x128xf32>
    %317 = vector.shape_cast %316 : vector<1x1x128xf32> to vector<1x128xf32>
    %318 = vector.shape_cast %315 : vector<1x128xf32> to vector<1x1x128xf32>
    tpu.vector_store %arg19[%c0_169, %c0_170, %c0_171], %318 {strides = array<i32>} : memref<1x1x128xf32, #tpu.memory_space<vmem>>, vector<1x1x128xf32>,
    %319 = math.sqrt %314 : vector<1x128xf32>
    %c0_172 = arith.constant 0 : index
    %c0_173 = arith.constant 0 : index
    %c0_174 = arith.constant 0 : index
    %320 = vector.load %arg20[%c0_172, %c0_173, %c0_174] : memref<1x1x128xf32, #tpu.memory_space<vmem>>, vector<1x1x128xf32>
    %321 = vector.shape_cast %320 : vector<1x1x128xf32> to vector<1x128xf32>
    %322 = vector.shape_cast %319 : vector<1x128xf32> to vector<1x1x128xf32>
    tpu.vector_store %arg20[%c0_172, %c0_173, %c0_174], %322 {strides = array<i32>} : memref<1x1x128xf32, #tpu.memory_space<vmem>>, vector<1x1x128xf32>,
    return
  }
  func.func @transform_0(%arg0: i32) -> (i32, i32, i32) {
    %c0_i32 = arith.constant 0 : i32
    %c0_i32_0 = arith.constant 0 : i32
    %c0_i32_1 = arith.constant 0 : i32
    return %arg0, %c0_i32, %c0_i32_0 : i32, i32, i32
  }
  func.func @transform_1(%arg0: i32) -> (i32, i32) {
    %c0_i32 = arith.constant 0 : i32
    %c0_i32_0 = arith.constant 0 : i32
    %c0_i32_1 = arith.constant 0 : i32
    return %c0_i32, %c0_i32_0 : i32, i32
  }
  func.func @transform_2(%arg0: i32) -> (i32, i32) {
    %c0_i32 = arith.constant 0 : i32
    %c0_i32_0 = arith.constant 0 : i32
    %c0_i32_1 = arith.constant 0 : i32
    return %c0_i32, %c0_i32_0 : i32, i32
  }
  func.func @transform_3(%arg0: i32) -> (i32, i32) {
    %c0_i32 = arith.constant 0 : i32
    %c0_i32_0 = arith.constant 0 : i32
    %c0_i32_1 = arith.constant 0 : i32
    return %c0_i32, %c0_i32_0 : i32, i32
  }
  func.func @transform_4(%arg0: i32) -> (i32, i32) {
    %c0_i32 = arith.constant 0 : i32
    %c0_i32_0 = arith.constant 0 : i32
    %c0_i32_1 = arith.constant 0 : i32
    return %c0_i32, %c0_i32_0 : i32, i32
  }
  func.func @transform_5(%arg0: i32) -> (i32, i32) {
    %c0_i32 = arith.constant 0 : i32
    %c0_i32_0 = arith.constant 0 : i32
    %c0_i32_1 = arith.constant 0 : i32
    return %c0_i32, %c0_i32_0 : i32, i32
  }
  func.func @transform_6(%arg0: i32) -> (i32, i32) {
    %c0_i32 = arith.constant 0 : i32
    %c0_i32_0 = arith.constant 0 : i32
    %c0_i32_1 = arith.constant 0 : i32
    return %c0_i32, %c0_i32_0 : i32, i32
  }
  func.func @transform_7(%arg0: i32) -> (i32, i32) {
    %c0_i32 = arith.constant 0 : i32
    %c0_i32_0 = arith.constant 0 : i32
    %c0_i32_1 = arith.constant 0 : i32
    return %c0_i32, %c0_i32_0 : i32, i32
  }
  func.func @transform_8(%arg0: i32) -> (i32, i32) {
    %c0_i32 = arith.constant 0 : i32
    %c0_i32_0 = arith.constant 0 : i32
    %c0_i32_1 = arith.constant 0 : i32
    return %c0_i32, %c0_i32_0 : i32, i32
  }
  func.func @transform_9(%arg0: i32) -> (i32, i32) {
    %c0_i32 = arith.constant 0 : i32
    %c0_i32_0 = arith.constant 0 : i32
    %c0_i32_1 = arith.constant 0 : i32
    return %c0_i32, %c0_i32_0 : i32, i32
  }
  func.func @transform_10(%arg0: i32) -> (i32, i32) {
    %c0_i32 = arith.constant 0 : i32
    %c0_i32_0 = arith.constant 0 : i32
    %c0_i32_1 = arith.constant 0 : i32
    return %c0_i32, %c0_i32_0 : i32, i32
  }
  func.func @transform_11(%arg0: i32) -> (i32, i32) {
    %c0_i32 = arith.constant 0 : i32
    %c0_i32_0 = arith.constant 0 : i32
    %c0_i32_1 = arith.constant 0 : i32
    return %c0_i32, %c0_i32_0 : i32, i32
  }
  func.func @transform_12(%arg0: i32) -> (i32, i32, i32) {
    %c0_i32 = arith.constant 0 : i32
    %c0_i32_0 = arith.constant 0 : i32
    %c0_i32_1 = arith.constant 0 : i32
    return %arg0, %c0_i32, %c0_i32_0 : i32, i32, i32
  }
  func.func @transform_13(%arg0: i32) -> (i32, i32, i32) {
    %c0_i32 = arith.constant 0 : i32
    %c0_i32_0 = arith.constant 0 : i32
    %c0_i32_1 = arith.constant 0 : i32
    return %arg0, %c0_i32, %c0_i32_0 : i32, i32, i32
  }
  func.func @transform_14(%arg0: i32) -> (i32, i32, i32) {
    %c0_i32 = arith.constant 0 : i32
    %c0_i32_0 = arith.constant 0 : i32
    %c0_i32_1 = arith.constant 0 : i32
    return %arg0, %c0_i32, %c0_i32_0 : i32, i32, i32
  }
  func.func @transform_15(%arg0: i32) -> (i32, i32, i32) {
    %c0_i32 = arith.constant 0 : i32
    %c0_i32_0 = arith.constant 0 : i32
    %c0_i32_1 = arith.constant 0 : i32
    return %arg0, %c0_i32, %c0_i32_0 : i32, i32, i32
  }
  func.func @transform_16(%arg0: i32) -> (i32, i32, i32) {
    %c0_i32 = arith.constant 0 : i32
    %c0_i32_0 = arith.constant 0 : i32
    %c0_i32_1 = arith.constant 0 : i32
    return %arg0, %c0_i32, %c0_i32_0 : i32, i32, i32
  }
  func.func @transform_17(%arg0: i32) -> (i32, i32, i32) {
    %c0_i32 = arith.constant 0 : i32
    %c0_i32_0 = arith.constant 0 : i32
    %c0_i32_1 = arith.constant 0 : i32
    return %arg0, %c0_i32, %c0_i32_0 : i32, i32, i32
  }
  func.func @transform_18(%arg0: i32) -> (i32, i32, i32) {
    %c0_i32 = arith.constant 0 : i32
    %c0_i32_0 = arith.constant 0 : i32
    %c0_i32_1 = arith.constant 0 : i32
    return %arg0, %c0_i32, %c0_i32_0 : i32, i32, i32
  }
  func.func @transform_19(%arg0: i32) -> (i32, i32, i32) {
    %c0_i32 = arith.constant 0 : i32
    %c0_i32_0 = arith.constant 0 : i32
    %c0_i32_1 = arith.constant 0 : i32
    return %arg0, %c0_i32, %c0_i32_0 : i32, i32, i32
  }
}

</mosaic_0001>

<bundles_post_ra>
// kernel: finet_encoder_pallas.1
= control target key start
LH: loop header
LB: loop body
LE: loop exit
PB: predicated region body
PF: predicated region fallthrough
CT: control target
= control target key end

     0   :  { %s16011_s0 = inlined_call_operand.vmem [shape: f32[2,128,3], index: 0, kind: input, shape index: {}]   ;;  %s16012_s1 = inlined_call_operand.vmem [shape: bf16[3,128], index: 1, kind: input, shape index: {}]   ;;  %s16013_s2 = inlined_call_operand.hbm [shape: bf16[128,128], index: 2, kind: input, shape index: {}]   ;;  %s16014_s3 = inlined_call_operand.vmem [shape: bf16[128,256], index: 3, kind: input, shape index: {}]   ;;  %s16015_s4 = inlined_call_operand.vmem [shape: bf16[128,256], index: 4, kind: input, shape index: {}]   ;;  %s16016_s5 = inlined_call_operand.hbm [shape: bf16[128,256], index: 5, kind: input, shape index: {}]   ;;  %s16017_s6 = inlined_call_operand.hbm [shape: bf16[128,256], index: 6, kind: input, shape index: {}]   ;;  %s16018_s7 = inlined_call_operand.hbm [shape: bf16[256,512], index: 7, kind: input, shape index: {}]   ;;  %s16019_s8 = inlined_call_operand.hbm [shape: bf16[256,512], index: 8, kind: input, shape index: {}]   ;;  %s16020_s9 = inlined_call_operand.hbm [shape: bf16[256,512], index: 9, kind: input, shape index: {}]   ;;  %s16021_s10 = inlined_call_operand.hbm [shape: bf16[256,512], index: 10, kind: input, shape index: {}]   ;;  %s16022_s11 = inlined_call_operand.hbm [shape: f32[8,512], index: 11, kind: input, shape index: {}]   ;;  %s16023_s12 = inlined_call_operand.hbm [shape: f32[2,1024,128], index: 12, kind: output, shape index: {0}]   ;;  %s16024_s13 = inlined_call_operand.hbm [shape: f32[2,1024,128], index: 13, kind: output, shape index: {1}]   ;;  %s16025_s14 = inlined_call_operand.vmem [shape: f32[2,1,1024], index: 14, kind: output, shape index: {2}]   ;;  %s16026_s15 = inlined_call_operand.vmem [shape: f32[2,1,1024], index: 15, kind: output, shape index: {3}]   ;;  %s16027_s16 = inlined_call_operand.vmem [shape: s32[2,1,1024], index: 16, kind: output, shape index: {4}]   ;;  %s16028_s17 = inlined_call_operand.vmem [shape: s32[2,1,1024], index: 17, kind: output, shape index: {5}]   ;;  %s16029_s18 = inlined_call_operand.hbm [shape: f32[2,1,128], index: 18, kind: output, shape index: {6}]   ;;  %s16030_s19 = inlined_call_operand.hbm [shape: f32[2,1,128], index: 19, kind: output, shape index: {7}]  }
   0x1   :  { %16463 = sst [smem:[#allocation141_spill]] %s16011_s0 }
   0x2   :  { %16464 = sst [smem:[#allocation142_spill]] %s16012_s1 }
   0x3   :  { %16465 = sst [smem:[#allocation143_spill]] %s16013_s2 }
   0x4   :  { %16466 = sst [smem:[#allocation144_spill]] %s16014_s3 }
   0x5   :  { %16467 = sst [smem:[#allocation145_spill]] %s16015_s4 }
   0x6   :  { %16468 = sst [smem:[#allocation146_spill]] %s16016_s5 }
   0x7   :  { %16469 = sst [smem:[#allocation147_spill]] %s16018_s7 }
   0x8   :  { %16470 = sst [smem:[#allocation148_spill]] %s16020_s9 }
   0x9   :  { %25 = vsyncpa [#allocation3], 0 }
   0xa   :  { %26 = vsyncpa [#allocation6], 0 }
   0xb   :  { %27 = vsyncpa [#allocation9], 0 }
   0xc   :  { %28 = vsyncpa [#allocation12], 0 }
   0xd   :  { %29 = vsyncpa [#allocation15], 0 }
   0xe   :  { %30 = vsyncpa [#allocation4], 0 }
   0xf   :  { %32 = vsyncpa [#allocation4 + $0x1], 0 }
  0x10   :  { %33 = vsyncpa [#allocation18], 0 }
  0x11   :  { %35 = vsyncpa [#allocation18 + $0x1], 0 }
  0x12   :  { %36 = vsyncpa [#allocation21], 0 }
  0x13   :  { %38 = vsyncpa [#allocation21 + $0x1], 0  ;;  %s10275_s0 = smov 0   ;;  %s10277_s30 = smov 0  }
  0x14   :  { %s10279_s20 = smov 0   ;;  %s10281_s21 = smov 0  }
  0x15 LB: > { %16471 = sst [smem:[#allocation30_spill]] %s10137_s0  ;;  %s10296_s1 = sadd.s32 4294967295, %s10149_s21   ;;  %s10149_s21 = sphi %s10281_s21, %s17161_s21   ;;  %s10145_s20 = sphi %s10279_s20, %s17163_s20   ;;  %s10141_s30 = sphi %s10277_s30, %s17165_s30   ;;  %s10137_s0 = sphi %s10275_s0, %s17164_s0  }
  0x16   : > { %16472 = sst [smem:[#allocation31_spill]] %s10145_s20  ;;  %s16032_s22 = sadd.s32 4294967294, %s10149_s21  }
  0x17   : > { %16473 = sst [smem:[#allocation32_spill]] %s10149_s21  ;;  %s10300_s2 = sadd.s32 1, %s10149_s21  }
  0x18   : > { %16474 = sst [smem:[#allocation33_spill]] %s10300_s2  ;;  %s308_s23 = sadd.s32 1, %s10145_s20 }
  0x19   : > { %s305_s24 = ssub.s32 %s10149_s21, %s10300_s2  ;;  %p318_p0 = scmp.ne.s32.totalorder %s10145_s20, %s10141_s30 }
  0x1a   : > { %p306_p1 = scmp.eq.s32.totalorder %s305_s24, 0  ;;  %p319_p2 = scmp.eq.s32.totalorder %s10296_s1, 1 }
  0x1b   : > { %p324_p3 = scmp.ne.s32.totalorder %s10141_s30, %s10137_s0  ;;  %p325_p4 = scmp.eq.s32.totalorder %s16032_s22, 1 }
  0x1c   : > { %s10313_s25 = scalar_select %p306_p1, %s10145_s20, %s308_s23  }
  0x1d   : > { %p10315_p5 = por %p319_p2, %p318_p0  ;;  %p10319_p6 = por %p325_p4, %p324_p3 }
  0x1e   : > { %16475 = sst [smem:[#allocation34_spill]] %s10313_s25  ;;  %p8673_p7 = scmp.ge.s32.totalorder %s10149_s21, 1 }
  0x1f   : > { %s16477_s26 = scalar_select %p10319_p6, 1, 0 }
  0x20   : > { %p514_p8 = scmp.lt.s32.totalorder %s10149_s21, 3  ;;  %p16042_p9 = scmp.eq.s32.totalorder %s10296_s1, 0 }
  0x21   : > { %16478 = sst [smem:[#allocation35_spill]] %s16477_s26  ;;  %s10151_s28 = smov [#allocation5]  }
  0x22   : > { %p10326_p10 = pnand %p8673_p7, %p514_p8  ;;  %s548_s29 = sshll.u32 %s10151_s28, 4  ;;  %s549_s29 = int_to_ptr.vmem [resolvable:$true] %s548_s29 }
  0x23   : > { %s10152_s24 = smov [#allocation8]   ;;  %s9786_s20 = scalar_lea.vmem %s549_s29, 2048 }
  0x24   : > { %p9164_p11 = pneg %p10326_p10  ;;  %s574_s22 = sshll.u32 %s10152_s24, 4  ;;  %s575_s22 = int_to_ptr.vmem [resolvable:$true] %s574_s22 }
  0x25   : > { %p9787_p0 = scmp.ne.s32.totalorder %s549_s29, %s9786_s20  ;;  %p9794_p3 = scmp.lt.s32.totalorder %s549_s29, %s549_s29 }
  0x26   : > { %p10334_p12 = pnand %p16042_p9, %p9164_p11  ;;  %p9795_p4 = scmp.lt.s32.totalorder %s9786_s20, %s9786_s20 }
  0x28   : > { %p10340_p13 = pneg %p10334_p12  ;;  %p9796_p7 = por %p9795_p4, %p9794_p3 }
  0x2a   : > { %p9789_p1 = pnand %p9787_p0, %p10340_p13 }
  0x2c   : > { %p9790_p2 = pneg %p9789_p1 }
  0x2e   : > { %p9797_p8 = pnand %p9796_p7, %p9790_p2 }
  0x30   : > { %9800 = shalt.err (!%p9797_p8)
}
  0x31   : > { %s16040_s28 = smov 128   ;;  %s16041_s24 = smov 8  }
  0x32   : > { %s16482_s5 = sld [smem:[#allocation146_spill]]  ;;  %s9812_s0 = scalar_lea.vmem %s575_s22, 8192 }
  0x33   : > { %p9813_p11 = scmp.ne.s32.totalorder %s575_s22, %s9812_s0  ;;  %p9820_p3 = scmp.lt.s32.totalorder %s575_s22, %s575_s22 }
  0x34   : > { %p9821_p2 = scmp.lt.s32.totalorder %s9812_s0, %s9812_s0 }
  0x35   : > { %p9815_p0 = pnand %p9813_p11, %p10340_p13 }
  0x36   : > { %p9822_p4 = por %p9821_p2, %p9820_p3 }
  0x37   : > { %p9816_p1 = pneg %p9815_p0 }
  0x38   : > { %9170 = dma.hbm_to_vmem [thread:$0]  (!%p10334_p12), %s16482_s5, 2048, %s549_s29, [#allocation6], %s16040_s28, %s16040_s28, %s16041_s24  }
  0x39   : > { %p9823_p7 = pnand %p9822_p4, %p9816_p1 }
  0x3b   : > { %9826 = shalt.err (!%p9823_p7)
}
  0x3c   : > { %s16043_s20 = smov 256   ;;  %s16045_s21 = smov 16  }
  0x3d   : > { %s16483_s7 = sld [smem:[#allocation147_spill]]  ;;  %s10157_s29 = smov [#allocation11]  }
  0x3e   : > { %s600_s28 = sshll.u32 %s10157_s29, 4  ;;  %s10158_s24 = smov [#allocation2]   ;;  %s601_s28 = int_to_ptr.vmem [resolvable:$true] %s600_s28 }
  0x3f   : > { %s529_s5 = sshll.u32 %s10158_s24, 4  ;;  %s9838_s0 = scalar_lea.vmem %s601_s28, 8192  ;;  %s530_s5 = int_to_ptr.vmem [resolvable:$true] %s529_s5 }
  0x40   : > { %p9839_p8 = scmp.ne.s32.totalorder %s601_s28, %s9838_s0  ;;  %p9846_p1 = scmp.lt.s32.totalorder %s601_s28, %s601_s28 }
  0x41   : > { %p9847_p3 = scmp.lt.s32.totalorder %s9838_s0, %s9838_s0 }
  0x42   : > { %p9841_p11 = pnand %p9839_p8, %p10340_p13 }
  0x43   : > { %9176 = dma.hbm_to_vmem [thread:$0]  (!%p10334_p12), %s16483_s7, 8192, %s575_s22, [#allocation9], %s16043_s20, %s16043_s20, %s16045_s21  }
  0x44   : > { %p9842_p0 = pneg %p9841_p11  ;;  %p9848_p2 = por %p9847_p3, %p9846_p1 }
  0x46   : > { %p9849_p4 = pnand %p9848_p2, %p9842_p0 }
  0x48   : > { %9852 = shalt.err (!%p9849_p4)
}
  0x49   : > { %s16484_s9 = sld [smem:[#allocation148_spill]]  ;;  %s9864_s24 = scalar_lea.vmem %s530_s5, 1024 }
  0x4a   : > { %p9865_p7 = scmp.ne.s32.totalorder %s530_s5, %s9864_s24  ;;  %p9872_p9 = scmp.lt.s32.totalorder %s530_s5, %s530_s5 }
  0x4b   : > { %p9873_p6 = scmp.lt.s32.totalorder %s9864_s24, %s9864_s24 }
  0x4c   : > { %p9867_p8 = pnand %p9865_p7, %p10340_p13 }
  0x4d   : > { %p9874_p1 = por %p9873_p6, %p9872_p9 }
  0x4e   : > { %p9868_p11 = pneg %p9867_p8 }
  0x4f   : > { %9182 = dma.hbm_to_vmem [thread:$0]  (!%p10334_p12), %s16484_s9, 8192, %s601_s28, [#allocation12], %s16043_s20, %s16043_s20, %s16045_s21  }
  0x50   : > { %p9875_p0 = pnand %p9874_p1, %p9868_p11 }
  0x52   : > { %9878 = shalt.err (!%p9875_p0)
}
  0x53   : > { %s10159_s26 = smov 64   ;;  %s10160_s29 = smov 4  }
  0x54   : > { %s16485_s22 = sld [smem:[#allocation143_spill]]  ;;  %s10161_s28 = smov [#allocation7]  }
  0x55   : > { %s561_s2 = sshll.u32 %s10161_s28, 4  ;;  %s10162_s20 = smov [#allocation10]   ;;  %s562_s2 = int_to_ptr.vmem [resolvable:$true] %s561_s2 }
  0x56   : > { %s587_s21 = sshll.u32 %s10162_s20, 4  ;;  %s9890_s9 = scalar_lea.vmem %s562_s2, 2048  ;;  %s588_s21 = int_to_ptr.vmem [resolvable:$true] %s587_s21 }
  0x57   : > { %p9891_p3 = scmp.ne.s32.totalorder %s562_s2, %s9890_s9  ;;  %p9898_p2 = scmp.lt.s32.totalorder %s562_s2, %s562_s2 }
  0x58   : > { %p9899_p4 = scmp.lt.s32.totalorder %s9890_s9, %s9890_s9 }
  0x59   : > { %p9893_p6 = pnand %p9891_p3, %p10340_p13 }
  0x5a   : > { %9167 = dma.hbm_to_vmem [thread:$0]  (!%p10334_p12), %s16485_s22, 1024, %s530_s5, [#allocation3], %s10159_s26, %s10159_s26, %s10160_s29  }
  0x5b   : > { %p9894_p9 = pneg %p9893_p6  ;;  %p9900_p7 = por %p9899_p4, %p9898_p2 }
  0x5d   : > { %p9901_p8 = pnand %p9900_p7, %p9894_p9 }
  0x5f   : > { %9904 = shalt.err (!%p9901_p8)
}
  0x60   : > { %s16486_s7 = smov 8   ;;  %s16487_s5 = smov 128  }
  0x61   : > { %9173 = dma.hbm_to_vmem [thread:$0]  (!%p10334_p12), %s16017_s6, 2048, %s562_s2, [#allocation6], %s16487_s5, %s16487_s5, %s16486_s7  }
  0x62   : > { %s9916_s20 = scalar_lea.vmem %s588_s21, 8192  ;;  %p9924_p3 = scmp.lt.s32.totalorder %s588_s21, %s588_s21 }
  0x63   : > { %p9917_p11 = scmp.ne.s32.totalorder %s588_s21, %s9916_s20  ;;  %p9925_p6 = scmp.lt.s32.totalorder %s9916_s20, %s9916_s20 }
  0x65   : > { %p9919_p1 = pnand %p9917_p11, %p10340_p13  ;;  %p9926_p2 = por %p9925_p6, %p9924_p3 }
  0x67   : > { %p9920_p0 = pneg %p9919_p1 }
  0x69   : > { %p9927_p9 = pnand %p9926_p2, %p9920_p0 }
  0x6b   : > { %9930 = shalt.err (!%p9927_p9)
}
  0x6c   : > { %s16488_s9 = smov 16   ;;  %s16489_s29 = smov 256  }
  0x6d   : > { %9179 = dma.hbm_to_vmem [thread:$0]  (!%p10334_p12), %s16019_s8, 8192, %s588_s21, [#allocation9], %s16489_s29, %s16489_s29, %s16488_s9  }
  0x6e   : > { %s10163_s28 = smov [#allocation13]   ;;  %s10164_s7 = smov [#allocation14]  }
  0x6f   : > { %s613_s2 = sshll.u32 %s10163_s28, 4  ;;  %s627_s5 = sshll.u32 %s10164_s7, 4  ;;  %s614_s2 = int_to_ptr.vmem [resolvable:$true] %s613_s2  ;;  %s628_s5 = int_to_ptr.vmem [resolvable:$true] %s627_s5 }
  0x70   : > { %s9942_s24 = scalar_lea.vmem %s614_s2, 8192  ;;  %p9950_p11 = scmp.lt.s32.totalorder %s614_s2, %s614_s2 }
  0x71   : > { %p9943_p4 = scmp.ne.s32.totalorder %s614_s2, %s9942_s24  ;;  %p9951_p1 = scmp.lt.s32.totalorder %s9942_s24, %s9942_s24 }
  0x73   : > { %p9945_p7 = pnand %p9943_p4, %p10340_p13  ;;  %p9952_p0 = por %p9951_p1, %p9950_p11 }
  0x75   : > { %p9946_p8 = pneg %p9945_p7 }
  0x77   : > { %p9953_p3 = pnand %p9952_p0, %p9946_p8 }
  0x79   : > { %9956 = shalt.err (!%p9953_p3)
}
  0x7a   : > { %9185 = dma.hbm_to_vmem [thread:$0]  (!%p10334_p12), %s16021_s10, 8192, %s614_s2, [#allocation12], %s16489_s29, %s16489_s29, %s16488_s9  }
  0x7b   : > { %s9968_s20 = scalar_lea.vmem %s628_s5, 512  ;;  %p9976_p4 = scmp.lt.s32.totalorder %s628_s5, %s628_s5 }
  0x7c   : > { %p9969_p6 = scmp.ne.s32.totalorder %s628_s5, %s9968_s20  ;;  %p9977_p7 = scmp.lt.s32.totalorder %s9968_s20, %s9968_s20 }
  0x7e   : > { %p9971_p2 = pnand %p9969_p6, %p10340_p13  ;;  %p9978_p11 = por %p9977_p7, %p9976_p4 }
  0x80   : > { %p9972_p9 = pneg %p9971_p2 }
  0x82   : > { %p9979_p8 = pnand %p9978_p11, %p9972_p9 }
  0x84   : > { %9982 = shalt.err (!%p9979_p8)
}
  0x85   : > { %9188 = dma.hbm_to_vmem [thread:$0]  (!%p10334_p12), %s16022_s11, 512, %s628_s5, [#allocation15]  }
  0x86   : > { %648 = sbr.rel (%p10326_p10) target bundleno = 2016 (0x7e0), region = 68 }
  0x8b   : > { %p16490_p1 = scmp.eq.s32.totalorder %s10296_s1, 0 }
  0x8d   : > { %10104 = dma.done.wait (%p16490_p1), [#allocation3], 1024   ;;  %p16491_p13 = pmov %p16490_p1 }
  0x8e   : > { %p16492_p0 = pmov %p16490_p1 }
  0x8f   : > { %10106 = vsyncadd (%p16491_p13), [#allocation3], 4294966272 }
  0x90   : > { %10108 = dma.done.wait (%p16492_p0), [#allocation6], 4096   ;;  %p16493_p3 = pmov %p16492_p0 }
  0x91   : > { %p16494_p6 = pmov %p16492_p0 }
  0x92   : > { %10110 = vsyncadd (%p16493_p3), [#allocation6], 4294963200 }
  0x93   : > { %10112 = dma.done.wait (%p16494_p6), [#allocation9], 16384   ;;  %p16495_p12 = pmov %p16492_p0 }
  0x94   : > { %p16496_p10 = pmov %p16492_p0 }
  0x95   : > { %10114 = vsyncadd (%p16495_p12), [#allocation9], 4294950912 }
  0x96   : > { %10116 = dma.done.wait (%p16496_p10), [#allocation12], 16384   ;;  %p16497_p2 = pmov %p16492_p0 }
  0x97   : > { %p16498_p9 = pmov %p16492_p0 }
  0x98   : > { %10118 = vsyncadd (%p16497_p2), [#allocation12], 4294950912 }
  0x99   : > { %10120 = dma.done.wait (%p16498_p9), [#allocation15], 512   ;;  %p16499_p4 = pmov %p16492_p0 }
  0x9a   : > { %vm834_vm0 = vcmask 1040384   ;;  %p761_p7 = scmp.lt.s32.totalorder %s10296_s1, 1  ;;  %vm835_vm1 = vcmask 1041408   ;;  %v10165_v0 = vmov 65535   ;;  %s16500_s29 = sld [smem:[#allocation141_spill]]  ;;  %vm809_vm2 = vcmask 23552  }
  0x9b   : > { %10122 = vsyncadd (%p16499_p4), [#allocation15], 4294966784  ;;  %v836_v1 = vsel %vm834_vm0, 4294967295, %v10165_v0  ;;  %s16501_s5 = sld [smem:[#allocation142_spill]]  ;;  %v9271_v16 = vld [vmem:[#allocation2 + $0x38] sm:$0xff]   ;;  %v9272_v17 = vld [vmem:[#allocation2 + $0x30] sm:$0xff]  }
  0x9c   : > { %s10442_s25 = scalar_select %p761_p7, %s10296_s1, 1  ;;  %v837_v2 = vsel %vm835_vm1, %v836_v1, 0  ;;  %v9273_v20 = vld [vmem:[#allocation2 + $0x28] sm:$0xff]   ;;  %v9274_v23 = vld [vmem:[#allocation2 + $0x20] sm:$0xff]   ;;  %v9275_v28 = vld [vmem:[#allocation2 + $0x18] sm:$0xff]  }
  0x9d   : > { %v9276_v34 = vld [vmem:[#allocation2 + $0x10] sm:$0xff]   ;;  %v9277_v35 = vld [vmem:[#allocation2 + $0x8] sm:$0xff]   ;;  %v9278_v36 = vld [vmem:[#allocation2] sm:$0xff]   ;;  %s16503_s20 = sld [smem:[#allocation144_spill]]  ;;  %s10169_s7 = smov [#allocation16]  }
  0x9e   : > { %s9046_s27 = sshll.u32 %s10442_s25, 7  ;;  %v10477_v38 = vld [vmem:[#allocation14] ss:$0 sm:$0xff]  ;;  %s10575_s24 = sshll.u32 %s10442_s25, 3 }
  0x9f   : > { %s10736_s0 = scalar_lea.vmem %s16027_s16, %s10575_s24  ;;  %s16523_s4 = sld [smem:[#allocation145_spill]] }
  0xa0   : > { %s10448_s28 = scalar_lea.vmem %s16500_s29, %s9046_s27  ;;  %s10813_s29 = sand.u32 1, %s10141_s30  }
  0xa1   : > { %v807_v3 = vld [vmem:[%s16501_s5] sm:$0x3]  ;;  %v784_v5 = vld [vmem:[%s10448_s28 + $0x8] sm:$0xff]  ;;  %v785_v8 = vld [vmem:[%s10448_s28 + $0x10] sm:$0xff]  ;;  %s10167_s5 = smov 64   ;;  %s8692_s2 = sshll.u32 %s10813_s29, 10 }
  0xa2   : > { %v783_v4 = vld [vmem:[%s10448_s28] sm:$0xff]  ;;  %v839_v6 = vand.u32 %v837_v2, %v807_v3  ;;  %v786_v9 = vld [vmem:[%s10448_s28 + $0x18] sm:$0xff]  ;;  %v788_v11 = vld [vmem:[%s10448_s28 + $0x28] sm:$0xff]  ;;  %s10820_s26 = scalar_lea.vmem %s16026_s15, %s10575_s24  ;;  %s10843_s9 = scalar_lea.vmem %s16028_s17, %s10575_s24 }
  0xa3   : > { %v799_v7 = vpack.c.bf16 %v784_v5, %v783_v4  ;;  %v787_v10 = vld [vmem:[%s10448_s28 + $0x20] sm:$0xff]  ;;  %v800_v12 = vpack.c.bf16 %v786_v9, %v785_v8  ;;  %v789_v14 = vld [vmem:[%s10448_s28 + $0x30] sm:$0xff]  ;;  %v790_v15 = vld [vmem:[%s10448_s28 + $0x38] sm:$0xff]  ;;  %s16504_s22 = smov %s16503_s20  ;;  %s10847_s25 = scalar_lea.vmem [#allocation17], %s8692_s2 }
  0xa4   : > { %9074 = vmatprep.subr.bf16.mxu0 %v839_v6  ;;  %v801_v13 = vpack.c.bf16 %v788_v11, %v787_v10  ;;  %v791_v18 = vld [vmem:[%s10448_s28 + $0x40] sm:$0xff]  ;;  %v792_v19 = vld [vmem:[%s10448_s28 + $0x48] sm:$0xff]  ;;  %v802_v21 = vpack.c.bf16 %v790_v15, %v789_v14  ;;  %v793_v24 = vld [vmem:[%s10448_s28 + $0x50] sm:$0xff] }
  0xa5   : > { %9076 = vmatprep.mubr.msk.bf16.mxu0 %vm809_vm2, %v799_v7  ;;  %9075 = vmatpush3.bf16.msra.mxu0 %v839_v6  ;;  %v803_v22 = vpack.c.bf16 %v792_v19, %v791_v18  ;;  %v794_v25 = vld [vmem:[%s10448_s28 + $0x58] sm:$0xff]  ;;  %v795_v26 = vld [vmem:[%s10448_s28 + $0x60] sm:$0xff]  ;;  %v796_v27 = vld [vmem:[%s10448_s28 + $0x68] sm:$0xff] }
  0xa6   : > { %9092 = vmatprep.subr.bf16.mxu0 %v9271_v16  ;;  %v804_v29 = vpack.c.bf16 %v794_v25, %v793_v24  ;;  %v805_v30 = vpack.c.bf16 %v796_v27, %v795_v26  ;;  %v797_v31 = vld [vmem:[%s10448_s28 + $0x70] sm:$0xff]  ;;  %v798_v32 = vld [vmem:[%s10448_s28 + $0x78] sm:$0xff]  ;;  %s10599_s28 = scalar_lea.vmem %s16025_s14, %s10575_s24  ;;  %s9987_s24 = sshll.u32 %s10169_s7, 4  ;;  %s9988_s24 = int_to_ptr.vmem [resolvable:$false] %s9987_s24 }
  0xa7   : > { %v806_v33 = vpack.c.bf16 %v798_v32, %v797_v31 }
  0xa8   : > { %9077 = vmatmul.mubr.msk.bf16.vlgmr.msra.gmra.mxu0 %vm809_vm2, %v800_v12 }
  0xa9   : > { %9080 = vmatprep.mubr.msk.bf16.mxu0 %vm809_vm2, %v801_v13  ;;  %9093 = vmatpush3.bf16.msra.mxu0 %v9271_v16 }
  0xaa   : > { %9094 = vmatprep.subr.bf16.mxu0 %v9272_v17 }
  0xad   : > { %9095 = vmatpush3.bf16.msra.mxu0 %v9272_v17 }
  0xae   : > { %9096 = vmatprep.subr.bf16.mxu0 %v9273_v20 }
  0xb0   : > { %9081 = vmatmul.mubr.msk.bf16.gmra.mxu0 %vm809_vm2, %v802_v21 }
  0xb1   : > { %9084 = vmatprep.mubr.msk.bf16.mxu0 %vm809_vm2, %v803_v22  ;;  %9097 = vmatpush3.bf16.msra.mxu0 %v9273_v20 }
  0xb2   : > { %9098 = vmatprep.subr.bf16.mxu0 %v9274_v23 }
  0xb5   : > { %9099 = vmatpush3.bf16.msra.mxu0 %v9274_v23 }
  0xb6   : > { %9100 = vmatprep.subr.bf16.mxu0 %v9275_v28 }
  0xb8   : > { %9085 = vmatmul.mubr.msk.bf16.gmra.mxu0 %vm809_vm2, %v804_v29 }
  0xb9   : > { %9088 = vmatprep.mubr.msk.bf16.mxu0 %vm809_vm2, %v805_v30  ;;  %9101 = vmatpush3.bf16.msra.mxu0 %v9275_v28 }
  0xba   : > { %9102 = vmatprep.subr.bf16.mxu0 %v9276_v34 }
  0xbd   : > { %9103 = vmatpush3.bf16.msra.mxu0 %v9276_v34 }
  0xbe   : > { %9104 = vmatprep.subr.bf16.mxu0 %v9277_v35 }
  0xc0   : > { %9089 = vmatmul.mubr.msk.bf16.gmra.mxu0 %vm809_vm2, %v806_v33 }
  0xc1   : > { %9105 = vmatpush3.bf16.msra.mxu0 %v9277_v35 }
  0xc2   : > { %9106 = vmatprep.subr.bf16.mxu0 %v9278_v36 }
  0xc5   : > { %9107 = vmatpush3.bf16.msra.mxu0 %v9278_v36 }
 0x168   : > { %v9078_v37 = vpop.f32.mrf.mxu0 }
 0x169   : > { %v884_v41 = vadd.f32 %v9078_v37, %v10477_v38 }
 0x16a   : > { %v875_v39 = vpop.f32.mrf.mxu0 }
 0x16b   : > { %v876_v40 = vadd.f32 %v875_v39, %v10477_v38  ;;  %v956_v49 = vmul.f32 0.1, %v884_v41  ;;  %vm940_vm5 = vcmp.gt.f32.partialorder %v884_v41, 0.0 }
 0x16c   : > { %v9079_v42 = vpop.f32.mrf.mxu0 }
 0x16d   : > { %vm938_vm3 = vcmp.gt.f32.partialorder %v876_v40, 0.0  ;;  %v954_v43 = vmul.f32 0.1, %v876_v40  ;;  %v887_v44 = vadd.f32 %v9079_v42, %v10477_v38  ;;  %v10491_v56 = vsel %vm940_vm5, %v884_v41, %v956_v49 }
 0x16e   : > { %v878_v45 = vpop.f32.mrf.mxu0 }
 0x16f   : > { %vm941_vm4 = vcmp.gt.f32.partialorder %v887_v44, 0.0  ;;  %v957_v46 = vmul.f32 0.1, %v887_v44  ;;  %v879_v47 = vadd.f32 %v878_v45, %v10477_v38  ;;  %v10483_v48 = vsel %vm938_vm3, %v876_v40, %v954_v43 }
 0x170   : > { %v9082_v50 = vpop.f32.mrf.mxu0  ;;  %986 = vxpose.xlu0.b32.start [1/16] %v10483_v48, 128 }
 0x171   : > { %v955_v51 = vmul.f32 0.1, %v879_v47  ;;  %vm939_vm6 = vcmp.gt.f32.partialorder %v879_v47, 0.0  ;;  %v10486_v52 = vsel %vm941_vm4, %v887_v44, %v957_v46  ;;  %v900_v57 = vadd.f32 %v9082_v50, %v10477_v38 }
 0x172   : > { %v891_v53 = vpop.f32.mrf.mxu0  ;;  %v1244_v60 = vpack.c.bf16 %v10486_v52, %v10491_v56 }
 0x173   : > { %v892_v54 = vadd.f32 %v891_v53, %v10477_v38  ;;  %v10489_v55 = vsel %vm939_vm6, %v879_v47, %v955_v51  ;;  %v960_v2 = vmul.f32 0.1, %v900_v57  ;;  %vm944_vm9 = vcmp.gt.f32.partialorder %v900_v57, 0.0 }
 0x174   : > { %v9083_v58 = vpop.f32.mrf.mxu0  ;;  %987 = vxpose.xlu0.b32.cont [2/16] %v10489_v55, 128  ;;  %v1243_v59 = vpack.c.bf16 %v10489_v55, %v10483_v48 }
 0x175   : > { %v903_v61 = vadd.f32 %v9083_v58, %v10477_v38  ;;  %v958_v63 = vmul.f32 0.1, %v892_v54  ;;  %vm942_vm8 = vcmp.gt.f32.partialorder %v892_v54, 0.0  ;;  %v10509_v10 = vsel %vm944_vm9, %v900_v57, %v960_v2 }
 0x176   : > { %v894_v62 = vpop.f32.mrf.mxu0  ;;  %9108 = vmatprep.mubr.bf16.mxu0 %v1243_v59  ;;  %v1036_v39 = vmax.f32 %v10491_v56, %v10509_v10  ;;  %v16047_v2 = vlaneseq }
 0x177   : > { %vm945_vm7 = vcmp.gt.f32.partialorder %v903_v61, 0.0  ;;  %v961_v0 = vmul.f32 0.1, %v903_v61  ;;  %v895_v1 = vadd.f32 %v894_v62, %v10477_v38  ;;  %9109 = vmatmul.mubr.bf16.vlgmr.msra.gmra.mxu0 %v1244_v60  ;;  %v10504_v7 = vsel %vm942_vm8, %v892_v54, %v958_v63 }
 0x178   : > { %v9086_v3 = vpop.f32.mrf.mxu0  ;;  %988 = vxpose.xlu0.b32.cont [3/16] %v10491_v56, 128  ;;  %v1034_v42 = vmax.f32 %v10483_v48, %v10504_v7  ;;  %vm10602_vm3 = vcmp.lt.s32.totalorder %v16047_v2, 64 }
 0x179   : > { %vm943_vm10 = vcmp.gt.f32.partialorder %v895_v1, 0.0  ;;  %v959_v4 = vmul.f32 0.1, %v895_v1  ;;  %v10502_v5 = vsel %vm945_vm7, %v903_v61, %v961_v0  ;;  %v916_v11 = vadd.f32 %v9086_v3, %v10477_v38 }
 0x17a   : > { %v907_v6 = vpop.f32.mrf.mxu0  ;;  %v1246_v15 = vpack.c.bf16 %v10502_v5, %v10509_v10  ;;  %v1037_v36 = vmax.f32 %v10486_v52, %v10502_v5 }
 0x17b   : > { %v10506_v8 = vsel %vm943_vm10, %v895_v1, %v959_v4  ;;  %v908_v9 = vadd.f32 %v907_v6, %v10477_v38  ;;  %v964_v20 = vmul.f32 0.1, %v916_v11  ;;  %vm948_vm13 = vcmp.gt.f32.partialorder %v916_v11, 0.0 }
 0x17c   : > { %v9087_v12 = vpop.f32.mrf.mxu0  ;;  %989 = vxpose.xlu0.b32.cont [4/16] %v10486_v52, 128  ;;  %v1245_v13 = vpack.c.bf16 %v10506_v8, %v10504_v7  ;;  %v1035_v43 = vmax.f32 %v10489_v55, %v10506_v8  ;;  %v10166_v4 = vmov 1966171168  }
 0x17d   : > { %v919_v14 = vadd.f32 %v9087_v12, %v10477_v38  ;;  %v962_v17 = vmul.f32 0.1, %v908_v9  ;;  %vm946_vm12 = vcmp.gt.f32.partialorder %v908_v9, 0.0  ;;  %v10528_v29 = vsel %vm948_vm13, %v916_v11, %v964_v20 }
 0x17e   : > { %v910_v16 = vpop.f32.mrf.mxu0  ;;  %9112 = vmatprep.mubr.bf16.mxu0 %v1245_v13  ;;  %v1040_v49 = vmax.f32 %v1036_v39, %v10528_v29  ;;  %v1150_v6 = vunpack.c.l.s4 %v10166_v4  ;;  %v10571_v11 = vshrl.u32 %v16047_v2, 7 }
 0x17f   : > { %vm949_vm11 = vcmp.gt.f32.partialorder %v919_v14, 0.0  ;;  %v965_v18 = vmul.f32 0.1, %v919_v14  ;;  %v911_v19 = vadd.f32 %v910_v16, %v10477_v38  ;;  %9113 = vmatmul.mubr.bf16.gmra.mxu0 %v1246_v15  ;;  %v10523_v26 = vsel %vm946_vm12, %v908_v9, %v962_v17  ;;  %v9281_v15 = vld [vmem:[%s16504_s22 + $0x70] ss:$8 sps:$4 sm:$0xff]  }
 0x180   : > { %v9090_v21 = vpop.f32.mrf.mxu0  ;;  %990 = vxpose.xlu0.b32.cont [5/16] %v10504_v7, 128  ;;  %v1038_v50 = vmax.f32 %v1034_v42, %v10523_v26  ;;  %16502 = vst [vmem:[#allocation36_spill] sm:$0xff] %v10571_v11  ;;  %v1151_v13 = vunpack.c.0.s8 %v1150_v6  ;;  %v9282_v16 = vld [vmem:[%s16504_s22 + $0x64] ss:$8 sps:$4 sm:$0xff]   ;;  %v10593_v20 = vadd.s32 40, %v10571_v11  ;;  %v9287_v6 = vld [vmem:[%s16504_s22 + $0x50] ss:$8 sps:$4 sm:$0xff]  }
 0x181   : > { %vm947_vm14 = vcmp.gt.f32.partialorder %v911_v19, 0.0  ;;  %v963_v22 = vmul.f32 0.1, %v911_v19  ;;  %v932_v23 = vadd.f32 %v9090_v21, %v10477_v38  ;;  %v10521_v24 = vsel %vm949_vm11, %v919_v14, %v965_v18  ;;  %v9279_v14 = vld [vmem:[%s16503_s20 + $0x74] ss:$8 sps:$4 sm:$0xff]   ;;  %s10824_s20 = scalar_lea.vmem [#allocation16], %s8692_s2 }
 0x182   : > { %v923_v25 = vpop.f32.mrf.mxu0  ;;  %v1248_v35 = vpack.c.bf16 %v10521_v24, %v10528_v29  ;;  %v1041_v44 = vmax.f32 %v1037_v36, %v10521_v24  ;;  %v10587_v18 = vadd.s32 8, %v10571_v11  ;;  %16507 = vst [vmem:[#allocation39_spill] sm:$0xff] %v10593_v20  ;;  %1920 = vmatprep.subr.bf16.mxu1 %v9279_v14  ;;  %v10664_v36 = vadd.s32 56, %v10571_v11  ;;  %v9290_v14 = vld [vmem:[%s16504_s22 + $0x40] ss:$8 sps:$4 sm:$0xff]  }
 0x183   : > { %v10525_v27 = vsel %vm947_vm14, %v911_v19, %v963_v22  ;;  %v924_v28 = vadd.f32 %v923_v25, %v10477_v38  ;;  %v968_v30 = vmul.f32 0.1, %v932_v23  ;;  %vm952_vm15 = vcmp.gt.f32.partialorder %v932_v23, 0.0  ;;  %1921 = vmatpush1.bf16.msra.mxu1 %v9281_v15  ;;  %v9291_v15 = vld [vmem:[%s16504_s22 + $0x34] ss:$8 sps:$4 sm:$0xff]  }
 0x184   : > { %v9091_v31 = vpop.f32.mrf.mxu0  ;;  %991 = vxpose.xlu0.b32.cont [6/16] %v10506_v8, 128  ;;  %v1247_v32 = vpack.c.bf16 %v10525_v27, %v10523_v26  ;;  %v1039_v51 = vmax.f32 %v1035_v43, %v10525_v27  ;;  %16505 = vst [vmem:[#allocation37_spill] sm:$0xff] %v10587_v18  ;;  %v10590_v19 = vadd.s32 32, %v10571_v11  ;;  %v10612_v25 = vadd.s32 72, %v10571_v11  ;;  %1922 = vmatprep.subr.bf16.mxu1 %v9282_v16 }
 0x185   : > { %v966_v33 = vmul.f32 0.1, %v924_v28  ;;  %v935_v34 = vadd.f32 %v9091_v31, %v10477_v38  ;;  %vm950_vm0 = vcmp.gt.f32.partialorder %v924_v28, 0.0  ;;  %v10547_v45 = vsel %vm952_vm15, %v932_v23, %v968_v30  ;;  %v9284_v30 = vld [vmem:[%s16504_s22 + $0x60] ss:$8 sps:$4 sm:$0xff]   ;;  %16518 = vst [vmem:[#allocation48_spill] sm:$0xff] %v10664_v36 }
 0x186   : > { %v926_v37 = vpop.f32.mrf.mxu0  ;;  %9116 = vmatprep.mubr.bf16.mxu0 %v1247_v32  ;;  %v1044_v57 = vmax.f32 %v1040_v49, %v10547_v45  ;;  %16506 = vst [vmem:[#allocation38_spill] sm:$0xff] %v10590_v19  ;;  %v10609_v23 = vadd.s32 64, %v10571_v11  ;;  %16511 = vst [vmem:[#allocation41_spill] sm:$0xff] %v10612_v25  ;;  %v10622_v31 = vadd.s32 104, %v10571_v11  ;;  %v10625_v32 = vsub.s32 %v1151_v13, %v10571_v11 }
 0x187   : > { %vm953_vm1 = vcmp.gt.f32.partialorder %v935_v34, 0.0  ;;  %v969_v40 = vmul.f32 0.1, %v935_v34  ;;  %v927_v41 = vadd.f32 %v926_v37, %v10477_v38  ;;  %9117 = vmatmul.mubr.bf16.gmra.mxu0 %v1248_v35  ;;  %v10550_v46 = vsel %vm950_vm0, %v924_v28, %v966_v33  ;;  %1923 = vmatpush1.bf16.msra.mxu1 %v9284_v30  ;;  %v9294_v30 = vld [vmem:[%s16504_s22 + $0x24] ss:$8 sps:$4 sm:$0xff]  }
 0x188   : > { %992 = vxpose.xlu0.b32.cont [7/16] %v10509_v10, 128  ;;  %v1042_v58 = vmax.f32 %v1038_v50, %v10550_v46  ;;  %16510 = vst [vmem:[#allocation40_spill] sm:$0xff] %v10609_v23  ;;  %v10615_v28 = vadd.s32 96, %v10571_v11  ;;  %16513 = vst [vmem:[#allocation43_spill] sm:$0xff] %v10622_v31  ;;  %v10628_v33 = vadd.s32 16, %v10571_v11  ;;  %v10661_v35 = vadd.s32 48, %v10571_v11 }
 0x189   : > { %v10552_v47 = vsel %vm953_vm1, %v935_v34, %v969_v40  ;;  %vm951_vm2 = vcmp.gt.f32.partialorder %v927_v41, 0.0  ;;  %v967_v38 = vmul.f32 0.1, %v927_v41  ;;  %16514 = vst [vmem:[#allocation44_spill] sm:$0xff] %v10625_v32  ;;  %v10631_v34 = vadd.s32 24, %v10571_v11 }
 0x18a   : > { %v1045_v53 = vmax.f32 %v1041_v44, %v10552_v47  ;;  %v1250_v61 = vpack.c.bf16 %v10552_v47, %v10547_v45  ;;  %16512 = vst [vmem:[#allocation42_spill] sm:$0xff] %v10615_v28  ;;  %16515 = vst [vmem:[#allocation45_spill] sm:$0xff] %v10628_v33  ;;  %v10685_v49 = vadd.s32 88, %v10571_v11 }
 0x18b   : > { %v10558_v54 = vsel %vm951_vm2, %v927_v41, %v967_v38  ;;  %16516 = vst [vmem:[#allocation46_spill] sm:$0xff] %v10631_v34  ;;  %16517 = vst [vmem:[#allocation47_spill] sm:$0xff] %v10661_v35  ;;  %v10682_v38 = vadd.s32 80, %v10571_v11 }
 0x18c   : > { %v1043_v59 = vmax.f32 %v1039_v51, %v10558_v54  ;;  %993 = vxpose.xlu0.b32.cont [8/16] %v10502_v5, 128  ;;  %v1249_v60 = vpack.c.bf16 %v10558_v54, %v10550_v46  ;;  %v1047_v62 = vmax.f32 %v1044_v57, %v1045_v53  ;;  %16520 = vst [vmem:[#allocation50_spill] sm:$0xff] %v10685_v49 }
 0x18d   : > { %16519 = vst [vmem:[#allocation49_spill] sm:$0xff] %v10682_v38 }
 0x18e   : > { %v1046_v63 = vmax.f32 %v1042_v58, %v1043_v59  ;;  %9120 = vmatprep.mubr.bf16.mxu0 %v1249_v60 }
 0x18f   : > { %9121 = vmatmul.mubr.bf16.gmra.mxu0 %v1250_v61 }
 0x190   : > { %v1048_v0 = vmax.f32 %v1046_v63, %v1047_v62  ;;  %994 = vxpose.xlu0.b32.cont [9/16] %v10523_v26, 128 }
 0x192   : > { %v1049_v1 = vrot.slane %v1048_v0, 4 }
 0x194   : > { %v1050_v3 = vmax.f32 %v1048_v0, %v1049_v1  ;;  %995 = vxpose.xlu0.b32.cont [10/16] %v10525_v27, 128 }
 0x196   : > { %v1051_v9 = vrot.slane %v1050_v3, 2 }
 0x198   : > { %v1052_v12 = vmax.f32 %v1050_v3, %v1051_v9  ;;  %996 = vxpose.xlu0.b32.cont [11/16] %v10528_v29, 128 }
 0x19a   : > { %v1053_v17 = vrot.slane %v1052_v12, 1 }
 0x19c   : > { %v10606_v22 = vmax.f32 %v1052_v12, %v1053_v17  ;;  %997 = vxpose.xlu0.b32.cont [12/16] %v10521_v24, 128  ;;  %v9288_v12 = vld [vmem:[%s16504_s22 + $0x44] ss:$8 sps:$4 sm:$0xff]  }
 0x19e   : > { %vm1072_vm4 = vcmp.eq.f32.partialorder %v10483_v48, %v10606_v22  ;;  %vm1073_vm5 = vcmp.eq.f32.partialorder %v10489_v55, %v10606_v22  ;;  %vm1076_vm6 = vcmp.eq.f32.partialorder %v10504_v7, %v10606_v22  ;;  %vm1077_vm7 = vcmp.eq.f32.partialorder %v10506_v8, %v10606_v22  ;;  %1147 = vst.msk [vmem:[%s10599_s28] sm:$0x1] %vm10602_vm3, %v10606_v22 }
 0x19f   : > { %vm1080_vm8 = vcmp.eq.f32.partialorder %v10523_v26, %v10606_v22  ;;  %vm1081_vm9 = vcmp.eq.f32.partialorder %v10525_v27, %v10606_v22  ;;  %vm1084_vm10 = vcmp.eq.f32.partialorder %v10550_v46, %v10606_v22  ;;  %vm1085_vm11 = vcmp.eq.f32.partialorder %v10558_v54, %v10606_v22 }
 0x1a0   : > { %v1088_v48 = vsel %vm1072_vm4, %v10571_v11, 128  ;;  %v1089_v55 = vsel %vm1073_vm5, %v10587_v18, 128  ;;  %v1092_v7 = vsel %vm1076_vm6, %v10590_v19, 128  ;;  %v1093_v8 = vsel %vm1077_vm7, %v10593_v20, 128  ;;  %998 = vxpose.xlu0.b32.cont [13/16] %v10550_v46, 128 }
 0x1a1   : > { %v1096_v26 = vsel %vm1080_vm8, %v10609_v23, 128  ;;  %v1097_v27 = vsel %vm1081_vm9, %v10612_v25, 128  ;;  %v1100_v37 = vsel %vm1084_vm10, %v10615_v28, 128  ;;  %vm1104_vm12 = vcmp.lt.s32.totalorder %v1088_v48, %v1092_v7 }
 0x1a2   : > { %vm1106_vm13 = vcmp.lt.s32.totalorder %v1089_v55, %v1093_v8  ;;  %v1155_v39 = vrot.slane %v10606_v22, %v10625_v32  ;;  %v1101_v40 = vsel %vm1085_vm11, %v10622_v31, 128  ;;  %v1105_v41 = vsel %vm1104_vm12, %v1088_v48, %v1092_v7  ;;  %v9296_v7 = vld [vmem:[%s16504_s22 + $0x20] ss:$8 sps:$4 sm:$0xff]  }
 0x1a3   : > { %v1107_v42 = vsel %vm1106_vm13, %v1089_v55, %v1093_v8  ;;  %vm1074_vm14 = vcmp.eq.f32.partialorder %v10491_v56, %v10606_v22  ;;  %vm1112_vm15 = vcmp.lt.s32.totalorder %v1105_v41, %v1096_v26  ;;  %vm1075_vm1 = vcmp.eq.f32.partialorder %v10486_v52, %v10606_v22  ;;  %v9297_v8 = vld [vmem:[%s16504_s22 + $0x14] ss:$8 sps:$4 sm:$0xff]  }
 0x1a4   : > { %vm1114_vm0 = vcmp.lt.s32.totalorder %v1107_v42, %v1097_v27  ;;  %v1162_v43 = vrot.slane %v1155_v39, %v10625_v32  ;;  %999 = vxpose.xlu0.b32.cont [14/16] %v10558_v54, 128  ;;  %v1113_v44 = vsel %vm1112_vm15, %v1105_v41, %v1096_v26  ;;  %vm1078_vm2 = vcmp.eq.f32.partialorder %v10509_v10, %v10606_v22  ;;  %v9303_v41 = vld [vmem:[%s16523_s4 + $0x70] ss:$8 sps:$4 sm:$0xff]  }
 0x1a5   : > { %v1115_v46 = vsel %vm1114_vm0, %v1107_v42, %v1097_v27  ;;  %vm1079_vm4 = vcmp.eq.f32.partialorder %v10502_v5, %v10606_v22  ;;  %vm1120_vm5 = vcmp.lt.s32.totalorder %v1113_v44, %v1100_v37  ;;  %v1090_v52 = vsel %vm1074_vm14, %v10628_v33, 128  ;;  %v9299_v27 = vld [vmem:[%s16504_s22 + $0x10] ss:$8 sps:$4 sm:$0xff]   ;;  %v9305_v42 = vld [vmem:[%s16523_s4 + $0x74] ss:$8 sps:$4 sm:$0xff]  }
 0x1a6   : > { %vm1122_vm6 = vcmp.lt.s32.totalorder %v1115_v46, %v1101_v40  ;;  %1163 = vrot.lane.b32.xlu1 %v1162_v43, %s10167_s5  ;;  %v1091_v10 = vsel %vm1075_vm1, %v10631_v34, 128  ;;  %vm1082_vm7 = vcmp.eq.f32.partialorder %v10528_v29, %v10606_v22  ;;  %vm1083_vm8 = vcmp.eq.f32.partialorder %v10521_v24, %v10606_v22  ;;  %1791 = vmatprep.subr.bf16.mxu0 %v9305_v42  ;;  %v9306_v43 = vld [vmem:[%s16523_s4 + $0x60] ss:$8 sps:$4 sm:$0xff]  }
 0x1a7   : > { %v1094_v5 = vsel %vm1078_vm2, %v10661_v35, 128  ;;  %v1095_v50 = vsel %vm1079_vm4, %v10664_v36, 128  ;;  %v1121_v51 = vsel %vm1120_vm5, %v1113_v44, %v1100_v37  ;;  %v1123_v53 = vsel %vm1122_vm6, %v1115_v46, %v1101_v40  ;;  %v9300_v37 = vld [vmem:[%s16504_s22 + $0x4] ss:$8 sps:$4 sm:$0xff]   ;;  %v9302_v40 = vld [vmem:[%s16504_s22] ss:$8 sps:$4 sm:$0xff]   ;;  %1792 = vmatpush1.bf16.msra.mxu0 %v9303_v41 }
 0x1a8   : > { %1000 = vxpose.xlu0.b32.cont [15/16] %v10547_v45, 128  ;;  %v10700_v54 = vadd.s32 112, %v10571_v11  ;;  %v10703_v56 = vadd.s32 120, %v10571_v11  ;;  %vm1086_vm9 = vcmp.eq.f32.partialorder %v10547_v45, %v10606_v22  ;;  %vm1087_vm10 = vcmp.eq.f32.partialorder %v10552_v47, %v10606_v22  ;;  %v9293_v22 = vld [vmem:[%s16504_s22 + $0x30] ss:$8 sps:$4 sm:$0xff]   ;;  %v9308_v44 = vld [vmem:[%s16523_s4 + $0x64] ss:$8 sps:$4 sm:$0xff]  }
 0x1a9   : > { %vm1108_vm11 = vcmp.lt.s32.totalorder %v1090_v52, %v1094_v5  ;;  %vm1110_vm12 = vcmp.lt.s32.totalorder %v1091_v10, %v1095_v50  ;;  %v1098_v24 = vsel %vm1082_vm7, %v10682_v38, 128  ;;  %v1099_v29 = vsel %vm1083_vm8, %v10685_v49, 128  ;;  %1793 = vmatprep.subr.bf16.mxu0 %v9308_v44  ;;  %v9309_v46 = vld [vmem:[%s16523_s4 + $0x50] ss:$8 sps:$4 sm:$0xff]  }
 0x1aa   : > { %16521 = vst [vmem:[#allocation51_spill] sm:$0xff] %v10700_v54  ;;  %16522 = vst [vmem:[#allocation52_spill] sm:$0xff] %v10703_v56  ;;  %v1109_v57 = vsel %vm1108_vm11, %v1090_v52, %v1094_v5  ;;  %v1111_v58 = vsel %vm1110_vm12, %v1091_v10, %v1095_v50  ;;  %vm1128_vm13 = vcmp.lt.s32.totalorder %v1121_v51, %v1123_v53  ;;  %v1102_v59 = vsel %vm1086_vm9, %v10700_v54, 128  ;;  %v9311_v52 = vld [vmem:[%s16523_s4 + $0x54] ss:$8 sps:$4 sm:$0xff]  }
 0x1ab   : > { %vm1116_vm14 = vcmp.lt.s32.totalorder %v1109_v57, %v1098_v24  ;;  %vm1118_vm15 = vcmp.lt.s32.totalorder %v1111_v58, %v1099_v29  ;;  %v1103_v45 = vsel %vm1087_vm10, %v10703_v56, 128  ;;  %v1129_v62 = vsel %vm1128_vm13, %v1121_v51, %v1123_v53  ;;  %1794 = vmatpush1.bf16.msra.mxu0 %v9306_v43  ;;  %v9314_v10 = vld [vmem:[%s16523_s4 + $0x44] ss:$8 sps:$4 sm:$0xff]   ;;  %v9312_v5 = vld [vmem:[%s16523_s4 + $0x40] ss:$8 sps:$4 sm:$0xff]  }
 0x1ac   : > { %1001 = vxpose.xlu0.b32.end [16/16] %v10552_v47, 128  ;;  %v1117_v60 = vsel %vm1116_vm14, %v1109_v57, %v1098_v24  ;;  %v1119_v61 = vsel %vm1118_vm15, %v1111_v58, %v1099_v29  ;;  %v9285_v47 = vld [vmem:[%s16504_s22 + $0x54] ss:$8 sps:$4 sm:$0xff]   ;;  %v16049_v39 = vmov 0   ;;  %1795 = vmatprep.subr.bf16.mxu0 %v9311_v52  ;;  %v9315_v51 = vld [vmem:[%s16523_s4 + $0x30] ss:$8 sps:$4 sm:$0xff]  }
 0x1ad   : > { %vm1124_vm0 = vcmp.lt.s32.totalorder %v1117_v60, %v1102_v59  ;;  %vm1126_vm1 = vcmp.lt.s32.totalorder %v1119_v61, %v1103_v45  ;;  %1924 = vmatprep.subr.bf16.mxu1 %v9285_v47  ;;  %1952 = vmatprep.mubr.bf16.mxu1 %v16049_v39  ;;  %v9317_v50 = vld [vmem:[%s16523_s4 + $0x34] ss:$8 sps:$4 sm:$0xff]   ;;  %v9320_v53 = vld [vmem:[%s16523_s4 + $0x24] ss:$8 sps:$4 sm:$0xff]   ;;  %v9318_v24 = vld [vmem:[%s16523_s4 + $0x20] ss:$8 sps:$4 sm:$0xff]  }
 0x1ae   : > { %v1125_v63 = vsel %vm1124_vm0, %v1117_v60, %v1102_v59  ;;  %v1127_v0 = vsel %vm1126_vm1, %v1119_v61, %v1103_v45  ;;  %1925 = vmatpush1.bf16.msra.mxu1 %v9287_v6  ;;  %1823 = vmatprep.mubr.bf16.mxu0 %v16049_v39  ;;  %v9323_v29 = vld [vmem:[%s16523_s4 + $0x14] ss:$8 sps:$4 sm:$0xff]   ;;  %v9321_v57 = vld [vmem:[%s16523_s4 + $0x10] ss:$8 sps:$4 sm:$0xff]   ;;  %v9326_v58 = vld [vmem:[%s16523_s4 + $0x4] ss:$8 sps:$4 sm:$0xff]  }
 0x1af   : > { %vm1130_vm2 = vcmp.lt.s32.totalorder %v1125_v63, %v1127_v0  ;;  %1926 = vmatprep.subr.bf16.mxu1 %v9288_v12  ;;  %1796 = vmatpush1.bf16.msra.mxu0 %v9309_v46  ;;  %v9324_v59 = vld [vmem:[%s16523_s4] ss:$8 sps:$4 sm:$0xff]   ;;  %s9989_s4 = scalar_lea.vmem %s9988_s24, 32768 }
 0x1b0   : > { %v1131_v1 = vsel %vm1130_vm2, %v1125_v63, %v1127_v0  ;;  %1797 = vmatprep.subr.bf16.mxu0 %v9314_v10  ;;  %v10854_v43 = vld [vmem:[#allocation14 + $0x1] ss:$0 sm:$0xff] }
 0x1b1   : > { %vm1132_vm4 = vcmp.lt.s32.totalorder %v1129_v62, %v1131_v1 }
 0x1b2   : > { %v1133_v3 = vsel %vm1132_vm4, %v1129_v62, %v1131_v1  ;;  %1927 = vmatpush1.bf16.msra.mxu1 %v9290_v14 }
 0x1b3   : > { %v1134_v4 = vrot.slane %v1133_v3, 4  ;;  %1928 = vmatprep.subr.bf16.mxu1 %v9291_v15  ;;  %1798 = vmatpush1.bf16.msra.mxu0 %v9312_v5 }
 0x1b4   : > { %1799 = vmatprep.subr.bf16.mxu0 %v9317_v50 }
 0x1b5   : > { %vm1135_vm5 = vcmp.lt.s32.totalorder %v1133_v3, %v1134_v4 }
 0x1b6   : > { %v1136_v9 = vsel %vm1135_vm5, %v1133_v3, %v1134_v4  ;;  %1929 = vmatpush1.bf16.msra.mxu1 %v9293_v22 }
 0x1b7   : > { %v1137_v13 = vrot.slane %v1136_v9, 2  ;;  %1930 = vmatprep.subr.bf16.mxu1 %v9294_v30  ;;  %1800 = vmatpush1.bf16.msra.mxu0 %v9315_v51 }
 0x1b8   : > { %1801 = vmatprep.subr.bf16.mxu0 %v9320_v53 }
 0x1b9   : > { %vm1138_vm6 = vcmp.lt.s32.totalorder %v1136_v9, %v1137_v13 }
 0x1ba   : > { %v1139_v16 = vsel %vm1138_vm6, %v1136_v9, %v1137_v13  ;;  %1931 = vmatpush1.bf16.msra.mxu1 %v9296_v7 }
 0x1bb   : > { %v1140_v17 = vrot.slane %v1139_v16, 1  ;;  %1932 = vmatprep.subr.bf16.mxu1 %v9297_v8  ;;  %1802 = vmatpush1.bf16.msra.mxu0 %v9318_v24 }
 0x1bc   : > { %1803 = vmatprep.subr.bf16.mxu0 %v9323_v29 }
 0x1bd   : > { %vm1141_vm7 = vcmp.lt.s32.totalorder %v1139_v16, %v1140_v17 }
 0x1be   : > { %v1142_v48 = vsel %vm1141_vm7, %v1139_v16, %v1140_v17  ;;  %1933 = vmatpush1.bf16.msra.mxu1 %v9299_v27 }
 0x1bf   : > { %v1174_v55 = vrot.slane %v1142_v48, %v10625_v32  ;;  %1167 = vst.msk [vmem:[%s10736_s0] sm:$0x1] %vm10602_vm3, %v1142_v48  ;;  %1934 = vmatprep.subr.bf16.mxu1 %v9300_v37  ;;  %1804 = vmatpush1.bf16.msra.mxu0 %v9321_v57 }
 0x1c0   : > { %1805 = vmatprep.subr.bf16.mxu0 %v9326_v58 }
 0x1c1   : > { %v1181_v26 = vrot.slane %v1174_v55, %v10625_v32 }
 0x1c2   : > { %1935 = vmatpush1.bf16.msra.mxu1 %v9302_v40 }
 0x1c3   : > { %1182 = vrot.lane.b32.xlu1 %v1181_v26, %s10167_s5  ;;  %1806 = vmatpush1.bf16.msra.mxu0 %v9324_v59 }
 0x1ec   : > { %v1002_v45 = vpop.trf.xlu0 }
 0x1ed   : > { %1018 = vst [vmem:[%s10824_s20] sm:$0xff] %v1002_v45  ;;  %v1185_v60 = vmul.f32 %v1002_v45, %v1002_v45 }
 0x1f0   : > { %v1003_v61 = vpop.trf.xlu0 }
 0x1f1   : > { %1019 = vst [vmem:[%s10824_s20 + $0x8] sm:$0xff] %v1003_v61  ;;  %v1186_v63 = vmul.f32 %v1003_v61, %v1003_v61 }
 0x1f3   : > { %v1201_v0 = vadd.f32 %v1186_v63, %v1185_v60 }
 0x1f4   : > { %v1004_v1 = vpop.trf.xlu0 }
 0x1f5   : > { %1020 = vst [vmem:[%s10824_s20 + $0x10] sm:$0xff] %v1004_v1  ;;  %v1187_v3 = vmul.f32 %v1004_v1, %v1004_v1 }
 0x1f7   : > { %v1202_v4 = vadd.f32 %v1201_v0, %v1187_v3 }
 0x1f8   : > { %v1005_v47 = vpop.trf.xlu0 }
 0x1f9   : > { %1021 = vst [vmem:[%s10824_s20 + $0x18] sm:$0xff] %v1005_v47  ;;  %v1188_v6 = vmul.f32 %v1005_v47, %v1005_v47 }
 0x1fb   : > { %v1203_v9 = vadd.f32 %v1202_v4, %v1188_v6 }
 0x1fc   : > { %v1006_v12 = vpop.trf.xlu0 }
 0x1fd   : > { %1022 = vst [vmem:[%s10824_s20 + $0x20] sm:$0xff] %v1006_v12  ;;  %v1189_v13 = vmul.f32 %v1006_v12, %v1006_v12 }
 0x1ff   : > { %v1204_v14 = vadd.f32 %v1203_v9, %v1189_v13 }
 0x200   : > { %v1007_v15 = vpop.trf.xlu0 }
 0x201   : > { %1023 = vst [vmem:[%s10824_s20 + $0x28] sm:$0xff] %v1007_v15  ;;  %v1190_v16 = vmul.f32 %v1007_v15, %v1007_v15 }
 0x203   : > { %v1205_v17 = vadd.f32 %v1204_v14, %v1190_v16 }
 0x204   : > { %v1008_v22 = vpop.trf.xlu0 }
 0x205   : > { %1024 = vst [vmem:[%s10824_s20 + $0x30] sm:$0xff] %v1008_v22  ;;  %v1191_v30 = vmul.f32 %v1008_v22, %v1008_v22 }
 0x207   : > { %v1206_v48 = vadd.f32 %v1205_v17, %v1191_v30 }
 0x208   : > { %v1009_v55 = vpop.trf.xlu0 }
 0x209   : > { %1025 = vst [vmem:[%s10824_s20 + $0x38] sm:$0xff] %v1009_v55  ;;  %v1192_v7 = vmul.f32 %v1009_v55, %v1009_v55 }
 0x20b   : > { %v10837_v8 = vadd.f32 %v1206_v48, %v1192_v7 }
 0x20c   : > { %v1010_v26 = vpop.trf.xlu0 }
 0x20d   : > { %16524 = vst [vmem:[#allocation53_spill] sm:$0xff] %v10837_v8  ;;  %1026 = vst [vmem:[%s10847_s25] sm:$0xff] %v1010_v26  ;;  %v1193_v40 = vmul.f32 %v1010_v26, %v1010_v26 }
 0x210   : > { %v1011_v41 = vpop.trf.xlu0 }
 0x211   : > { %1027 = vst [vmem:[%s10847_s25 + $0x8] sm:$0xff] %v1011_v41  ;;  %v1194_v42 = vmul.f32 %v1011_v41, %v1011_v41 }
 0x213   : > { %v1214_v10 = vadd.f32 %v1194_v42, %v1193_v40 }
 0x214   : > { %v1012_v5 = vpop.trf.xlu0 }
 0x215   : > { %1028 = vst [vmem:[%s10847_s25 + $0x10] sm:$0xff] %v1012_v5  ;;  %v1195_v21 = vmul.f32 %v1012_v5, %v1012_v5 }
 0x217   : > { %v1215_v58 = vadd.f32 %v1214_v10, %v1195_v21 }
 0x218   : > { %v1164_v62 = vpop.permute.xlu1 %1163  ;;  %v1013_v59 = vpop.trf.xlu0 }
 0x219   : > { %1166 = vst.msk [vmem:[%s10820_s26] sm:$0x1] %vm10602_vm3, %v1164_v62  ;;  %1029 = vst [vmem:[%s10847_s25 + $0x18] sm:$0xff] %v1013_v59  ;;  %v1196_v62 = vmul.f32 %v1013_v59, %v1013_v59 }
 0x21b   : > { %v1216_v4 = vadd.f32 %v1215_v58, %v1196_v62 }
 0x21c   : > { %v1014_v47 = vpop.trf.xlu0 }
 0x21d   : > { %1030 = vst [vmem:[%s10847_s25 + $0x20] sm:$0xff] %v1014_v47  ;;  %v1197_v12 = vmul.f32 %v1014_v47, %v1014_v47 }
 0x21f   : > { %v1217_v17 = vadd.f32 %v1216_v4, %v1197_v12 }
 0x220   : > { %v1015_v22 = vpop.trf.xlu0 }
 0x221   : > { %1031 = vst [vmem:[%s10847_s25 + $0x28] sm:$0xff] %v1015_v22  ;;  %v1198_v26 = vmul.f32 %v1015_v22, %v1015_v22 }
 0x223   : > { %v1218_v41 = vadd.f32 %v1217_v17, %v1198_v26 }
 0x224   : > { %v1016_v42 = vpop.trf.xlu0 }
 0x225   : > { %1032 = vst [vmem:[%s10847_s25 + $0x30] sm:$0xff] %v1016_v42  ;;  %v1199_v21 = vmul.f32 %v1016_v42, %v1016_v42 }
 0x227   : > { %v10895_v58 = vadd.f32 %v1218_v41, %v1199_v21 }
 0x228   : > { %v1017_v59 = vpop.trf.xlu0 }
 0x229   : > { %16525 = vst [vmem:[#allocation54_spill] sm:$0xff] %v10895_v58  ;;  %1033 = vst [vmem:[%s10847_s25 + $0x38] sm:$0xff] %v1017_v59 }
 0x235   : > { %v1183_v27 = vpop.permute.xlu1 %1182 }
 0x236   : > { %1184 = vst.msk [vmem:[%s10843_s9] sm:$0x1] %vm10602_vm3, %v1183_v27 }
 0x237   : > { %v9110_v37 = vpop.f32.mrf.mxu0 }
 0x238   : > { %v1343_v53 = vadd.f32 %v9110_v37, %v10854_v43 }
 0x239   : > { %v1334_v44 = vpop.f32.mrf.mxu0 }
 0x23a   : > { %v1335_v46 = vadd.f32 %v1334_v44, %v10854_v43  ;;  %v1415_v63 = vmul.f32 0.1, %v1343_v53  ;;  %vm1399_vm9 = vcmp.gt.f32.partialorder %v1343_v53, 0.0 }
 0x23b   : > { %v9111_v52 = vpop.f32.mrf.mxu0 }
 0x23c   : > { %vm1397_vm8 = vcmp.gt.f32.partialorder %v1335_v46, 0.0  ;;  %v1413_v50 = vmul.f32 0.1, %v1335_v46  ;;  %v1346_v45 = vadd.f32 %v9111_v52, %v10854_v43  ;;  %v10872_v14 = vsel %vm1399_vm9, %v1343_v53, %v1415_v63 }
 0x23d   : > { %v1337_v51 = vpop.f32.mrf.mxu0 }
 0x23e   : > { %v1338_v24 = vadd.f32 %v1337_v51, %v10854_v43  ;;  %v10860_v29 = vsel %vm1397_vm8, %v1335_v46, %v1413_v50  ;;  %v1416_v6 = vmul.f32 0.1, %v1346_v45  ;;  %vm1400_vm10 = vcmp.gt.f32.partialorder %v1346_v45, 0.0 }
 0x23f   : > { %v9114_v57 = vpop.f32.mrf.mxu0  ;;  %1445 = vxpose.xlu1.b32.start [1/16] %v10860_v29, 128  ;;  %vm1603_vm8 = vcmp.ge.s32.totalorder %v16047_v2, 64 }
 0x240   : > { %v1414_v60 = vmul.f32 0.1, %v1338_v24  ;;  %vm1398_vm3 = vcmp.gt.f32.partialorder %v1338_v24, 0.0  ;;  %v1359_v15 = vadd.f32 %v9114_v57, %v10854_v43  ;;  %v10879_v55 = vsel %vm1400_vm10, %v1346_v45, %v1416_v6 }
 0x241   : > { %v1350_v61 = vpop.f32.mrf.mxu0  ;;  %v1687_v40 = vpack.c.bf16 %v10879_v55, %v10872_v14 }
 0x242   : > { %v10865_v0 = vsel %vm1398_vm3, %v1338_v24, %v1414_v60  ;;  %v1351_v13 = vadd.f32 %v1350_v61, %v10854_v43  ;;  %vm1403_vm11 = vcmp.gt.f32.partialorder %v1359_v15, 0.0  ;;  %v1419_v44 = vmul.f32 0.1, %v1359_v15 }
 0x243   : > { %v9115_v1 = vpop.f32.mrf.mxu0  ;;  %1446 = vxpose.xlu1.b32.cont [2/16] %v10865_v0, 128  ;;  %v1686_v3 = vpack.c.bf16 %v10865_v0, %v10860_v29  ;;  %vm10963_vm3 = vcmp.lt.s32.totalorder %v16047_v2, 128 }
 0x244   : > { %v1362_v30 = vadd.f32 %v9115_v1, %v10854_v43  ;;  %v1417_v27 = vmul.f32 0.1, %v1351_v13  ;;  %vm1401_vm12 = vcmp.gt.f32.partialorder %v1351_v13, 0.0  ;;  %v10901_v62 = vsel %vm1403_vm11, %v1359_v15, %v1419_v44  ;;  %vm10969_vm9 = vmand %vm1603_vm8, %vm10963_vm3 }
 0x245   : > { %v1353_v9 = vpop.f32.mrf.mxu0  ;;  %1953 = vmatmul.mubr.bf16.vlgmr.msra.gmra.mxu1 %v1686_v3  ;;  %v1495_v15 = vmax.f32 %v10872_v14, %v10901_v62 }
 0x246   : > { %1962 = vmatprep.mubr.bf16.mxu1 %v16049_v39  ;;  %v1354_v48 = vadd.f32 %v1353_v9, %v10854_v43  ;;  %v1420_v46 = vmul.f32 0.1, %v1362_v30  ;;  %vm1404_vm14 = vcmp.gt.f32.partialorder %v1362_v30, 0.0  ;;  %v10891_v24 = vsel %vm1401_vm12, %v1351_v13, %v1417_v27 }
 0x247   : > { %v9118_v16 = vpop.f32.mrf.mxu0  ;;  %1447 = vxpose.xlu1.b32.cont [3/16] %v10872_v14, 128  ;;  %v1493_v42 = vmax.f32 %v10860_v29, %v10891_v24 }
 0x248   : > { %v1418_v52 = vmul.f32 0.1, %v1354_v48  ;;  %v1375_v5 = vadd.f32 %v9118_v16, %v10854_v43  ;;  %vm1402_vm13 = vcmp.gt.f32.partialorder %v1354_v48, 0.0  ;;  %v10905_v4 = vsel %vm1404_vm14, %v1362_v30, %v1420_v46 }
 0x249   : > { %v1366_v7 = vpop.f32.mrf.mxu0 }
 0x24a   : > { %v1367_v50 = vadd.f32 %v1366_v7, %v10854_v43  ;;  %v10898_v61 = vsel %vm1402_vm13, %v1354_v48, %v1418_v52  ;;  %v1423_v63 = vmul.f32 0.1, %v1375_v5  ;;  %vm1407_vm0 = vcmp.gt.f32.partialorder %v1375_v5, 0.0 }
 0x24b   : > { %v9119_v37 = vpop.f32.mrf.mxu0  ;;  %1448 = vxpose.xlu1.b32.cont [4/16] %v10879_v55, 128  ;;  %v1688_v13 = vpack.c.bf16 %v10898_v61, %v10891_v24  ;;  %v1496_v48 = vmax.f32 %v10879_v55, %v10905_v4  ;;  %v1494_v44 = vmax.f32 %v10865_v0, %v10898_v61 }
 0x24c   : > { %v1378_v10 = vadd.f32 %v9119_v37, %v10854_v43  ;;  %v1421_v1 = vmul.f32 0.1, %v1367_v50  ;;  %vm1405_vm1 = vcmp.gt.f32.partialorder %v1367_v50, 0.0  ;;  %v10923_v26 = vsel %vm1407_vm0, %v1375_v5, %v1423_v63 }
 0x24d   : > { %v1369_v51 = vpop.f32.mrf.mxu0  ;;  %1963 = vmatmul.mubr.bf16.gmra.mxu1 %v1687_v40 }
 0x24e   : > { %v1370_v53 = vadd.f32 %v1369_v51, %v10854_v43  ;;  %1972 = vmatprep.mubr.bf16.mxu1 %v16049_v39  ;;  %v1424_v45 = vmul.f32 0.1, %v1378_v10  ;;  %vm1408_vm15 = vcmp.gt.f32.partialorder %v1378_v10, 0.0  ;;  %v10920_v7 = vsel %vm1405_vm1, %v1367_v50, %v1421_v1 }
 0x24f   : > { %v9122_v57 = vpop.f32.mrf.mxu0  ;;  %1449 = vxpose.xlu1.b32.cont [5/16] %v10891_v24, 128  ;;  %v1497_v5 = vmax.f32 %v1493_v42, %v10920_v7  ;;  %v1499_v51 = vmax.f32 %v1495_v15, %v10923_v26 }
 0x250   : > { %v1391_v60 = vadd.f32 %v9122_v57, %v10854_v43  ;;  %v1422_v47 = vmul.f32 0.1, %v1370_v53  ;;  %vm1406_vm2 = vcmp.gt.f32.partialorder %v1370_v53, 0.0  ;;  %v10915_v22 = vsel %vm1408_vm15, %v1378_v10, %v1424_v45 }
 0x251   : > { %v1382_v3 = vpop.f32.mrf.mxu0  ;;  %v1500_v46 = vmax.f32 %v1496_v48, %v10915_v22  ;;  %v1689_v57 = vpack.c.bf16 %v10905_v4, %v10901_v62  ;;  %v1691_v48 = vpack.c.bf16 %v10915_v22, %v10923_v26 }
 0x252   : > { %v1383_v6 = vadd.f32 %v1382_v3, %v10854_v43  ;;  %v1427_v9 = vmul.f32 0.1, %v1391_v60  ;;  %vm1411_vm4 = vcmp.gt.f32.partialorder %v1391_v60, 0.0  ;;  %v10927_v40 = vsel %vm1406_vm2, %v1370_v53, %v1422_v47 }
 0x253   : > { %v9123_v12 = vpop.f32.mrf.mxu0  ;;  %1450 = vxpose.xlu1.b32.cont [6/16] %v10898_v61, 128  ;;  %v1498_v50 = vmax.f32 %v1494_v44, %v10927_v40 }
 0x254   : > { %v1425_v16 = vmul.f32 0.1, %v1383_v6  ;;  %v1394_v17 = vadd.f32 %v9123_v12, %v10854_v43  ;;  %vm1409_vm5 = vcmp.gt.f32.partialorder %v1383_v6, 0.0  ;;  %v10929_v41 = vsel %vm1411_vm4, %v1391_v60, %v1427_v9 }
 0x255   : > { %v1385_v30 = vpop.f32.mrf.mxu0  ;;  %1973 = vmatmul.mubr.bf16.gmra.mxu1 %v1688_v13  ;;  %v1503_v60 = vmax.f32 %v1499_v51, %v10929_v41 }
 0x256   : > { %vm1412_vm6 = vcmp.gt.f32.partialorder %v1394_v17, 0.0  ;;  %v1428_v27 = vmul.f32 0.1, %v1394_v17  ;;  %v1386_v37 = vadd.f32 %v1385_v30, %v10854_v43  ;;  %1982 = vmatprep.mubr.bf16.mxu1 %v16049_v39  ;;  %v10938_v52 = vsel %vm1409_vm5, %v1383_v6, %v1425_v16 }
 0x257   : > { %1451 = vxpose.xlu1.b32.cont [7/16] %v10901_v62, 128  ;;  %v1501_v59 = vmax.f32 %v1497_v5, %v10938_v52  ;;  %v1690_v6 = vpack.c.bf16 %v10927_v40, %v10920_v7 }
 0x258   : > { %v10940_v43 = vsel %vm1412_vm6, %v1394_v17, %v1428_v27  ;;  %vm1410_vm7 = vcmp.gt.f32.partialorder %v1386_v37, 0.0  ;;  %v1426_v10 = vmul.f32 0.1, %v1386_v37 }
 0x259   : > { %v1504_v21 = vmax.f32 %v1500_v46, %v10940_v43 }
 0x25a   : > { %v10946_v53 = vsel %vm1410_vm7, %v1386_v37, %v1426_v10 }
 0x25b   : > { %1452 = vxpose.xlu1.b32.cont [8/16] %v10905_v4, 128  ;;  %v1502_v45 = vmax.f32 %v1498_v50, %v10946_v53  ;;  %v1506_v1 = vmax.f32 %v1503_v60, %v1504_v21 }
 0x25d   : > { %1983 = vmatmul.mubr.bf16.gmra.mxu1 %v1689_v57  ;;  %v1505_v63 = vmax.f32 %v1501_v59, %v1502_v45 }
 0x25e   : > { %1992 = vmatprep.mubr.bf16.mxu1 %v16049_v39 }
 0x25f   : > { %1453 = vxpose.xlu1.b32.cont [9/16] %v10920_v7, 128  ;;  %v1507_v3 = vmax.f32 %v1505_v63, %v1506_v1  ;;  %v1693_v63 = vpack.c.bf16 %v10940_v43, %v10929_v41 }
 0x261   : > { %v1508_v47 = vrot.slane %v1507_v3, 4 }
 0x263   : > { %1454 = vxpose.xlu1.b32.cont [10/16] %v10927_v40, 128  ;;  %v1509_v9 = vmax.f32 %v1507_v3, %v1508_v47 }
 0x265   : > { %1993 = vmatmul.mubr.bf16.gmra.mxu1 %v1690_v6  ;;  %v1510_v12 = vrot.slane %v1509_v9, 2 }
 0x266   : > { %2002 = vmatprep.mubr.bf16.mxu1 %v16049_v39 }
 0x267   : > { %1455 = vxpose.xlu1.b32.cont [11/16] %v10923_v26, 128  ;;  %v1511_v13 = vmax.f32 %v1509_v9, %v1510_v12 }
 0x269   : > { %v1512_v16 = vrot.slane %v1511_v13, 1 }
 0x26b   : > { %v10973_v30 = vmax.f32 %v1511_v13, %v1512_v16  ;;  %1456 = vxpose.xlu1.b32.cont [12/16] %v10915_v22, 128  ;;  %v9327_v16 = vld [vmem:[#allocation7 + $0x70] ss:$8 sps:$4 sm:$0xff]  }
 0x26d   : > { %vm1516_vm10 = vcmp.eq.f32.partialorder %v10872_v14, %v10973_v30  ;;  %vm1517_vm11 = vcmp.eq.f32.partialorder %v10879_v55, %v10973_v30  ;;  %vm1520_vm12 = vcmp.eq.f32.partialorder %v10901_v62, %v10973_v30  ;;  %vm1521_vm13 = vcmp.eq.f32.partialorder %v10905_v4, %v10973_v30  ;;  %2003 = vmatmul.mubr.bf16.gmra.mxu1 %v1691_v48 }
 0x26e   : > { %1607 = vst.msk [vmem:[%s10820_s26] sm:$0x1] %vm10969_vm9, %v10973_v30  ;;  %vm1524_vm14 = vcmp.eq.f32.partialorder %v10923_v26, %v10973_v30  ;;  %vm1525_vm15 = vcmp.eq.f32.partialorder %v10915_v22, %v10973_v30  ;;  %vm1528_vm0 = vcmp.eq.f32.partialorder %v10929_v41, %v10973_v30  ;;  %2012 = vmatprep.mubr.bf16.mxu1 %v16049_v39  ;;  %v1532_v55 = vsel %vm1516_vm10, %v10628_v33, 128 }
 0x26f   : > { %v1692_v14 = vpack.c.bf16 %v10946_v53, %v10938_v52  ;;  %v1533_v62 = vsel %vm1517_vm11, %v10631_v34, 128  ;;  %v1536_v4 = vsel %vm1520_vm12, %v10661_v35, 128  ;;  %v1537_v27 = vsel %vm1521_vm13, %v10664_v36, 128  ;;  %1457 = vxpose.xlu1.b32.cont [13/16] %v10938_v52, 128 }
 0x270   : > { %vm1529_vm1 = vcmp.eq.f32.partialorder %v10940_v43, %v10973_v30  ;;  %v1540_v22 = vsel %vm1524_vm14, %v10682_v38, 128  ;;  %v1541_v26 = vsel %vm1525_vm15, %v10685_v49, 128  ;;  %v1544_v37 = vsel %vm1528_vm0, %v10700_v54, 128 }
 0x271   : > { %vm1550_vm2 = vcmp.lt.s32.totalorder %v1532_v55, %v1536_v4  ;;  %vm1552_vm4 = vcmp.lt.s32.totalorder %v1533_v62, %v1537_v27  ;;  %v1710_v42 = vpack.c.bf16 %v10973_v30, %v10973_v30  ;;  %v1592_v44 = vrot.slane %v10973_v30, %v10625_v32 }
 0x272   : > { %v1551_v46 = vsel %vm1550_vm2, %v1532_v55, %v1536_v4  ;;  %v1553_v10 = vsel %vm1552_vm4, %v1533_v62, %v1537_v27  ;;  %vm1514_vm5 = vcmp.eq.f32.partialorder %v10860_v29, %v10973_v30  ;;  %vm1515_vm6 = vcmp.eq.f32.partialorder %v10865_v0, %v10973_v30  ;;  %v9330_v55 = vld [vmem:[#allocation7 + $0x60] ss:$8 sps:$4 sm:$0xff]   ;;  %v9335_v27 = vld [vmem:[#allocation7 + $0x54] ss:$8 sps:$4 sm:$0xff]  }
 0x273   : > { %v1545_v5 = vsel %vm1529_vm1, %v10703_v56, 128  ;;  %vm1558_vm7 = vcmp.lt.s32.totalorder %v1551_v46, %v1540_v22  ;;  %vm1560_vm8 = vcmp.lt.s32.totalorder %v1553_v10, %v1541_v26  ;;  %1824 = vmatmul.mubr.bf16.vlgmr.msra.gmra.mxu0 %v1710_v42  ;;  %v1599_v50 = vrot.slane %v1592_v44, %v10625_v32  ;;  %1458 = vxpose.xlu1.b32.cont [14/16] %v10946_v53, 128  ;;  %v9336_v44 = vld [vmem:[#allocation7 + $0x40] ss:$8 sps:$4 sm:$0xff]  }
 0x274   : > { %v1559_v51 = vsel %vm1558_vm7, %v1551_v46, %v1540_v22  ;;  %v1561_v21 = vsel %vm1560_vm8, %v1553_v10, %v1541_v26  ;;  %vm1518_vm10 = vcmp.eq.f32.partialorder %v10891_v24, %v10973_v30  ;;  %vm1519_vm11 = vcmp.eq.f32.partialorder %v10898_v61, %v10973_v30  ;;  %2684 = vmatprep.mubr.bf16.mxu0 %v16049_v39  ;;  %v9333_v22 = vld [vmem:[#allocation7 + $0x50] ss:$8 sps:$4 sm:$0xff]   ;;  %v9338_v46 = vld [vmem:[#allocation7 + $0x44] ss:$8 sps:$4 sm:$0xff]  }
 0x275   : > { %vm1566_vm12 = vcmp.lt.s32.totalorder %v1559_v51, %v1544_v37  ;;  %vm1568_vm13 = vcmp.lt.s32.totalorder %v1561_v21, %v1545_v5  ;;  %1600 = vrot.lane.b32.xlu0 %v1599_v50, %s10167_s5  ;;  %2013 = vmatmul.mubr.bf16.gmra.mxu1 %v1692_v14  ;;  %v1530_v57 = vsel %vm1514_vm5, %v10571_v11, 128  ;;  %v1531_v24 = vsel %vm1515_vm6, %v10587_v18, 128  ;;  %v9332_v14 = vld [vmem:[#allocation7 + $0x64] ss:$8 sps:$4 sm:$0xff]   ;;  %v9339_v10 = vld [vmem:[#allocation5 + $0x70] ss:$8 sps:$4 sm:$0xff]  }
 0x276   : > { %2022 = vmatprep.mubr.bf16.mxu1 %v16049_v39  ;;  %vm1522_vm14 = vcmp.eq.f32.partialorder %v10920_v7, %v10973_v30  ;;  %vm1523_vm15 = vcmp.eq.f32.partialorder %v10927_v40, %v10973_v30  ;;  %v1534_v61 = vsel %vm1518_vm10, %v10590_v19, 128  ;;  %v1535_v59 = vsel %vm1519_vm11, %v10593_v20, 128  ;;  %v9342_v50 = vld [vmem:[#allocation7 + $0x30] ss:$8 sps:$4 sm:$0xff]  }
 0x277   : > { %1459 = vxpose.xlu1.b32.cont [15/16] %v10929_v41, 128  ;;  %v1567_v45 = vsel %vm1566_vm12, %v1559_v51, %v1544_v37  ;;  %v1569_v29 = vsel %vm1568_vm13, %v1561_v21, %v1545_v5  ;;  %vm1526_vm0 = vcmp.eq.f32.partialorder %v10938_v52, %v10973_v30  ;;  %vm1527_vm1 = vcmp.eq.f32.partialorder %v10946_v53, %v10973_v30  ;;  %v9329_v30 = vld [vmem:[#allocation7 + $0x74] ss:$8 sps:$4 sm:$0xff]   ;;  %v9345_v21 = vld [vmem:[#allocation5 + $0x60] ss:$8 sps:$4 sm:$0xff]  }
 0x278   : > { %vm1546_vm2 = vcmp.lt.s32.totalorder %v1530_v57, %v1534_v61  ;;  %vm1548_vm4 = vcmp.lt.s32.totalorder %v1531_v24, %v1535_v59  ;;  %v1538_v0 = vsel %vm1522_vm14, %v10609_v23, 128  ;;  %v1539_v7 = vsel %vm1523_vm15, %v10612_v25, 128  ;;  %2978 = vmatprep.subr.bf16.mxu1 %v9329_v30  ;;  %v9341_v5 = vld [vmem:[#allocation5 + $0x74] ss:$8 sps:$4 sm:$0xff]  }
 0x279   : > { %v1547_v60 = vsel %vm1546_vm2, %v1530_v57, %v1534_v61  ;;  %v1549_v40 = vsel %vm1548_vm4, %v1531_v24, %v1535_v59  ;;  %vm1572_vm5 = vcmp.lt.s32.totalorder %v1567_v45, %v1569_v29  ;;  %v1542_v52 = vsel %vm1526_vm0, %v10615_v28, 128  ;;  %2979 = vmatpush1.bf16.msra.mxu1 %v9327_v16  ;;  %v9344_v51 = vld [vmem:[#allocation7 + $0x34] ss:$8 sps:$4 sm:$0xff]   ;;  %2652 = vmatprep.subr.bf16.mxu0 %v9341_v5  ;;  %v9347_v57 = vld [vmem:[#allocation5 + $0x64] ss:$8 sps:$4 sm:$0xff]  }
 0x27a   : > { %vm1554_vm6 = vcmp.lt.s32.totalorder %v1547_v60, %v1538_v0  ;;  %vm1556_vm7 = vcmp.lt.s32.totalorder %v1549_v40, %v1539_v7  ;;  %v1543_v53 = vsel %vm1527_vm1, %v10622_v31, 128  ;;  %v1573_v47 = vsel %vm1572_vm5, %v1567_v45, %v1569_v29  ;;  %2980 = vmatprep.subr.bf16.mxu1 %v9332_v14  ;;  %2653 = vmatpush1.bf16.msra.mxu0 %v9339_v10  ;;  %v9348_v24 = vld [vmem:[#allocation5 + $0x50] ss:$8 sps:$4 sm:$0xff]   ;;  %v9350_v61 = vld [vmem:[#allocation5 + $0x54] ss:$8 sps:$4 sm:$0xff]  }
 0x27b   : > { %1460 = vxpose.xlu1.b32.end [16/16] %v10940_v43, 128  ;;  %v1555_v1 = vsel %vm1554_vm6, %v1547_v60, %v1538_v0  ;;  %v1557_v3 = vsel %vm1556_vm7, %v1549_v40, %v1539_v7  ;;  %2654 = vmatprep.subr.bf16.mxu0 %v9347_v57  ;;  %v9351_v59 = vld [vmem:[#allocation7 + $0x20] ss:$8 sps:$4 sm:$0xff]   ;;  %v9353_v45 = vld [vmem:[#allocation7 + $0x24] ss:$8 sps:$4 sm:$0xff]   ;;  %v9357_v7 = vld [vmem:[#allocation5 + $0x30] ss:$8 sps:$4 sm:$0xff]  }
 0x27c   : > { %vm1562_vm8 = vcmp.lt.s32.totalorder %v1555_v1, %v1542_v52  ;;  %vm1564_vm10 = vcmp.lt.s32.totalorder %v1557_v3, %v1543_v53  ;;  %v9354_v29 = vld [vmem:[#allocation5 + $0x40] ss:$8 sps:$4 sm:$0xff]   ;;  %v9356_v0 = vld [vmem:[#allocation5 + $0x44] ss:$8 sps:$4 sm:$0xff]   ;;  %v9359_v60 = vld [vmem:[#allocation5 + $0x34] ss:$8 sps:$4 sm:$0xff]  }
 0x27d   : > { %2023 = vmatmul.mubr.bf16.gmra.mxu1 %v1693_v63  ;;  %v1563_v6 = vsel %vm1562_vm8, %v1555_v1, %v1542_v52  ;;  %v1565_v9 = vsel %vm1564_vm10, %v1557_v3, %v1543_v53  ;;  %v9360_v40 = vld [vmem:[#allocation7 + $0x10] ss:$8 sps:$4 sm:$0xff]   ;;  %v9362_v63 = vld [vmem:[#allocation7 + $0x14] ss:$8 sps:$4 sm:$0xff]   ;;  %v9363_v52 = vld [vmem:[#allocation5 + $0x20] ss:$8 sps:$4 sm:$0xff]  }
 0x27e   : > { %3010 = vmatprep.mubr.bf16.mxu1 %v16049_v39  ;;  %vm1570_vm11 = vcmp.lt.s32.totalorder %v1563_v6, %v1565_v9  ;;  %2981 = vmatpush1.bf16.msra.mxu1 %v9330_v55  ;;  %v9365_v53 = vld [vmem:[#allocation5 + $0x24] ss:$8 sps:$4 sm:$0xff]   ;;  %v9366_v1 = vld [vmem:[#allocation5 + $0x10] ss:$8 sps:$4 sm:$0xff]   ;;  %v9368_v3 = vld [vmem:[#allocation5 + $0x14] ss:$8 sps:$4 sm:$0xff]  }
 0x27f   : > { %v1571_v12 = vsel %vm1570_vm11, %v1563_v6, %v1565_v9  ;;  %2982 = vmatprep.subr.bf16.mxu1 %v9335_v27  ;;  %2655 = vmatpush1.bf16.msra.mxu0 %v9345_v21  ;;  %v9371_v6 = vld [vmem:[#allocation7 + $0x4] ss:$8 sps:$4 sm:$0xff]   ;;  %v16534_v54 = vmov 0  }
 0x280   : > { %vm1574_vm12 = vcmp.lt.s32.totalorder %v1571_v12, %v1573_v47  ;;  %2656 = vmatprep.subr.bf16.mxu0 %v9350_v61  ;;  %v9374_v9 = vld [vmem:[#allocation5 + $0x4] ss:$8 sps:$4 sm:$0xff]  }
 0x281   : > { %v1575_v41 = vsel %vm1574_vm12, %v1571_v12, %v1573_v47  ;;  %v9369_v47 = vld [vmem:[#allocation7] ss:$8 sps:$4 sm:$0xff]  }
 0x282   : > { %v1576_v43 = vrot.slane %v1575_v41, 4  ;;  %2983 = vmatpush1.bf16.msra.mxu1 %v9333_v22  ;;  %v9372_v12 = vld [vmem:[#allocation5] ss:$8 sps:$4 sm:$0xff]  }
 0x283   : > { %2984 = vmatprep.subr.bf16.mxu1 %v9338_v46  ;;  %2657 = vmatpush1.bf16.msra.mxu0 %v9348_v24  ;;  %v11097_v24 = vsub.s32 0, %v10571_v11 }
 0x284   : > { %vm1577_vm13 = vcmp.lt.s32.totalorder %v1575_v41, %v1576_v43  ;;  %2658 = vmatprep.subr.bf16.mxu0 %v9356_v0 }
 0x285   : > { %v1578_v13 = vsel %vm1577_vm13, %v1575_v41, %v1576_v43  ;;  %16530 = vst [vmem:[#allocation55_spill] sm:$0xff] %v11097_v24 }
 0x286   : > { %v1579_v48 = vrot.slane %v1578_v13, 2  ;;  %2985 = vmatpush1.bf16.msra.mxu1 %v9336_v44 }
 0x287   : > { %2986 = vmatprep.subr.bf16.mxu1 %v9344_v51  ;;  %2659 = vmatpush1.bf16.msra.mxu0 %v9354_v29 }
 0x288   : > { %vm1580_vm14 = vcmp.lt.s32.totalorder %v1578_v13, %v1579_v48  ;;  %2660 = vmatprep.subr.bf16.mxu0 %v9359_v60 }
 0x289   : > { %v1581_v62 = vsel %vm1580_vm14, %v1578_v13, %v1579_v48 }
 0x28a   : > { %v1582_v4 = vrot.slane %v1581_v62, 1  ;;  %2987 = vmatpush1.bf16.msra.mxu1 %v9342_v50 }
 0x28b   : > { %2988 = vmatprep.subr.bf16.mxu1 %v9353_v45  ;;  %2661 = vmatpush1.bf16.msra.mxu0 %v9357_v7 }
 0x28c   : > { %vm1583_vm15 = vcmp.lt.s32.totalorder %v1581_v62, %v1582_v4  ;;  %2662 = vmatprep.subr.bf16.mxu0 %v9365_v53 }
 0x28d   : > { %v1584_v26 = vsel %vm1583_vm15, %v1581_v62, %v1582_v4 }
 0x28e   : > { %v1614_v37 = vrot.slane %v1584_v26, %v10625_v32  ;;  %1625 = vst.msk [vmem:[%s10843_s9] sm:$0x1] %vm10969_vm9, %v1584_v26  ;;  %2989 = vmatpush1.bf16.msra.mxu1 %v9351_v59  ;;  %v2034_v59 = vld [vmem:[#allocation14 + $0x2] ss:$8 sm:$0x3] }
 0x28f   : > { %2990 = vmatprep.subr.bf16.mxu1 %v9362_v63  ;;  %2663 = vmatpush1.bf16.msra.mxu0 %v9363_v52  ;;  %v11103_v60 = vrot.slane %v2034_v59, %v11097_v24 }
 0x290   : > { %v1621_v42 = vrot.slane %v1614_v37, %v10625_v32  ;;  %2664 = vmatprep.subr.bf16.mxu0 %v9368_v3 }
 0x292   : > { %1622 = vrot.lane.b32.xlu0 %v1621_v42, %s10167_s5  ;;  %2991 = vmatpush1.bf16.msra.mxu1 %v9360_v40  ;;  %v11106_v40 = vsub.s32 1, %v10571_v11  ;;  %s8296_s5 = sshll.u32 %s10824_s20, 4  ;;  %s15860_s5 = int_to_ptr.vmem [resolvable:$true] %s8296_s5 }
 0x293   : > { %2665 = vmatpush1.bf16.msra.mxu0 %v9366_v1  ;;  %2992 = vmatprep.subr.bf16.mxu1 %v9371_v6  ;;  %s9983_s2 = scalar_lea.vmem %s15860_s5, 16384  ;;  %p9990_p13 = scmp.lt.s32.totalorder %s15860_s5, %s9988_s24 }
 0x294   : > { %2666 = vmatprep.subr.bf16.mxu0 %v9374_v9  ;;  %16531 = vst [vmem:[#allocation56_spill] sm:$0xff] %v11106_v40  ;;  %p9984_p11 = scmp.ne.s32.totalorder %s15860_s5, %s9983_s2  ;;  %p9991_p0 = scmp.lt.s32.totalorder %s9989_s4, %s9983_s2 }
 0x296   : > { %2993 = vmatpush1.bf16.msra.mxu1 %v9369_v47  ;;  %p9985_p8 = pnand %p9984_p11, %p10315_p5  ;;  %p9992_p3 = por %p9991_p0, %p9990_p13 }
 0x297   : > { %2667 = vmatpush1.bf16.msra.mxu0 %v9372_v12  ;;  %v11116_v12 = vrot.slane %v2034_v59, %v11106_v40 }
 0x298   : > { %p9986_p1 = pneg %p9985_p8 }
 0x29a   : > { %p9993_p6 = pnand %p9992_p3, %p9986_p1 }
 0x2e7   : > { %v1601_v41 = vpop.permute.xlu0 %1600 }
 0x2e8   : > { %1606 = vst.msk [vmem:[%s10599_s28] sm:$0x1] %vm10969_vm9, %v1601_v41 }
 0x304   : > { %v1623_v43 = vpop.permute.xlu0 %1622 }
 0x305   : > { %v1954_v13 = vpop.f32.mrf.mxu1  ;;  %1624 = vst.msk [vmem:[%s10736_s0] sm:$0x1] %vm10969_vm9, %v1623_v43 }
 0x307   : > { %v1956_v16 = vpop.f32.mrf.mxu1 }
 0x309   : > { %v1958_v30 = vpop.f32.mrf.mxu1 }
 0x30b   : > { %v1960_v48 = vpop.f32.mrf.mxu1 }
 0x30d   : > { %v1964_v14 = vpop.f32.mrf.mxu1 }
 0x30f   : > { %v11066_v55 = vpop.f32.mrf.mxu1 }
 0x311   : > { %v1968_v62 = vpop.f32.mrf.mxu1 }
 0x313   : > { %v11068_v4 = vpop.f32.mrf.mxu1 }
 0x315   : > { %v1974_v27 = vpop.f32.mrf.mxu1 }
 0x317   : > { %v11070_v22 = vpop.f32.mrf.mxu1 }
 0x319   : > { %v11072_v26 = vpop.f32.mrf.mxu1 }
 0x31b   : > { %v11074_v37 = vpop.f32.mrf.mxu1 }
 0x31d   : > { %v11076_v42 = vpop.f32.mrf.mxu1 }
 0x31f   : > { %v11078_v17 = vpop.f32.mrf.mxu1 }
 0x321   : > { %v11080_v44 = vpop.f32.mrf.mxu1 }
 0x323   : > { %v11082_v46 = vpop.f32.mrf.mxu1 }
 0x325   : > { %v11084_v10 = vpop.f32.mrf.mxu1 }
 0x327   : > { %v11086_v5 = vpop.f32.mrf.mxu1 }
 0x329   : > { %v11088_v50 = vpop.f32.mrf.mxu1 }
 0x32b   : > { %v11090_v51 = vpop.f32.mrf.mxu1 }
 0x32d   : > { %v11092_v21 = vpop.f32.mrf.mxu1 }
 0x32f   : > { %v11094_v57 = vpop.f32.mrf.mxu1 }
 0x331   : > { %v2008_v61 = vpop.f32.mrf.mxu1 }
 0x333   : > { %v1825_v45 = vpop.f32.mrf.mxu0  ;;  %v2010_v29 = vpop.f32.mrf.mxu1 }
 0x334   : > { %v11100_v0 = vrot.slane %v1825_v45, %v11097_v24 }
 0x335   : > { %v1827_v7 = vpop.f32.mrf.mxu0  ;;  %v2014_v63 = vpop.f32.mrf.mxu1 }
 0x336   : > { %v11109_v52 = vrot.slane %v1827_v7, %v11097_v24  ;;  %v2009_v53 = vadd.f32 %v2008_v61, %v11100_v0  ;;  %v1955_v1 = vadd.f32 %v1954_v13, %v11100_v0  ;;  %v1959_v6 = vadd.f32 %v1958_v30, %v11100_v0 }
 0x337   : > { %v1829_v3 = vpop.f32.mrf.mxu0  ;;  %v2016_v47 = vpop.f32.mrf.mxu1  ;;  %v2015_v9 = vadd.f32 %v2014_v63, %v11100_v0  ;;  %v1985_v49 = vadd.f32 %v11076_v42, %v11100_v0 }
 0x338   : > { %v2046_v45 = vadd.f32 %v11103_v60, %v1955_v1  ;;  %v2048_v7 = vadd.f32 %v11103_v60, %v1959_v6  ;;  %v2068_v2 = vadd.f32 %v11103_v60, %v2009_v53  ;;  %v1957_v61 = vadd.f32 %v1956_v16, %v11109_v52 }
 0x339   : > { %v1830_v41 = vpop.f32.mrf.mxu0  ;;  %v2018_v43 = vpop.f32.mrf.mxu1  ;;  %v1961_v13 = vadd.f32 %v1960_v48, %v11109_v52  ;;  %v1965_v3 = vadd.f32 %v1964_v14, %v11100_v0  ;;  %v2011_v30 = vadd.f32 %v2010_v29, %v11109_v52  ;;  %v11127_v39 = vadd.f32 %v11103_v60, %v2015_v9 }
 0x33a   : > { %v2019_v63 = vadd.f32 %v2018_v43, %v11100_v0  ;;  %vm2078_vm9 = vcmp.gt.f32.partialorder %v2046_v45, 0.0  ;;  %v2110_v59 = vmul.f32 0.1, %v2046_v45  ;;  %v1969_v1 = vadd.f32 %v1968_v62, %v11100_v0 }
 0x33b   : > { %v2020_v41 = vpop.f32.mrf.mxu1  ;;  %v11131_v53 = vadd.f32 %v1974_v27, %v11100_v0  ;;  %v2017_v16 = vadd.f32 %v2016_v47, %v11109_v52  ;;  %vm2080_vm0 = vcmp.gt.f32.partialorder %v2048_v7, 0.0  ;;  %v2112_v43 = vmul.f32 0.1, %v2048_v7 }
 0x33c   : > { %v11134_v48 = vsel %vm2078_vm9, %v2046_v45, %v2110_v59  ;;  %v2021_v14 = vadd.f32 %v2020_v41, %v11109_v52  ;;  %v2072_v6 = vadd.f32 %v11103_v60, %v2019_v63  ;;  %v2047_v9 = vadd.f32 %v11116_v12, %v1957_v61 }
 0x33d   : > { %v2024_v29 = vpop.f32.mrf.mxu1  ;;  %2174 = vxpose.xlu0.b32.start [1/16] %v11134_v48, 128  ;;  %v2049_v62 = vadd.f32 %v11116_v12, %v1961_v13  ;;  %vm2100_vm1 = vcmp.gt.f32.partialorder %v2068_v2, 0.0  ;;  %v2132_v27 = vmul.f32 0.1, %v2068_v2  ;;  %v11142_v32 = vadd.f32 %v11116_v12, %v2011_v30 }
 0x33e   : > { %v2050_v45 = vadd.f32 %v11103_v60, %v1965_v3  ;;  %v11146_v59 = vmul.f32 0.1, %v11127_v39  ;;  %v11148_v41 = vsel %vm2080_vm0, %v2048_v7, %v2112_v43  ;;  %vm2079_vm2 = vcmp.gt.f32.partialorder %v2047_v9, 0.0 }
 0x33f   : > { %v2026_v47 = vpop.f32.mrf.mxu1  ;;  %v2025_v63 = vadd.f32 %v2024_v29, %v11100_v0  ;;  %v11152_v61 = vadd.f32 %v11116_v12, %v2017_v16  ;;  %v2551_v13 = vpack.c.bf16 %v11148_v41, %v11134_v48  ;;  %vm2081_vm4 = vcmp.gt.f32.partialorder %v2049_v62, 0.0 }
 0x340   : > { %v2111_v30 = vmul.f32 0.1, %v2047_v9  ;;  %v2136_v24 = vmul.f32 0.1, %v2072_v6  ;;  %v11157_v3 = vadd.f32 %v11116_v12, %v2021_v14  ;;  %v2113_v58 = vmul.f32 0.1, %v2049_v62 }
 0x341   : > { %v2028_v40 = vpop.f32.mrf.mxu1  ;;  %2175 = vxpose.xlu0.b32.cont [2/16] %v11148_v41, 128  ;;  %v2027_v7 = vadd.f32 %v2026_v47, %v11109_v52  ;;  %2685 = vmatmul.mubr.bf16.vlgmr.msra.gmra.mxu0 %v2551_v13  ;;  %vm2082_vm5 = vcmp.gt.f32.partialorder %v2050_v45, 0.0  ;;  %v2114_v43 = vmul.f32 0.1, %v2050_v45  ;;  %v11165_v8 = vsel %vm2100_vm1, %v2068_v2, %v2132_v27 }
 0x342   : > { %v11161_v29 = vsel %vm2079_vm2, %v2047_v9, %v2111_v30  ;;  %v2029_v16 = vadd.f32 %v2028_v40, %v11100_v0  ;;  %vm2104_vm6 = vcmp.gt.f32.partialorder %v2072_v6, 0.0  ;;  %v11167_v56 = vsel %vm2081_vm4, %v2049_v62, %v2113_v58  ;;  %2694 = vmatprep.mubr.bf16.mxu0 %v16534_v54 }
 0x343   : > { %16532 = vst [vmem:[#allocation57_spill] sm:$0xff] %v11161_v29  ;;  %16533 = vst [vmem:[#allocation58_spill] sm:$0xff] %v11167_v56  ;;  %2206 = vxpose.xlu1.b32.start [1/16] %v11161_v29, 128  ;;  %v11171_v14 = vadd.f32 %v11103_v60, %v2025_v63  ;;  %v11175_v9 = vmul.f32 0.1, %v11142_v32  ;;  %v2877_v40 = vpack.c.bf16 %v11167_v56, %v11161_v29  ;;  %v2030_v2 = vpop.f32.mrf.mxu1  ;;  %v11183_v58 = vmul.f32 0.1, %v11152_v61 }
 0x344   : > { %v11179_v47 = vsel %vm2082_vm5, %v2050_v45, %v2114_v43  ;;  %v2052_v27 = vadd.f32 %v11103_v60, %v1969_v1  ;;  %v11186_v62 = vmul.f32 0.1, %v11157_v3  ;;  %v2076_v63 = vadd.f32 %v11103_v60, %v2029_v16 }
 0x345   : > { %2176 = vxpose.xlu0.b32.cont [3/16] %v11179_v47, 128  ;;  %v1967_v13 = vadd.f32 %v11066_v55, %v11109_v52  ;;  %v11192_v30 = vsel %vm2104_vm6, %v2072_v6, %v2136_v24  ;;  %3011 = vmatmul.mubr.bf16.vlgmr.msra.gmra.mxu1 %v2877_v40  ;;  %v11195_v45 = vadd.f32 %v11116_v12, %v2027_v7  ;;  %v11198_v43 = vmul.f32 0.1, %v11171_v14 }
 0x346   : > { %vm2084_vm7 = vcmp.gt.f32.partialorder %v2052_v27, 0.0  ;;  %v2116_v1 = vmul.f32 0.1, %v2052_v27  ;;  %v2031_v16 = vadd.f32 %v2030_v2, %v11109_v52  ;;  %3020 = vmatprep.mubr.bf16.mxu1 %v16534_v54  ;;  %v1971_v55 = vadd.f32 %v11068_v4, %v11109_v52 }
 0x347   : > { %2207 = vxpose.xlu1.b32.cont [2/16] %v11167_v56, 128  ;;  %v2051_v31 = vadd.f32 %v11116_v12, %v1967_v13  ;;  %v2270_v24 = vmax.f32 %v11134_v48, %v11179_v47  ;;  %v2054_v7 = vadd.f32 %v11103_v60, %v11131_v53  ;;  %v1979_v40 = vadd.f32 %v11072_v26, %v11100_v0 }
 0x348   : > { %v11208_v6 = vsel %vm2084_vm7, %v2052_v27, %v2116_v1  ;;  %vm2108_vm8 = vcmp.gt.f32.partialorder %v2076_v63, 0.0  ;;  %v2140_v2 = vmul.f32 0.1, %v2076_v63  ;;  %v2053_v28 = vadd.f32 %v11116_v12, %v1971_v55 }
 0x349   : > { %v2552_v13 = vpack.c.bf16 %v11208_v6, %v11179_v47  ;;  %vm2083_vm10 = vcmp.gt.f32.partialorder %v2051_v31, 0.0  ;;  %2177 = vxpose.xlu0.b32.cont [4/16] %v11208_v6, 128  ;;  %v2115_v4 = vmul.f32 0.1, %v2051_v31  ;;  %vm2086_vm11 = vcmp.gt.f32.partialorder %v2054_v7, 0.0 }
 0x34a   : > { %v2118_v27 = vmul.f32 0.1, %v2054_v7  ;;  %v2056_v1 = vadd.f32 %v11103_v60, %v1979_v40  ;;  %v1977_v53 = vadd.f32 %v11070_v22, %v11109_v52  ;;  %v1981_v26 = vadd.f32 %v11074_v37, %v11109_v52 }
 0x34b   : > { %2695 = vmatmul.mubr.bf16.gmra.mxu0 %v2552_v13  ;;  %v11225_v38 = vsel %vm2083_vm10, %v2051_v31, %v2115_v4  ;;  %vm2085_vm12 = vcmp.gt.f32.partialorder %v2053_v28, 0.0  ;;  %v2117_v25 = vmul.f32 0.1, %v2053_v28  ;;  %v11231_v55 = vsel %vm2108_vm8, %v2076_v63, %v2140_v2 }
 0x34c   : > { %16535 = vst [vmem:[#allocation59_spill] sm:$0xff] %v11225_v38  ;;  %v11227_v23 = vsel %vm2086_vm11, %v2054_v7, %v2118_v27  ;;  %2704 = vmatprep.mubr.bf16.mxu0 %v16534_v54  ;;  %v11234_v40 = vadd.f32 %v11116_v12, %v2031_v16  ;;  %2208 = vxpose.xlu1.b32.cont [3/16] %v11225_v38, 128  ;;  %vm2088_vm13 = vcmp.gt.f32.partialorder %v2056_v1, 0.0  ;;  %v2120_v22 = vmul.f32 0.1, %v2056_v1 }
 0x34d   : > { %2178 = vxpose.xlu0.b32.cont [5/16] %v11227_v23, 128  ;;  %v11238_v31 = vsel %vm2085_vm12, %v2053_v28, %v2117_v25  ;;  %v2055_v37 = vadd.f32 %v11116_v12, %v1977_v53  ;;  %v2057_v42 = vadd.f32 %v11116_v12, %v1981_v26  ;;  %v2058_v7 = vadd.f32 %v11103_v60, %v1985_v49 }
 0x34e   : > { %16536 = vst [vmem:[#allocation60_spill] sm:$0xff] %v11238_v31  ;;  %v2271_v63 = vmax.f32 %v11148_v41, %v11208_v6  ;;  %v2878_v16 = vpack.c.bf16 %v11238_v31, %v11225_v38  ;;  %v11247_v2 = vsel %vm2088_vm13, %v2056_v1, %v2120_v22  ;;  %v1989_v13 = vadd.f32 %v11080_v44, %v11100_v0 }
 0x34f   : > { %v2291_v25 = vmax.f32 %v11161_v29, %v11225_v38  ;;  %v2553_v28 = vpack.c.bf16 %v11247_v2, %v11227_v23  ;;  %vm2087_vm14 = vcmp.gt.f32.partialorder %v2055_v37, 0.0  ;;  %v2119_v4 = vmul.f32 0.1, %v2055_v37 }
 0x350   : > { %3021 = vmatmul.mubr.bf16.gmra.mxu1 %v2878_v16  ;;  %2209 = vxpose.xlu1.b32.cont [4/16] %v11238_v31, 128  ;;  %vm2089_vm15 = vcmp.gt.f32.partialorder %v2057_v42, 0.0  ;;  %v2121_v49 = vmul.f32 0.1, %v2057_v42  ;;  %vm2090_vm9 = vcmp.gt.f32.partialorder %v2058_v7, 0.0  ;;  %v2122_v27 = vmul.f32 0.1, %v2058_v7 }
 0x351   : > { %v11257_v1 = vmul.f32 0.1, %v11195_v45  ;;  %v2292_v44 = vmax.f32 %v11167_v56, %v11238_v31  ;;  %3030 = vmatprep.mubr.bf16.mxu1 %v16534_v54  ;;  %2179 = vxpose.xlu0.b32.cont [6/16] %v11247_v2, 128  ;;  %v2060_v53 = vadd.f32 %v11103_v60, %v1989_v13  ;;  %v1987_v26 = vadd.f32 %v11078_v17, %v11109_v52 }
 0x352   : > { %v2272_v22 = vmax.f32 %v2270_v24, %v11227_v23  ;;  %v11268_v16 = vsel %vm2087_vm14, %v2055_v37, %v2119_v4  ;;  %v11270_v38 = vsel %vm2089_vm15, %v2057_v42, %v2121_v49  ;;  %v1991_v31 = vadd.f32 %v11082_v46, %v11109_v52 }
 0x353   : > { %2705 = vmatmul.mubr.bf16.gmra.mxu0 %v2553_v28  ;;  %v2273_v56 = vmax.f32 %v2271_v63, %v11247_v2  ;;  %v11276_v29 = vmax.f32 %v2291_v25, %v11268_v16  ;;  %v11278_v13 = vsel %vm2090_vm9, %v2058_v7, %v2122_v27  ;;  %vm2092_vm0 = vcmp.gt.f32.partialorder %v2060_v53, 0.0 }
 0x354   : > { %2714 = vmatprep.mubr.bf16.mxu0 %v16534_v54  ;;  %2210 = vxpose.xlu1.b32.cont [5/16] %v11268_v16, 128  ;;  %v2124_v17 = vmul.f32 0.1, %v2060_v53  ;;  %v2059_v24 = vadd.f32 %v11116_v12, %v1987_v26  ;;  %v2061_v37 = vadd.f32 %v11116_v12, %v1991_v31  ;;  %v1995_v46 = vadd.f32 %v11084_v10, %v11100_v0 }
 0x355   : > { %v11287_v42 = vmax.f32 %v2292_v44, %v11270_v38  ;;  %v2879_v7 = vpack.c.bf16 %v11270_v38, %v11268_v16  ;;  %2180 = vxpose.xlu0.b32.cont [7/16] %v11278_v13, 128  ;;  %v1999_v63 = vadd.f32 %v11088_v50, %v11100_v0  ;;  %v1997_v25 = vadd.f32 %v11086_v5, %v11109_v52 }
 0x356   : > { %v11296_v28 = vsel %vm2092_vm0, %v2060_v53, %v2124_v17  ;;  %v2123_v31 = vmul.f32 0.1, %v2059_v24  ;;  %v2001_v10 = vadd.f32 %v11090_v51, %v11109_v52  ;;  %v2005_v4 = vadd.f32 %v11092_v21, %v11100_v0 }
 0x357   : > { %vm2101_vm1 = vcmp.gt.f32.partialorder %v11142_v32, 0.0  ;;  %vm2091_vm2 = vcmp.gt.f32.partialorder %v2059_v24, 0.0  ;;  %vm2093_vm4 = vcmp.gt.f32.partialorder %v2061_v37, 0.0  ;;  %v2125_v49 = vmul.f32 0.1, %v2061_v37 }
 0x358   : > { %v2062_v27 = vadd.f32 %v11103_v60, %v1995_v46  ;;  %v11305_v50 = vmul.f32 0.1, %v11234_v40  ;;  %3031 = vmatmul.mubr.bf16.gmra.mxu1 %v2879_v7  ;;  %2211 = vxpose.xlu1.b32.cont [6/16] %v11270_v38, 128  ;;  %v2554_v5 = vpack.c.bf16 %v11296_v28, %v11278_v13  ;;  %v2064_v51 = vadd.f32 %v11103_v60, %v1999_v63 }
 0x359   : > { %v2063_v21 = vadd.f32 %v11116_v12, %v1997_v25  ;;  %vm2105_vm5 = vcmp.gt.f32.partialorder %v11157_v3, 0.0  ;;  %v2274_v0 = vmax.f32 %v2272_v22, %v11278_v13  ;;  %v2275_v44 = vmax.f32 %v2273_v56, %v11296_v28  ;;  %3040 = vmatprep.mubr.bf16.mxu1 %v16534_v54  ;;  %2181 = vxpose.xlu0.b32.cont [8/16] %v11296_v28, 128 }
 0x35a   : > { %vm2094_vm6 = vcmp.gt.f32.partialorder %v2062_v27, 0.0  ;;  %v2126_v53 = vmul.f32 0.1, %v2062_v27  ;;  %vm2109_vm7 = vcmp.gt.f32.partialorder %v11234_v40, 0.0  ;;  %v11319_v26 = vsel %vm2091_vm2, %v2059_v24, %v2123_v31 }
 0x35b   : > { %2715 = vmatmul.mubr.bf16.gmra.mxu0 %v2554_v5  ;;  %v11322_v17 = vsel %vm2093_vm4, %v2061_v37, %v2125_v49  ;;  %vm2096_vm8 = vcmp.gt.f32.partialorder %v2064_v51, 0.0  ;;  %v2128_v46 = vmul.f32 0.1, %v2064_v51  ;;  %v2295_v56 = vmax.f32 %v11276_v29, %v11319_v26 }
 0x35c   : > { %v2296_v22 = vmax.f32 %v11287_v42, %v11322_v17  ;;  %v11328_v7 = vsel %vm2094_vm6, %v2062_v27, %v2126_v53  ;;  %2724 = vmatprep.mubr.bf16.mxu0 %v16534_v54  ;;  %v2065_v63 = vadd.f32 %v11116_v12, %v2001_v10  ;;  %2212 = vxpose.xlu1.b32.cont [7/16] %v11319_v26, 128  ;;  %v2127_v37 = vmul.f32 0.1, %v2063_v21 }
 0x35d   : > { %v11333_v24 = vsel %vm2096_vm8, %v2064_v51, %v2128_v46  ;;  %v2066_v25 = vadd.f32 %v11103_v60, %v2005_v4  ;;  %v2007_v31 = vadd.f32 %v11094_v57, %v11109_v52  ;;  %v2276_v29 = vmax.f32 %v2274_v0, %v11328_v7  ;;  %2182 = vxpose.xlu0.b32.cont [9/16] %v11328_v7, 128 }
 0x35e   : > { %v2277_v42 = vmax.f32 %v2275_v44, %v11333_v24  ;;  %vm2095_vm10 = vcmp.gt.f32.partialorder %v2063_v21, 0.0  ;;  %vm2097_vm11 = vcmp.gt.f32.partialorder %v2065_v63, 0.0  ;;  %v2880_v10 = vpack.c.bf16 %v11322_v17, %v11319_v26 }
 0x35f   : > { %v2129_v49 = vmul.f32 0.1, %v2065_v63  ;;  %vm2098_vm12 = vcmp.gt.f32.partialorder %v2066_v25, 0.0  ;;  %v2130_v27 = vmul.f32 0.1, %v2066_v25  ;;  %v2555_v60 = vpack.c.bf16 %v11333_v24, %v11328_v7 }
 0x360   : > { %v2279_v5 = vmax.f32 %v2277_v42, %v11165_v8  ;;  %v2067_v57 = vadd.f32 %v11116_v12, %v2007_v31  ;;  %vm2102_vm13 = vcmp.gt.f32.partialorder %v11127_v39, 0.0  ;;  %3041 = vmatmul.mubr.bf16.gmra.mxu1 %v2880_v10  ;;  %2213 = vxpose.xlu1.b32.cont [8/16] %v11322_v17, 128  ;;  %v11349_v52 = vsel %vm2095_vm10, %v2063_v21, %v2127_v37 }
 0x361   : > { %v11351_v4 = vsel %vm2097_vm11, %v2065_v63, %v2129_v49  ;;  %v11353_v51 = vsel %vm2098_vm12, %v2066_v25, %v2130_v27  ;;  %vm2106_vm14 = vcmp.gt.f32.partialorder %v11171_v14, 0.0  ;;  %v2297_v0 = vmax.f32 %v2295_v56, %v11349_v52  ;;  %3050 = vmatprep.mubr.bf16.mxu1 %v16534_v54  ;;  %2183 = vxpose.xlu0.b32.cont [10/16] %v11333_v24, 128 }
 0x362   : > { %v2298_v44 = vmax.f32 %v2296_v22, %v11351_v4  ;;  %v2278_v12 = vmax.f32 %v2276_v29, %v11353_v51  ;;  %vm2099_vm15 = vcmp.gt.f32.partialorder %v2067_v57, 0.0  ;;  %v2131_v21 = vmul.f32 0.1, %v2067_v57 }
 0x363   : > { %2725 = vmatmul.mubr.bf16.gmra.mxu0 %v2555_v60  ;;  %v11365_v53 = vsel %vm2101_vm1, %v11142_v32, %v11175_v9  ;;  %v11371_v46 = vsel %vm2102_vm13, %v11127_v39, %v11146_v59  ;;  %v11375_v56 = vsel %vm2106_vm14, %v11171_v14, %v11198_v43  ;;  %vm2103_vm9 = vcmp.gt.f32.partialorder %v11152_v61, 0.0 }
 0x364   : > { %2734 = vmatprep.mubr.bf16.mxu0 %v16534_v54  ;;  %v2300_v22 = vmax.f32 %v2298_v44, %v11365_v53  ;;  %v2280_v63 = vmax.f32 %v2278_v12, %v11371_v46  ;;  %v2281_v32 = vmax.f32 %v2279_v5, %v11192_v30  ;;  %v11386_v39 = vsel %vm2105_vm5, %v11157_v3, %v11186_v62 }
 0x365   : > { %2214 = vxpose.xlu1.b32.cont [9/16] %v11349_v52, 128  ;;  %v11389_v59 = vsel %vm2099_vm15, %v2067_v57, %v2131_v21  ;;  %vm2107_vm0 = vcmp.gt.f32.partialorder %v11195_v45, 0.0  ;;  %v11396_v14 = vsel %vm2109_vm7, %v11234_v40, %v11305_v50  ;;  %2184 = vxpose.xlu0.b32.cont [11/16] %v11353_v51, 128  ;;  %v2881_v62 = vpack.c.bf16 %v11351_v4, %v11349_v52 }
 0x366   : > { %v2299_v9 = vmax.f32 %v2297_v0, %v11389_v59  ;;  %v2282_v43 = vmax.f32 %v2280_v63, %v11375_v56  ;;  %v2283_v3 = vmax.f32 %v2281_v32, %v11231_v55  ;;  %v11406_v37 = vsel %vm2103_vm9, %v11152_v61, %v11183_v58 }
 0x367   : > { %v11410_v25 = vsel %vm2107_vm0, %v11195_v45, %v11257_v1  ;;  %v2302_v40 = vmax.f32 %v2300_v22, %v11386_v39  ;;  %v2556_v29 = vpack.c.bf16 %v11165_v8, %v11353_v51  ;;  %v2882_v27 = vpack.c.bf16 %v11365_v53, %v11389_v59 }
 0x368   : > { %v2301_v50 = vmax.f32 %v2299_v9, %v11406_v37  ;;  %v2284_v31 = vmax.f32 %v2282_v43, %v2283_v3  ;;  %3051 = vmatmul.mubr.bf16.gmra.mxu1 %v2881_v62  ;;  %v2557_v60 = vpack.c.bf16 %v11192_v30, %v11371_v46  ;;  %v2883_v21 = vpack.c.bf16 %v11386_v39, %v11406_v37 }
 0x369   : > { %2215 = vxpose.xlu1.b32.cont [10/16] %v11351_v4, 128  ;;  %v2304_v42 = vmax.f32 %v2302_v40, %v11396_v14  ;;  %3060 = vmatprep.mubr.bf16.mxu1 %v16534_v54  ;;  %v2558_v22 = vpack.c.bf16 %v11231_v55, %v11375_v56 }
 0x36a   : > { %2185 = vxpose.xlu0.b32.cont [12/16] %v11165_v8, 128  ;;  %v2285_v61 = vrot.slane %v2284_v31, 4  ;;  %v2303_v58 = vmax.f32 %v2301_v50, %v11410_v25 }
 0x36b   : > { %2735 = vmatmul.mubr.bf16.gmra.mxu0 %v2556_v29  ;;  %v16538_v29 = vld [vmem:[#allocation41_spill] sm:$0xff] }
 0x36c   : > { %2744 = vmatprep.mubr.bf16.mxu0 %v16534_v54  ;;  %v2286_v45 = vmax.f32 %v2284_v31, %v2285_v61  ;;  %v2305_v1 = vmax.f32 %v2303_v58, %v2304_v42 }
 0x36d   : > { %2216 = vxpose.xlu1.b32.cont [11/16] %v11389_v59, 128 }
 0x36e   : > { %2186 = vxpose.xlu0.b32.cont [13/16] %v11371_v46, 128  ;;  %v2287_v10 = vrot.slane %v2286_v45, 2  ;;  %v2306_v49 = vrot.slane %v2305_v1, 4 }
 0x370   : > { %v2288_v5 = vmax.f32 %v2286_v45, %v2287_v10  ;;  %3061 = vmatmul.mubr.bf16.gmra.mxu1 %v2882_v27  ;;  %v2307_v0 = vmax.f32 %v2305_v1, %v2306_v49  ;;  %v16539_v45 = vld [vmem:[#allocation49_spill] sm:$0xff]  ;;  %v16540_v1 = vld [vmem:[#allocation50_spill] sm:$0xff]  ;;  %v16542_v27 = vld [vmem:[#allocation43_spill] sm:$0xff] }
 0x371   : > { %2217 = vxpose.xlu1.b32.cont [12/16] %v11365_v53, 128  ;;  %3070 = vmatprep.mubr.bf16.mxu1 %v16534_v54 }
 0x372   : > { %2187 = vxpose.xlu0.b32.cont [14/16] %v11192_v30, 128  ;;  %v2289_v57 = vrot.slane %v2288_v5, 1  ;;  %v2308_v12 = vrot.slane %v2307_v0, 2 }
 0x373   : > { %2745 = vmatmul.mubr.bf16.gmra.mxu0 %v2557_v60 }
 0x374   : > { %v11431_v44 = vmax.f32 %v2288_v5, %v2289_v57  ;;  %2754 = vmatprep.mubr.bf16.mxu0 %v16534_v54  ;;  %v2309_v63 = vmax.f32 %v2307_v0, %v2308_v12  ;;  %v16543_v57 = vld [vmem:[#allocation51_spill] sm:$0xff] }
 0x375   : > { %2218 = vxpose.xlu1.b32.cont [13/16] %v11406_v37, 128 }
 0x376   : > { %2455 = vst.msk [vmem:[%s10599_s28 + $0x1] sm:$0x1] %vm10963_vm3, %v11431_v44  ;;  %2188 = vxpose.xlu0.b32.cont [15/16] %v11375_v56, 128  ;;  %vm2312_vm1 = vcmp.eq.f32.partialorder %v11134_v48, %v11431_v44  ;;  %vm2314_vm2 = vcmp.eq.f32.partialorder %v11148_v41, %v11431_v44  ;;  %vm2316_vm4 = vcmp.eq.f32.partialorder %v11179_v47, %v11431_v44 }
 0x377   : > { %vm2318_vm5 = vcmp.eq.f32.partialorder %v11208_v6, %v11431_v44  ;;  %v2344_v48 = vsel %vm2312_vm1, %v10571_v11, 128  ;;  %v2346_v41 = vsel %vm2314_vm2, %v10587_v18, 128  ;;  %v2348_v47 = vsel %vm2316_vm4, %v10628_v33, 128 }
 0x378   : > { %3071 = vmatmul.mubr.bf16.gmra.mxu1 %v2883_v21  ;;  %v2350_v32 = vsel %vm2318_vm5, %v10631_v34, 128  ;;  %vm2320_vm6 = vcmp.eq.f32.partialorder %v11227_v23, %v11431_v44  ;;  %vm2322_vm7 = vcmp.eq.f32.partialorder %v11247_v2, %v11431_v44  ;;  %vm2324_vm8 = vcmp.eq.f32.partialorder %v11278_v13, %v11431_v44  ;;  %v16537_v13 = vld [vmem:[#allocation40_spill] sm:$0xff] }
 0x379   : > { %2219 = vxpose.xlu1.b32.cont [14/16] %v11386_v39, 128  ;;  %3080 = vmatprep.mubr.bf16.mxu1 %v16534_v54  ;;  %v2884_v54 = vpack.c.bf16 %v11396_v14, %v11410_v25  ;;  %vm2326_vm10 = vcmp.eq.f32.partialorder %v11296_v28, %v11431_v44  ;;  %vm2328_vm11 = vcmp.eq.f32.partialorder %v11328_v7, %v11431_v44  ;;  %v2310_v23 = vrot.slane %v2309_v63, 1 }
 0x37a   : > { %2189 = vxpose.xlu0.b32.end [16/16] %v11231_v55, 128  ;;  %vm2330_vm12 = vcmp.eq.f32.partialorder %v11333_v24, %v11431_v44  ;;  %vm2332_vm13 = vcmp.eq.f32.partialorder %v11353_v51, %v11431_v44  ;;  %vm2376_vm14 = vcmp.lt.s32.totalorder %v2344_v48, %v2348_v47  ;;  %vm2378_vm15 = vcmp.lt.s32.totalorder %v2346_v41, %v2350_v32 }
 0x37b   : > { %2755 = vmatmul.mubr.bf16.gmra.mxu0 %v2558_v22  ;;  %v2352_v6 = vsel %vm2320_vm6, %v10590_v19, 128  ;;  %v2354_v2 = vsel %vm2322_vm7, %v10593_v20, 128  ;;  %v2377_v9 = vsel %vm2376_vm14, %v2344_v48, %v2348_v47  ;;  %v2379_v43 = vsel %vm2378_vm15, %v2346_v41, %v2350_v32 }
 0x37c   : > { %vm2334_vm9 = vcmp.eq.f32.partialorder %v11165_v8, %v11431_v44  ;;  %vm2380_vm0 = vcmp.lt.s32.totalorder %v2377_v9, %v2352_v6  ;;  %vm2382_vm1 = vcmp.lt.s32.totalorder %v2379_v43, %v2354_v2  ;;  %v11480_v3 = vmax.f32 %v2309_v63, %v2310_v23  ;;  %v16544_v8 = vld [vmem:[#allocation52_spill] sm:$0xff]  ;;  %v16545_v63 = vld [vmem:[#allocation57_spill] sm:$0xff] }
 0x37d   : > { %2220 = vxpose.xlu1.b32.cont [15/16] %v11410_v25, 128  ;;  %v2356_v62 = vsel %vm2324_vm8, %v10661_v35, 128  ;;  %v2358_v40 = vsel %vm2326_vm10, %v10664_v36, 128  ;;  %v2381_v50 = vsel %vm2380_vm0, %v2377_v9, %v2352_v6  ;;  %v2383_v31 = vsel %vm2382_vm1, %v2379_v43, %v2354_v2 }
 0x37e   : > { %vm2336_vm2 = vcmp.eq.f32.partialorder %v11371_v46, %v11431_v44  ;;  %vm2338_vm4 = vcmp.eq.f32.partialorder %v11192_v30, %v11431_v44  ;;  %vm2384_vm5 = vcmp.lt.s32.totalorder %v2381_v50, %v2356_v62  ;;  %vm2386_vm6 = vcmp.lt.s32.totalorder %v2383_v31, %v2358_v40  ;;  %2456 = vst.msk [vmem:[%s10820_s26 + $0x1] sm:$0x1] %vm10963_vm3, %v11480_v3  ;;  %v16546_v46 = vld [vmem:[#allocation59_spill] sm:$0xff]  ;;  %v16547_v30 = vld [vmem:[#allocation58_spill] sm:$0xff] }
 0x37f   : > { %v2360_v28 = vsel %vm2328_vm11, %v16537_v13, 128  ;;  %v2362_v42 = vsel %vm2330_vm12, %v16538_v29, 128  ;;  %v2385_v61 = vsel %vm2384_vm5, %v2381_v50, %v2356_v62  ;;  %v2387_v58 = vsel %vm2386_vm6, %v2383_v31, %v2358_v40 }
 0x380   : > { %3081 = vmatmul.mubr.bf16.gmra.mxu1 %v2884_v54  ;;  %vm2340_vm7 = vcmp.eq.f32.partialorder %v11375_v56, %v11431_v44  ;;  %vm2342_vm8 = vcmp.eq.f32.partialorder %v11231_v55, %v11431_v44  ;;  %vm2388_vm10 = vcmp.lt.s32.totalorder %v2385_v61, %v2360_v28  ;;  %vm2390_vm14 = vcmp.lt.s32.totalorder %v2387_v58, %v2362_v42  ;;  %v16541_v56 = vld [vmem:[#allocation42_spill] sm:$0xff]  ;;  %v16548_v44 = vld [vmem:[#allocation60_spill] sm:$0xff] }
 0x381   : > { %2221 = vxpose.xlu1.b32.end [16/16] %v11396_v14, 128  ;;  %v2364_v7 = vsel %vm2332_vm13, %v16539_v45, 128  ;;  %v2366_v24 = vsel %vm2334_vm9, %v16540_v1, 128  ;;  %v2389_v10 = vsel %vm2388_vm10, %v2385_v61, %v2360_v28  ;;  %v2391_v49 = vsel %vm2390_vm14, %v2387_v58, %v2362_v42 }
 0x382   : > { %vm2392_vm11 = vcmp.lt.s32.totalorder %v2389_v10, %v2364_v7  ;;  %vm2394_vm12 = vcmp.lt.s32.totalorder %v2391_v49, %v2366_v24  ;;  %v2368_v55 = vsel %vm2336_vm2, %v16541_v56, 128  ;;  %v2370_v51 = vsel %vm2338_vm4, %v16542_v27, 128 }
 0x383   : > { %v2393_v5 = vsel %vm2392_vm11, %v2389_v10, %v2364_v7  ;;  %v2395_v60 = vsel %vm2394_vm12, %v2391_v49, %v2366_v24  ;;  %v2372_v0 = vsel %vm2340_vm7, %v16543_v57, 128  ;;  %v2374_v12 = vsel %vm2342_vm8, %v16544_v8, 128 }
 0x384   : > { %vm2396_vm13 = vcmp.lt.s32.totalorder %v2393_v5, %v2368_v55  ;;  %vm2398_vm15 = vcmp.lt.s32.totalorder %v2395_v60, %v2370_v51  ;;  %vm2313_vm9 = vcmp.eq.f32.partialorder %v16545_v63, %v11480_v3  ;;  %vm2317_vm0 = vcmp.eq.f32.partialorder %v16546_v46, %v11480_v3 }
 0x385   : > { %v2397_v21 = vsel %vm2396_vm13, %v2393_v5, %v2368_v55  ;;  %v2399_v22 = vsel %vm2398_vm15, %v2395_v60, %v2370_v51  ;;  %vm2315_vm4 = vcmp.eq.f32.partialorder %v16547_v30, %v11480_v3  ;;  %vm2319_vm5 = vcmp.eq.f32.partialorder %v16548_v44, %v11480_v3  ;;  %v1461_v51 = vpop.trf.xlu1 }
 0x386   : > { %vm2400_vm1 = vcmp.lt.s32.totalorder %v2397_v21, %v2372_v0  ;;  %vm2402_vm2 = vcmp.lt.s32.totalorder %v2399_v22, %v2374_v12  ;;  %vm2321_vm6 = vcmp.eq.f32.partialorder %v11268_v16, %v11480_v3  ;;  %vm2323_vm7 = vcmp.eq.f32.partialorder %v11270_v38, %v11480_v3  ;;  %1477 = vst [vmem:[%s10824_s20 + $0x40] sm:$0xff] %v1461_v51 }
 0x387   : > { %v2401_v48 = vsel %vm2400_vm1, %v2397_v21, %v2372_v0  ;;  %v2403_v41 = vsel %vm2402_vm2, %v2399_v22, %v2374_v12  ;;  %vm2325_vm10 = vcmp.eq.f32.partialorder %v11319_v26, %v11480_v3  ;;  %v2345_v47 = vsel %vm2313_vm9, %v10571_v11, 128 }
 0x388   : > { %vm2404_vm8 = vcmp.lt.s32.totalorder %v2401_v48, %v2403_v41  ;;  %v2349_v32 = vsel %vm2317_vm0, %v10628_v33, 128  ;;  %vm2327_vm14 = vcmp.eq.f32.partialorder %v11322_v17, %v11480_v3  ;;  %v2347_v23 = vsel %vm2315_vm4, %v10587_v18, 128 }
 0x389   : > { %v2405_v54 = vsel %vm2404_vm8, %v2401_v48, %v2403_v41  ;;  %v2351_v6 = vsel %vm2319_vm5, %v10631_v34, 128  ;;  %vm2329_vm11 = vcmp.eq.f32.partialorder %v11349_v52, %v11480_v3  ;;  %vm2331_vm12 = vcmp.eq.f32.partialorder %v11351_v4, %v11480_v3  ;;  %v1462_v63 = vpop.trf.xlu1 }
 0x38a   : > { %v2406_v2 = vrot.slane %v2405_v54, 4  ;;  %vm2333_vm13 = vcmp.eq.f32.partialorder %v11389_v59, %v11480_v3  ;;  %vm2335_vm15 = vcmp.eq.f32.partialorder %v11365_v53, %v11480_v3  ;;  %vm2337_vm9 = vcmp.eq.f32.partialorder %v11406_v37, %v11480_v3  ;;  %1478 = vst [vmem:[%s10824_s20 + $0x48] sm:$0xff] %v1462_v63 }
 0x38b   : > { %vm2339_vm0 = vcmp.eq.f32.partialorder %v11386_v39, %v11480_v3  ;;  %vm2415_vm1 = vcmp.lt.s32.totalorder %v2345_v47, %v2349_v32  ;;  %v2353_v9 = vsel %vm2321_vm6, %v10590_v19, 128  ;;  %vm2417_vm4 = vcmp.lt.s32.totalorder %v2347_v23, %v2351_v6 }
 0x38c   : > { %vm2407_vm2 = vcmp.lt.s32.totalorder %v2405_v54, %v2406_v2  ;;  %v2416_v43 = vsel %vm2415_vm1, %v2345_v47, %v2349_v32  ;;  %v2355_v40 = vsel %vm2323_vm7, %v10593_v20, 128  ;;  %v2418_v50 = vsel %vm2417_vm4, %v2347_v23, %v2351_v6  ;;  %v9377_v23 = vld [vmem:[#allocation10 + $0xe4] ss:$16 sps:$4 sm:$0xff]   ;;  %v9378_v6 = vld [vmem:[#allocation10 + $0xe8] ss:$16 sps:$4 sm:$0xff]  }
 0x38d   : > { %v2408_v62 = vsel %vm2407_vm2, %v2405_v54, %v2406_v2  ;;  %vm2419_vm5 = vcmp.lt.s32.totalorder %v2416_v43, %v2353_v9  ;;  %v2357_v28 = vsel %vm2325_vm10, %v10661_v35, 128  ;;  %vm2421_vm8 = vcmp.lt.s32.totalorder %v2418_v50, %v2355_v40  ;;  %v1463_v41 = vpop.trf.xlu1  ;;  %v9375_v54 = vld [vmem:[#allocation10 + $0xe0] ss:$16 sps:$4 sm:$0xff]   ;;  %v9380_v2 = vld [vmem:[#allocation10 + $0xec] ss:$16 sps:$4 sm:$0xff]   ;;  %4425 = vmatprep.subr.bf16.mxu0 %v9377_v23 }
 0x38e   : > { %v2409_v31 = vrot.slane %v2408_v62, 2  ;;  %v2420_v42 = vsel %vm2419_vm5, %v2416_v43, %v2353_v9  ;;  %vm2341_vm6 = vcmp.eq.f32.partialorder %v11410_v25, %v11480_v3  ;;  %v2359_v16 = vsel %vm2327_vm14, %v10664_v36, 128  ;;  %1479 = vst [vmem:[%s10824_s20 + $0x50] sm:$0xff] %v1463_v41  ;;  %4466 = vmatprep.subr.bf16.mxu1 %v9380_v2  ;;  %4426 = vmatpush1.bf16.msra.mxu0 %v9375_v54  ;;  %v9413_v2 = vld [vmem:[#allocation10 + $0x24] ss:$16 sps:$4 sm:$0xff]  }
 0x38f   : > { %v2422_v38 = vsel %vm2421_vm8, %v2418_v50, %v2355_v40  ;;  %vm2423_vm7 = vcmp.lt.s32.totalorder %v2420_v42, %v2357_v28  ;;  %v2361_v61 = vsel %vm2329_vm11, %v16537_v13, 128  ;;  %v2363_v7 = vsel %vm2331_vm12, %v16538_v29, 128  ;;  %4467 = vmatpush1.bf16.msra.mxu1 %v9378_v6  ;;  %v9381_v50 = vld [vmem:[#allocation10 + $0xc0] ss:$16 sps:$4 sm:$0xff]  }
 0x390   : > { %vm2410_vm1 = vcmp.lt.s32.totalorder %v2408_v62, %v2409_v31  ;;  %v2424_v26 = vsel %vm2423_vm7, %v2420_v42, %v2357_v28  ;;  %vm2425_vm10 = vcmp.lt.s32.totalorder %v2422_v38, %v2359_v16  ;;  %v2365_v10 = vsel %vm2333_vm13, %v16539_v45, 128  ;;  %v9384_v28 = vld [vmem:[#allocation10 + $0xc8] ss:$16 sps:$4 sm:$0xff]   ;;  %v9411_v6 = vld [vmem:[#allocation10 + $0x20] ss:$16 sps:$4 sm:$0xff]  }
 0x391   : > { %v2411_v58 = vsel %vm2410_vm1, %v2408_v62, %v2409_v31  ;;  %v2426_v24 = vsel %vm2425_vm10, %v2422_v38, %v2359_v16  ;;  %vm2427_vm2 = vcmp.lt.s32.totalorder %v2424_v26, %v2361_v61  ;;  %vm2343_vm11 = vcmp.eq.f32.partialorder %v11396_v14, %v11480_v3  ;;  %v1464_v43 = vpop.trf.xlu1  ;;  %v9383_v31 = vld [vmem:[#allocation10 + $0xc4] ss:$16 sps:$4 sm:$0xff]   ;;  %v9386_v16 = vld [vmem:[#allocation10 + $0xcc] ss:$16 sps:$4 sm:$0xff]  }
 0x392   : > { %v2412_v17 = vrot.slane %v2411_v58, 1  ;;  %v2428_v49 = vsel %vm2427_vm2, %v2424_v26, %v2361_v61  ;;  %vm2429_vm14 = vcmp.lt.s32.totalorder %v2426_v24, %v2363_v7  ;;  %v2367_v52 = vsel %vm2335_vm15, %v16540_v1, 128  ;;  %1480 = vst [vmem:[%s10824_s20 + $0x58] sm:$0xff] %v1464_v43  ;;  %4427 = vmatprep.subr.bf16.mxu0 %v9383_v31  ;;  %4468 = vmatprep.subr.bf16.mxu1 %v9386_v16  ;;  %v9417_v16 = vld [vmem:[#allocation10] ss:$16 sps:$4 sm:$0xff]  }
 0x393   : > { %v2430_v4 = vsel %vm2429_vm14, %v2426_v24, %v2363_v7  ;;  %vm2431_vm12 = vcmp.lt.s32.totalorder %v2428_v49, %v2365_v10  ;;  %v2369_v59 = vsel %vm2337_vm9, %v16541_v56, 128  ;;  %v2371_v60 = vsel %vm2339_vm0, %v16542_v27, 128  ;;  %4428 = vmatpush1.bf16.msra.mxu0 %v9381_v50  ;;  %4469 = vmatpush1.bf16.msra.mxu1 %v9384_v28  ;;  %v9387_v7 = vld [vmem:[#allocation10 + $0xa0] ss:$16 sps:$4 sm:$0xff]   ;;  %v9389_v24 = vld [vmem:[#allocation10 + $0xa4] ss:$16 sps:$4 sm:$0xff]  }
 0x394   : > { %vm2413_vm4 = vcmp.lt.s32.totalorder %v2411_v58, %v2412_v17  ;;  %v2432_v55 = vsel %vm2431_vm12, %v2428_v49, %v2365_v10  ;;  %vm2433_vm13 = vcmp.lt.s32.totalorder %v2430_v4, %v2367_v52  ;;  %v2373_v37 = vsel %vm2341_vm6, %v16543_v57, 128  ;;  %v9392_v10 = vld [vmem:[#allocation10 + $0xac] ss:$16 sps:$4 sm:$0xff]   ;;  %4429 = vmatprep.subr.bf16.mxu0 %v9389_v24 }
 0x395   : > { %v2414_v5 = vsel %vm2413_vm4, %v2411_v58, %v2412_v17  ;;  %v2434_v53 = vsel %vm2433_vm13, %v2430_v4, %v2367_v52  ;;  %vm2435_vm15 = vcmp.lt.s32.totalorder %v2432_v55, %v2369_v59  ;;  %v2375_v39 = vsel %vm2343_vm11, %v16544_v8, 128  ;;  %v1465_v61 = vpop.trf.xlu1  ;;  %v9390_v17 = vld [vmem:[#allocation10 + $0xa8] ss:$16 sps:$4 sm:$0xff]   ;;  %4470 = vmatprep.subr.bf16.mxu1 %v9392_v10  ;;  %v16549_v4 = vld [vmem:[#allocation53_spill] sm:$0xff] }
 0x396   : > { %2457 = vst.msk [vmem:[%s10736_s0 + $0x1] sm:$0x1] %vm10963_vm3, %v2414_v5  ;;  %v2436_v0 = vsel %vm2435_vm15, %v2432_v55, %v2369_v59  ;;  %vm2437_vm9 = vcmp.lt.s32.totalorder %v2434_v53, %v2371_v60  ;;  %v1626_v21 = vmul.f32 %v1461_v51, %v1461_v51  ;;  %v1627_v30 = vmul.f32 %v1462_v63, %v1462_v63  ;;  %v9393_v55 = vld [vmem:[#allocation10 + $0x80] ss:$16 sps:$4 sm:$0xff]   ;;  %v9395_v51 = vld [vmem:[#allocation10 + $0x84] ss:$16 sps:$4 sm:$0xff]  }
 0x397   : > { %v2438_v12 = vsel %vm2437_vm9, %v2434_v53, %v2371_v60  ;;  %vm2439_vm0 = vcmp.lt.s32.totalorder %v2436_v0, %v2373_v37  ;;  %v1628_v14 = vmul.f32 %v1463_v41, %v1463_v41  ;;  %v1629_v40 = vmul.f32 %v1464_v43, %v1464_v43  ;;  %1481 = vst [vmem:[%s10824_s20 + $0x60] sm:$0xff] %v1465_v61  ;;  %v9396_v5 = vld [vmem:[#allocation10 + $0x88] ss:$16 sps:$4 sm:$0xff]   ;;  %v9398_v60 = vld [vmem:[#allocation10 + $0x8c] ss:$16 sps:$4 sm:$0xff]  }
 0x398   : > { %v2440_v22 = vsel %vm2439_vm0, %v2436_v0, %v2373_v37  ;;  %vm2441_vm5 = vcmp.lt.s32.totalorder %v2438_v12, %v2375_v39  ;;  %v1642_v44 = vadd.f32 %v1627_v30, %v1626_v21  ;;  %v1630_v26 = vmul.f32 %v1465_v61, %v1465_v61  ;;  %4430 = vmatpush1.bf16.msra.mxu0 %v9387_v7  ;;  %v9402_v21 = vld [vmem:[#allocation10 + $0x68] ss:$16 sps:$4 sm:$0xff]   ;;  %v9407_v41 = vld [vmem:[#allocation10 + $0x44] ss:$16 sps:$4 sm:$0xff]   ;;  %v9422_v7 = vld [vmem:[#allocation10 + $0xc] ss:$16 sps:$4 sm:$0xff]  }
 0x399   : > { %v2442_v46 = vsel %vm2441_vm5, %v2438_v12, %v2375_v39  ;;  %v1466_v49 = vpop.trf.xlu1  ;;  %v1208_v15 = vrot.slane %v16549_v4, 4  ;;  %4471 = vmatpush1.bf16.msra.mxu1 %v9390_v17  ;;  %4431 = vmatprep.subr.bf16.mxu0 %v9395_v51  ;;  %v9399_v39 = vld [vmem:[#allocation10 + $0x60] ss:$16 sps:$4 sm:$0xff]   ;;  %v9401_v12 = vld [vmem:[#allocation10 + $0x64] ss:$16 sps:$4 sm:$0xff]  }
 0x39a   : > { %vm2443_vm8 = vcmp.lt.s32.totalorder %v2440_v22, %v2442_v46  ;;  %v1643_v32 = vadd.f32 %v1642_v44, %v1628_v14  ;;  %1482 = vst [vmem:[%s10824_s20 + $0x68] sm:$0xff] %v1466_v49  ;;  %v1631_v52 = vmul.f32 %v1466_v49, %v1466_v49  ;;  %4472 = vmatprep.subr.bf16.mxu1 %v9398_v60  ;;  %v9410_v14 = vld [vmem:[#allocation10 + $0x4c] ss:$16 sps:$4 sm:$0xff]   ;;  %v9420_v61 = vld [vmem:[#allocation10 + $0x8] ss:$16 sps:$4 sm:$0xff]  }
 0x39b   : > { %v2444_v25 = vsel %vm2443_vm8, %v2440_v22, %v2442_v46  ;;  %v1209_v37 = vadd.f32 %v1208_v15, %v16549_v4  ;;  %v9404_v22 = vld [vmem:[#allocation10 + $0x6c] ss:$16 sps:$4 sm:$0xff]   ;;  %v9423_v15 = vld [vmem:[#allocation10 + $0x1e0] ss:$16 sps:$4 sm:$0xff]  }
 0x39c   : > { %v2445_v48 = vrot.slane %v2444_v25, 4  ;;  %v1644_v42 = vadd.f32 %v1643_v32, %v1629_v40  ;;  %4432 = vmatpush1.bf16.msra.mxu0 %v9393_v55  ;;  %v9416_v40 = vld [vmem:[#allocation10 + $0x2c] ss:$16 sps:$4 sm:$0xff]   ;;  %v9426_v55 = vld [vmem:[#allocation10 + $0x1e8] ss:$16 sps:$4 sm:$0xff]  }
 0x39d   : > { %v1467_v53 = vpop.trf.xlu1  ;;  %4473 = vmatpush1.bf16.msra.mxu1 %v9396_v5  ;;  %4433 = vmatprep.subr.bf16.mxu0 %v9401_v12  ;;  %v1210_v30 = vrot.slane %v1209_v37, 2  ;;  %v9428_v51 = vld [vmem:[#allocation10 + $0x1ec] ss:$16 sps:$4 sm:$0xff]  }
 0x39e   : > { %vm2446_vm6 = vcmp.lt.s32.totalorder %v2444_v25, %v2445_v48  ;;  %v1645_v58 = vadd.f32 %v1644_v42, %v1630_v26  ;;  %1483 = vst [vmem:[%s10824_s20 + $0x70] sm:$0xff] %v1467_v53  ;;  %v1632_v0 = vmul.f32 %v1467_v53, %v1467_v53  ;;  %4474 = vmatprep.subr.bf16.mxu1 %v9404_v22  ;;  %v9434_v12 = vld [vmem:[#allocation10 + $0x1cc] ss:$16 sps:$4 sm:$0xff]  }
 0x39f   : > { %v2447_v47 = vsel %vm2446_vm6, %v2444_v25, %v2445_v48  ;;  %v9405_v48 = vld [vmem:[#allocation10 + $0x40] ss:$16 sps:$4 sm:$0xff]   ;;  %v1211_v32 = vadd.f32 %v1210_v30, %v1209_v37  ;;  %v9438_v30 = vld [vmem:[#allocation10 + $0x1a8] ss:$16 sps:$4 sm:$0xff]   ;;  %v9476_v45 = vld [vmem:[#allocation8 + $0xec] ss:$16 sps:$4 sm:$0xff]  }
 0x3a0   : > { %v2448_v3 = vrot.slane %v2447_v47, 2  ;;  %v1646_v59 = vadd.f32 %v1645_v58, %v1631_v52  ;;  %4434 = vmatpush1.bf16.msra.mxu0 %v9399_v39  ;;  %v9429_v37 = vld [vmem:[#allocation10 + $0x1c0] ss:$16 sps:$4 sm:$0xff]   ;;  %v9432_v39 = vld [vmem:[#allocation10 + $0x1c8] ss:$16 sps:$4 sm:$0xff]  }
 0x3a1   : > { %v1468_v46 = vpop.trf.xlu1  ;;  %4475 = vmatpush1.bf16.msra.mxu1 %v9402_v21  ;;  %4435 = vmatprep.subr.bf16.mxu0 %v9407_v41  ;;  %v1212_v43 = vrot.slane %v1211_v32, 1  ;;  %v9443_v41 = vld [vmem:[#allocation10 + $0x184] ss:$16 sps:$4 sm:$0xff]  }
 0x3a2   : > { %vm2449_vm7 = vcmp.lt.s32.totalorder %v2447_v47, %v2448_v3  ;;  %v1647_v63 = vadd.f32 %v1646_v59, %v1632_v0  ;;  %1484 = vst [vmem:[%s10824_s20 + $0x78] sm:$0xff] %v1468_v46  ;;  %v1633_v25 = vmul.f32 %v1468_v46, %v1468_v46  ;;  %4476 = vmatprep.subr.bf16.mxu1 %v9410_v14  ;;  %v9425_v59 = vld [vmem:[#allocation10 + $0x1e4] ss:$16 sps:$4 sm:$0xff]   ;;  %v9441_v14 = vld [vmem:[#allocation10 + $0x180] ss:$16 sps:$4 sm:$0xff]  }
 0x3a3   : > { %v2450_v9 = vsel %vm2449_vm7, %v2447_v47, %v2448_v3  ;;  %v9408_v47 = vld [vmem:[#allocation10 + $0x48] ss:$16 sps:$4 sm:$0xff]   ;;  %v1213_v26 = vadd.f32 %v1212_v43, %v1211_v32  ;;  %v9431_v0 = vld [vmem:[#allocation10 + $0x1c4] ss:$16 sps:$4 sm:$0xff]  }
 0x3a4   : > { %v2451_v62 = vrot.slane %v2450_v9, 1  ;;  %v1648_v44 = vadd.f32 %v1647_v63, %v1633_v25  ;;  %4436 = vmatpush1.bf16.msra.mxu0 %v9405_v48  ;;  %v9435_v63 = vld [vmem:[#allocation10 + $0x1a0] ss:$16 sps:$4 sm:$0xff]   ;;  %v9437_v46 = vld [vmem:[#allocation10 + $0x1a4] ss:$16 sps:$4 sm:$0xff]  }
 0x3a5   : > { %v1469_v3 = vpop.trf.xlu1  ;;  %4477 = vmatpush1.bf16.msra.mxu1 %v9408_v47  ;;  %4437 = vmatprep.subr.bf16.mxu0 %v9413_v2  ;;  %v9440_v25 = vld [vmem:[#allocation10 + $0x1ac] ss:$16 sps:$4 sm:$0xff]   ;;  %v9450_v2 = vld [vmem:[#allocation10 + $0x168] ss:$16 sps:$4 sm:$0xff]  }
 0x3a6   : > { %vm2452_vm1 = vcmp.lt.s32.totalorder %v2450_v9, %v2451_v62  ;;  %v1649_v54 = vrot.slane %v1648_v44, 4  ;;  %1485 = vst [vmem:[%s10847_s25 + $0x40] sm:$0xff] %v1469_v3  ;;  %v1634_v50 = vmul.f32 %v1469_v3, %v1469_v3  ;;  %4478 = vmatprep.subr.bf16.mxu1 %v9416_v40  ;;  %v9446_v47 = vld [vmem:[#allocation10 + $0x18c] ss:$16 sps:$4 sm:$0xff]   ;;  %v9444_v3 = vld [vmem:[#allocation10 + $0x188] ss:$16 sps:$4 sm:$0xff]  }
 0x3a7   : > { %v2453_v38 = vsel %vm2452_vm1, %v2450_v9, %v2451_v62  ;;  %v9414_v9 = vld [vmem:[#allocation10 + $0x28] ss:$16 sps:$4 sm:$0xff]   ;;  %v9458_v40 = vld [vmem:[#allocation10 + $0x14c] ss:$16 sps:$4 sm:$0xff]  }
 0x3a8   : > { %2458 = vst.msk [vmem:[%s10843_s9 + $0x1] sm:$0x1] %vm10963_vm3, %v2453_v38  ;;  %v1650_v23 = vadd.f32 %v1649_v54, %v1648_v44  ;;  %4438 = vmatpush1.bf16.msra.mxu0 %v9411_v6  ;;  %v9419_v38 = vld [vmem:[#allocation10 + $0x4] ss:$16 sps:$4 sm:$0xff]   ;;  %v9447_v6 = vld [vmem:[#allocation10 + $0x160] ss:$16 sps:$4 sm:$0xff]  }
 0x3a9   : > { %v1470_v28 = vpop.trf.xlu1  ;;  %4479 = vmatpush1.bf16.msra.mxu1 %v9414_v9  ;;  %4439 = vmatprep.subr.bf16.mxu0 %v9419_v38  ;;  %v9449_v54 = vld [vmem:[#allocation10 + $0x164] ss:$16 sps:$4 sm:$0xff]   ;;  %v9763_v9 = vld [vmem:[%s10847_s25 + $0x38] sm:$0xff] }
 0x3aa   : > { %v1651_v62 = vrot.slane %v1650_v23, 2  ;;  %1486 = vst [vmem:[%s10847_s25 + $0x48] sm:$0xff] %v1470_v28  ;;  %v1635_v42 = vmul.f32 %v1470_v28, %v1470_v28  ;;  %4480 = vmatprep.subr.bf16.mxu1 %v9422_v7  ;;  %v1200_v43 = vmul.f32 %v9763_v9, %v9763_v9  ;;  %v2560_v28 = vld [vmem:[#allocation14 + $0x3] ss:$8 sm:$0x3] }
 0x3ab   : > { %v16552_v38 = vld [vmem:[#allocation55_spill] sm:$0xff] }
 0x3ac   : > { %v1652_v31 = vadd.f32 %v1651_v62, %v1650_v23  ;;  %v1655_v24 = vadd.f32 %v1635_v42, %v1634_v50  ;;  %4440 = vmatpush1.bf16.msra.mxu0 %v9417_v16  ;;  %v9452_v23 = vld [vmem:[#allocation10 + $0x16c] ss:$16 sps:$4 sm:$0xff]   ;;  %v9455_v62 = vld [vmem:[#allocation10 + $0x144] ss:$16 sps:$4 sm:$0xff]   ;;  %v9453_v50 = vld [vmem:[#allocation10 + $0x140] ss:$16 sps:$4 sm:$0xff]  }
 0x3ad   : > { %v1471_v10 = vpop.trf.xlu1  ;;  %4481 = vmatpush1.bf16.msra.mxu1 %v9420_v61  ;;  %4441 = vmatprep.subr.bf16.mxu0 %v9425_v59  ;;  %v16551_v42 = vld [vmem:[#allocation54_spill] sm:$0xff]  ;;  %v11644_v61 = vrot.slane %v2560_v28, %v16552_v38 }
 0x3ae   : > { %v1653_v58 = vrot.slane %v1652_v31, 1  ;;  %1487 = vst [vmem:[%s10847_s25 + $0x50] sm:$0xff] %v1471_v10  ;;  %v1636_v49 = vmul.f32 %v1471_v10, %v1471_v10  ;;  %4482 = vmatprep.subr.bf16.mxu1 %v9428_v51  ;;  %v1220_v16 = vadd.f32 %v16551_v42, %v1200_v43 }
 0x3b0   : > { %v1654_v17 = vadd.f32 %v1653_v58, %v1652_v31  ;;  %v1656_v4 = vadd.f32 %v1655_v24, %v1636_v49  ;;  %4442 = vmatpush2.bf16.msra.mxu0 %v9423_v15  ;;  %v9456_v31 = vld [vmem:[#allocation10 + $0x148] ss:$16 sps:$4 sm:$0xff]   ;;  %v1221_v7 = vrot.slane %v1220_v16, 4 }
 0x3b1   : > { %v1472_v5 = vpop.trf.xlu1  ;;  %4483 = vmatpush2.bf16.msra.mxu1 %v9426_v55  ;;  %4443 = vmatprep.subr.bf16.mxu0 %v9431_v0 }
 0x3b2   : > { %v11632_v52 = vadd.f32 %v1654_v17, %v1213_v26  ;;  %1488 = vst [vmem:[%s10847_s25 + $0x58] sm:$0xff] %v1472_v5  ;;  %v1637_v60 = vmul.f32 %v1472_v5, %v1472_v5  ;;  %4484 = vmatprep.subr.bf16.mxu1 %v9434_v12  ;;  %v16553_v26 = vld [vmem:[#allocation56_spill] sm:$0xff]  ;;  %v1222_v51 = vadd.f32 %v1221_v7, %v1220_v16 }
 0x3b3   : > { %v11647_v58 = vrot.slane %v2560_v28, %v16553_v26 }
 0x3b4   : > { %16550 = vst [vmem:[#allocation57_spill] sm:$0xff] %v11632_v52  ;;  %v1657_v53 = vadd.f32 %v1656_v4, %v1637_v60  ;;  %4444 = vmatpush2.bf16.msra.mxu0 %v9429_v37  ;;  %v2886_v4 = vld [vmem:[#allocation14 + $0x4] ss:$8 sm:$0x3] }
 0x3b5   : > { %v1473_v21 = vpop.trf.xlu1  ;;  %4485 = vmatpush2.bf16.msra.mxu1 %v9432_v39  ;;  %4445 = vmatprep.subr.bf16.mxu0 %v9437_v46  ;;  %v11654_v37 = vrot.slane %v2886_v4, %v16552_v38  ;;  %v9470_v38 = vld [vmem:[#allocation10 + $0x10c] ss:$16 sps:$4 sm:$0xff]  }
 0x3b6   : > { %1489 = vst [vmem:[%s10847_s25 + $0x60] sm:$0xff] %v1473_v21  ;;  %v1638_v22 = vmul.f32 %v1473_v21, %v1473_v21  ;;  %4486 = vmatprep.subr.bf16.mxu1 %v9440_v25 }
 0x3b8   : > { %v1658_v44 = vadd.f32 %v1657_v53, %v1638_v22  ;;  %4446 = vmatpush2.bf16.msra.mxu0 %v9435_v63  ;;  %v11660_v63 = vrot.slane %v2886_v4, %v16553_v26 }
 0x3b9   : > { %4487 = vmatpush2.bf16.msra.mxu1 %v9438_v30  ;;  %v1474_v48 = vpop.trf.xlu1  ;;  %4447 = vmatprep.subr.bf16.mxu0 %v9443_v41 }
 0x3ba   : > { %1490 = vst [vmem:[%s10847_s25 + $0x68] sm:$0xff] %v1474_v48  ;;  %4488 = vmatprep.subr.bf16.mxu1 %v9446_v47  ;;  %v1639_v10 = vmul.f32 %v1474_v48, %v1474_v48 }
 0x3bc   : > { %4448 = vmatpush2.bf16.msra.mxu0 %v9441_v14  ;;  %v11651_v55 = vadd.f32 %v1658_v44, %v1639_v10  ;;  %v1223_v44 = vrot.slane %v1222_v51, 2 }
 0x3bd   : > { %v11637_v32 = vpop.trf.xlu1  ;;  %4489 = vmatpush2.bf16.msra.mxu1 %v9444_v3  ;;  %4449 = vmatprep.subr.bf16.mxu0 %v9449_v54 }
 0x3be   : > { %1491 = vst [vmem:[%s10847_s25 + $0x70] sm:$0xff] %v11637_v32  ;;  %4490 = vmatprep.subr.bf16.mxu1 %v9452_v23 }
 0x3c0   : > { %4450 = vmatpush2.bf16.msra.mxu0 %v9447_v6 }
 0x3c1   : > { %4491 = vmatpush2.bf16.msra.mxu1 %v9450_v2  ;;  %4451 = vmatprep.subr.bf16.mxu0 %v9455_v62 }
 0x3c2   : > { %4492 = vmatprep.subr.bf16.mxu1 %v9458_v40  ;;  %v11678_v40 = vadd.f32 %v1223_v44, %v1222_v51 }
 0x3c4   : > { %4452 = vmatpush2.bf16.msra.mxu0 %v9453_v50 }
 0x3c5   : > { %4493 = vmatpush2.bf16.msra.mxu1 %v9456_v31 }
 0x401   : > { %v2686_v24 = vpop.f32.mrf.mxu0 }
 0x402   : > { %v2687_v17 = vadd.f32 %v2686_v24, %v11644_v61 }
 0x403   : > { %v2688_v49 = vpop.f32.mrf.mxu0 }
 0x404   : > { %vm2765_vm3 = vcmp.gt.f32.partialorder %v2687_v17, 0.0  ;;  %v2797_v15 = vmul.f32 0.1, %v2687_v17  ;;  %v2689_v59 = vadd.f32 %v2688_v49, %v11647_v58 }
 0x405   : > { %v3012_v5 = vpop.f32.mrf.mxu1  ;;  %v2690_v60 = vpop.f32.mrf.mxu0 }
 0x406   : > { %vm2766_vm10 = vcmp.gt.f32.partialorder %v2689_v59, 0.0  ;;  %v2798_v53 = vmul.f32 0.1, %v2689_v59  ;;  %v2691_v0 = vadd.f32 %v2690_v60, %v11644_v61  ;;  %v11657_v21 = vsel %vm2765_vm3, %v2687_v17, %v2797_v15 }
 0x407   : > { %v3014_v39 = vpop.f32.mrf.mxu1  ;;  %v2692_v12 = vpop.f32.mrf.mxu0  ;;  %16554 = vst [vmem:[#allocation59_spill] sm:$0xff] %v11657_v21  ;;  %3187 = vxpose.xlu1.b32.start [1/16] %v11657_v21, 128  ;;  %v3013_v48 = vadd.f32 %v3012_v5, %v11654_v37 }
 0x408   : > { %vm2767_vm2 = vcmp.gt.f32.partialorder %v2691_v0, 0.0  ;;  %v2799_v22 = vmul.f32 0.1, %v2691_v0  ;;  %v2693_v46 = vadd.f32 %v2692_v12, %v11647_v58  ;;  %v11664_v25 = vsel %vm2766_vm10, %v2689_v59, %v2798_v53 }
 0x409   : > { %v3016_v30 = vpop.f32.mrf.mxu1  ;;  %3219 = vxpose.xlu0.b32.start [1/16] %v11664_v25, 128  ;;  %v3015_v54 = vadd.f32 %v3014_v39, %v11660_v63  ;;  %vm3091_vm11 = vcmp.gt.f32.partialorder %v3013_v48, 0.0  ;;  %v3123_v28 = vmul.f32 0.1, %v3013_v48 }
 0x40a   : > { %v11668_v47 = vsel %vm2767_vm2, %v2691_v0, %v2799_v22  ;;  %vm2768_vm14 = vcmp.gt.f32.partialorder %v2693_v46, 0.0  ;;  %v2800_v14 = vmul.f32 0.1, %v2693_v46  ;;  %v3017_v23 = vadd.f32 %v3016_v30, %v11654_v37 }
 0x40b   : > { %v2696_v41 = vpop.f32.mrf.mxu0  ;;  %16555 = vst [vmem:[#allocation58_spill] sm:$0xff] %v11668_v47  ;;  %v3018_v3 = vpop.f32.mrf.mxu1  ;;  %3188 = vxpose.xlu1.b32.cont [2/16] %v11668_v47, 128  ;;  %vm3092_vm13 = vcmp.gt.f32.partialorder %v3015_v54, 0.0  ;;  %v3124_v7 = vmul.f32 0.1, %v3015_v54  ;;  %v11698_v12 = vsel %vm3091_vm11, %v3013_v48, %v3123_v28 }
 0x40c   : > { %v2697_v6 = vadd.f32 %v2696_v41, %v11644_v61  ;;  %v3019_v9 = vadd.f32 %v3018_v3, %v11660_v63  ;;  %v11676_v62 = vsel %vm2768_vm14, %v2693_v46, %v2800_v14  ;;  %v3125_v24 = vmul.f32 0.1, %v3017_v23  ;;  %16558 = vst [vmem:[#allocation54_spill] sm:$0xff] %v11698_v12  ;;  %v9461_v3 = vld [vmem:[#allocation10 + $0x124] ss:$16 sps:$4 sm:$0xff]  }
 0x40d   : > { %v2698_v2 = vpop.f32.mrf.mxu0  ;;  %3220 = vxpose.xlu0.b32.cont [2/16] %v11676_v62, 128  ;;  %vm3093_vm9 = vcmp.gt.f32.partialorder %v3017_v23, 0.0  ;;  %v11705_v14 = vsel %vm3092_vm13, %v3015_v54, %v3124_v7  ;;  %4453 = vmatprep.subr.bf16.mxu0 %v9461_v3 }
 0x40e   : > { %v2699_v43 = vadd.f32 %v2698_v2, %v11647_v58  ;;  %vm2769_vm12 = vcmp.gt.f32.partialorder %v2697_v6, 0.0  ;;  %v2801_v50 = vmul.f32 0.1, %v2697_v6  ;;  %v3126_v4 = vmul.f32 0.1, %v3019_v9  ;;  %16560 = vst [vmem:[#allocation62_spill] sm:$0xff] %v11705_v14 }
 0x40f   : > { %v2700_v31 = vpop.f32.mrf.mxu0  ;;  %vm3094_vm0 = vcmp.gt.f32.partialorder %v3019_v9, 0.0  ;;  %v11713_v48 = vsel %vm3093_vm9, %v3017_v23, %v3125_v24 }
 0x410   : > { %vm2770_vm4 = vcmp.gt.f32.partialorder %v2699_v43, 0.0  ;;  %v2802_v42 = vmul.f32 0.1, %v2699_v43  ;;  %v2701_v16 = vadd.f32 %v2700_v31, %v11644_v61  ;;  %v3022_v17 = vpop.f32.mrf.mxu1  ;;  %v11682_v49 = vsel %vm2769_vm12, %v2697_v6, %v2801_v50  ;;  %v9464_v6 = vld [vmem:[#allocation10 + $0x12c] ss:$16 sps:$4 sm:$0xff]   ;;  %16561 = vst [vmem:[#allocation63_spill] sm:$0xff] %v11713_v48 }
 0x411   : > { %v2702_v10 = vpop.f32.mrf.mxu0  ;;  %16556 = vst [vmem:[#allocation60_spill] sm:$0xff] %v11682_v49  ;;  %3189 = vxpose.xlu1.b32.cont [3/16] %v11682_v49, 128  ;;  %v11691_v0 = vadd.f32 %v3022_v17, %v11654_v37  ;;  %v11716_v50 = vsel %vm3094_vm0, %v3019_v9, %v3126_v4  ;;  %v9459_v31 = vld [vmem:[#allocation10 + $0x120] ss:$16 sps:$4 sm:$0xff]   ;;  %v3283_v54 = vmax.f32 %v11657_v21, %v11682_v49  ;;  %v9462_v17 = vld [vmem:[#allocation10 + $0x128] ss:$16 sps:$4 sm:$0xff]  }
 0x412   : > { %vm2771_vm15 = vcmp.gt.f32.partialorder %v2701_v16, 0.0  ;;  %v2803_v15 = vmul.f32 0.1, %v2701_v16  ;;  %v2703_v59 = vadd.f32 %v2702_v10, %v11647_v58  ;;  %v3024_v5 = vpop.f32.mrf.mxu1  ;;  %v11688_v53 = vsel %vm2770_vm4, %v2699_v43, %v2802_v42  ;;  %16562 = vst [vmem:[#allocation64_spill] sm:$0xff] %v11716_v50  ;;  %4494 = vmatprep.subr.bf16.mxu1 %v9464_v6  ;;  %4454 = vmatpush2.bf16.msra.mxu0 %v9459_v31 }
 0x413   : > { %v2706_v60 = vpop.f32.mrf.mxu0  ;;  %16557 = vst [vmem:[#allocation53_spill] sm:$0xff] %v11688_v53  ;;  %v11694_v39 = vadd.f32 %v3024_v5, %v11660_v63  ;;  %3221 = vxpose.xlu0.b32.cont [3/16] %v11688_v53, 128  ;;  %v11724_v23 = vmul.f32 0.1, %v11691_v0  ;;  %v3304_v10 = vmax.f32 %v11664_v25, %v11688_v53  ;;  %4495 = vmatpush2.bf16.msra.mxu1 %v9462_v17 }
 0x414   : > { %vm2772_vm5 = vcmp.gt.f32.partialorder %v2703_v59, 0.0  ;;  %v2804_v22 = vmul.f32 0.1, %v2703_v59  ;;  %v3026_v46 = vpop.f32.mrf.mxu1  ;;  %v2707_v30 = vadd.f32 %v2706_v60, %v11644_v61  ;;  %v11702_v41 = vsel %vm2771_vm15, %v2701_v16, %v2803_v15  ;;  %4496 = vmatprep.subr.bf16.mxu1 %v9470_v38 }
 0x415   : > { %v2708_v44 = vpop.f32.mrf.mxu0  ;;  %16559 = vst [vmem:[#allocation61_spill] sm:$0xff] %v11702_v41  ;;  %v11708_v2 = vadd.f32 %v3026_v46, %v11654_v37  ;;  %3190 = vxpose.xlu1.b32.cont [4/16] %v11702_v41, 128  ;;  %v11727_v9 = vmul.f32 0.1, %v11694_v39  ;;  %v9467_v46 = vld [vmem:[#allocation10 + $0x104] ss:$16 sps:$4 sm:$0xff]   ;;  %v3284_v3 = vmax.f32 %v11668_v47, %v11702_v41 }
 0x416   : > { %v2709_v43 = vadd.f32 %v2708_v44, %v11647_v58  ;;  %vm2773_vm8 = vcmp.gt.f32.partialorder %v2707_v30, 0.0  ;;  %v2805_v28 = vmul.f32 0.1, %v2707_v30  ;;  %v3028_v42 = vpop.f32.mrf.mxu1  ;;  %v11721_v7 = vsel %vm2772_vm5, %v2703_v59, %v2804_v22  ;;  %v9465_v22 = vld [vmem:[#allocation10 + $0x100] ss:$16 sps:$4 sm:$0xff]   ;;  %4455 = vmatprep.subr.bf16.mxu0 %v9467_v46 }
 0x417   : > { %v2710_v16 = vpop.f32.mrf.mxu0  ;;  %16563 = vst [vmem:[#allocation65_spill] sm:$0xff] %v11721_v7  ;;  %v11730_v24 = vadd.f32 %v3028_v42, %v11660_v63  ;;  %3222 = vxpose.xlu0.b32.cont [4/16] %v11721_v7, 128  ;;  %v11740_v44 = vmul.f32 0.1, %v11708_v2  ;;  %v3305_v6 = vmax.f32 %v11676_v62, %v11721_v7  ;;  %v9468_v42 = vld [vmem:[#allocation10 + $0x108] ss:$16 sps:$4 sm:$0xff]   ;;  %4456 = vmatpush2.bf16.msra.mxu0 %v9465_v22 }
 0x418   : > { %vm2774_vm6 = vcmp.gt.f32.partialorder %v2709_v43, 0.0  ;;  %v2806_v4 = vmul.f32 0.1, %v2709_v43  ;;  %v3032_v15 = vpop.f32.mrf.mxu1  ;;  %v2711_v59 = vadd.f32 %v2710_v16, %v11644_v61  ;;  %v11737_v60 = vsel %vm2773_vm8, %v2707_v30, %v2805_v28  ;;  %4497 = vmatpush2.bf16.msra.mxu1 %v9468_v42 }
 0x419   : > { %v2712_v5 = vpop.f32.mrf.mxu0  ;;  %16564 = vst [vmem:[#allocation66_spill] sm:$0xff] %v11737_v60  ;;  %3191 = vxpose.xlu1.b32.cont [5/16] %v11737_v60, 128  ;;  %v11749_v30 = vmul.f32 0.1, %v11730_v24  ;;  %v3285_v17 = vmax.f32 %v3283_v54, %v11737_v60  ;;  %v11756_v52 = vadd.f32 %v3032_v15, %v11654_v37  ;;  %4956 = vmatprep.subr.bf16.mxu1 %v9476_v45 }
 0x41a   : > { %v2713_v31 = vadd.f32 %v2712_v5, %v11647_v58  ;;  %v2807_v28 = vmul.f32 0.1, %v2711_v59  ;;  %v3034_v16 = vpop.f32.mrf.mxu1  ;;  %v11753_v26 = vsel %vm2774_vm6, %v2709_v43, %v2806_v4  ;;  %vm2775_vm7 = vcmp.gt.f32.partialorder %v2711_v59, 0.0 }
 0x41b   : > { %v2716_v51 = vpop.f32.mrf.mxu0  ;;  %16565 = vst [vmem:[#allocation67_spill] sm:$0xff] %v11753_v26  ;;  %v3035_v5 = vadd.f32 %v3034_v16, %v11660_v63  ;;  %3223 = vxpose.xlu0.b32.cont [5/16] %v11753_v26, 128  ;;  %v11760_v8 = vmax.f32 %v3284_v3, %v3285_v17  ;;  %v3306_v43 = vmax.f32 %v3304_v10, %v11753_v26 }
 0x41c   : > { %vm2776_vm1 = vcmp.gt.f32.partialorder %v2713_v31, 0.0  ;;  %v2808_v7 = vmul.f32 0.1, %v2713_v31  ;;  %v3036_v53 = vpop.f32.mrf.mxu1  ;;  %v2717_v54 = vadd.f32 %v2716_v51, %v11644_v61  ;;  %v11769_v3 = vsel %vm2775_vm7, %v2711_v59, %v2807_v28 }
 0x41d   : > { %v2718_v4 = vpop.f32.mrf.mxu0  ;;  %vm3100_vm3 = vcmp.gt.f32.partialorder %v3035_v5, 0.0  ;;  %v3132_v15 = vmul.f32 0.1, %v3035_v5  ;;  %v3037_v46 = vadd.f32 %v3036_v53, %v11654_v37  ;;  %v11766_v27 = vmax.f32 %v3305_v6, %v3306_v43  ;;  %16566 = vst [vmem:[#allocation68_spill] sm:$0xff] %v11769_v3  ;;  %3192 = vxpose.xlu1.b32.cont [6/16] %v11769_v3, 128  ;;  %v9473_v53 = vld [vmem:[#allocation8 + $0xe4] ss:$16 sps:$4 sm:$0xff]  }
 0x41e   : > { %v2719_v16 = vadd.f32 %v2718_v4, %v11647_v58  ;;  %vm2777_vm10 = vcmp.gt.f32.partialorder %v2717_v54, 0.0  ;;  %v2809_v57 = vmul.f32 0.1, %v2717_v54  ;;  %v3038_v22 = vpop.f32.mrf.mxu1  ;;  %v3287_v6 = vmax.f32 %v11769_v3, %v11760_v8  ;;  %4843 = vmatprep.subr.bf16.mxu0 %v9473_v53 }
 0x41f   : > { %v2720_v51 = vpop.f32.mrf.mxu0  ;;  %v11771_v17 = vsel %vm3100_vm3, %v3035_v5, %v3132_v15  ;;  %vm3101_vm2 = vcmp.gt.f32.partialorder %v3037_v46, 0.0  ;;  %v3133_v38 = vmul.f32 0.1, %v3037_v46  ;;  %v3039_v10 = vadd.f32 %v3038_v22, %v11660_v63 }
 0x420   : > { %16567 = vst [vmem:[#allocation69_spill] sm:$0xff] %v11771_v17  ;;  %vm2778_vm14 = vcmp.gt.f32.partialorder %v2719_v16, 0.0  ;;  %v2810_v42 = vmul.f32 0.1, %v2719_v16  ;;  %v3042_v4 = vpop.f32.mrf.mxu1  ;;  %v2721_v43 = vadd.f32 %v2720_v51, %v11644_v61  ;;  %v11782_v56 = vsel %vm2776_vm1, %v2713_v31, %v2808_v7 }
 0x421   : > { %v2722_v59 = vpop.f32.mrf.mxu0  ;;  %v11778_v28 = vsel %vm3101_vm2, %v3037_v46, %v3133_v38  ;;  %vm3102_vm11 = vcmp.gt.f32.partialorder %v3039_v10, 0.0  ;;  %v3134_v5 = vmul.f32 0.1, %v3039_v10  ;;  %v3043_v15 = vadd.f32 %v3042_v4, %v11654_v37  ;;  %16569 = vst [vmem:[#allocation71_spill] sm:$0xff] %v11782_v56  ;;  %3224 = vxpose.xlu0.b32.cont [6/16] %v11782_v56, 128 }
 0x422   : > { %16568 = vst [vmem:[#allocation70_spill] sm:$0xff] %v11778_v28  ;;  %vm2779_vm12 = vcmp.gt.f32.partialorder %v2721_v43, 0.0  ;;  %v2811_v22 = vmul.f32 0.1, %v2721_v43  ;;  %v3044_v26 = vpop.f32.mrf.mxu1  ;;  %v11785_v1 = vadd.f32 %v2722_v59, %v11647_v58  ;;  %v3308_v7 = vmax.f32 %v11782_v56, %v11766_v27 }
 0x423   : > { %v2726_v8 = vpop.f32.mrf.mxu0  ;;  %v11787_v51 = vsel %vm3102_vm11, %v3039_v10, %v3134_v5  ;;  %vm3103_vm4 = vcmp.gt.f32.partialorder %v3043_v15, 0.0  ;;  %v3135_v46 = vmul.f32 0.1, %v3043_v15  ;;  %v3045_v38 = vadd.f32 %v3044_v26, %v11660_v63 }
 0x424   : > { %16570 = vst [vmem:[#allocation72_spill] sm:$0xff] %v11787_v51  ;;  %v3692_v53 = vmax.f32 %v11787_v51, %v11771_v17  ;;  %vm2780_vm13 = vcmp.gt.f32.partialorder %v11785_v1, 0.0  ;;  %v2812_v31 = vmul.f32 0.1, %v11785_v1  ;;  %v3046_v4 = vpop.f32.mrf.mxu1  ;;  %v11803_v51 = vsel %vm2777_vm10, %v2717_v54, %v2809_v57 }
 0x425   : > { %v2728_v59 = vpop.f32.mrf.mxu0  ;;  %v11797_v10 = vsel %vm3103_vm4, %v3043_v15, %v3135_v46  ;;  %vm3104_vm15 = vcmp.gt.f32.partialorder %v3045_v38, 0.0  ;;  %v3136_v5 = vmul.f32 0.1, %v3045_v38  ;;  %v3047_v26 = vadd.f32 %v3046_v4, %v11654_v37  ;;  %16572 = vst [vmem:[#allocation74_spill] sm:$0xff] %v11803_v51  ;;  %3193 = vxpose.xlu1.b32.cont [7/16] %v11803_v51, 128 }
 0x426   : > { %16571 = vst [vmem:[#allocation73_spill] sm:$0xff] %v11797_v10  ;;  %v3672_v29 = vmax.f32 %v11797_v10, %v11778_v28  ;;  %v2727_v27 = vadd.f32 %v2726_v8, %v11644_v61  ;;  %v3048_v56 = vpop.f32.mrf.mxu1  ;;  %v11807_v17 = vsel %vm2778_vm14, %v2719_v16, %v2810_v42  ;;  %v3288_v46 = vmax.f32 %v11803_v51, %v3287_v6  ;;  %v11823_v10 = vpop.trf.xlu1 }
 0x427   : > { %16573 = vst [vmem:[#allocation75_spill] sm:$0xff] %v11807_v17  ;;  %v2730_v13 = vpop.f32.mrf.mxu0  ;;  %v11809_v45 = vsel %vm3104_vm15, %v3045_v38, %v3136_v5  ;;  %vm3105_vm9 = vcmp.gt.f32.partialorder %v3047_v26, 0.0  ;;  %v3137_v15 = vmul.f32 0.1, %v3047_v26  ;;  %3225 = vxpose.xlu0.b32.cont [7/16] %v11807_v17, 128  ;;  %v3049_v8 = vadd.f32 %v3048_v56, %v11660_v63  ;;  %1492 = vst [vmem:[%s10847_s25 + $0x78] sm:$0xff] %v11823_v10 }
 0x428   : > { %16574 = vst [vmem:[#allocation76_spill] sm:$0xff] %v11809_v45  ;;  %v3694_v57 = vmax.f32 %v3692_v53, %v11809_v45  ;;  %vm2781_vm0 = vcmp.gt.f32.partialorder %v2727_v27, 0.0  ;;  %v2813_v54 = vmul.f32 0.1, %v2727_v27  ;;  %v3052_v16 = vpop.f32.mrf.mxu1  ;;  %v11819_v38 = vmax.f32 %v11807_v17, %v3308_v7 }
 0x429   : > { %v2732_v42 = vpop.f32.mrf.mxu0  ;;  %v11816_v4 = vsel %vm3105_vm9, %v3047_v26, %v3137_v15  ;;  %v2729_v6 = vadd.f32 %v2728_v59, %v11647_v58  ;;  %v3053_v5 = vadd.f32 %v3052_v16, %v11654_v37  ;;  %vm3106_vm5 = vcmp.gt.f32.partialorder %v3049_v8, 0.0 }
 0x42a   : > { %16575 = vst [vmem:[#allocation77_spill] sm:$0xff] %v11816_v4  ;;  %v11826_v53 = vmax.f32 %v3672_v29, %v11816_v4  ;;  %v3138_v45 = vmul.f32 0.1, %v3049_v8  ;;  %v11829_v56 = vsel %vm2779_vm12, %v2721_v43, %v2811_v22  ;;  %v3054_v28 = vpop.f32.mrf.mxu1  ;;  %v2731_v16 = vadd.f32 %v2730_v13, %v11644_v61 }
 0x42b   : > { %16576 = vst [vmem:[#allocation78_spill] sm:$0xff] %v11829_v56  ;;  %v2736_v26 = vpop.f32.mrf.mxu0  ;;  %vm2782_vm8 = vcmp.gt.f32.partialorder %v2729_v6, 0.0  ;;  %v2814_v7 = vmul.f32 0.1, %v2729_v6  ;;  %vm3107_vm6 = vcmp.gt.f32.partialorder %v3053_v5, 0.0  ;;  %3194 = vxpose.xlu1.b32.cont [8/16] %v11829_v56, 128  ;;  %v3289_v29 = vmax.f32 %v11829_v56, %v3288_v46 }
 0x42c   : > { %v3139_v59 = vmul.f32 0.1, %v3053_v5  ;;  %v11834_v15 = vsel %vm3106_vm5, %v3049_v8, %v3138_v45  ;;  %v3055_v43 = vadd.f32 %v3054_v28, %v11660_v63  ;;  %v3056_v22 = vpop.f32.mrf.mxu1  ;;  %v11845_v35 = vsel %vm2780_vm13, %v11785_v1, %v2812_v31  ;;  %v11848_v8 = vpop.trf.xlu1 }
 0x42d   : > { %16577 = vst [vmem:[#allocation79_spill] sm:$0xff] %v11834_v15  ;;  %v2738_v4 = vpop.f32.mrf.mxu0  ;;  %v3696_v17 = vmax.f32 %v3694_v57, %v11834_v15  ;;  %16579 = vst [vmem:[#allocation81_spill] sm:$0xff] %v11845_v35  ;;  %v2733_v45 = vadd.f32 %v2732_v42, %v11647_v58  ;;  %vm2783_vm7 = vcmp.gt.f32.partialorder %v2731_v16, 0.0  ;;  %v2815_v28 = vmul.f32 0.1, %v2731_v16  ;;  %3226 = vxpose.xlu0.b32.cont [8/16] %v11845_v35, 128 }
 0x42e   : > { %v11840_v36 = vsel %vm3107_vm6, %v3053_v5, %v3139_v59  ;;  %vm3108_vm1 = vcmp.gt.f32.partialorder %v3055_v43, 0.0  ;;  %v3058_v46 = vpop.f32.mrf.mxu1  ;;  %2254 = vst [vmem:[%s10847_s25 + $0x80] sm:$0xff] %v11848_v8  ;;  %v3140_v5 = vmul.f32 0.1, %v3055_v43  ;;  %v3310_v1 = vmax.f32 %v11845_v35, %v11819_v38 }
 0x42f   : > { %16578 = vst [vmem:[#allocation80_spill] sm:$0xff] %v11840_v36  ;;  %v3676_v13 = vmax.f32 %v11826_v53, %v11840_v36  ;;  %v2740_v57 = vpop.f32.mrf.mxu0  ;;  %vm2784_vm3 = vcmp.gt.f32.partialorder %v2733_v45, 0.0  ;;  %v2816_v31 = vmul.f32 0.1, %v2733_v45  ;;  %v3057_v42 = vadd.f32 %v3056_v22, %v11654_v37 }
 0x430   : > { %v11859_v59 = vsel %vm2781_vm0, %v2727_v27, %v2813_v54  ;;  %v2737_v53 = vadd.f32 %v2736_v26, %v11644_v61  ;;  %v3059_v36 = vadd.f32 %v3058_v46, %v11660_v63  ;;  %v3062_v15 = vpop.f32.mrf.mxu1  ;;  %v11863_v19 = vsel %vm3108_vm1, %v3055_v43, %v3140_v5  ;;  %v11873_v27 = vpop.trf.xlu1 }
 0x431   : > { %16580 = vst [vmem:[#allocation82_spill] sm:$0xff] %v11859_v59  ;;  %v2742_v20 = vpop.f32.mrf.mxu0  ;;  %16581 = vst [vmem:[#allocation83_spill] sm:$0xff] %v11863_v19  ;;  %v3290_v34 = vmax.f32 %v11859_v59, %v3289_v29  ;;  %3195 = vxpose.xlu1.b32.cont [9/16] %v11859_v59, 128  ;;  %v11868_v38 = vsel %vm2782_vm8, %v2729_v6, %v2814_v7  ;;  %v11871_v22 = vadd.f32 %v2738_v4, %v11647_v58 }
 0x432   : > { %16582 = vst [vmem:[#allocation84_spill] sm:$0xff] %v11868_v38  ;;  %v3698_v54 = vmax.f32 %v3696_v17, %v11863_v19  ;;  %vm3109_vm10 = vcmp.gt.f32.partialorder %v3057_v42, 0.0  ;;  %v3141_v26 = vmul.f32 0.1, %v3057_v42  ;;  %vm2785_vm2 = vcmp.gt.f32.partialorder %v2737_v53, 0.0  ;;  %3227 = vxpose.xlu0.b32.cont [9/16] %v11868_v38, 128  ;;  %v3064_v43 = vpop.f32.mrf.mxu1  ;;  %2255 = vst [vmem:[%s10847_s25 + $0x88] sm:$0xff] %v11873_v27 }
 0x433   : > { %v2746_v46 = vpop.f32.mrf.mxu0  ;;  %v2817_v29 = vmul.f32 0.1, %v2737_v53  ;;  %vm3110_vm14 = vcmp.gt.f32.partialorder %v3059_v36, 0.0  ;;  %v3142_v6 = vmul.f32 0.1, %v3059_v36  ;;  %v3311_v7 = vmax.f32 %v11868_v38, %v3310_v1 }
 0x434   : > { %v11880_v4 = vsel %vm3109_vm10, %v3057_v42, %v3141_v26  ;;  %vm2786_vm11 = vcmp.gt.f32.partialorder %v11871_v22, 0.0  ;;  %v2818_v17 = vmul.f32 0.1, %v11871_v22  ;;  %v3063_v5 = vadd.f32 %v3062_v15, %v11654_v37  ;;  %v3066_v19 = vpop.f32.mrf.mxu1  ;;  %v11892_v42 = vpop.trf.xlu1 }
 0x435   : > { %16583 = vst [vmem:[#allocation85_spill] sm:$0xff] %v11880_v4  ;;  %v2748_v35 = vpop.f32.mrf.mxu0  ;;  %v3678_v33 = vmax.f32 %v3676_v13, %v11880_v4  ;;  %v11886_v18 = vsel %vm3110_vm14, %v3059_v36, %v3142_v6  ;;  %v11889_v11 = vsel %vm2783_vm7, %v2731_v16, %v2815_v28  ;;  %v2741_v1 = vadd.f32 %v2740_v57, %v11644_v61 }
 0x436   : > { %16584 = vst [vmem:[#allocation86_spill] sm:$0xff] %v11886_v18  ;;  %16585 = vst [vmem:[#allocation87_spill] sm:$0xff] %v11889_v11  ;;  %v3700_v26 = vmax.f32 %v3698_v54, %v11886_v18  ;;  %vm3111_vm12 = vcmp.gt.f32.partialorder %v3063_v5, 0.0  ;;  %v3143_v38 = vmul.f32 0.1, %v3063_v5  ;;  %v3291_v59 = vmax.f32 %v11889_v11, %v3290_v34  ;;  %3196 = vxpose.xlu1.b32.cont [10/16] %v11889_v11, 128  ;;  %v3068_v15 = vpop.f32.mrf.mxu1 }
 0x437   : > { %v2750_v56 = vpop.f32.mrf.mxu0  ;;  %2256 = vst [vmem:[%s10847_s25 + $0x90] sm:$0xff] %v11892_v42  ;;  %vm2787_vm4 = vcmp.gt.f32.partialorder %v2741_v1, 0.0  ;;  %v2819_v36 = vmul.f32 0.1, %v2741_v1  ;;  %v3065_v16 = vadd.f32 %v3064_v43, %v11660_v63  ;;  %v11901_v13 = vsel %vm2784_vm3, %v2733_v45, %v2816_v31 }
 0x438   : > { %16586 = vst [vmem:[#allocation88_spill] sm:$0xff] %v11901_v13  ;;  %v11903_v28 = vsel %vm3111_vm12, %v3063_v5, %v3143_v38  ;;  %v3312_v57 = vmax.f32 %v11901_v13, %v3311_v7  ;;  %3228 = vxpose.xlu0.b32.cont [10/16] %v11901_v13, 128  ;;  %v2743_v34 = vadd.f32 %v2742_v20, %v11647_v58  ;;  %v3072_v6 = vpop.f32.mrf.mxu1  ;;  %v11913_v31 = vpop.trf.xlu1  ;;  %vm3095_vm14 = vcmp.gt.f32.partialorder %v11691_v0, 0.0 }
 0x439   : > { %16587 = vst [vmem:[#allocation89_spill] sm:$0xff] %v11903_v28  ;;  %v3067_v54 = vadd.f32 %v3066_v19, %v11654_v37  ;;  %v2752_v18 = vpop.f32.mrf.mxu0  ;;  %v3680_v4 = vmax.f32 %v3678_v33, %v11903_v28  ;;  %vm3112_vm13 = vcmp.gt.f32.partialorder %v3065_v16, 0.0  ;;  %v3144_v43 = vmul.f32 0.1, %v3065_v16  ;;  %2257 = vst [vmem:[%s10847_s25 + $0x98] sm:$0xff] %v11913_v31 }
 0x43a   : > { %v11911_v45 = vsel %vm2785_vm2, %v2737_v53, %v2817_v29  ;;  %vm2788_vm15 = vcmp.gt.f32.partialorder %v2743_v34, 0.0  ;;  %v2820_v38 = vmul.f32 0.1, %v2743_v34  ;;  %v3074_v20 = vpop.f32.mrf.mxu1  ;;  %v2747_v5 = vadd.f32 %v2746_v46, %v11644_v61 }
 0x43b   : > { %16588 = vst [vmem:[#allocation90_spill] sm:$0xff] %v11911_v45  ;;  %vm3113_vm9 = vcmp.gt.f32.partialorder %v3067_v54, 0.0  ;;  %v3145_v7 = vmul.f32 0.1, %v3067_v54  ;;  %3197 = vxpose.xlu1.b32.cont [11/16] %v11911_v45, 128  ;;  %v11918_v19 = vsel %vm3112_vm13, %v3065_v16, %v3144_v43  ;;  %v3292_v33 = vmax.f32 %v11911_v45, %v3291_v59  ;;  %v2756_v43 = vpop.f32.mrf.mxu0 }
 0x43c   : > { %16589 = vst [vmem:[#allocation91_spill] sm:$0xff] %v11918_v19  ;;  %v3069_v53 = vadd.f32 %v3068_v15, %v11660_v63  ;;  %v3702_v29 = vmax.f32 %v3700_v26, %v11918_v19  ;;  %v11929_v13 = vsel %vm2786_vm11, %v11871_v22, %v2818_v17  ;;  %v2749_v11 = vadd.f32 %v2748_v35, %v11647_v58  ;;  %v3076_v16 = vpop.f32.mrf.mxu1  ;;  %v11936_v26 = vpop.trf.xlu1 }
 0x43d   : > { %v11924_v28 = vsel %vm3113_vm9, %v3067_v54, %v3145_v7  ;;  %16591 = vst [vmem:[#allocation93_spill] sm:$0xff] %v11929_v13  ;;  %vm2789_vm0 = vcmp.gt.f32.partialorder %v2747_v5, 0.0  ;;  %v2821_v46 = vmul.f32 0.1, %v2747_v5  ;;  %3229 = vxpose.xlu0.b32.cont [11/16] %v11929_v13, 128  ;;  %v3313_v54 = vmax.f32 %v11929_v13, %v3312_v57  ;;  %2258 = vst [vmem:[%s10847_s25 + $0xa0] sm:$0xff] %v11936_v26 }
 0x43e   : > { %16590 = vst [vmem:[#allocation92_spill] sm:$0xff] %v11924_v28  ;;  %v11933_v59 = vmax.f32 %v3680_v4, %v11924_v28  ;;  %vm3114_vm5 = vcmp.gt.f32.partialorder %v3069_v53, 0.0  ;;  %v3146_v15 = vmul.f32 0.1, %v3069_v53  ;;  %vm2790_vm8 = vcmp.gt.f32.partialorder %v2749_v11, 0.0  ;;  %v3078_v17 = vpop.f32.mrf.mxu1 }
 0x43f   : > { %v2822_v22 = vmul.f32 0.1, %v2749_v11  ;;  %v3073_v35 = vadd.f32 %v3072_v6, %v11654_v37  ;;  %v11943_v4 = vsel %vm2787_vm4, %v2741_v1, %v2819_v36  ;;  %v2751_v7 = vadd.f32 %v2750_v56, %v11644_v61  ;;  %v2758_v6 = vpop.f32.mrf.mxu0 }
 0x440   : > { %16592 = vst [vmem:[#allocation94_spill] sm:$0xff] %v11943_v4  ;;  %v3075_v28 = vadd.f32 %v3074_v20, %v11660_v63  ;;  %v11947_v19 = vsel %vm3114_vm5, %v3069_v53, %v3146_v15  ;;  %v3293_v45 = vmax.f32 %v11943_v4, %v3292_v33  ;;  %3198 = vxpose.xlu1.b32.cont [12/16] %v11943_v4, 128  ;;  %v3082_v1 = vpop.f32.mrf.mxu1  ;;  %v11959_v20 = vpop.trf.xlu1  ;;  %vm3096_vm11 = vcmp.gt.f32.partialorder %v11694_v39, 0.0 }
 0x441   : > { %16593 = vst [vmem:[#allocation95_spill] sm:$0xff] %v11947_v19  ;;  %v11952_v57 = vsel %vm2788_vm15, %v2743_v34, %v2820_v38  ;;  %v11955_v13 = vadd.f32 %v2752_v18, %v11647_v58  ;;  %v3693_v36 = vmax.f32 %v11947_v19, %v3702_v29  ;;  %vm3115_vm6 = vcmp.gt.f32.partialorder %v3073_v35, 0.0  ;;  %2259 = vst [vmem:[%s10847_s25 + $0xa8] sm:$0xff] %v11959_v20 }
 0x442   : > { %16594 = vst [vmem:[#allocation96_spill] sm:$0xff] %v11952_v57  ;;  %v3147_v56 = vmul.f32 0.1, %v3073_v35  ;;  %vm2791_vm7 = vcmp.gt.f32.partialorder %v2751_v7, 0.0  ;;  %3230 = vxpose.xlu0.b32.cont [12/16] %v11952_v57, 128  ;;  %v2823_v33 = vmul.f32 0.1, %v2751_v7  ;;  %v3314_v34 = vmax.f32 %v11952_v57, %v3313_v54  ;;  %v3084_v15 = vpop.f32.mrf.mxu1 }
 0x443   : > { %vm3116_vm1 = vcmp.gt.f32.partialorder %v3075_v28, 0.0  ;;  %v3148_v53 = vmul.f32 0.1, %v3075_v28  ;;  %vm2792_vm3 = vcmp.gt.f32.partialorder %v11955_v13, 0.0  ;;  %v2824_v38 = vmul.f32 0.1, %v11955_v13 }
 0x444   : > { %v11964_v18 = vsel %vm3115_vm6, %v3073_v35, %v3147_v56  ;;  %v3077_v29 = vadd.f32 %v3076_v16, %v11654_v37  ;;  %v11974_v51 = vsel %vm2789_vm0, %v2747_v5, %v2821_v46  ;;  %v2757_v54 = vadd.f32 %v2756_v43, %v11644_v61  ;;  %v2760_v35 = vpop.f32.mrf.mxu0  ;;  %v11982_v3 = vpop.trf.xlu1 }
 0x445   : > { %16595 = vst [vmem:[#allocation97_spill] sm:$0xff] %v11964_v18  ;;  %v3671_v19 = vmax.f32 %v11964_v18, %v11933_v59  ;;  %v11971_v4 = vsel %vm3116_vm1, %v3075_v28, %v3148_v53  ;;  %16597 = vst [vmem:[#allocation99_spill] sm:$0xff] %v11974_v51  ;;  %v3294_v16 = vmax.f32 %v11974_v51, %v3293_v45  ;;  %3199 = vxpose.xlu1.b32.cont [13/16] %v11974_v51, 128 }
 0x446   : > { %16596 = vst [vmem:[#allocation98_spill] sm:$0xff] %v11971_v4  ;;  %v11978_v56 = vmax.f32 %v3693_v36, %v11971_v4  ;;  %vm3117_vm10 = vcmp.gt.f32.partialorder %v3077_v29, 0.0  ;;  %v3149_v57 = vmul.f32 0.1, %v3077_v29  ;;  %vm2793_vm2 = vcmp.gt.f32.partialorder %v2757_v54, 0.0  ;;  %2260 = vst [vmem:[%s10847_s25 + $0xb0] sm:$0xff] %v11982_v3 }
 0x447   : > { %v2825_v28 = vmul.f32 0.1, %v2757_v54  ;;  %v3079_v59 = vadd.f32 %v3078_v17, %v11660_v63  ;;  %v11986_v5 = vsel %vm2790_vm8, %v2749_v11, %v2822_v22  ;;  %v2759_v46 = vadd.f32 %v2758_v6, %v11647_v58  ;;  %v3086_v17 = vpop.f32.mrf.mxu1 }
 0x448   : > { %v11992_v43 = vsel %vm3117_vm10, %v3077_v29, %v3149_v57  ;;  %v3315_v45 = vmax.f32 %v11986_v5, %v3314_v34  ;;  %3231 = vxpose.xlu0.b32.cont [13/16] %v11986_v5, 128  ;;  %v3083_v36 = vadd.f32 %v3082_v1, %v11654_v37  ;;  %v12002_v53 = vsel %vm2791_vm7, %v2751_v7, %v2823_v33  ;;  %v2762_v57 = vpop.f32.mrf.mxu0  ;;  %v12005_v6 = vpop.trf.xlu1 }
 0x449   : > { %16598 = vst [vmem:[#allocation100_spill] sm:$0xff] %v11992_v43  ;;  %v11999_v11 = vmax.f32 %v3671_v19, %v11992_v43  ;;  %vm3118_vm12 = vcmp.gt.f32.partialorder %v3079_v59, 0.0  ;;  %v3150_v22 = vmul.f32 0.1, %v3079_v59  ;;  %16599 = vst [vmem:[#allocation101_spill] sm:$0xff] %v12002_v53  ;;  %vm2794_vm4 = vcmp.gt.f32.partialorder %v2759_v46, 0.0  ;;  %3200 = vxpose.xlu1.b32.cont [14/16] %v12002_v53, 128 }
 0x44a   : > { %v2826_v29 = vmul.f32 0.1, %v2759_v46  ;;  %vm3119_vm13 = vcmp.gt.f32.partialorder %v3083_v36, 0.0  ;;  %v3151_v34 = vmul.f32 0.1, %v3083_v36  ;;  %vm3097_vm15 = vcmp.gt.f32.partialorder %v11708_v2, 0.0 }
 0x44b   : > { %vm3098_vm9 = vcmp.gt.f32.partialorder %v11730_v24, 0.0  ;;  %v12009_v19 = vsel %vm3118_vm12, %v3079_v59, %v3150_v22  ;;  %v3295_v1 = vmax.f32 %v12002_v53, %v3294_v16  ;;  %v2761_v7 = vadd.f32 %v2760_v35, %v11644_v61  ;;  %2261 = vst [vmem:[%s10847_s25 + $0xb8] sm:$0xff] %v12005_v6  ;;  %v3088_v16 = vpop.f32.mrf.mxu1  ;;  %v12029_v35 = vpop.trf.xlu0 }
 0x44c   : > { %16600 = vst [vmem:[#allocation102_spill] sm:$0xff] %v12009_v19  ;;  %v3085_v33 = vadd.f32 %v3084_v15, %v11660_v63  ;;  %v3697_v43 = vmax.f32 %v11978_v56, %v12009_v19  ;;  %v12018_v18 = vsel %vm3119_vm13, %v3083_v36, %v3151_v34  ;;  %v12023_v4 = vsel %vm2792_vm3, %v11955_v13, %v2824_v38 }
 0x44d   : > { %16601 = vst [vmem:[#allocation103_spill] sm:$0xff] %v12018_v18  ;;  %v2763_v59 = vadd.f32 %v2762_v57, %v11647_v58  ;;  %v3675_v61 = vmax.f32 %v11999_v11, %v12018_v18  ;;  %vm2795_vm0 = vcmp.gt.f32.partialorder %v2761_v7, 0.0  ;;  %v2827_v15 = vmul.f32 0.1, %v2761_v7  ;;  %3232 = vxpose.xlu0.b32.cont [14/16] %v12023_v4, 128  ;;  %2238 = vst [vmem:[%s10824_s20 + $0x80] sm:$0xff] %v12029_v35  ;;  %v12034_v58 = vpop.trf.xlu1 }
 0x44e   : > { %vm3120_vm5 = vcmp.gt.f32.partialorder %v3085_v33, 0.0  ;;  %v3152_v56 = vmul.f32 0.1, %v3085_v33  ;;  %v3316_v36 = vmax.f32 %v12023_v4, %v3315_v45  ;;  %16602 = vst [vmem:[#allocation104_spill] sm:$0xff] %v12034_v58  ;;  %vm3099_vm6 = vcmp.gt.f32.partialorder %v11756_v52, 0.0  ;;  %2262 = vst [vmem:[%s10847_s25 + $0xc0] sm:$0xff] %v12034_v58 }
 0x44f   : > { %vm2796_vm8 = vcmp.gt.f32.partialorder %v2763_v59, 0.0  ;;  %v2828_v13 = vmul.f32 0.1, %v2763_v59  ;;  %v3087_v38 = vadd.f32 %v3086_v17, %v11654_v37  ;;  %v12039_v11 = vsel %vm2793_vm2, %v2757_v54, %v2825_v28  ;;  %v12057_v28 = vpop.trf.xlu0 }
 0x450   : > { %16603 = vst [vmem:[#allocation105_spill] sm:$0xff] %v12039_v11  ;;  %v3089_v22 = vadd.f32 %v3088_v16, %v11660_v63  ;;  %v12043_v57 = vsel %vm2794_vm4, %v2759_v46, %v2826_v29  ;;  %v12047_v45 = vsel %vm3120_vm5, %v3085_v33, %v3152_v56  ;;  %v3296_v34 = vmax.f32 %v12039_v11, %v3295_v1 }
 0x451   : > { %16604 = vst [vmem:[#allocation106_spill] sm:$0xff] %v12047_v45  ;;  %3201 = vxpose.xlu1.b32.cont [15/16] %v12039_v11, 128  ;;  %v3317_v18 = vmax.f32 %v12043_v57, %v3316_v36  ;;  %v12053_v37 = vsel %vm2795_vm0, %v2761_v7, %v2827_v15  ;;  %v3699_v54 = vmax.f32 %v3697_v43, %v12047_v45  ;;  %vm3121_vm7 = vcmp.gt.f32.partialorder %v3087_v38, 0.0  ;;  %v12067_v43 = vpop.trf.xlu1 }
 0x452   : > { %16605 = vst [vmem:[#allocation107_spill] sm:$0xff] %v12053_v37  ;;  %v3153_v63 = vmul.f32 0.1, %v3087_v38  ;;  %vm3122_vm1 = vcmp.gt.f32.partialorder %v3089_v22, 0.0  ;;  %3233 = vxpose.xlu0.b32.cont [15/16] %v12043_v57, 128  ;;  %16606 = vst [vmem:[#allocation108_spill] sm:$0xff] %v12057_v28  ;;  %v3297_v17 = vmax.f32 %v12053_v37, %v3296_v34  ;;  %v12061_v29 = vsel %vm2796_vm8, %v2763_v59, %v2828_v13 }
 0x453   : > { %v3154_v46 = vmul.f32 0.1, %v3089_v22  ;;  %16607 = vst [vmem:[#allocation109_spill] sm:$0xff] %v12061_v29  ;;  %v1640_v1 = vmul.f32 %v11637_v32, %v11637_v32  ;;  %2239 = vst [vmem:[%s10824_s20 + $0x88] sm:$0xff] %v12057_v28  ;;  %v3318_v33 = vmax.f32 %v12061_v29, %v3317_v18  ;;  %v12076_v16 = vsel %vm3095_vm14, %v11691_v0, %v11724_v23  ;;  %v12098_v36 = vpop.trf.xlu0  ;;  %v16651_v28 = vld [vmem:[#allocation41_spill] sm:$0xff] }
 0x454   : > { %16608 = vst [vmem:[#allocation110_spill] sm:$0xff] %v12067_v43  ;;  %v12069_v7 = vsel %vm3121_vm7, %v3087_v38, %v3153_v63  ;;  %16610 = vst [vmem:[#allocation112_spill] sm:$0xff] %v12076_v16  ;;  %v12082_v59 = vsel %vm3096_vm11, %v11694_v39, %v11727_v9  ;;  %v3131_v32 = vmul.f32 0.1, %v11756_v52  ;;  %v3298_v56 = vrot.slane %v3297_v17, 4 }
 0x455   : > { %16609 = vst [vmem:[#allocation111_spill] sm:$0xff] %v12069_v7  ;;  %16611 = vst [vmem:[#allocation113_spill] sm:$0xff] %v12082_v59  ;;  %v3677_v15 = vmax.f32 %v3675_v61, %v12069_v7  ;;  %v12089_v18 = vsel %vm3122_vm1, %v3089_v22, %v3154_v46  ;;  %3202 = vxpose.xlu1.b32.end [16/16] %v12053_v37, 128  ;;  %v3319_v23 = vrot.slane %v3318_v33, 4  ;;  %v12115_v34 = vpop.trf.xlu1  ;;  %v16671_v7 = vld [vmem:[#allocation88_spill] sm:$0xff] }
 0x456   : > { %2263 = vst [vmem:[%s10847_s25 + $0xc8] sm:$0xff] %v12067_v43  ;;  %16612 = vst [vmem:[#allocation114_spill] sm:$0xff] %v12089_v18  ;;  %v3701_v0 = vmax.f32 %v3699_v54, %v12089_v18  ;;  %3234 = vxpose.xlu0.b32.end [16/16] %v12061_v29, 128  ;;  %v3669_v39 = vmax.f32 %v11698_v12, %v12076_v16  ;;  %v3690_v9 = vmax.f32 %v11705_v14, %v12082_v59 }
 0x457   : > { %16613 = vst [vmem:[#allocation115_spill] sm:$0xff] %v12098_v36  ;;  %v3299_v61 = vmax.f32 %v3297_v17, %v3298_v56  ;;  %v1660_v13 = vadd.f32 %v11651_v55, %v1640_v1  ;;  %v12105_v38 = vsel %vm3097_vm15, %v11708_v2, %v11740_v44  ;;  %v12111_v22 = vsel %vm3098_vm9, %v11730_v24, %v11749_v30  ;;  %v12133_v56 = vpop.trf.xlu0 }
 0x458   : > { %16614 = vst [vmem:[#allocation116_spill] sm:$0xff] %v12105_v38  ;;  %16615 = vst [vmem:[#allocation117_spill] sm:$0xff] %v12111_v22  ;;  %v3320_v54 = vmax.f32 %v3318_v33, %v3319_v23  ;;  %v3679_v63 = vmax.f32 %v3677_v15, %v3669_v39  ;;  %v3703_v46 = vmax.f32 %v3701_v0, %v3690_v9 }
 0x459   : > { %2240 = vst [vmem:[%s10824_s20 + $0x90] sm:$0xff] %v12098_v36  ;;  %16616 = vst [vmem:[#allocation118_spill] sm:$0xff] %v12115_v34  ;;  %v3670_v55 = vmax.f32 %v11713_v48, %v12105_v38  ;;  %v3300_v2 = vrot.slane %v3299_v61, 2  ;;  %3573 = vxpose.xlu1.b32.start [1/16] %v11698_v12, 128  ;;  %v3691_v24 = vmax.f32 %v11716_v50, %v12111_v22  ;;  %v12142_v39 = vpop.trf.xlu1  ;;  %v16649_v36 = vld [vmem:[#allocation48_spill] sm:$0xff] }
 0x45a   : > { %2264 = vst [vmem:[%s10847_s25 + $0xd0] sm:$0xff] %v12115_v34  ;;  %v1641_v44 = vmul.f32 %v11823_v10, %v11823_v10  ;;  %v2475_v30 = vmul.f32 %v11848_v8, %v11848_v8  ;;  %v3321_v17 = vrot.slane %v3320_v54, 2  ;;  %3605 = vxpose.xlu0.b32.start [1/16] %v11705_v14, 128  ;;  %v2476_v33 = vmul.f32 %v11873_v27, %v11873_v27 }
 0x45b   : > { %v3681_v1 = vmax.f32 %v3679_v63, %v3670_v55  ;;  %v2477_v15 = vmul.f32 %v11892_v42, %v11892_v42  ;;  %16617 = vst [vmem:[#allocation119_spill] sm:$0xff] %v12133_v56  ;;  %v3301_v0 = vmax.f32 %v3299_v61, %v3300_v2  ;;  %v3704_v23 = vmax.f32 %v3691_v24, %v3703_v46 }
 0x45c   : > { %v12138_v10 = vsel %vm3099_vm6, %v11756_v52, %v3131_v32  ;;  %v1661_v8 = vadd.f32 %v1660_v13, %v1641_v44  ;;  %2241 = vst [vmem:[%s10824_s20 + $0x98] sm:$0xff] %v12133_v56  ;;  %16619 = vst [vmem:[#allocation121_spill] sm:$0xff] %v12142_v39  ;;  %v3322_v9 = vmax.f32 %v3320_v54, %v3321_v17  ;;  %v12151_v54 = vpop.trf.xlu0  ;;  %v16623_v24 = vrot.slane %v11678_v40, 1  ;;  %v16648_v56 = vld [vmem:[#allocation47_spill] sm:$0xff] }
 0x45d   : > { %16618 = vst [vmem:[#allocation120_spill] sm:$0xff] %v12138_v10  ;;  %v3683_v27 = vmax.f32 %v3681_v1, %v12138_v10  ;;  %v2512_v63 = vadd.f32 %v2476_v33, %v2475_v30  ;;  %v2478_v42 = vmul.f32 %v11913_v31, %v11913_v31  ;;  %2265 = vst [vmem:[%s10847_s25 + $0xd8] sm:$0xff] %v12142_v39  ;;  %v3302_v61 = vrot.slane %v3301_v0, 1  ;;  %v12157_v31 = vpop.trf.xlu1  ;;  %v16647_v39 = vld [vmem:[#allocation39_spill] sm:$0xff] }
 0x45e   : > { %3574 = vxpose.xlu1.b32.cont [2/16] %v11713_v48, 128  ;;  %v3705_v52 = vrot.slane %v3704_v23, 4  ;;  %v3323_v32 = vrot.slane %v3322_v9, 1  ;;  %3606 = vxpose.xlu0.b32.cont [2/16] %v11716_v50, 128  ;;  %v1662_v46 = vrot.slane %v1661_v8, 4  ;;  %16620 = vst [vmem:[#allocation122_spill] sm:$0xff] %v12151_v54  ;;  %2242 = vst [vmem:[%s10824_s20 + $0xa0] sm:$0xff] %v12151_v54  ;;  %v12162_v44 = vadd.f32 %v16623_v24, %v11678_v40  ;;  %v16642_v24 = vld [vmem:[#allocation45_spill] sm:$0xff] }
 0x45f   : > { %v3684_v13 = vrot.slane %v3683_v27, 4  ;;  %v2513_v55 = vadd.f32 %v2512_v63, %v2477_v15  ;;  %v12153_v2 = vmax.f32 %v3301_v0, %v3302_v61  ;;  %16622 = vst [vmem:[#allocation124_spill] sm:$0xff] %v12157_v31  ;;  %2266 = vst [vmem:[%s10847_s25 + $0xe0] sm:$0xff] %v12157_v31  ;;  %v12171_v17 = vpack.c.bf16 %v11676_v62, %v11664_v25  ;;  %v16638_v61 = vld [vmem:[#allocation90_spill] sm:$0xff]  ;;  %v16686_v48 = vld [vmem:[#allocation44_spill] sm:$0xff] }
 0x460   : > { %16624 = vst [vmem:[#allocation125_spill] sm:$0xff] %v12162_v44  ;;  %v12175_v1 = vmul.f32 %v11936_v26, %v11936_v26  ;;  %v12179_v33 = vmul.f32 %v11959_v20, %v11959_v20  ;;  %v12183_v40 = vmul.f32 %v11982_v3, %v11982_v3  ;;  %v12185_v15 = vmax.f32 %v3322_v9, %v3323_v32  ;;  %v12194_v26 = vpop.trf.xlu0  ;;  %v16633_v20 = vld [vmem:[#allocation68_spill] sm:$0xff]  ;;  %v16636_v9 = vld [vmem:[#allocation82_spill] sm:$0xff] }
 0x461   : > { %16621 = vst [vmem:[#allocation123_spill] sm:$0xff] %v12153_v2  ;;  %v12164_v30 = vadd.f32 %v2513_v55, %v2478_v42  ;;  %16626 = vst [vmem:[#allocation127_spill] sm:$0xff] %v12171_v17  ;;  %v12188_v0 = vmax.f32 %v3704_v23, %v3705_v52  ;;  %v12190_v63 = vmax.f32 %v3683_v27, %v3684_v13  ;;  %v12206_v3 = vpop.trf.xlu1  ;;  %v16634_v23 = vld [vmem:[#allocation74_spill] sm:$0xff]  ;;  %v16637_v27 = vld [vmem:[#allocation87_spill] sm:$0xff] }
 0x462   : > { %3575 = vxpose.xlu1.b32.cont [3/16] %v12076_v16, 128  ;;  %16627 = vst [vmem:[#allocation128_spill] sm:$0xff] %v12175_v1  ;;  %16628 = vst [vmem:[#allocation129_spill] sm:$0xff] %v12179_v33  ;;  %3607 = vxpose.xlu0.b32.cont [3/16] %v12082_v59, 128  ;;  %v12192_v42 = vadd.f32 %v1662_v46, %v1661_v8  ;;  %vm3325_vm3 = vcmp.eq.f32.partialorder %v11657_v21, %v12153_v2  ;;  %v16635_v8 = vld [vmem:[#allocation78_spill] sm:$0xff]  ;;  %v16640_v32 = vld [vmem:[#allocation36_spill] sm:$0xff]  ;;  %v16677_v16 = vlaneseq }
 0x463   : > { %16625 = vst [vmem:[#allocation126_spill] sm:$0xff] %v12164_v30  ;;  %16629 = vst [vmem:[#allocation130_spill] sm:$0xff] %v12183_v40  ;;  %vm3327_vm10 = vcmp.eq.f32.partialorder %v11668_v47, %v12153_v2  ;;  %vm3329_vm2 = vcmp.eq.f32.partialorder %v11682_v49, %v12153_v2  ;;  %vm3331_vm14 = vcmp.eq.f32.partialorder %v11702_v41, %v12153_v2  ;;  %v16639_v52 = vld [vmem:[#allocation94_spill] sm:$0xff]  ;;  %v3357_v13 = vsel %vm3325_vm3, %v16640_v32, 128  ;;  %v16641_v46 = vld [vmem:[#allocation37_spill] sm:$0xff] }
 0x464   : > { %16630 = vst [vmem:[#allocation131_spill] sm:$0xff] %v12185_v15  ;;  %16631 = vst [vmem:[#allocation132_spill] sm:$0xff] %v12194_v26  ;;  %vm3333_vm11 = vcmp.eq.f32.partialorder %v11737_v60, %v12153_v2  ;;  %vm3335_vm12 = vcmp.eq.f32.partialorder %v16633_v20, %v12153_v2  ;;  %vm3337_vm4 = vcmp.eq.f32.partialorder %v16634_v23, %v12153_v2  ;;  %v3359_v55 = vsel %vm3327_vm10, %v16641_v46, 128  ;;  %v16643_v31 = vld [vmem:[#allocation46_spill] sm:$0xff]  ;;  %v12252_v49 = vpop.trf.xlu0  ;;  %v16650_v60 = vld [vmem:[#allocation40_spill] sm:$0xff] }
 0x465   : > { %2243 = vst [vmem:[%s10824_s20 + $0xa8] sm:$0xff] %v12194_v26  ;;  %16632 = vst [vmem:[#allocation133_spill] sm:$0xff] %v12206_v3  ;;  %vm3339_vm13 = vcmp.eq.f32.partialorder %v16635_v8, %v12153_v2  ;;  %vm3341_vm15 = vcmp.eq.f32.partialorder %v16636_v9, %v12153_v2  ;;  %vm3343_vm9 = vcmp.eq.f32.partialorder %v16637_v27, %v12153_v2  ;;  %v3363_v26 = vsel %vm3331_vm14, %v16643_v31, 128  ;;  %v12254_v47 = vpop.trf.xlu1  ;;  %v16646_v41 = vld [vmem:[#allocation38_spill] sm:$0xff]  ;;  %v16652_v8 = vld [vmem:[#allocation49_spill] sm:$0xff] }
 0x466   : > { %2267 = vst [vmem:[%s10847_s25 + $0xe8] sm:$0xff] %v12206_v3  ;;  %vm3345_vm0 = vcmp.eq.f32.partialorder %v16638_v61, %v12153_v2  ;;  %vm3347_vm5 = vcmp.eq.f32.partialorder %v16639_v52, %v12153_v2  ;;  %3576 = vxpose.xlu1.b32.cont [4/16] %v12105_v38, 128  ;;  %v3361_v3 = vsel %vm3329_vm2, %v16642_v24, 128  ;;  %3608 = vxpose.xlu0.b32.cont [4/16] %v12111_v22, 128  ;;  %16644 = vst [vmem:[#allocation134_spill] sm:$0xff] %v12252_v49  ;;  %v16654_v27 = vld [vmem:[#allocation69_spill] sm:$0xff]  ;;  %v16655_v44 = vld [vmem:[#allocation42_spill] sm:$0xff] }
 0x467   : > { %vm3349_vm8 = vcmp.eq.f32.partialorder %v11974_v51, %v12153_v2  ;;  %vm3351_vm6 = vcmp.eq.f32.partialorder %v12002_v53, %v12153_v2  ;;  %vm3353_vm7 = vcmp.eq.f32.partialorder %v12039_v11, %v12153_v2  ;;  %vm3355_vm1 = vcmp.eq.f32.partialorder %v12053_v37, %v12153_v2  ;;  %16645 = vst [vmem:[#allocation135_spill] sm:$0xff] %v12254_v47  ;;  %v16656_v30 = vld [vmem:[#allocation43_spill] sm:$0xff]  ;;  %v16661_v11 = vld [vmem:[#allocation70_spill] sm:$0xff] }
 0x468   : > { %v3365_v21 = vsel %vm3333_vm11, %v16646_v41, 128  ;;  %v3367_v54 = vsel %vm3335_vm12, %v16647_v39, 128  ;;  %v3369_v34 = vsel %vm3337_vm4, %v16648_v56, 128  ;;  %v3371_v43 = vsel %vm3339_vm13, %v16649_v36, 128  ;;  %2244 = vst [vmem:[%s10824_s20 + $0xb0] sm:$0xff] %v12252_v49  ;;  %2268 = vst [vmem:[%s10847_s25 + $0xf0] sm:$0xff] %v12254_v47  ;;  %v12302_v1 = vpop.trf.xlu0 }
 0x469   : > { %v3373_v20 = vsel %vm3341_vm15, %v16650_v60, 128  ;;  %v3375_v23 = vsel %vm3343_vm9, %v16651_v28, 128  ;;  %vm3389_vm3 = vcmp.lt.s32.totalorder %v3357_v13, %v3361_v3  ;;  %vm3391_vm10 = vcmp.lt.s32.totalorder %v3359_v55, %v3363_v26  ;;  %v16653_v49 = vld [vmem:[#allocation50_spill] sm:$0xff]  ;;  %16657 = vst [vmem:[#allocation136_spill] sm:$0xff] %v12302_v1  ;;  %v12304_v52 = vpop.trf.xlu1  ;;  %2245 = vst [vmem:[%s10824_s20 + $0xb8] sm:$0xff] %v12302_v1 }
 0x46a   : > { %3577 = vxpose.xlu1.b32.cont [5/16] %v12138_v10, 128  ;;  %v3377_v47 = vsel %vm3345_vm0, %v16652_v8, 128  ;;  %v3379_v9 = vsel %vm3347_vm5, %v16653_v49, 128  ;;  %v3390_v58 = vsel %vm3389_vm3, %v3357_v13, %v3361_v3  ;;  %v3392_v40 = vsel %vm3391_vm10, %v3359_v55, %v3363_v26  ;;  %3609 = vxpose.xlu0.b32.cont [5/16] %v16654_v27, 128  ;;  %16658 = vst [vmem:[#allocation137_spill] sm:$0xff] %v12304_v52  ;;  %v16659_v3 = vld [vmem:[#allocation51_spill] sm:$0xff]  ;;  %v16660_v13 = vld [vmem:[#allocation52_spill] sm:$0xff]  ;;  %v16672_v10 = vld [vmem:[#allocation73_spill] sm:$0xff] }
 0x46b   : > { %v3381_v33 = vsel %vm3349_vm8, %v16655_v44, 128  ;;  %v3383_v61 = vsel %vm3351_vm6, %v16656_v30, 128  ;;  %vm3393_vm2 = vcmp.lt.s32.totalorder %v3390_v58, %v3365_v21  ;;  %vm3395_vm14 = vcmp.lt.s32.totalorder %v3392_v40, %v3367_v54  ;;  %2269 = vst [vmem:[%s10847_s25 + $0xf8] sm:$0xff] %v12304_v52  ;;  %v16666_v52 = vld [vmem:[#allocation71_spill] sm:$0xff] }
 0x46c   : > { %v3385_v26 = vsel %vm3353_vm7, %v16659_v3, 128  ;;  %v3387_v55 = vsel %vm3355_vm1, %v16660_v13, 128  ;;  %v3394_v51 = vsel %vm3393_vm2, %v3390_v58, %v3365_v21  ;;  %v3396_v17 = vsel %vm3395_vm14, %v3392_v40, %v3367_v54  ;;  %v16662_v21 = vld [vmem:[#allocation53_spill] sm:$0xff]  ;;  %v16664_v54 = vld [vmem:[#allocation72_spill] sm:$0xff]  ;;  %v16665_v40 = vld [vmem:[#allocation67_spill] sm:$0xff]  ;;  %v12332_v1 = vpop.trf.xlu0 }
 0x46d   : > { %vm3397_vm11 = vcmp.lt.s32.totalorder %v3394_v51, %v3369_v34  ;;  %vm3399_vm12 = vcmp.lt.s32.totalorder %v3396_v17, %v3371_v43  ;;  %vm3326_vm4 = vcmp.eq.f32.partialorder %v11664_v25, %v12185_v15  ;;  %vm3328_vm13 = vcmp.eq.f32.partialorder %v11676_v62, %v12185_v15  ;;  %v16663_v58 = vld [vmem:[#allocation65_spill] sm:$0xff]  ;;  %16667 = vst [vmem:[#allocation138_spill] sm:$0xff] %v12332_v1 }
 0x46e   : > { %3578 = vxpose.xlu1.b32.cont [6/16] %v16661_v11, 128  ;;  %v3398_v53 = vsel %vm3397_vm11, %v3394_v51, %v3369_v34  ;;  %v3400_v37 = vsel %vm3399_vm12, %v3396_v17, %v3371_v43  ;;  %vm3330_vm15 = vcmp.eq.f32.partialorder %v16662_v21, %v12185_v15  ;;  %vm3332_vm9 = vcmp.eq.f32.partialorder %v16663_v58, %v12185_v15  ;;  %v16668_v34 = vld [vmem:[#allocation75_spill] sm:$0xff]  ;;  %v16669_v17 = vld [vmem:[#allocation81_spill] sm:$0xff]  ;;  %v16670_v11 = vld [vmem:[#allocation84_spill] sm:$0xff] }
 0x46f   : > { %3610 = vxpose.xlu0.b32.cont [6/16] %v16664_v54, 128  ;;  %vm3401_vm0 = vcmp.lt.s32.totalorder %v3398_v53, %v3373_v20  ;;  %vm3403_vm5 = vcmp.lt.s32.totalorder %v3400_v37, %v3375_v23  ;;  %vm3334_vm8 = vcmp.eq.f32.partialorder %v16665_v40, %v12185_v15  ;;  %vm3336_vm6 = vcmp.eq.f32.partialorder %v16666_v52, %v12185_v15  ;;  %v16681_v21 = vld [vmem:[#allocation79_spill] sm:$0xff] }
 0x470   : > { %v3402_v51 = vsel %vm3401_vm0, %v3398_v53, %v3373_v20  ;;  %v3404_v43 = vsel %vm3403_vm5, %v3400_v37, %v3375_v23  ;;  %vm3338_vm7 = vcmp.eq.f32.partialorder %v16668_v34, %v12185_v15  ;;  %vm3340_vm1 = vcmp.eq.f32.partialorder %v16669_v17, %v12185_v15  ;;  %2246 = vst [vmem:[%s10824_s20 + $0xc0] sm:$0xff] %v12332_v1  ;;  %v16673_v20 = vld [vmem:[#allocation93_spill] sm:$0xff]  ;;  %v16674_v23 = vld [vmem:[#allocation96_spill] sm:$0xff] }
 0x471   : > { %vm3405_vm3 = vcmp.lt.s32.totalorder %v3402_v51, %v3377_v47  ;;  %vm3407_vm10 = vcmp.lt.s32.totalorder %v3404_v43, %v3379_v9  ;;  %vm3344_vm14 = vcmp.eq.f32.partialorder %v16671_v7, %v12185_v15  ;;  %vm3346_vm11 = vcmp.eq.f32.partialorder %v16673_v20, %v12185_v15  ;;  %v16675_v1 = vld [vmem:[#allocation76_spill] sm:$0xff] }
 0x472   : > { %3579 = vxpose.xlu1.b32.cont [7/16] %v16672_v10, 128  ;;  %v3406_v53 = vsel %vm3405_vm3, %v3402_v51, %v3377_v47  ;;  %v3408_v37 = vsel %vm3407_vm10, %v3404_v43, %v3379_v9  ;;  %vm3348_vm12 = vcmp.eq.f32.partialorder %v16674_v23, %v12185_v15  ;;  %vm3350_vm2 = vcmp.eq.f32.partialorder %v11986_v5, %v12185_v15  ;;  %v12360_v51 = vpop.trf.xlu0  ;;  %v16685_v23 = vld [vmem:[#allocation83_spill] sm:$0xff] }
 0x473   : > { %3611 = vxpose.xlu0.b32.cont [7/16] %v16675_v1, 128  ;;  %vm3409_vm0 = vcmp.lt.s32.totalorder %v3406_v53, %v3381_v33  ;;  %vm3411_vm5 = vcmp.lt.s32.totalorder %v3408_v37, %v3383_v61  ;;  %v3358_v47 = vsel %vm3326_vm4, %v16640_v32, 128  ;;  %v3360_v9 = vsel %vm3328_vm13, %v16641_v46, 128  ;;  %16676 = vst [vmem:[#allocation139_spill] sm:$0xff] %v12360_v51  ;;  %2247 = vst [vmem:[%s10824_s20 + $0xc8] sm:$0xff] %v12360_v51  ;;  %v16684_v51 = vld [vmem:[#allocation80_spill] sm:$0xff] }
 0x474   : > { %v3410_v43 = vsel %vm3409_vm0, %v3406_v53, %v3381_v33  ;;  %v3412_v10 = vsel %vm3411_vm5, %v3408_v37, %v3383_v61  ;;  %vm3352_vm3 = vcmp.eq.f32.partialorder %v12023_v4, %v12185_v15  ;;  %v3362_v38 = vsel %vm3330_vm15, %v16642_v24, 128  ;;  %v16680_v53 = vld [vmem:[#allocation77_spill] sm:$0xff] }
 0x475   : > { %v3364_v25 = vsel %vm3332_vm9, %v16643_v31, 128  ;;  %vm12373_vm4 = vcmp.lt.s32.totalorder %v16677_v16, 256  ;;  %vm3413_vm13 = vcmp.lt.s32.totalorder %v3410_v43, %v3385_v26  ;;  %vm3415_vm10 = vcmp.lt.s32.totalorder %v3412_v10, %v3387_v55 }
 0x476   : > { %v3366_v33 = vsel %vm3334_vm8, %v16646_v41, 128  ;;  %v3368_v61 = vsel %vm3336_vm6, %v16647_v39, 128  ;;  %3580 = vxpose.xlu1.b32.cont [8/16] %v16680_v53, 128  ;;  %v3414_v37 = vsel %vm3413_vm13, %v3410_v43, %v3385_v26  ;;  %v3416_v16 = vsel %vm3415_vm10, %v3412_v10, %v3387_v55  ;;  %v12411_v43 = vpop.trf.xlu0 }
 0x477   : > { %v3370_v58 = vsel %vm3338_vm7, %v16648_v56, 128  ;;  %v3372_v40 = vsel %vm3340_vm1, %v16649_v36, 128  ;;  %3612 = vxpose.xlu0.b32.cont [8/16] %v16681_v21, 128  ;;  %vm3417_vm15 = vcmp.lt.s32.totalorder %v3414_v37, %v3416_v16  ;;  %vm3354_vm9 = vcmp.eq.f32.partialorder %v12043_v57, %v12185_v15  ;;  %16683 = vst [vmem:[#allocation140_spill] sm:$0xff] %v12411_v43  ;;  %2248 = vst [vmem:[%s10824_s20 + $0xd0] sm:$0xff] %v12411_v43 }
 0x478   : > { %vm16682_vm8 = vcmp.eq.f32.partialorder %v16670_v11, %v12185_v15  ;;  %v3376_v26 = vsel %vm3344_vm14, %v16651_v28, 128  ;;  %v3378_v55 = vsel %vm3346_vm11, %v16652_v8, 128  ;;  %v3418_v17 = vsel %vm3417_vm15, %v3414_v37, %v3416_v16  ;;  %v16687_v8 = vld [vmem:[#allocation85_spill] sm:$0xff] }
 0x479   : > { %v3374_v10 = vsel %vm16682_vm8, %v16650_v60, 128  ;;  %vm3356_vm6 = vcmp.eq.f32.partialorder %v12061_v29, %v12185_v15  ;;  %v3380_v11 = vsel %vm3348_vm12, %v16653_v49, 128  ;;  %vm3428_vm7 = vcmp.lt.s32.totalorder %v3358_v47, %v3362_v38 }
 0x47a   : > { %vm3430_vm1 = vcmp.lt.s32.totalorder %v3360_v9, %v3364_v25  ;;  %v3419_v7 = vrot.slane %v3418_v17, 4  ;;  %v3429_v34 = vsel %vm3428_vm7, %v3358_v47, %v3362_v38  ;;  %v3469_v20 = vcombine.low %v12153_v2, %v12185_v15  ;;  %3581 = vxpose.xlu1.b32.cont [9/16] %v16684_v51, 128  ;;  %v12428_v47 = vpop.trf.xlu0 }
 0x47b   : > { %v3431_v52 = vsel %vm3430_vm1, %v3360_v9, %v3364_v25  ;;  %vm3432_vm14 = vcmp.lt.s32.totalorder %v3429_v34, %v3366_v33  ;;  %v3707_v16 = vrot.slane %v12188_v0, 2  ;;  %v3686_v37 = vrot.slane %v12190_v63, 2  ;;  %3613 = vxpose.xlu0.b32.cont [9/16] %v16685_v23, 128  ;;  %2249 = vst [vmem:[%s10824_s20 + $0xd8] sm:$0xff] %v12428_v47 }
 0x47c   : > { %vm3434_vm11 = vcmp.lt.s32.totalorder %v3431_v52, %v3368_v61  ;;  %vm3420_vm12 = vcmp.lt.s32.totalorder %v3418_v17, %v3419_v7  ;;  %v3433_v53 = vsel %vm3432_vm14, %v3429_v34, %v3366_v33  ;;  %v3476_v38 = vrot.slane %v3469_v20, %v16686_v48 }
 0x47d   : > { %v3435_v43 = vsel %vm3434_vm11, %v3431_v52, %v3368_v61  ;;  %v3421_v9 = vsel %vm3420_vm12, %v3418_v17, %v3419_v7  ;;  %vm3436_vm0 = vcmp.lt.s32.totalorder %v3433_v53, %v3370_v58  ;;  %v3708_v25 = vmax.f32 %v12188_v0, %v3707_v16  ;;  %v16688_v0 = vld [vmem:[#allocation86_spill] sm:$0xff] }
 0x47e   : > { %vm3438_vm5 = vcmp.lt.s32.totalorder %v3435_v43, %v3372_v40  ;;  %v3422_v2 = vrot.slane %v3421_v9, 2  ;;  %v3437_v51 = vsel %vm3436_vm0, %v3433_v53, %v3370_v58  ;;  %v3483_v49 = vrot.slane %v3476_v38, %v16686_v48  ;;  %3582 = vxpose.xlu1.b32.cont [10/16] %v16687_v8, 128  ;;  %v12447_v17 = vpop.trf.xlu0 }
 0x47f   : > { %v3439_v12 = vsel %vm3438_vm5, %v3435_v43, %v3372_v40  ;;  %v3382_v7 = vsel %vm3350_vm2, %v16655_v44, 128  ;;  %vm3440_vm13 = vcmp.lt.s32.totalorder %v3437_v51, %v3374_v10  ;;  %v3709_v52 = vrot.slane %v3708_v25, 1  ;;  %3614 = vxpose.xlu0.b32.cont [10/16] %v16688_v0, 128  ;;  %2250 = vst [vmem:[%s10824_s20 + $0xe0] sm:$0xff] %v12447_v17 }
 0x480   : > { %vm3442_vm10 = vcmp.lt.s32.totalorder %v3439_v12, %v3376_v26  ;;  %vm3423_vm15 = vcmp.lt.s32.totalorder %v3421_v9, %v3422_v2  ;;  %v3384_v58 = vsel %vm3352_vm3, %v16656_v30, 128  ;;  %v3441_v40 = vsel %vm3440_vm13, %v3437_v51, %v3374_v10  ;;  %3487 = vst.msk [vmem:[%s10599_s28 + $0x2] sm:$0x3] %vm12373_vm4, %v3483_v49  ;;  %v16689_v51 = vld [vmem:[#allocation89_spill] sm:$0xff] }
 0x481   : > { %v3443_v34 = vsel %vm3442_vm10, %v3439_v12, %v3376_v26  ;;  %v3424_v20 = vsel %vm3423_vm15, %v3421_v9, %v3422_v2  ;;  %vm3444_vm2 = vcmp.lt.s32.totalorder %v3441_v40, %v3378_v55  ;;  %v12450_v33 = vmax.f32 %v12190_v63, %v3686_v37  ;;  %v16690_v12 = vld [vmem:[#allocation91_spill] sm:$0xff] }
 0x482   : > { %vm3446_vm8 = vcmp.lt.s32.totalorder %v3443_v34, %v3380_v11  ;;  %v3425_v61 = vrot.slane %v3424_v20, 1  ;;  %v3445_v53 = vsel %vm3444_vm2, %v3441_v40, %v3378_v55  ;;  %v12454_v16 = vmax.f32 %v3708_v25, %v3709_v52  ;;  %3583 = vxpose.xlu1.b32.cont [11/16] %v16689_v51, 128  ;;  %v12470_v26 = vpop.trf.xlu0  ;;  %v16691_v25 = vld [vmem:[#allocation92_spill] sm:$0xff] }
 0x483   : > { %v3447_v43 = vsel %vm3446_vm8, %v3443_v34, %v3380_v11  ;;  %v3386_v49 = vsel %vm3354_vm9, %v16659_v3, 128  ;;  %vm3448_vm3 = vcmp.lt.s32.totalorder %v3445_v53, %v3382_v7  ;;  %3615 = vxpose.xlu0.b32.cont [11/16] %v16690_v12, 128  ;;  %v12464_v2 = vmul.f32 %v12005_v6, %v12005_v6  ;;  %2251 = vst [vmem:[%s10824_s20 + $0xe8] sm:$0xff] %v12470_v26  ;;  %v16693_v34 = vld [vmem:[#allocation98_spill] sm:$0xff] }
 0x484   : > { %vm3450_vm7 = vcmp.lt.s32.totalorder %v3447_v43, %v3384_v58  ;;  %vm3426_vm1 = vcmp.lt.s32.totalorder %v3424_v20, %v3425_v61  ;;  %v3388_v11 = vsel %vm3356_vm6, %v16660_v13, 128  ;;  %v3449_v63 = vsel %vm3448_vm3, %v3445_v53, %v3382_v7 }
 0x485   : > { %v3451_v10 = vsel %vm3450_vm7, %v3447_v43, %v3384_v58  ;;  %vm3452_vm14 = vcmp.lt.s32.totalorder %v3449_v63, %v3386_v49  ;;  %v12475_v37 = vmul.f32 %v12029_v35, %v12029_v35  ;;  %vm3712_vm11 = vcmp.eq.f32.partialorder %v11705_v14, %v12454_v16  ;;  %v16692_v35 = vld [vmem:[#allocation95_spill] sm:$0xff]  ;;  %v16698_v14 = vld [vmem:[#allocation50_spill] sm:$0xff] }
 0x486   : > { %vm3454_vm9 = vcmp.lt.s32.totalorder %v3451_v10, %v3388_v11  ;;  %v3453_v6 = vsel %vm3452_vm14, %v3449_v63, %v3386_v49  ;;  %v3688_v9 = vrot.slane %v12450_v33, 1  ;;  %3584 = vxpose.xlu1.b32.cont [12/16] %v16691_v25, 128  ;;  %v12483_v7 = vsel %vm3426_vm1, %v3424_v20, %v3425_v61  ;;  %v12496_v58 = vpop.trf.xlu0  ;;  %v16694_v20 = vld [vmem:[#allocation97_spill] sm:$0xff] }
 0x487   : > { %v3455_v38 = vsel %vm3454_vm9, %v3451_v10, %v3388_v11  ;;  %vm3714_vm12 = vcmp.eq.f32.partialorder %v11716_v50, %v12454_v16  ;;  %vm3716_vm0 = vcmp.eq.f32.partialorder %v12082_v59, %v12454_v16  ;;  %3616 = vxpose.xlu0.b32.cont [12/16] %v16692_v35, 128  ;;  %vm3718_vm5 = vcmp.eq.f32.partialorder %v12111_v22, %v12454_v16 }
 0x488   : > { %vm3456_vm6 = vcmp.lt.s32.totalorder %v3453_v6, %v3455_v38  ;;  %vm3720_vm13 = vcmp.eq.f32.partialorder %v16654_v27, %v12454_v16  ;;  %vm3722_vm10 = vcmp.eq.f32.partialorder %v16664_v54, %v12454_v16  ;;  %vm3724_vm15 = vcmp.eq.f32.partialorder %v16675_v1, %v12454_v16  ;;  %2252 = vst [vmem:[%s10824_s20 + $0xf0] sm:$0xff] %v12496_v58  ;;  %v16696_v27 = vld [vmem:[#allocation100_spill] sm:$0xff]  ;;  %v16697_v1 = vld [vmem:[#allocation49_spill] sm:$0xff] }
 0x489   : > { %v3457_v52 = vsel %vm3456_vm6, %v3453_v6, %v3455_v38  ;;  %vm3726_vm2 = vcmp.eq.f32.partialorder %v16681_v21, %v12454_v16  ;;  %vm3730_vm3 = vcmp.eq.f32.partialorder %v16688_v0, %v12454_v16  ;;  %vm3732_vm7 = vcmp.eq.f32.partialorder %v16690_v12, %v12454_v16 }
 0x48a   : > { %v3458_v40 = vrot.slane %v3457_v52, 4  ;;  %vm3734_vm1 = vcmp.eq.f32.partialorder %v16692_v35, %v12454_v16  ;;  %vm3736_vm14 = vcmp.eq.f32.partialorder %v16693_v34, %v12454_v16  ;;  %3585 = vxpose.xlu1.b32.cont [13/16] %v16694_v20, 128  ;;  %vm3738_vm6 = vcmp.eq.f32.partialorder %v12009_v19, %v12454_v16  ;;  %v12536_v63 = vpop.trf.xlu0  ;;  %v9474_v35 = vld [vmem:[#allocation8 + $0xe8] ss:$16 sps:$4 sm:$0xff]  }
 0x48b   : > { %vm3740_vm8 = vcmp.eq.f32.partialorder %v12047_v45, %v12454_v16  ;;  %v3744_v61 = vsel %vm3712_vm11, %v16640_v32, 128  ;;  %3617 = vxpose.xlu0.b32.cont [13/16] %v16693_v34, 128  ;;  %v3746_v43 = vsel %vm3714_vm12, %v16641_v46, 128  ;;  %v3748_v49 = vsel %vm3716_vm0, %v16642_v24, 128  ;;  %2253 = vst [vmem:[%s10824_s20 + $0xf8] sm:$0xff] %v12536_v63 }
 0x48c   : > { %vm3459_vm9 = vcmp.lt.s32.totalorder %v3457_v52, %v3458_v40  ;;  %v3750_v11 = vsel %vm3718_vm5, %v16643_v31, 128  ;;  %vm3742_vm11 = vcmp.eq.f32.partialorder %v12089_v18, %v12454_v16  ;;  %v3752_v6 = vsel %vm3720_vm13, %v16646_v41, 128 }
 0x48d   : > { %v3460_v53 = vsel %vm3459_vm9, %v3457_v52, %v3458_v40  ;;  %v3754_v38 = vsel %vm3722_vm10, %v16647_v39, 128  ;;  %v3756_v52 = vsel %vm3724_vm15, %v16648_v56, 128  ;;  %v3758_v40 = vsel %vm3726_vm2, %v16649_v36, 128 }
 0x48e   : > { %v3461_v10 = vrot.slane %v3460_v53, 2  ;;  %vm16695_vm12 = vcmp.eq.f32.partialorder %v16685_v23, %v12454_v16  ;;  %v3762_v54 = vsel %vm3730_vm3, %v16651_v28, 128  ;;  %3586 = vxpose.xlu1.b32.cont [14/16] %v16696_v27, 128  ;;  %v3764_v22 = vsel %vm3732_vm7, %v16697_v1, 128 }
 0x48f   : > { %v3760_v55 = vsel %vm16695_vm12, %v16650_v60, 128  ;;  %vm3814_vm5 = vcmp.lt.s32.totalorder %v3744_v61, %v3748_v49  ;;  %vm3816_vm13 = vcmp.lt.s32.totalorder %v3746_v43, %v3750_v11  ;;  %3618 = vxpose.xlu0.b32.cont [14/16] %v12009_v19, 128  ;;  %v4104_v50 = vpack.c.bf16 %v12454_v16, %v12454_v16  ;;  %v9471_v19 = vld [vmem:[#allocation8 + $0xe0] ss:$16 sps:$4 sm:$0xff]  }
 0x490   : > { %vm3462_vm0 = vcmp.lt.s32.totalorder %v3460_v53, %v3461_v10  ;;  %v3815_v23 = vsel %vm3814_vm5, %v3744_v61, %v3748_v49  ;;  %v3817_v59 = vsel %vm3816_vm13, %v3746_v43, %v3750_v11  ;;  %v3766_v15 = vsel %vm3734_vm1, %v16698_v14, 128 }
 0x491   : > { %v3463_v21 = vsel %vm3462_vm0, %v3460_v53, %v3461_v10  ;;  %vm3818_vm10 = vcmp.lt.s32.totalorder %v3815_v23, %v3752_v6  ;;  %vm3820_vm15 = vcmp.lt.s32.totalorder %v3817_v59, %v3754_v38  ;;  %v3768_v12 = vsel %vm3736_vm14, %v16655_v44, 128  ;;  %4457 = vmatprep.mubr.bf16.mxu0 %v4104_v50  ;;  %4498 = vmatprep.mubr.bf16.mxu1 %v4104_v50 }
 0x492   : > { %v3464_v0 = vrot.slane %v3463_v21, 1  ;;  %v3819_v29 = vsel %vm3818_vm10, %v3815_v23, %v3752_v6  ;;  %v3821_v53 = vsel %vm3820_vm15, %v3817_v59, %v3754_v38  ;;  %v12583_v61 = vmax.f32 %v12450_v33, %v3688_v9  ;;  %v16699_v33 = vld [vmem:[#allocation103_spill] sm:$0xff]  ;;  %v16702_v38 = vld [vmem:[#allocation112_spill] sm:$0xff] }
 0x493   : > { %v3770_v43 = vsel %vm3738_vm6, %v16656_v30, 128  ;;  %vm3822_vm3 = vcmp.lt.s32.totalorder %v3819_v29, %v3756_v52  ;;  %vm3824_vm7 = vcmp.lt.s32.totalorder %v3821_v53, %v3758_v40  ;;  %v3772_v23 = vsel %vm3740_vm8, %v16659_v3, 128  ;;  %3587 = vxpose.xlu1.b32.cont [15/16] %v16699_v33, 128  ;;  %3619 = vxpose.xlu0.b32.cont [15/16] %v12047_v45, 128 }
 0x494   : > { %vm3465_vm2 = vcmp.lt.s32.totalorder %v3463_v21, %v3464_v0  ;;  %v3823_v59 = vsel %vm3822_vm3, %v3819_v29, %v3756_v52  ;;  %v3825_v11 = vsel %vm3824_vm7, %v3821_v53, %v3758_v40  ;;  %v3774_v10 = vsel %vm3742_vm11, %v16660_v13, 128  ;;  %v16700_v29 = vld [vmem:[#allocation54_spill] sm:$0xff]  ;;  %v16703_v40 = vld [vmem:[#allocation116_spill] sm:$0xff] }
 0x495   : > { %v3466_v49 = vsel %vm3465_vm2, %v3463_v21, %v3464_v0  ;;  %vm3826_vm1 = vcmp.lt.s32.totalorder %v3823_v59, %v3760_v55  ;;  %vm3828_vm14 = vcmp.lt.s32.totalorder %v3825_v11, %v3762_v54  ;;  %vm3711_vm8 = vcmp.eq.f32.partialorder %v16700_v29, %v12583_v61  ;;  %v16701_v0 = vld [vmem:[#allocation63_spill] sm:$0xff]  ;;  %v12604_v6 = vpop.trf.xlu1  ;;  %v16704_v53 = vld [vmem:[#allocation120_spill] sm:$0xff] }
 0x496   : > { %v3488_v9 = vcombine.low %v12483_v7, %v3466_v49  ;;  %v3827_v50 = vsel %vm3826_vm1, %v3823_v59, %v3760_v55  ;;  %v3829_v21 = vsel %vm3828_vm14, %v3825_v11, %v3762_v54  ;;  %vm3713_vm9 = vcmp.eq.f32.partialorder %v16701_v0, %v12583_v61  ;;  %3251 = vst [vmem:[%s10824_s20 + $0x100] sm:$0xff] %v12604_v6  ;;  %v12611_v55 = vpop.trf.xlu0  ;;  %v16705_v49 = vld [vmem:[#allocation111_spill] sm:$0xff]  ;;  %v16706_v11 = vld [vmem:[#allocation70_spill] sm:$0xff] }
 0x497   : > { %vm3830_vm6 = vcmp.lt.s32.totalorder %v3827_v50, %v3764_v22  ;;  %vm3832_vm12 = vcmp.lt.s32.totalorder %v3829_v21, %v3766_v15  ;;  %vm3715_vm11 = vcmp.eq.f32.partialorder %v16702_v38, %v12583_v61  ;;  %vm3717_vm0 = vcmp.eq.f32.partialorder %v16703_v40, %v12583_v61  ;;  %3588 = vxpose.xlu1.b32.end [16/16] %v16705_v49, 128 }
 0x498   : > { %v3495_v7 = vrot.slane %v3488_v9, %v16686_v48  ;;  %v3831_v54 = vsel %vm3830_vm6, %v3827_v50, %v3764_v22  ;;  %v3833_v52 = vsel %vm3832_vm12, %v3829_v21, %v3766_v15  ;;  %vm3719_vm5 = vcmp.eq.f32.partialorder %v16704_v53, %v12583_v61  ;;  %3267 = vst [vmem:[%s10824_s20 + $0x180] sm:$0xff] %v12611_v55  ;;  %v16707_v9 = vld [vmem:[#allocation73_spill] sm:$0xff] }
 0x499   : > { %vm3834_vm13 = vcmp.lt.s32.totalorder %v3831_v54, %v3768_v12  ;;  %vm3836_vm10 = vcmp.lt.s32.totalorder %v3833_v52, %v3770_v43  ;;  %vm3721_vm15 = vcmp.eq.f32.partialorder %v16706_v11, %v12583_v61  ;;  %3620 = vxpose.xlu0.b32.end [16/16] %v12089_v18, 128  ;;  %vm3723_vm2 = vcmp.eq.f32.partialorder %v16707_v9, %v12583_v61  ;;  %v16708_v50 = vld [vmem:[#allocation77_spill] sm:$0xff]  ;;  %v12628_v21 = vpop.trf.xlu1 }
 0x49a   : > { %v3502_v59 = vrot.slane %v3495_v7, %v16686_v48  ;;  %v3835_v22 = vsel %vm3834_vm13, %v3831_v54, %v3768_v12  ;;  %v3837_v15 = vsel %vm3836_vm10, %v3833_v52, %v3770_v43  ;;  %vm3725_vm3 = vcmp.eq.f32.partialorder %v16708_v50, %v12583_v61  ;;  %v16709_v7 = vld [vmem:[#allocation80_spill] sm:$0xff]  ;;  %3252 = vst [vmem:[%s10824_s20 + $0x108] sm:$0xff] %v12628_v21  ;;  %v12639_v12 = vpop.trf.xlu0 }
 0x49b   : > { %vm3838_vm7 = vcmp.lt.s32.totalorder %v3835_v22, %v3772_v23  ;;  %vm3840_vm1 = vcmp.lt.s32.totalorder %v3837_v15, %v3774_v10  ;;  %vm3731_vm12 = vcmp.eq.f32.partialorder %v16689_v51, %v12583_v61  ;;  %vm3733_vm13 = vcmp.eq.f32.partialorder %v16691_v25, %v12583_v61  ;;  %3268 = vst [vmem:[%s10824_s20 + $0x188] sm:$0xff] %v12639_v12 }
 0x49c   : > { %3503 = vst.msk [vmem:[%s10736_s0 + $0x2] sm:$0x3] %vm12373_vm4, %v3502_v59  ;;  %v3839_v43 = vsel %vm3838_vm7, %v3835_v22, %v3772_v23  ;;  %v3841_v54 = vsel %vm3840_vm1, %v3837_v15, %v3774_v10  ;;  %vm3735_vm14 = vcmp.eq.f32.partialorder %v16694_v20, %v12583_v61  ;;  %vm3737_vm6 = vcmp.eq.f32.partialorder %v16696_v27, %v12583_v61  ;;  %v9480_v20 = vld [vmem:[#allocation8 + $0xc8] ss:$16 sps:$4 sm:$0xff]  }
 0x49d   : > { %vm3842_vm10 = vcmp.lt.s32.totalorder %v3839_v43, %v3841_v54  ;;  %v3743_v23 = vsel %vm3711_vm8, %v16640_v32, 128  ;;  %vm3739_vm7 = vcmp.eq.f32.partialorder %v16699_v33, %v12583_v61  ;;  %v3745_v52 = vsel %vm3713_vm9, %v16641_v46, 128  ;;  %v12669_v15 = vpop.trf.xlu1  ;;  %v16738_v33 = vld [vmem:[#allocation138_spill] sm:$0xff] }
 0x49e   : > { %v3843_v10 = vsel %vm3842_vm10, %v3839_v43, %v3841_v54  ;;  %v3747_v59 = vsel %vm3715_vm11, %v16642_v24, 128  ;;  %v3749_v22 = vsel %vm3717_vm0, %v16643_v31, 128  ;;  %vm3741_vm8 = vcmp.eq.f32.partialorder %v16705_v49, %v12583_v61  ;;  %3253 = vst [vmem:[%s10824_s20 + $0x110] sm:$0xff] %v12669_v15  ;;  %v12683_v46 = vpop.trf.xlu0  ;;  %v16732_v49 = vld [vmem:[#allocation134_spill] sm:$0xff] }
 0x49f   : > { %v3844_v43 = vrot.slane %v3843_v10, 4  ;;  %v3751_v54 = vsel %vm3719_vm5, %v16646_v41, 128  ;;  %v3753_v24 = vsel %vm3721_vm15, %v16647_v39, 128  ;;  %v3755_v31 = vsel %vm3723_vm2, %v16648_v56, 128  ;;  %3269 = vst [vmem:[%s10824_s20 + $0x190] sm:$0xff] %v12683_v46 }
 0x4a0   : > { %v3757_v32 = vsel %vm3725_vm3, %v16649_v36, 128  ;;  %vm16710_vm9 = vcmp.eq.f32.partialorder %v16709_v7, %v12583_v61  ;;  %vm16711_vm11 = vcmp.eq.f32.partialorder %v16687_v8, %v12583_v61  ;;  %v3763_v56 = vsel %vm3731_vm12, %v16697_v1, 128 }
 0x4a1   : > { %v3759_v41 = vsel %vm16710_vm9, %v16650_v60, 128  ;;  %v3761_v39 = vsel %vm16711_vm11, %v16651_v28, 128  ;;  %vm3845_vm0 = vcmp.lt.s32.totalorder %v3843_v10, %v3844_v43  ;;  %vm3775_vm5 = vcmp.lt.s32.totalorder %v3743_v23, %v3747_v59  ;;  %v12709_v28 = vpop.trf.xlu1 }
 0x4a2   : > { %vm3777_vm15 = vcmp.lt.s32.totalorder %v3745_v52, %v3749_v22  ;;  %v3846_v36 = vsel %vm3845_vm0, %v3843_v10, %v3844_v43  ;;  %v3776_v18 = vsel %vm3775_vm5, %v3743_v23, %v3747_v59  ;;  %v3855_v60 = vcombine.low %v12583_v61, %v12454_v16  ;;  %3254 = vst [vmem:[%s10824_s20 + $0x118] sm:$0xff] %v12709_v28  ;;  %v12715_v1 = vpop.trf.xlu0  ;;  %v9479_v59 = vld [vmem:[#allocation8 + $0xc4] ss:$16 sps:$4 sm:$0xff]  }
 0x4a3   : > { %v3778_v45 = vsel %vm3777_vm15, %v3745_v52, %v3749_v22  ;;  %v3847_v34 = vrot.slane %v3846_v36, 2  ;;  %vm3779_vm2 = vcmp.lt.s32.totalorder %v3776_v18, %v3751_v54  ;;  %v4103_v51 = vpack.c.bf16 %v12583_v61, %v12583_v61  ;;  %3270 = vst [vmem:[%s10824_s20 + $0x198] sm:$0xff] %v12715_v1  ;;  %v9486_v61 = vld [vmem:[#allocation8 + $0xa8] ss:$16 sps:$4 sm:$0xff]  }
 0x4a4   : > { %vm3781_vm3 = vcmp.lt.s32.totalorder %v3778_v45, %v3753_v24  ;;  %v3780_v23 = vsel %vm3779_vm2, %v3776_v18, %v3751_v54  ;;  %v3862_v52 = vrot.slane %v3855_v60, %v16686_v48  ;;  %v16712_v16 = vrot.slane %v12192_v42, 2  ;;  %v9477_v54 = vld [vmem:[#allocation8 + $0xc0] ss:$16 sps:$4 sm:$0xff]  }
 0x4a5   : > { %v3782_v10 = vsel %vm3781_vm3, %v3778_v45, %v3753_v24  ;;  %vm3848_vm1 = vcmp.lt.s32.totalorder %v3846_v36, %v3847_v34  ;;  %v3765_v43 = vsel %vm3733_vm13, %v16698_v14, 128  ;;  %vm3783_vm12 = vcmp.lt.s32.totalorder %v3780_v23, %v3755_v31  ;;  %4458 = vmatmul.mubr.bf16.vlgmr.msra.gmra.mxu0 %v4103_v51  ;;  %4499 = vmatmul.mubr.bf16.vlgmr.msra.gmra.mxu1 %v4103_v51  ;;  %v9482_v45 = vld [vmem:[#allocation8 + $0xcc] ss:$16 sps:$4 sm:$0xff]  }
 0x4a6   : > { %v1665_v22 = vadd.f32 %v16712_v16, %v12192_v42  ;;  %vm3785_vm10 = vcmp.lt.s32.totalorder %v3782_v10, %v3757_v32  ;;  %v3767_v60 = vsel %vm3735_vm14, %v16655_v44, 128  ;;  %v3784_v18 = vsel %vm3783_vm12, %v3780_v23, %v3755_v31  ;;  %4844 = vmatpush1.bf16.msra.mxu0 %v9471_v19  ;;  %v12732_v16 = vpop.trf.xlu1  ;;  %4957 = vmatpush1.bf16.msra.mxu1 %v9474_v35  ;;  %v16713_v51 = vld [vmem:[#allocation127_spill] sm:$0xff]  ;;  %v9485_v44 = vld [vmem:[#allocation8 + $0xa4] ss:$16 sps:$4 sm:$0xff]   ;;  %v12739_v31 = vpop.trf.xlu0 }
 0x4a7   : > { %v3786_v42 = vsel %vm3785_vm10, %v3782_v10, %v3757_v32  ;;  %v3869_v24 = vrot.slane %v3862_v52, %v16686_v48  ;;  %v12734_v14 = vsel %vm3848_vm1, %v3846_v36, %v3847_v34  ;;  %vm3787_vm13 = vcmp.lt.s32.totalorder %v3784_v18, %v3759_v41  ;;  %4875 = vmatprep.mubr.bf16.mxu0 %v16713_v51  ;;  %v9488_v35 = vld [vmem:[#allocation8 + $0xac] ss:$16 sps:$4 sm:$0xff]   ;;  %v16714_v34 = vld [vmem:[#allocation128_spill] sm:$0xff]  ;;  %v16715_v23 = vld [vmem:[#allocation126_spill] sm:$0xff] }
 0x4a8   : > { %vm3789_vm9 = vcmp.lt.s32.totalorder %v3786_v42, %v3761_v39  ;;  %v1666_v25 = vrot.slane %v1665_v22, 1  ;;  %3255 = vst [vmem:[%s10824_s20 + $0x120] sm:$0xff] %v12732_v16  ;;  %v3769_v19 = vsel %vm3737_vm6, %v16656_v30, 128  ;;  %v3788_v36 = vsel %vm3787_vm13, %v3784_v18, %v3759_v41  ;;  %4988 = vmatprep.mubr.bf16.mxu1 %v16713_v51  ;;  %4845 = vmatprep.subr.bf16.mxu0 %v9479_v59 }
 0x4a9   : > { %v3790_v32 = vsel %vm3789_vm9, %v3786_v42, %v3761_v39  ;;  %3871 = vst.msk [vmem:[%s10820_s26 + $0x2] sm:$0x3] %vm12373_vm4, %v3869_v24  ;;  %v2515_v10 = vadd.f32 %v16715_v23, %v16714_v34  ;;  %3271 = vst [vmem:[%s10824_s20 + $0x1a0] sm:$0xff] %v12739_v31  ;;  %v3771_v52 = vsel %vm3739_vm7, %v16659_v3, 128  ;;  %vm3791_vm14 = vcmp.lt.s32.totalorder %v3788_v36, %v3763_v56  ;;  %v9483_v42 = vld [vmem:[#allocation8 + $0xa0] ss:$16 sps:$4 sm:$0xff]  }
 0x4aa   : > { %vm3793_vm6 = vcmp.lt.s32.totalorder %v3790_v32, %v3765_v43  ;;  %4958 = vmatprep.subr.bf16.mxu1 %v9482_v45  ;;  %v1667_v41 = vadd.f32 %v1666_v25, %v1665_v22  ;;  %v3773_v39 = vsel %vm3741_vm8, %v16660_v13, 128  ;;  %v3792_v59 = vsel %vm3791_vm14, %v3788_v36, %v3763_v56  ;;  %4846 = vmatpush1.bf16.msra.mxu0 %v9477_v54  ;;  %v16716_v24 = vld [vmem:[#allocation129_spill] sm:$0xff]  ;;  %v12762_v34 = vpop.trf.xlu1  ;;  %v9491_v45 = vld [vmem:[#allocation8 + $0x84] ss:$16 sps:$4 sm:$0xff]   ;;  %v12770_v56 = vpop.trf.xlu0 }
 0x4ab   : > { %v3794_v18 = vsel %vm3793_vm6, %v3790_v32, %v3765_v43  ;;  %v2516_v51 = vadd.f32 %v2515_v10, %v16716_v24  ;;  %vm3795_vm7 = vcmp.lt.s32.totalorder %v3792_v59, %v3767_v60  ;;  %4959 = vmatpush1.bf16.msra.mxu1 %v9480_v20  ;;  %v16717_v25 = vld [vmem:[#allocation125_spill] sm:$0xff]  ;;  %4847 = vmatprep.subr.bf16.mxu0 %v9485_v44  ;;  %v16718_v32 = vld [vmem:[#allocation130_spill] sm:$0xff]  ;;  %v16719_v24 = vld [vmem:[#allocation104_spill] sm:$0xff] }
 0x4ac   : > { %vm3797_vm11 = vcmp.lt.s32.totalorder %v3794_v18, %v3769_v19  ;;  %v12766_v22 = vadd.f32 %v1667_v41, %v16717_v25  ;;  %3256 = vst [vmem:[%s10824_s20 + $0x128] sm:$0xff] %v12762_v34  ;;  %v3796_v43 = vsel %vm3795_vm7, %v3792_v59, %v3767_v60  ;;  %4960 = vmatprep.subr.bf16.mxu1 %v9488_v35  ;;  %v9494_v36 = vld [vmem:[#allocation8 + $0x8c] ss:$16 sps:$4 sm:$0xff]   ;;  %3272 = vst [vmem:[%s10824_s20 + $0x1a8] sm:$0xff] %v12770_v56  ;;  %v16720_v44 = vld [vmem:[#allocation108_spill] sm:$0xff] }
 0x4ad   : > { %v3798_v54 = vsel %vm3797_vm11, %v3794_v18, %v3769_v19  ;;  %v2517_v10 = vadd.f32 %v2516_v51, %v16718_v32  ;;  %v2483_v23 = vmul.f32 %v16719_v24, %v16719_v24  ;;  %vm3799_vm8 = vcmp.lt.s32.totalorder %v3796_v43, %v3771_v52  ;;  %v16721_v41 = vld [vmem:[#allocation110_spill] sm:$0xff]  ;;  %v9489_v35 = vld [vmem:[#allocation8 + $0x80] ss:$16 sps:$4 sm:$0xff]   ;;  %v16731_v3 = vld [vmem:[#allocation124_spill] sm:$0xff] }
 0x4ae   : > { %vm3801_vm0 = vcmp.lt.s32.totalorder %v3798_v54, %v3773_v39  ;;  %v2460_v20 = vmul.f32 %v16720_v44, %v16720_v44  ;;  %v2484_v25 = vmul.f32 %v16721_v41, %v16721_v41  ;;  %v3800_v60 = vsel %vm3799_vm8, %v3796_v43, %v3771_v52  ;;  %4848 = vmatpush1.bf16.msra.mxu0 %v9483_v42  ;;  %v16722_v18 = vld [vmem:[#allocation115_spill] sm:$0xff]  ;;  %v12784_v32 = vpop.trf.xlu1  ;;  %v9492_v24 = vld [vmem:[#allocation8 + $0x88] ss:$16 sps:$4 sm:$0xff]   ;;  %v9497_v44 = vld [vmem:[#allocation8 + $0x64] ss:$16 sps:$4 sm:$0xff]   ;;  %v12789_v52 = vpop.trf.xlu0 }
 0x4af   : > { %v3802_v19 = vsel %vm3801_vm0, %v3798_v54, %v3773_v39  ;;  %v2518_v59 = vadd.f32 %v2517_v10, %v12464_v2  ;;  %v2461_v51 = vmul.f32 %v16722_v18, %v16722_v18  ;;  %4961 = vmatpush1.bf16.msra.mxu1 %v9486_v61  ;;  %4849 = vmatprep.subr.bf16.mxu0 %v9491_v45  ;;  %v9500_v2 = vld [vmem:[#allocation8 + $0x6c] ss:$16 sps:$4 sm:$0xff]   ;;  %v16723_v43 = vld [vmem:[#allocation118_spill] sm:$0xff]  ;;  %v16726_v18 = vrot.slane %v12734_v14, 1 }
 0x4b0   : > { %vm3803_vm5 = vcmp.lt.s32.totalorder %v3800_v60, %v3802_v19  ;;  %v2491_v13 = vadd.f32 %v2460_v20, %v12475_v37  ;;  %3257 = vst [vmem:[%s10824_s20 + $0x130] sm:$0xff] %v12784_v32  ;;  %4962 = vmatprep.subr.bf16.mxu1 %v9494_v36  ;;  %v2485_v54 = vmul.f32 %v16723_v43, %v16723_v43  ;;  %v16724_v10 = vld [vmem:[#allocation119_spill] sm:$0xff]  ;;  %3273 = vst [vmem:[%s10824_s20 + $0x1b0] sm:$0xff] %v12789_v52  ;;  %v16725_v37 = vld [vmem:[#allocation122_spill] sm:$0xff] }
 0x4b1   : > { %v3804_v39 = vsel %vm3803_vm5, %v3800_v60, %v3802_v19  ;;  %v2519_v42 = vadd.f32 %v2518_v59, %v2483_v23  ;;  %v2462_v41 = vmul.f32 %v16724_v10, %v16724_v10  ;;  %v2463_v20 = vmul.f32 %v16725_v37, %v16725_v37  ;;  %v9495_v23 = vld [vmem:[#allocation8 + $0x60] ss:$16 sps:$4 sm:$0xff]   ;;  %v16730_v37 = vld [vmem:[#allocation132_spill] sm:$0xff] }
 0x4b2   : > { %v3805_v61 = vrot.slane %v3804_v39, 4  ;;  %v2492_v45 = vadd.f32 %v2491_v13, %v2461_v51  ;;  %vm12802_vm15 = vcmp.lt.s32.totalorder %v12734_v14, %v16726_v18  ;;  %4850 = vmatpush1.bf16.msra.mxu0 %v9489_v35  ;;  %v16729_v19 = vld [vmem:[#allocation121_spill] sm:$0xff]  ;;  %v12808_v43 = vpop.trf.xlu1  ;;  %v9498_v13 = vld [vmem:[#allocation8 + $0x68] ss:$16 sps:$4 sm:$0xff]   ;;  %v9503_v51 = vld [vmem:[#allocation8 + $0x44] ss:$16 sps:$4 sm:$0xff]   ;;  %v2464_v18 = vmul.f32 %v16730_v37, %v16730_v37  ;;  %v12814_v35 = vpop.trf.xlu0 }
 0x4b3   : > { %v2520_v60 = vadd.f32 %v2519_v42, %v2484_v25  ;;  %v2486_v59 = vmul.f32 %v16729_v19, %v16729_v19  ;;  %4963 = vmatpush1.bf16.msra.mxu1 %v9492_v24  ;;  %4851 = vmatprep.subr.bf16.mxu0 %v9497_v44  ;;  %3258 = vst [vmem:[%s10824_s20 + $0x138] sm:$0xff] %v12808_v43  ;;  %v9506_v42 = vld [vmem:[#allocation8 + $0x4c] ss:$16 sps:$4 sm:$0xff]   ;;  %3274 = vst [vmem:[%s10824_s20 + $0x1b8] sm:$0xff] %v12814_v35  ;;  %v16735_v36 = vld [vmem:[#allocation136_spill] sm:$0xff] }
 0x4b4   : > { %vm3806_vm2 = vcmp.lt.s32.totalorder %v3804_v39, %v3805_v61  ;;  %v2493_v10 = vadd.f32 %v2492_v45, %v2462_v41  ;;  %4964 = vmatprep.subr.bf16.mxu1 %v9500_v2  ;;  %v2487_v30 = vmul.f32 %v16731_v3, %v16731_v3  ;;  %v2465_v41 = vmul.f32 %v16732_v49, %v16732_v49  ;;  %v9501_v2 = vld [vmem:[#allocation8 + $0x40] ss:$16 sps:$4 sm:$0xff]   ;;  %v9504_v49 = vld [vmem:[#allocation8 + $0x48] ss:$16 sps:$4 sm:$0xff]  }
 0x4b5   : > { %v3807_v25 = vsel %vm3806_vm2, %v3804_v39, %v3805_v61  ;;  %v2521_v19 = vadd.f32 %v2520_v60, %v2485_v54  ;;  %v16733_v45 = vrot.slane %v12734_v14, 1  ;;  %v16734_v61 = vld [vmem:[#allocation133_spill] sm:$0xff]  ;;  %v3504_v60 = vmul.f32 %v12604_v6, %v12604_v6 }
 0x4b6   : > { %v3808_v24 = vrot.slane %v3807_v25, 2  ;;  %v2494_v44 = vadd.f32 %v2493_v10, %v2463_v20  ;;  %4852 = vmatpush1.bf16.msra.mxu0 %v9495_v23  ;;  %v2488_v3 = vmul.f32 %v16734_v61, %v16734_v61  ;;  %v12831_v20 = vpop.trf.xlu1  ;;  %v9509_v10 = vld [vmem:[#allocation8 + $0x24] ss:$16 sps:$4 sm:$0xff]   ;;  %v12837_v23 = vpop.trf.xlu0 }
 0x4b7   : > { %v3852_v39 = vsel %vm12802_vm15, %v12734_v14, %v16733_v45  ;;  %v2522_v54 = vadd.f32 %v2521_v19, %v2486_v59  ;;  %4965 = vmatpush1.bf16.msra.mxu1 %v9498_v13  ;;  %4853 = vmatprep.subr.bf16.mxu0 %v9503_v51  ;;  %v2466_v14 = vmul.f32 %v16735_v36, %v16735_v36  ;;  %v9512_v19 = vld [vmem:[#allocation8 + $0x2c] ss:$16 sps:$4 sm:$0xff]  }
 0x4b8   : > { %vm3809_vm3 = vcmp.lt.s32.totalorder %v3807_v25, %v3808_v24  ;;  %v2495_v37 = vadd.f32 %v2494_v44, %v2464_v18  ;;  %3259 = vst [vmem:[%s10824_s20 + $0x140] sm:$0xff] %v12831_v20  ;;  %4966 = vmatprep.subr.bf16.mxu1 %v9506_v42  ;;  %v16736_v45 = vld [vmem:[#allocation135_spill] sm:$0xff]  ;;  %v3505_v13 = vmul.f32 %v12628_v21, %v12628_v21  ;;  %3275 = vst [vmem:[%s10824_s20 + $0x1c0] sm:$0xff] %v12837_v23  ;;  %v16737_v44 = vld [vmem:[#allocation137_spill] sm:$0xff] }
 0x4b9   : > { %v3810_v59 = vsel %vm3809_vm3, %v3807_v25, %v3808_v24  ;;  %v2523_v6 = vadd.f32 %v2522_v54, %v2487_v30  ;;  %v2489_v61 = vmul.f32 %v16736_v45, %v16736_v45  ;;  %v2490_v36 = vmul.f32 %v16737_v44, %v16737_v44  ;;  %v9507_v42 = vld [vmem:[#allocation8 + $0x20] ss:$16 sps:$4 sm:$0xff]  }
 0x4ba   : > { %v3811_v51 = vrot.slane %v3810_v59, 1  ;;  %v2496_v18 = vadd.f32 %v2495_v37, %v2465_v41  ;;  %v2467_v25 = vmul.f32 %v16738_v33, %v16738_v33  ;;  %4854 = vmatpush1.bf16.msra.mxu0 %v9501_v2  ;;  %v16739_v24 = vld [vmem:[#allocation139_spill] sm:$0xff]  ;;  %v3536_v45 = vadd.f32 %v3505_v13, %v3504_v60  ;;  %v12853_v27 = vpop.trf.xlu1  ;;  %v9510_v41 = vld [vmem:[#allocation8 + $0x28] ss:$16 sps:$4 sm:$0xff]   ;;  %v9515_v37 = vld [vmem:[#allocation8 + $0x4] ss:$16 sps:$4 sm:$0xff]   ;;  %v12859_v2 = vpop.trf.xlu0 }
 0x4bb   : > { %v2524_v30 = vadd.f32 %v2523_v6, %v2488_v3  ;;  %v2468_v54 = vmul.f32 %v16739_v24, %v16739_v24  ;;  %v3506_v21 = vmul.f32 %v12669_v15, %v12669_v15  ;;  %4967 = vmatpush1.bf16.msra.mxu1 %v9504_v49  ;;  %4855 = vmatprep.subr.bf16.mxu0 %v9509_v10  ;;  %v9518_v60 = vld [vmem:[#allocation8 + $0xc] ss:$16 sps:$4 sm:$0xff]   ;;  %v16740_v10 = vld [vmem:[#allocation140_spill] sm:$0xff] }
 0x4bc   : > { %vm3812_vm1 = vcmp.lt.s32.totalorder %v3810_v59, %v3811_v51  ;;  %v2497_v44 = vadd.f32 %v2496_v18, %v2466_v14  ;;  %v3507_v33 = vmul.f32 %v12709_v28, %v12709_v28  ;;  %3260 = vst [vmem:[%s10824_s20 + $0x148] sm:$0xff] %v12853_v27  ;;  %4968 = vmatprep.subr.bf16.mxu1 %v9512_v19  ;;  %3276 = vst [vmem:[%s10824_s20 + $0x1c8] sm:$0xff] %v12859_v2  ;;  %v9513_v18 = vld [vmem:[#allocation8] ss:$16 sps:$4 sm:$0xff]  }
 0x4bd   : > { %v3813_v3 = vsel %vm3812_vm1, %v3810_v59, %v3811_v51  ;;  %v2525_v15 = vadd.f32 %v2524_v30, %v2489_v61  ;;  %v3537_v6 = vadd.f32 %v3536_v45, %v3506_v21  ;;  %v2469_v14 = vmul.f32 %v16740_v10, %v16740_v10  ;;  %v9521_v51 = vld [vmem:[#allocation8 + $0x1e4] ss:$16 sps:$4 sm:$0xff]  }
 0x4be   : > { %v3872_v13 = vcombine.low %v3813_v3, %v3852_v39  ;;  %v2498_v49 = vadd.f32 %v2497_v44, %v2467_v25  ;;  %4856 = vmatpush1.bf16.msra.mxu0 %v9507_v42  ;;  %v2470_v24 = vmul.f32 %v12428_v47, %v12428_v47  ;;  %v3508_v59 = vmul.f32 %v12732_v16, %v12732_v16  ;;  %v3213_v19 = vpop.trf.xlu1  ;;  %v9516_v39 = vld [vmem:[#allocation8 + $0x8] ss:$16 sps:$4 sm:$0xff]   ;;  %v9524_v47 = vld [vmem:[#allocation8 + $0x1ec] ss:$16 sps:$4 sm:$0xff]  }
 0x4bf   : > { %v2526_v28 = vadd.f32 %v2525_v15, %v2490_v36  ;;  %v3538_v8 = vadd.f32 %v3537_v6, %v3507_v33  ;;  %4969 = vmatpush1.bf16.msra.mxu1 %v9510_v41  ;;  %4857 = vmatprep.subr.bf16.mxu0 %v9515_v37  ;;  %v3509_v42 = vmul.f32 %v12762_v34, %v12762_v34  ;;  %v12873_v36 = vpop.trf.xlu0  ;;  %v9519_v41 = vld [vmem:[#allocation8 + $0x1e0] ss:$16 sps:$4 sm:$0xff]   ;;  %v9522_v3 = vld [vmem:[#allocation8 + $0x1e8] ss:$16 sps:$4 sm:$0xff]   ;;  %v9530_v6 = vld [vmem:[#allocation8 + $0x1cc] ss:$16 sps:$4 sm:$0xff]  }
 0x4c0   : > { %v3879_v61 = vrot.slane %v3872_v13, %v16686_v48  ;;  %v2499_v25 = vadd.f32 %v2498_v49, %v2468_v54  ;;  %3261 = vst [vmem:[%s10824_s20 + $0x150] sm:$0xff] %v3213_v19  ;;  %4970 = vmatprep.subr.bf16.mxu1 %v9518_v60  ;;  %3277 = vst [vmem:[%s10824_s20 + $0x1d0] sm:$0xff] %v12873_v36  ;;  %v2471_v54 = vmul.f32 %v12447_v17, %v12447_v17  ;;  %v9527_v60 = vld [vmem:[#allocation8 + $0x1c4] ss:$16 sps:$4 sm:$0xff]  }
 0x4c1   : > { %v2527_v30 = vrot.slane %v2526_v28, 4  ;;  %v3539_v45 = vadd.f32 %v3538_v8, %v3508_v59  ;;  %v3510_v34 = vmul.f32 %v12784_v32, %v12784_v32  ;;  %v3511_v33 = vmul.f32 %v12808_v43, %v12808_v43  ;;  %v9528_v59 = vld [vmem:[#allocation8 + $0x1c8] ss:$16 sps:$4 sm:$0xff]  }
 0x4c2   : > { %v3886_v16 = vrot.slane %v3879_v61, %v16686_v48  ;;  %v2500_v21 = vadd.f32 %v2499_v25, %v2469_v14  ;;  %4858 = vmatpush1.bf16.msra.mxu0 %v9513_v18  ;;  %v3214_v8 = vpop.trf.xlu1  ;;  %v2472_v32 = vmul.f32 %v12470_v26, %v12470_v26  ;;  %v3512_v49 = vmul.f32 %v12831_v20, %v12831_v20  ;;  %v9525_v14 = vld [vmem:[#allocation8 + $0x1c0] ss:$16 sps:$4 sm:$0xff]   ;;  %v9533_v20 = vld [vmem:[#allocation8 + $0x1a4] ss:$16 sps:$4 sm:$0xff]  }
 0x4c3   : > { %v2528_v37 = vadd.f32 %v2527_v30, %v2526_v28  ;;  %v3540_v44 = vadd.f32 %v3539_v45, %v3509_v42  ;;  %4971 = vmatpush1.bf16.msra.mxu1 %v9516_v39  ;;  %4859 = vmatprep.subr.bf16.mxu0 %v9521_v51  ;;  %3262 = vst [vmem:[%s10824_s20 + $0x158] sm:$0xff] %v3214_v8  ;;  %v12890_v15 = vpop.trf.xlu0  ;;  %v9531_v30 = vld [vmem:[#allocation8 + $0x1a0] ss:$16 sps:$4 sm:$0xff]  }
 0x4c4   : > { %3887 = vst.msk [vmem:[%s10843_s9 + $0x2] sm:$0x3] %vm12373_vm4, %v3886_v16  ;;  %v2501_v17 = vadd.f32 %v2500_v21, %v2470_v24  ;;  %4972 = vmatprep.subr.bf16.mxu1 %v9524_v47  ;;  %3278 = vst [vmem:[%s10824_s20 + $0x1d8] sm:$0xff] %v12890_v15  ;;  %v2473_v10 = vmul.f32 %v12496_v58, %v12496_v58  ;;  %v3513_v28 = vmul.f32 %v12853_v27, %v12853_v27  ;;  %v9536_v58 = vld [vmem:[#allocation8 + $0x1ac] ss:$16 sps:$4 sm:$0xff]  }
 0x4c5   : > { %v2529_v13 = vrot.slane %v2528_v37, 2  ;;  %v3541_v43 = vadd.f32 %v3540_v44, %v3510_v34  ;;  %v2474_v39 = vmul.f32 %v12536_v63, %v12536_v63  ;;  %v3514_v47 = vmul.f32 %v3213_v19, %v3213_v19  ;;  %v9534_v63 = vld [vmem:[#allocation8 + $0x1a8] ss:$16 sps:$4 sm:$0xff]   ;;  %v9539_v34 = vld [vmem:[#allocation8 + $0x184] ss:$16 sps:$4 sm:$0xff]  }
 0x4c6   : > { %v2502_v62 = vadd.f32 %v2501_v17, %v2471_v54  ;;  %4860 = vmatpush2.bf16.msra.mxu0 %v9519_v41  ;;  %v3215_v24 = vpop.trf.xlu1  ;;  %v3515_v21 = vmul.f32 %v3214_v8, %v3214_v8  ;;  %v9542_v19 = vld [vmem:[#allocation8 + $0x18c] ss:$16 sps:$4 sm:$0xff]  }
 0x4c7   : > { %v2530_v26 = vadd.f32 %v2529_v13, %v2528_v37  ;;  %v3542_v18 = vadd.f32 %v3541_v43, %v3511_v33  ;;  %4973 = vmatpush2.bf16.msra.mxu1 %v9522_v3  ;;  %4861 = vmatprep.subr.bf16.mxu0 %v9527_v60  ;;  %3263 = vst [vmem:[%s10824_s20 + $0x160] sm:$0xff] %v3215_v24  ;;  %v12903_v51 = vpop.trf.xlu0  ;;  %v9537_v60 = vld [vmem:[#allocation8 + $0x180] ss:$16 sps:$4 sm:$0xff]   ;;  %v9540_v13 = vld [vmem:[#allocation8 + $0x188] ss:$16 sps:$4 sm:$0xff]  }
 0x4c8   : > { %v2503_v61 = vadd.f32 %v2502_v62, %v2472_v32  ;;  %4974 = vmatprep.subr.bf16.mxu1 %v9530_v6  ;;  %3279 = vst [vmem:[%s10824_s20 + $0x1e0] sm:$0xff] %v12903_v51  ;;  %v3516_v3 = vmul.f32 %v3215_v24, %v3215_v24  ;;  %v9545_v43 = vld [vmem:[#allocation8 + $0x164] ss:$16 sps:$4 sm:$0xff]  }
 0x4c9   : > { %v2531_v25 = vrot.slane %v2530_v26, 1  ;;  %v3543_v42 = vadd.f32 %v3542_v18, %v3512_v49  ;;  %v9543_v18 = vld [vmem:[#allocation8 + $0x160] ss:$16 sps:$4 sm:$0xff]  }
 0x4ca   : > { %v2504_v27 = vadd.f32 %v2503_v61, %v2473_v10  ;;  %4862 = vmatpush2.bf16.msra.mxu0 %v9525_v14  ;;  %v3216_v54 = vpop.trf.xlu1 }
 0x4cb   : > { %v2532_v45 = vadd.f32 %v2531_v25, %v2530_v26  ;;  %v3544_v16 = vadd.f32 %v3543_v42, %v3513_v28  ;;  %4975 = vmatpush2.bf16.msra.mxu1 %v9528_v59  ;;  %4863 = vmatprep.subr.bf16.mxu0 %v9533_v20  ;;  %3264 = vst [vmem:[%s10824_s20 + $0x168] sm:$0xff] %v3216_v54  ;;  %v12908_v37 = vpop.trf.xlu0  ;;  %v9546_v59 = vld [vmem:[#allocation8 + $0x168] ss:$16 sps:$4 sm:$0xff]   ;;  %v9551_v20 = vld [vmem:[#allocation8 + $0x144] ss:$16 sps:$4 sm:$0xff]  }
 0x4cc   : > { %v2505_v41 = vadd.f32 %v2504_v27, %v2474_v39  ;;  %4976 = vmatprep.subr.bf16.mxu1 %v9536_v58  ;;  %3280 = vst [vmem:[%s10824_s20 + $0x1e8] sm:$0xff] %v12908_v37  ;;  %v3517_v32 = vmul.f32 %v3216_v54, %v3216_v54  ;;  %v9554_v25 = vld [vmem:[#allocation8 + $0x14c] ss:$16 sps:$4 sm:$0xff]   ;;  %v3520_v42 = vmul.f32 %v12611_v55, %v12611_v55  ;;  %v9557_v54 = vld [vmem:[#allocation8 + $0x124] ss:$16 sps:$4 sm:$0xff]  }
 0x4cd   : > { %v12911_v44 = vadd.f32 %v2532_v45, %v12766_v22  ;;  %v3545_v33 = vadd.f32 %v3544_v16, %v3514_v47  ;;  %v9548_v22 = vld [vmem:[#allocation8 + $0x16c] ss:$16 sps:$4 sm:$0xff]   ;;  %v3521_v45 = vmul.f32 %v12639_v12, %v12639_v12  ;;  %v3522_v55 = vmul.f32 %v12683_v46, %v12683_v46  ;;  %v9555_v12 = vld [vmem:[#allocation8 + $0x120] ss:$16 sps:$4 sm:$0xff]   ;;  %v9558_v46 = vld [vmem:[#allocation8 + $0x128] ss:$16 sps:$4 sm:$0xff]  }
 0x4ce   : > { %v2506_v8 = vrot.slane %v2505_v41, 4  ;;  %4864 = vmatpush2.bf16.msra.mxu0 %v9531_v30  ;;  %v3217_v6 = vpop.trf.xlu1  ;;  %v9549_v30 = vld [vmem:[#allocation8 + $0x140] ss:$16 sps:$4 sm:$0xff]  }
 0x4cf   : > { %v3546_v17 = vadd.f32 %v3545_v33, %v3515_v21  ;;  %4977 = vmatpush2.bf16.msra.mxu1 %v9534_v63  ;;  %4865 = vmatprep.subr.bf16.mxu0 %v9539_v34  ;;  %3265 = vst [vmem:[%s10824_s20 + $0x170] sm:$0xff] %v3217_v6  ;;  %v12916_v62 = vpop.trf.xlu0  ;;  %v3518_v14 = vmul.f32 %v3217_v6, %v3217_v6  ;;  %v9552_v21 = vld [vmem:[#allocation8 + $0x148] ss:$16 sps:$4 sm:$0xff]   ;;  %v9560_v34 = vld [vmem:[#allocation8 + $0x12c] ss:$16 sps:$4 sm:$0xff]  }
 0x4d0   : > { %v2507_v49 = vadd.f32 %v2506_v8, %v2505_v41  ;;  %4978 = vmatprep.subr.bf16.mxu1 %v9542_v19  ;;  %3281 = vst [vmem:[%s10824_s20 + $0x1f0] sm:$0xff] %v12916_v62  ;;  %v16741_v33 = vld [vmem:[#allocation57_spill] sm:$0xff] }
 0x4d1   : > { %v3547_v10 = vadd.f32 %v3546_v17, %v3516_v3 }
 0x4d2   : > { %v2508_v26 = vrot.slane %v2507_v49, 2  ;;  %4866 = vmatpush2.bf16.msra.mxu0 %v9537_v60  ;;  %v3218_v24 = vpop.trf.xlu1  ;;  %v3523_v60 = vmul.f32 %v12715_v1, %v12715_v1  ;;  %v9561_v1 = vld [vmem:[#allocation8 + $0x100] ss:$16 sps:$4 sm:$0xff]  }
 0x4d3   : > { %v3548_v28 = vadd.f32 %v3547_v10, %v3517_v32  ;;  %4979 = vmatpush2.bf16.msra.mxu1 %v9540_v13  ;;  %4867 = vmatprep.subr.bf16.mxu0 %v9545_v43  ;;  %3266 = vst [vmem:[%s10824_s20 + $0x178] sm:$0xff] %v3218_v24  ;;  %v3519_v39 = vmul.f32 %v3218_v24, %v3218_v24  ;;  %v12921_v58 = vpop.trf.xlu0  ;;  %v9563_v32 = vld [vmem:[#allocation8 + $0x104] ss:$16 sps:$4 sm:$0xff]   ;;  %v9566_v13 = vld [vmem:[#allocation8 + $0x10c] ss:$16 sps:$4 sm:$0xff]  }
 0x4d4   : > { %v2509_v61 = vadd.f32 %v2508_v26, %v2507_v49  ;;  %4980 = vmatprep.subr.bf16.mxu1 %v9548_v22  ;;  %3282 = vst [vmem:[%s10824_s20 + $0x1f8] sm:$0xff] %v12921_v58  ;;  %v3524_v43 = vmul.f32 %v12739_v31, %v12739_v31  ;;  %v3525_v26 = vmul.f32 %v12770_v56, %v12770_v56  ;;  %v9569_v31 = vld [vmem:[#allocation13 + $0xe4] ss:$16 sps:$4 sm:$0xff]  }
 0x4d5   : > { %v3549_v47 = vadd.f32 %v3548_v28, %v3518_v14  ;;  %v9564_v28 = vld [vmem:[#allocation8 + $0x108] ss:$16 sps:$4 sm:$0xff]   ;;  %v3527_v56 = vmul.f32 %v12814_v35, %v12814_v35  ;;  %v3528_v35 = vmul.f32 %v12837_v23, %v12837_v23  ;;  %v9573_v23 = vld [vmem:[#allocation13 + $0xc0] ss:$16 sps:$4 sm:$0xff]  }
 0x4d6   : > { %v2510_v27 = vrot.slane %v2509_v61, 1  ;;  %4868 = vmatpush2.bf16.msra.mxu0 %v9543_v18 }
 0x4d7   : > { %v3550_v16 = vadd.f32 %v3549_v47, %v3519_v39  ;;  %4981 = vmatpush2.bf16.msra.mxu1 %v9546_v59  ;;  %4869 = vmatprep.subr.bf16.mxu0 %v9551_v20  ;;  %v3589_v19 = vpop.trf.xlu1  ;;  %v9572_v59 = vld [vmem:[#allocation13 + $0xec] ss:$16 sps:$4 sm:$0xff]   ;;  %v3526_v20 = vmul.f32 %v12789_v52, %v12789_v52 }
 0x4d8   : > { %v2511_v63 = vadd.f32 %v2510_v27, %v2509_v61  ;;  %4982 = vmatprep.subr.bf16.mxu1 %v9554_v25  ;;  %3637 = vst [vmem:[%s10847_s25 + $0x100] sm:$0xff] %v3589_v19  ;;  %v3888_v6 = vmul.f32 %v3589_v19, %v3589_v19  ;;  %v16742_v27 = vld [vmem:[#allocation59_spill] sm:$0xff] }
 0x4d9   : > { %v3551_v41 = vadd.f32 %v3550_v16, %v3520_v42  ;;  %v12935_v8 = vpop.trf.xlu0  ;;  %v9567_v16 = vld [vmem:[#allocation13 + $0xe0] ss:$16 sps:$4 sm:$0xff]  }
 0x4da   : > { %v12932_v3 = vadd.f32 %v2511_v63, %v16741_v33  ;;  %4870 = vmatpush2.bf16.msra.mxu0 %v9549_v30  ;;  %3653 = vst [vmem:[%s10847_s25 + $0x180] sm:$0xff] %v12935_v8  ;;  %v16743_v30 = vld [vmem:[#allocation58_spill] sm:$0xff]  ;;  %v16745_v63 = vld [vmem:[#allocation65_spill] sm:$0xff] }
 0x4db   : > { %v3552_v17 = vadd.f32 %v3551_v41, %v3521_v45  ;;  %4983 = vmatpush2.bf16.msra.mxu1 %v9552_v21  ;;  %4871 = vmatprep.subr.bf16.mxu0 %v9557_v54  ;;  %v3590_v22 = vpop.trf.xlu1  ;;  %v4023_v45 = vpack.c.bf16 %v16743_v30, %v16742_v27  ;;  %v9570_v21 = vld [vmem:[#allocation13 + $0xe8] ss:$16 sps:$4 sm:$0xff]   ;;  %v16744_v54 = vld [vmem:[#allocation53_spill] sm:$0xff] }
 0x4dc   : > { %4984 = vmatprep.subr.bf16.mxu1 %v9560_v34  ;;  %3638 = vst [vmem:[%s10847_s25 + $0x108] sm:$0xff] %v3590_v22  ;;  %v3889_v10 = vmul.f32 %v3590_v22, %v3590_v22  ;;  %v4026_v34 = vpack.c.bf16 %v16745_v63, %v16744_v54  ;;  %v9578_v33 = vld [vmem:[#allocation13 + $0xcc] ss:$16 sps:$4 sm:$0xff]   ;;  %v9588_v63 = vld [vmem:[#allocation13 + $0x88] ss:$16 sps:$4 sm:$0xff]  }
 0x4dd   : > { %v3553_v49 = vadd.f32 %v3552_v17, %v3522_v55  ;;  %v12944_v14 = vpop.trf.xlu0  ;;  %v9575_v55 = vld [vmem:[#allocation13 + $0xc4] ss:$16 sps:$4 sm:$0xff]   ;;  %v9590_v30 = vld [vmem:[#allocation13 + $0x8c] ss:$16 sps:$4 sm:$0xff]  }
 0x4de   : > { %4872 = vmatpush2.bf16.msra.mxu0 %v9555_v12  ;;  %3654 = vst [vmem:[%s10847_s25 + $0x188] sm:$0xff] %v12944_v14  ;;  %v3920_v24 = vadd.f32 %v3889_v10, %v3888_v6  ;;  %v9576_v6 = vld [vmem:[#allocation13 + $0xc8] ss:$16 sps:$4 sm:$0xff]   ;;  %v9584_v10 = vld [vmem:[#allocation13 + $0xac] ss:$16 sps:$4 sm:$0xff]  }
 0x4df   : > { %v3554_v18 = vadd.f32 %v3553_v49, %v3523_v60  ;;  %4985 = vmatpush2.bf16.msra.mxu1 %v9558_v46  ;;  %4873 = vmatprep.subr.bf16.mxu0 %v9563_v32  ;;  %v3591_v39 = vpop.trf.xlu1  ;;  %v3529_v46 = vmul.f32 %v12859_v2, %v12859_v2  ;;  %v3530_v49 = vmul.f32 %v12873_v36, %v12873_v36 }
 0x4e0   : > { %4986 = vmatprep.subr.bf16.mxu1 %v9566_v13  ;;  %3639 = vst [vmem:[%s10847_s25 + $0x110] sm:$0xff] %v3591_v39  ;;  %v3890_v25 = vmul.f32 %v3591_v39, %v3591_v39  ;;  %v9581_v13 = vld [vmem:[#allocation13 + $0xa4] ss:$16 sps:$4 sm:$0xff]   ;;  %v16749_v39 = vld [vmem:[#allocation71_spill] sm:$0xff] }
 0x4e1   : > { %v3555_v61 = vadd.f32 %v3554_v18, %v3524_v43  ;;  %v12953_v42 = vpop.trf.xlu0  ;;  %v3531_v18 = vmul.f32 %v12890_v15, %v12890_v15  ;;  %v3532_v15 = vmul.f32 %v12903_v51, %v12903_v51  ;;  %v9585_v51 = vld [vmem:[#allocation13 + $0x80] ss:$16 sps:$4 sm:$0xff]  }
 0x4e2   : > { %4874 = vmatpush2.bf16.msra.mxu0 %v9561_v1  ;;  %3655 = vst [vmem:[%s10847_s25 + $0x190] sm:$0xff] %v12953_v42  ;;  %v3921_v52 = vadd.f32 %v3920_v24, %v3890_v25 }
 0x4e3   : > { %v3556_v47 = vadd.f32 %v3555_v61, %v3525_v26  ;;  %4987 = vmatpush2.bf16.msra.mxu1 %v9564_v28  ;;  %5814 = vmatprep.subr.bf16.mxu0 %v9569_v31  ;;  %v3592_v19 = vpop.trf.xlu1  ;;  %v16746_v28 = vld [vmem:[#allocation60_spill] sm:$0xff]  ;;  %v16747_v31 = vld [vmem:[#allocation61_spill] sm:$0xff]  ;;  %v16748_v61 = vld [vmem:[#allocation67_spill] sm:$0xff] }
 0x4e4   : > { %5855 = vmatprep.subr.bf16.mxu1 %v9572_v59  ;;  %3640 = vst [vmem:[%s10847_s25 + $0x118] sm:$0xff] %v3592_v19  ;;  %v3891_v12 = vmul.f32 %v3592_v19, %v3592_v19  ;;  %v4025_v24 = vpack.c.bf16 %v16747_v31, %v16746_v28  ;;  %v9579_v59 = vld [vmem:[#allocation13 + $0xa0] ss:$16 sps:$4 sm:$0xff]   ;;  %v4028_v25 = vpack.c.bf16 %v16749_v39, %v16748_v61  ;;  %v9596_v19 = vld [vmem:[#allocation13 + $0x6c] ss:$16 sps:$4 sm:$0xff]  }
 0x4e5   : > { %v3557_v41 = vadd.f32 %v3556_v47, %v3526_v20  ;;  %4876 = vmatmul.mubr.bf16.vlgmr.msra.gmra.mxu0 %v4023_v45  ;;  %v12966_v60 = vpop.trf.xlu0  ;;  %v9582_v20 = vld [vmem:[#allocation13 + $0xa8] ss:$16 sps:$4 sm:$0xff]  }
 0x4e6   : > { %4989 = vmatmul.mubr.bf16.vlgmr.msra.gmra.mxu1 %v4023_v45  ;;  %4885 = vmatprep.mubr.bf16.mxu0 %v4026_v34  ;;  %3656 = vst [vmem:[%s10847_s25 + $0x198] sm:$0xff] %v12966_v60  ;;  %v3922_v32 = vadd.f32 %v3921_v52, %v3891_v12 }
 0x4e7   : > { %v3558_v17 = vadd.f32 %v3557_v41, %v3527_v56  ;;  %4998 = vmatprep.mubr.bf16.mxu1 %v4026_v34  ;;  %5815 = vmatpush1.bf16.msra.mxu0 %v9567_v16  ;;  %v3593_v22 = vpop.trf.xlu1  ;;  %v9587_v56 = vld [vmem:[#allocation13 + $0x84] ss:$16 sps:$4 sm:$0xff]  }
 0x4e8   : > { %5856 = vmatpush1.bf16.msra.mxu1 %v9570_v21  ;;  %5816 = vmatprep.subr.bf16.mxu0 %v9575_v55  ;;  %3641 = vst [vmem:[%s10847_s25 + $0x120] sm:$0xff] %v3593_v22  ;;  %v3892_v2 = vmul.f32 %v3593_v22, %v3593_v22  ;;  %v3533_v21 = vmul.f32 %v12908_v37, %v12908_v37  ;;  %v9593_v34 = vld [vmem:[#allocation13 + $0x64] ss:$16 sps:$4 sm:$0xff]  }
 0x4e9   : > { %v3559_v43 = vadd.f32 %v3558_v17, %v3528_v35  ;;  %5857 = vmatprep.subr.bf16.mxu1 %v9578_v33  ;;  %v12975_v1 = vpop.trf.xlu0  ;;  %v3534_v35 = vmul.f32 %v12916_v62, %v12916_v62  ;;  %v3535_v17 = vmul.f32 %v12921_v58, %v12921_v58  ;;  %v9602_v58 = vld [vmem:[#allocation13 + $0x4c] ss:$16 sps:$4 sm:$0xff]  }
 0x4ea   : > { %3657 = vst [vmem:[%s10847_s25 + $0x1a0] sm:$0xff] %v12975_v1  ;;  %v3923_v36 = vadd.f32 %v3922_v32, %v3892_v2 }
 0x4eb   : > { %v3560_v26 = vadd.f32 %v3559_v43, %v3529_v46  ;;  %5817 = vmatpush1.bf16.msra.mxu0 %v9573_v23  ;;  %v3594_v27 = vpop.trf.xlu1  ;;  %v16750_v46 = vld [vmem:[#allocation66_spill] sm:$0xff]  ;;  %v16751_v23 = vld [vmem:[#allocation68_spill] sm:$0xff]  ;;  %v16752_v43 = vld [vmem:[#allocation75_spill] sm:$0xff] }
 0x4ec   : > { %5858 = vmatpush1.bf16.msra.mxu1 %v9576_v6  ;;  %5818 = vmatprep.subr.bf16.mxu0 %v9581_v13  ;;  %3642 = vst [vmem:[%s10847_s25 + $0x128] sm:$0xff] %v3594_v27  ;;  %v3893_v45 = vmul.f32 %v3594_v27, %v3594_v27  ;;  %v4027_v32 = vpack.c.bf16 %v16751_v23, %v16750_v46  ;;  %v9591_v6 = vld [vmem:[#allocation13 + $0x60] ss:$16 sps:$4 sm:$0xff]   ;;  %v9594_v13 = vld [vmem:[#allocation13 + $0x68] ss:$16 sps:$4 sm:$0xff]  }
 0x4ed   : > { %v3561_v47 = vadd.f32 %v3560_v26, %v3530_v49  ;;  %4886 = vmatmul.mubr.bf16.gmra.mxu0 %v4025_v24  ;;  %5859 = vmatprep.subr.bf16.mxu1 %v9584_v10  ;;  %v12988_v16 = vpop.trf.xlu0  ;;  %v16753_v49 = vld [vmem:[#allocation81_spill] sm:$0xff]  ;;  %v9599_v10 = vld [vmem:[#allocation13 + $0x44] ss:$16 sps:$4 sm:$0xff]  }
 0x4ee   : > { %4999 = vmatmul.mubr.bf16.gmra.mxu1 %v4025_v24  ;;  %4895 = vmatprep.mubr.bf16.mxu0 %v4028_v25  ;;  %3658 = vst [vmem:[%s10847_s25 + $0x1a8] sm:$0xff] %v12988_v16  ;;  %v3924_v54 = vadd.f32 %v3923_v36, %v3893_v45  ;;  %v4030_v22 = vpack.c.bf16 %v16753_v49, %v16752_v43  ;;  %v9597_v24 = vld [vmem:[#allocation13 + $0x40] ss:$16 sps:$4 sm:$0xff]   ;;  %v9600_v36 = vld [vmem:[#allocation13 + $0x48] ss:$16 sps:$4 sm:$0xff]  }
 0x4ef   : > { %v3562_v52 = vadd.f32 %v3561_v47, %v3531_v18  ;;  %5008 = vmatprep.mubr.bf16.mxu1 %v4028_v25  ;;  %5819 = vmatpush1.bf16.msra.mxu0 %v9579_v59  ;;  %v3595_v41 = vpop.trf.xlu1  ;;  %v9608_v25 = vld [vmem:[#allocation13 + $0x2c] ss:$16 sps:$4 sm:$0xff]   ;;  %v16754_v27 = vld [vmem:[#allocation74_spill] sm:$0xff]  ;;  %v9609_v46 = vld [vmem:[#allocation13] ss:$16 sps:$4 sm:$0xff]  }
 0x4f0   : > { %5860 = vmatpush1.bf16.msra.mxu1 %v9582_v20  ;;  %5820 = vmatprep.subr.bf16.mxu0 %v9587_v56  ;;  %3643 = vst [vmem:[%s10847_s25 + $0x130] sm:$0xff] %v3595_v41  ;;  %v3894_v37 = vmul.f32 %v3595_v41, %v3595_v41  ;;  %v9605_v20 = vld [vmem:[#allocation13 + $0x24] ss:$16 sps:$4 sm:$0xff]   ;;  %v9620_v43 = vld [vmem:[#allocation13 + $0x1ec] ss:$16 sps:$4 sm:$0xff]  }
 0x4f1   : > { %v3563_v55 = vadd.f32 %v3562_v52, %v3532_v15  ;;  %5861 = vmatprep.subr.bf16.mxu1 %v9590_v30  ;;  %v12997_v33 = vpop.trf.xlu0  ;;  %v16755_v30 = vld [vmem:[#allocation78_spill] sm:$0xff]  ;;  %v9603_v52 = vld [vmem:[#allocation13 + $0x20] ss:$16 sps:$4 sm:$0xff]  }
 0x4f2   : > { %3659 = vst [vmem:[%s10847_s25 + $0x1b0] sm:$0xff] %v12997_v33  ;;  %v3925_v62 = vadd.f32 %v3924_v54, %v3894_v37  ;;  %v4029_v45 = vpack.c.bf16 %v16755_v30, %v16754_v27  ;;  %v16756_v54 = vld [vmem:[#allocation84_spill] sm:$0xff]  ;;  %v9621_v30 = vld [vmem:[#allocation13 + $0x1c0] ss:$16 sps:$4 sm:$0xff]  }
 0x4f3   : > { %v3564_v12 = vadd.f32 %v3563_v55, %v3533_v21  ;;  %5821 = vmatpush1.bf16.msra.mxu0 %v9585_v51  ;;  %v3596_v26 = vpop.trf.xlu1  ;;  %v9606_v51 = vld [vmem:[#allocation13 + $0x28] ss:$16 sps:$4 sm:$0xff]   ;;  %v9611_v55 = vld [vmem:[#allocation13 + $0x4] ss:$16 sps:$4 sm:$0xff]  }
 0x4f4   : > { %5862 = vmatpush1.bf16.msra.mxu1 %v9588_v63  ;;  %5822 = vmatprep.subr.bf16.mxu0 %v9593_v34  ;;  %3644 = vst [vmem:[%s10847_s25 + $0x138] sm:$0xff] %v3596_v26  ;;  %v3895_v18 = vmul.f32 %v3596_v26, %v3596_v26  ;;  %v16757_v63 = vld [vmem:[#allocation88_spill] sm:$0xff]  ;;  %v16759_v26 = vld [vmem:[#allocation87_spill] sm:$0xff] }
 0x4f5   : > { %v3565_v2 = vadd.f32 %v3564_v12, %v3534_v35  ;;  %4896 = vmatmul.mubr.bf16.gmra.mxu0 %v4027_v32  ;;  %5863 = vmatprep.subr.bf16.mxu1 %v9596_v19  ;;  %v13008_v28 = vpop.trf.xlu0  ;;  %v4032_v34 = vpack.c.bf16 %v16757_v63, %v16756_v54  ;;  %v9614_v19 = vld [vmem:[#allocation13 + $0xc] ss:$16 sps:$4 sm:$0xff]  }
 0x4f6   : > { %5009 = vmatmul.mubr.bf16.gmra.mxu1 %v4027_v32  ;;  %4905 = vmatprep.mubr.bf16.mxu0 %v4030_v22  ;;  %3660 = vst [vmem:[%s10847_s25 + $0x1b8] sm:$0xff] %v13008_v28  ;;  %v3926_v59 = vadd.f32 %v3925_v62, %v3895_v18  ;;  %v9612_v32 = vld [vmem:[#allocation13 + $0x8] ss:$16 sps:$4 sm:$0xff]   ;;  %v9615_v18 = vld [vmem:[#allocation13 + $0x1e0] ss:$16 sps:$4 sm:$0xff]  }
 0x4f7   : > { %v3566_v31 = vadd.f32 %v3565_v2, %v3535_v17  ;;  %5018 = vmatprep.mubr.bf16.mxu1 %v4030_v22  ;;  %5823 = vmatpush1.bf16.msra.mxu0 %v9591_v6  ;;  %v3597_v39 = vpop.trf.xlu1  ;;  %v9617_v6 = vld [vmem:[#allocation13 + $0x1e4] ss:$16 sps:$4 sm:$0xff]  }
 0x4f8   : > { %5864 = vmatpush1.bf16.msra.mxu1 %v9594_v13  ;;  %5824 = vmatprep.subr.bf16.mxu0 %v9599_v10  ;;  %3645 = vst [vmem:[%s10847_s25 + $0x140] sm:$0xff] %v3597_v39  ;;  %v3896_v56 = vmul.f32 %v3597_v39, %v3597_v39  ;;  %v16758_v2 = vld [vmem:[#allocation82_spill] sm:$0xff] }
 0x4f9   : > { %v3567_v61 = vrot.slane %v3566_v31, 4  ;;  %5865 = vmatprep.subr.bf16.mxu1 %v9602_v58  ;;  %v13013_v47 = vpop.trf.xlu0  ;;  %v4031_v58 = vpack.c.bf16 %v16759_v26, %v16758_v2 }
 0x4fa   : > { %3661 = vst [vmem:[%s10847_s25 + $0x1c0] sm:$0xff] %v13013_v47  ;;  %v3927_v21 = vadd.f32 %v3926_v59, %v3896_v56  ;;  %v16760_v59 = vld [vmem:[#allocation93_spill] sm:$0xff] }
 0x4fb   : > { %v3568_v15 = vadd.f32 %v3567_v61, %v3566_v31  ;;  %5825 = vmatpush1.bf16.msra.mxu0 %v9597_v24  ;;  %v3598_v41 = vpop.trf.xlu1  ;;  %v9618_v24 = vld [vmem:[#allocation13 + $0x1e8] ss:$16 sps:$4 sm:$0xff]   ;;  %v9623_v61 = vld [vmem:[#allocation13 + $0x1c4] ss:$16 sps:$4 sm:$0xff]   ;;  %v9626_v56 = vld [vmem:[#allocation13 + $0x1cc] ss:$16 sps:$4 sm:$0xff]  }
 0x4fc   : > { %5866 = vmatpush1.bf16.msra.mxu1 %v9600_v36  ;;  %5826 = vmatprep.subr.bf16.mxu0 %v9605_v20  ;;  %3646 = vst [vmem:[%s10847_s25 + $0x148] sm:$0xff] %v3598_v41  ;;  %v3897_v37 = vmul.f32 %v3598_v41, %v3598_v41  ;;  %v16761_v36 = vld [vmem:[#allocation96_spill] sm:$0xff]  ;;  %v9627_v41 = vld [vmem:[#allocation13 + $0x1a0] ss:$16 sps:$4 sm:$0xff]  }
 0x4fd   : > { %v3569_v35 = vrot.slane %v3568_v15, 2  ;;  %4906 = vmatmul.mubr.bf16.gmra.mxu0 %v4029_v45  ;;  %5867 = vmatprep.subr.bf16.mxu1 %v9608_v25  ;;  %v13022_v12 = vpop.trf.xlu0  ;;  %v4034_v20 = vpack.c.bf16 %v16761_v36, %v16760_v59  ;;  %v9642_v36 = vld [vmem:[#allocation13 + $0x168] ss:$16 sps:$4 sm:$0xff]  }
 0x4fe   : > { %5019 = vmatmul.mubr.bf16.gmra.mxu1 %v4029_v45  ;;  %4915 = vmatprep.mubr.bf16.mxu0 %v4032_v34  ;;  %3662 = vst [vmem:[%s10847_s25 + $0x1c8] sm:$0xff] %v13022_v12  ;;  %v3928_v23 = vadd.f32 %v3927_v21, %v3897_v37  ;;  %v9630_v37 = vld [vmem:[#allocation13 + $0x1a8] ss:$16 sps:$4 sm:$0xff]  }
 0x4ff   : > { %v3570_v17 = vadd.f32 %v3569_v35, %v3568_v15  ;;  %5028 = vmatprep.mubr.bf16.mxu1 %v4032_v34  ;;  %5827 = vmatpush1.bf16.msra.mxu0 %v9603_v52  ;;  %v3599_v13 = vpop.trf.xlu1  ;;  %v9629_v52 = vld [vmem:[#allocation13 + $0x1a4] ss:$16 sps:$4 sm:$0xff]  }
 0x500   : > { %5868 = vmatpush1.bf16.msra.mxu1 %v9606_v51  ;;  %5828 = vmatprep.subr.bf16.mxu0 %v9611_v55  ;;  %3647 = vst [vmem:[%s10847_s25 + $0x150] sm:$0xff] %v3599_v13  ;;  %v3898_v49 = vmul.f32 %v3599_v13, %v3599_v13  ;;  %v9632_v51 = vld [vmem:[#allocation13 + $0x1ac] ss:$16 sps:$4 sm:$0xff]   ;;  %v16763_v34 = vld [vmem:[#allocation90_spill] sm:$0xff]  ;;  %v9633_v13 = vld [vmem:[#allocation13 + $0x180] ss:$16 sps:$4 sm:$0xff]  }
 0x501   : > { %v3571_v62 = vrot.slane %v3570_v17, 1  ;;  %5869 = vmatprep.subr.bf16.mxu1 %v9614_v19  ;;  %v13027_v22 = vpop.trf.xlu0  ;;  %v16764_v55 = vld [vmem:[#allocation94_spill] sm:$0xff] }
 0x502   : > { %3663 = vst [vmem:[%s10847_s25 + $0x1d0] sm:$0xff] %v13027_v22  ;;  %v3929_v31 = vadd.f32 %v3928_v23, %v3898_v49  ;;  %v4033_v35 = vpack.c.bf16 %v16764_v55, %v16763_v34  ;;  %v3906_v34 = vmul.f32 %v12953_v42, %v12953_v42  ;;  %v9662_v42 = vld [vmem:[#allocation13 + $0x10c] ss:$16 sps:$4 sm:$0xff]  }
 0x503   : > { %v3572_v10 = vadd.f32 %v3571_v62, %v3570_v17  ;;  %5829 = vmatpush1.bf16.msra.mxu0 %v9609_v46  ;;  %v3600_v25 = vpop.trf.xlu1  ;;  %v4036_v17 = vpack.c.bf16 %v12023_v4, %v11986_v5  ;;  %v9635_v46 = vld [vmem:[#allocation13 + $0x184] ss:$16 sps:$4 sm:$0xff]   ;;  %v9636_v4 = vld [vmem:[#allocation13 + $0x188] ss:$16 sps:$4 sm:$0xff]  }
 0x504   : > { %5870 = vmatpush1.bf16.msra.mxu1 %v9612_v32  ;;  %5830 = vmatprep.subr.bf16.mxu0 %v9617_v6  ;;  %3648 = vst [vmem:[%s10847_s25 + $0x158] sm:$0xff] %v3600_v25  ;;  %v3899_v15 = vmul.f32 %v3600_v25, %v3600_v25  ;;  %v9638_v32 = vld [vmem:[#allocation13 + $0x18c] ss:$16 sps:$4 sm:$0xff]   ;;  %v9641_v5 = vld [vmem:[#allocation13 + $0x164] ss:$16 sps:$4 sm:$0xff]  }
 0x505   : > { %v13036_v39 = vadd.f32 %v3572_v10, %v12932_v3  ;;  %4916 = vmatmul.mubr.bf16.gmra.mxu0 %v4031_v58  ;;  %5871 = vmatprep.subr.bf16.mxu1 %v9620_v43  ;;  %v13039_v27 = vpop.trf.xlu0  ;;  %v9624_v3 = vld [vmem:[#allocation13 + $0x1c8] ss:$16 sps:$4 sm:$0xff]   ;;  %v9644_v10 = vld [vmem:[#allocation13 + $0x16c] ss:$16 sps:$4 sm:$0xff]   ;;  %v9647_v25 = vld [vmem:[#allocation13 + $0x144] ss:$16 sps:$4 sm:$0xff]  }
 0x506   : > { %5029 = vmatmul.mubr.bf16.gmra.mxu1 %v4031_v58  ;;  %4925 = vmatprep.mubr.bf16.mxu0 %v4034_v20  ;;  %3664 = vst [vmem:[%s10847_s25 + $0x1d8] sm:$0xff] %v13039_v27  ;;  %v3930_v45 = vadd.f32 %v3929_v31, %v3899_v15  ;;  %v16765_v58 = vld [vmem:[#allocation99_spill] sm:$0xff] }
 0x507   : > { %16762 = vst [vmem:[#allocation54_spill] sm:$0xff] %v13036_v39  ;;  %5038 = vmatprep.mubr.bf16.mxu1 %v4034_v20  ;;  %5831 = vmatpush2.bf16.msra.mxu0 %v9615_v18  ;;  %v3601_v21 = vpop.trf.xlu1  ;;  %v16766_v18 = vld [vmem:[#allocation101_spill] sm:$0xff] }
 0x508   : > { %5872 = vmatpush2.bf16.msra.mxu1 %v9618_v24  ;;  %5832 = vmatprep.subr.bf16.mxu0 %v9623_v61  ;;  %3649 = vst [vmem:[%s10847_s25 + $0x160] sm:$0xff] %v3601_v21  ;;  %v3900_v54 = vmul.f32 %v3601_v21, %v3601_v21  ;;  %v4035_v31 = vpack.c.bf16 %v16766_v18, %v16765_v58  ;;  %v9639_v24 = vld [vmem:[#allocation13 + $0x160] ss:$16 sps:$4 sm:$0xff]   ;;  %v9650_v15 = vld [vmem:[#allocation13 + $0x14c] ss:$16 sps:$4 sm:$0xff]  }
 0x509   : > { %5873 = vmatprep.subr.bf16.mxu1 %v9626_v56  ;;  %v13044_v63 = vpop.trf.xlu0  ;;  %v16767_v20 = vld [vmem:[#allocation109_spill] sm:$0xff]  ;;  %v3910_v58 = vmul.f32 %v12997_v33, %v12997_v33  ;;  %v16772_v33 = vld [vmem:[#allocation62_spill] sm:$0xff] }
 0x50a   : > { %3665 = vst [vmem:[%s10847_s25 + $0x1e0] sm:$0xff] %v13044_v63  ;;  %v3931_v19 = vadd.f32 %v3930_v45, %v3900_v54  ;;  %v4038_v61 = vpack.c.bf16 %v16767_v20, %v12043_v57  ;;  %v3905_v57 = vmul.f32 %v12944_v14, %v12944_v14  ;;  %v9653_v54 = vld [vmem:[#allocation13 + $0x124] ss:$16 sps:$4 sm:$0xff]   ;;  %v9663_v18 = vld [vmem:[#allocation11 + $0xe0] ss:$16 sps:$4 sm:$0xff]  }
 0x50b   : > { %5833 = vmatpush2.bf16.msra.mxu0 %v9621_v30  ;;  %v3602_v23 = vpop.trf.xlu1  ;;  %v3904_v30 = vmul.f32 %v12935_v8, %v12935_v8  ;;  %v9656_v8 = vld [vmem:[#allocation13 + $0x12c] ss:$16 sps:$4 sm:$0xff]   ;;  %v9671_v20 = vld [vmem:[#allocation11 + $0xc4] ss:$16 sps:$4 sm:$0xff]  }
 0x50c   : > { %5874 = vmatpush2.bf16.msra.mxu1 %v9624_v3  ;;  %5834 = vmatprep.subr.bf16.mxu0 %v9629_v52  ;;  %3650 = vst [vmem:[%s10847_s25 + $0x168] sm:$0xff] %v3602_v23  ;;  %v3901_v6 = vmul.f32 %v3602_v23, %v3602_v23  ;;  %v9645_v52 = vld [vmem:[#allocation13 + $0x140] ss:$16 sps:$4 sm:$0xff]  }
 0x50d   : > { %4926 = vmatmul.mubr.bf16.gmra.mxu0 %v4033_v35  ;;  %5875 = vmatprep.subr.bf16.mxu1 %v9632_v51  ;;  %v13053_v62 = vpop.trf.xlu0  ;;  %v9648_v51 = vld [vmem:[#allocation13 + $0x148] ss:$16 sps:$4 sm:$0xff]   ;;  %v16770_v23 = vld [vmem:[#allocation131_spill] sm:$0xff] }
 0x50e   : > { %5039 = vmatmul.mubr.bf16.gmra.mxu1 %v4033_v35  ;;  %4935 = vmatprep.mubr.bf16.mxu0 %v4036_v17  ;;  %3666 = vst [vmem:[%s10847_s25 + $0x1e8] sm:$0xff] %v13053_v62  ;;  %v3932_v43 = vadd.f32 %v3931_v19, %v3901_v6  ;;  %v16768_v35 = vld [vmem:[#allocation105_spill] sm:$0xff]  ;;  %v9659_v6 = vld [vmem:[#allocation13 + $0x104] ss:$16 sps:$4 sm:$0xff]  }
 0x50f   : > { %5048 = vmatprep.mubr.bf16.mxu1 %v4036_v17  ;;  %5835 = vmatpush2.bf16.msra.mxu0 %v9627_v41  ;;  %v3603_v49 = vpop.trf.xlu1  ;;  %v16769_v41 = vld [vmem:[#allocation107_spill] sm:$0xff]  ;;  %v3907_v17 = vmul.f32 %v12966_v60, %v12966_v60 }
 0x510   : > { %5876 = vmatpush2.bf16.msra.mxu1 %v9630_v37  ;;  %5836 = vmatprep.subr.bf16.mxu0 %v9635_v46  ;;  %3651 = vst [vmem:[%s10847_s25 + $0x170] sm:$0xff] %v3603_v49  ;;  %v3902_v2 = vmul.f32 %v3603_v49, %v3603_v49  ;;  %v4037_v19 = vpack.c.bf16 %v16769_v41, %v16768_v35  ;;  %v9651_v37 = vld [vmem:[#allocation13 + $0x120] ss:$16 sps:$4 sm:$0xff]   ;;  %v9654_v46 = vld [vmem:[#allocation13 + $0x128] ss:$16 sps:$4 sm:$0xff]  }
 0x511   : > { %5877 = vmatprep.subr.bf16.mxu1 %v9638_v32  ;;  %v13058_v26 = vpop.trf.xlu0  ;;  %v5493_v32 = vpack.c.bf16 %v16770_v23, %v16770_v23  ;;  %v9657_v60 = vld [vmem:[#allocation13 + $0x100] ss:$16 sps:$4 sm:$0xff]   ;;  %v9660_v49 = vld [vmem:[#allocation13 + $0x108] ss:$16 sps:$4 sm:$0xff]   ;;  %v9683_v35 = vld [vmem:[#allocation11 + $0x84] ss:$16 sps:$4 sm:$0xff]  }
 0x512   : > { %3667 = vst [vmem:[%s10847_s25 + $0x1f0] sm:$0xff] %v13058_v26  ;;  %v3933_v59 = vadd.f32 %v3932_v43, %v3902_v2  ;;  %v9668_v2 = vld [vmem:[#allocation11 + $0xec] ss:$16 sps:$4 sm:$0xff]  }
 0x513   : > { %5837 = vmatpush2.bf16.msra.mxu0 %v9633_v13  ;;  %v3604_v56 = vpop.trf.xlu1  ;;  %v3908_v13 = vmul.f32 %v12975_v1, %v12975_v1  ;;  %v9686_v41 = vld [vmem:[#allocation11 + $0x8c] ss:$16 sps:$4 sm:$0xff]  }
 0x514   : > { %5878 = vmatpush2.bf16.msra.mxu1 %v9636_v4  ;;  %5838 = vmatprep.subr.bf16.mxu0 %v9641_v5  ;;  %3652 = vst [vmem:[%s10847_s25 + $0x178] sm:$0xff] %v3604_v56  ;;  %v3903_v45 = vmul.f32 %v3604_v56, %v3604_v56  ;;  %v3909_v4 = vmul.f32 %v12988_v16, %v12988_v16  ;;  %v16773_v56 = vld [vmem:[#allocation64_spill] sm:$0xff]  ;;  %v9692_v23 = vld [vmem:[#allocation11 + $0x6c] ss:$16 sps:$4 sm:$0xff]  }
 0x515   : > { %4936 = vmatmul.mubr.bf16.gmra.mxu0 %v4035_v31  ;;  %5879 = vmatprep.subr.bf16.mxu1 %v9644_v10  ;;  %v13069_v3 = vpop.trf.xlu0  ;;  %v9665_v10 = vld [vmem:[#allocation11 + $0xe4] ss:$16 sps:$4 sm:$0xff]  }
 0x516   : > { %5049 = vmatmul.mubr.bf16.gmra.mxu1 %v4035_v31  ;;  %4945 = vmatprep.mubr.bf16.mxu0 %v4038_v61  ;;  %3668 = vst [vmem:[%s10847_s25 + $0x1f8] sm:$0xff] %v13069_v3  ;;  %v3934_v21 = vadd.f32 %v3933_v59, %v3903_v45  ;;  %v3911_v31 = vmul.f32 %v13008_v28, %v13008_v28  ;;  %v16771_v59 = vld [vmem:[#allocation123_spill] sm:$0xff] }
 0x517   : > { %5058 = vmatprep.mubr.bf16.mxu1 %v4038_v61  ;;  %5839 = vmatpush2.bf16.msra.mxu0 %v9639_v24  ;;  %v5492_v16 = vpack.c.bf16 %v16771_v59, %v16771_v59  ;;  %v3912_v61 = vmul.f32 %v13013_v47, %v13013_v47  ;;  %v9669_v28 = vld [vmem:[#allocation11 + $0xc0] ss:$16 sps:$4 sm:$0xff]   ;;  %v9680_v47 = vld [vmem:[#allocation11 + $0xac] ss:$16 sps:$4 sm:$0xff]  }
 0x518   : > { %5880 = vmatpush2.bf16.msra.mxu1 %v9642_v36  ;;  %5840 = vmatprep.subr.bf16.mxu0 %v9647_v25  ;;  %v3935_v55 = vadd.f32 %v3934_v21, %v3904_v30  ;;  %v9666_v36 = vld [vmem:[#allocation11 + $0xe8] ss:$16 sps:$4 sm:$0xff]   ;;  %v9674_v30 = vld [vmem:[#allocation11 + $0xcc] ss:$16 sps:$4 sm:$0xff]   ;;  %v9677_v21 = vld [vmem:[#allocation11 + $0xa4] ss:$16 sps:$4 sm:$0xff]  }
 0x519   : > { %5881 = vmatprep.subr.bf16.mxu1 %v9650_v15  ;;  %v5413_v15 = vpack.c.bf16 %v16773_v56, %v16772_v33  ;;  %v9711_v56 = vld [vmem:[#allocation11 + $0x1e0] ss:$16 sps:$4 sm:$0xff]  }
 0x51a   : > { %v3936_v14 = vadd.f32 %v3935_v55, %v3905_v57  ;;  %v9672_v57 = vld [vmem:[#allocation11 + $0xc8] ss:$16 sps:$4 sm:$0xff]   ;;  %v3915_v55 = vmul.f32 %v13039_v27, %v13039_v27  ;;  %v9689_v27 = vld [vmem:[#allocation11 + $0x64] ss:$16 sps:$4 sm:$0xff]  }
 0x51b   : > { %5841 = vmatpush2.bf16.msra.mxu0 %v9645_v52  ;;  %v3913_v52 = vmul.f32 %v13022_v12, %v13022_v12  ;;  %v9678_v12 = vld [vmem:[#allocation11 + $0xa8] ss:$16 sps:$4 sm:$0xff]  }
 0x51c   : > { %5882 = vmatpush2.bf16.msra.mxu1 %v9648_v51  ;;  %5842 = vmatprep.subr.bf16.mxu0 %v9653_v54  ;;  %v3937_v43 = vadd.f32 %v3936_v14, %v3906_v34  ;;  %v3914_v54 = vmul.f32 %v13027_v22, %v13027_v22  ;;  %v3917_v14 = vmul.f32 %v13053_v62, %v13053_v62  ;;  %v9695_v62 = vld [vmem:[#allocation11 + $0x44] ss:$16 sps:$4 sm:$0xff]  }
 0x51d   : > { %4946 = vmatmul.mubr.bf16.gmra.mxu0 %v4037_v19  ;;  %5883 = vmatprep.subr.bf16.mxu1 %v9656_v8  ;;  %v9675_v8 = vld [vmem:[#allocation11 + $0xa0] ss:$16 sps:$4 sm:$0xff]  }
 0x51e   : > { %5059 = vmatmul.mubr.bf16.gmra.mxu1 %v4037_v19  ;;  %5846 = vmatprep.mubr.bf16.mxu0 %v5493_v32  ;;  %v3938_v5 = vadd.f32 %v3937_v43, %v3907_v17  ;;  %v9681_v17 = vld [vmem:[#allocation11 + $0x80] ss:$16 sps:$4 sm:$0xff]   ;;  %v9690_v43 = vld [vmem:[#allocation11 + $0x68] ss:$16 sps:$4 sm:$0xff]  }
 0x51f   : > { %5843 = vmatpush2.bf16.msra.mxu0 %v9651_v37  ;;  %5887 = vmatprep.mubr.bf16.mxu1 %v5493_v32  ;;  %v3916_v37 = vmul.f32 %v13044_v63, %v13044_v63  ;;  %v3919_v63 = vmul.f32 %v13069_v3, %v13069_v3 }
 0x520   : > { %5884 = vmatpush2.bf16.msra.mxu1 %v9654_v46  ;;  %5844 = vmatprep.subr.bf16.mxu0 %v9659_v6  ;;  %v3939_v1 = vadd.f32 %v3938_v5, %v3908_v13  ;;  %v9684_v46 = vld [vmem:[#allocation11 + $0x88] ss:$16 sps:$4 sm:$0xff]   ;;  %v3918_v6 = vmul.f32 %v13058_v26, %v13058_v26  ;;  %v9693_v5 = vld [vmem:[#allocation11 + $0x40] ss:$16 sps:$4 sm:$0xff]   ;;  %v9701_v26 = vld [vmem:[#allocation11 + $0x24] ss:$16 sps:$4 sm:$0xff]  }
 0x521   : > { %5885 = vmatprep.subr.bf16.mxu1 %v9662_v42  ;;  %v9687_v42 = vld [vmem:[#allocation11 + $0x60] ss:$16 sps:$4 sm:$0xff]  }
 0x522   : > { %v3940_v24 = vadd.f32 %v3939_v1, %v3909_v4  ;;  %v9699_v1 = vld [vmem:[#allocation11 + $0x20] ss:$16 sps:$4 sm:$0xff]  }
 0x523   : > { %5845 = vmatpush2.bf16.msra.mxu0 %v9657_v60  ;;  %v9698_v60 = vld [vmem:[#allocation11 + $0x4c] ss:$16 sps:$4 sm:$0xff]  }
 0x524   : > { %5886 = vmatpush2.bf16.msra.mxu1 %v9660_v49  ;;  %6232 = vmatprep.subr.bf16.mxu0 %v9665_v10  ;;  %v3941_v25 = vadd.f32 %v3940_v24, %v3910_v58  ;;  %v9696_v10 = vld [vmem:[#allocation11 + $0x48] ss:$16 sps:$4 sm:$0xff]   ;;  %v9710_v24 = vld [vmem:[#allocation11 + $0xc] ss:$16 sps:$4 sm:$0xff]  }
 0x525   : > { %6345 = vmatprep.subr.bf16.mxu1 %v9668_v2  ;;  %v9704_v2 = vld [vmem:[#allocation11 + $0x2c] ss:$16 sps:$4 sm:$0xff]  }
 0x526   : > { %5847 = vmatmul.mubr.bf16.vlgmr.msra.gmra.mxu0 %v5492_v16  ;;  %v3942_v45 = vadd.f32 %v3941_v25, %v3911_v31  ;;  %v9707_v31 = vld [vmem:[#allocation11 + $0x4] ss:$16 sps:$4 sm:$0xff]   ;;  %v9716_v25 = vld [vmem:[#allocation11 + $0x1ec] ss:$16 sps:$4 sm:$0xff]  }
 0x527   : > { %5888 = vmatmul.mubr.bf16.vlgmr.msra.gmra.mxu1 %v5492_v16  ;;  %6233 = vmatpush1.bf16.msra.mxu0 %v9663_v18  ;;  %v9702_v18 = vld [vmem:[#allocation11 + $0x28] ss:$16 sps:$4 sm:$0xff]   ;;  %v9705_v16 = vld [vmem:[#allocation11] ss:$16 sps:$4 sm:$0xff]  }
 0x528   : > { %6264 = vmatprep.mubr.bf16.mxu0 %v5413_v15  ;;  %6346 = vmatpush1.bf16.msra.mxu1 %v9666_v36  ;;  %v3943_v51 = vadd.f32 %v3942_v45, %v3912_v61  ;;  %v9713_v61 = vld [vmem:[#allocation11 + $0x1e4] ss:$16 sps:$4 sm:$0xff]   ;;  %v9722_v45 = vld [vmem:[#allocation11 + $0x1cc] ss:$16 sps:$4 sm:$0xff]  }
 0x529   : > { %6377 = vmatprep.mubr.bf16.mxu1 %v5413_v15  ;;  %6234 = vmatprep.subr.bf16.mxu0 %v9671_v20  ;;  %v9708_v20 = vld [vmem:[#allocation11 + $0x8] ss:$16 sps:$4 sm:$0xff]  }
 0x52a   : > { %6347 = vmatprep.subr.bf16.mxu1 %v9674_v30  ;;  %v3944_v34 = vadd.f32 %v3943_v51, %v3913_v52  ;;  %v9714_v30 = vld [vmem:[#allocation11 + $0x1e8] ss:$16 sps:$4 sm:$0xff]   ;;  %v9728_v51 = vld [vmem:[#allocation11 + $0x1ac] ss:$16 sps:$4 sm:$0xff]  }
 0x52b   : > { %6235 = vmatpush1.bf16.msra.mxu0 %v9669_v28  ;;  %v9719_v28 = vld [vmem:[#allocation11 + $0x1c4] ss:$16 sps:$4 sm:$0xff]  }
 0x52c   : > { %6348 = vmatpush1.bf16.msra.mxu1 %v9672_v57  ;;  %6236 = vmatprep.subr.bf16.mxu0 %v9677_v21  ;;  %v3945_v19 = vadd.f32 %v3944_v34, %v3914_v54  ;;  %v9717_v57 = vld [vmem:[#allocation11 + $0x1c0] ss:$16 sps:$4 sm:$0xff]   ;;  %v9720_v21 = vld [vmem:[#allocation11 + $0x1c8] ss:$16 sps:$4 sm:$0xff]   ;;  %v9731_v34 = vld [vmem:[#allocation11 + $0x184] ss:$16 sps:$4 sm:$0xff]  }
 0x52d   : > { %6349 = vmatprep.subr.bf16.mxu1 %v9680_v47  ;;  %v9725_v47 = vld [vmem:[#allocation11 + $0x1a4] ss:$16 sps:$4 sm:$0xff]   ;;  %v9723_v54 = vld [vmem:[#allocation11 + $0x1a0] ss:$16 sps:$4 sm:$0xff]  }
 0x52e   : > { %v3946_v22 = vadd.f32 %v3945_v19, %v3915_v55  ;;  %v9734_v55 = vld [vmem:[#allocation11 + $0x18c] ss:$16 sps:$4 sm:$0xff]   ;;  %v9735_v19 = vld [vmem:[#allocation11 + $0x160] ss:$16 sps:$4 sm:$0xff]  }
 0x52f   : > { %6237 = vmatpush1.bf16.msra.mxu0 %v9675_v8  ;;  %v9726_v8 = vld [vmem:[#allocation11 + $0x1a8] ss:$16 sps:$4 sm:$0xff]  }
 0x530   : > { %6350 = vmatpush1.bf16.msra.mxu1 %v9678_v12  ;;  %6238 = vmatprep.subr.bf16.mxu0 %v9683_v35  ;;  %v3947_v32 = vadd.f32 %v3946_v22, %v3916_v37  ;;  %v9729_v12 = vld [vmem:[#allocation11 + $0x180] ss:$16 sps:$4 sm:$0xff]   ;;  %v9737_v35 = vld [vmem:[#allocation11 + $0x164] ss:$16 sps:$4 sm:$0xff]   ;;  %v9738_v37 = vld [vmem:[#allocation11 + $0x168] ss:$16 sps:$4 sm:$0xff]  }
 0x531   : > { %6351 = vmatprep.subr.bf16.mxu1 %v9686_v41  ;;  %v9740_v41 = vld [vmem:[#allocation11 + $0x16c] ss:$16 sps:$4 sm:$0xff]  }
 0x532   : > { %v3948_v13 = vadd.f32 %v3947_v32, %v3917_v14  ;;  %v9746_v22 = vld [vmem:[#allocation11 + $0x14c] ss:$16 sps:$4 sm:$0xff]   ;;  %v9741_v14 = vld [vmem:[#allocation11 + $0x140] ss:$16 sps:$4 sm:$0xff]  }
 0x533   : > { %6239 = vmatpush1.bf16.msra.mxu0 %v9681_v17  ;;  %v9743_v17 = vld [vmem:[#allocation11 + $0x144] ss:$16 sps:$4 sm:$0xff]   ;;  %v9747_v32 = vld [vmem:[#allocation11 + $0x120] ss:$16 sps:$4 sm:$0xff]  }
 0x534   : > { %6352 = vmatpush1.bf16.msra.mxu1 %v9684_v46  ;;  %6240 = vmatprep.subr.bf16.mxu0 %v9689_v27  ;;  %v3949_v4 = vadd.f32 %v3948_v13, %v3918_v6  ;;  %v9744_v46 = vld [vmem:[#allocation11 + $0x148] ss:$16 sps:$4 sm:$0xff]   ;;  %v9749_v27 = vld [vmem:[#allocation11 + $0x124] ss:$16 sps:$4 sm:$0xff]   ;;  %v9758_v13 = vld [vmem:[#allocation11 + $0x10c] ss:$16 sps:$4 sm:$0xff]  }
 0x535   : > { %6353 = vmatprep.subr.bf16.mxu1 %v9692_v23  ;;  %v9752_v23 = vld [vmem:[#allocation11 + $0x12c] ss:$16 sps:$4 sm:$0xff]   ;;  %v9750_v6 = vld [vmem:[#allocation11 + $0x128] ss:$16 sps:$4 sm:$0xff]  }
 0x536   : > { %v3950_v49 = vadd.f32 %v3949_v4, %v3919_v63  ;;  %v9753_v63 = vld [vmem:[#allocation11 + $0x100] ss:$16 sps:$4 sm:$0xff]  }
 0x537   : > { %6241 = vmatpush1.bf16.msra.mxu0 %v9687_v42  ;;  %v9755_v42 = vld [vmem:[#allocation11 + $0x104] ss:$16 sps:$4 sm:$0xff]  }
 0x538   : > { %6354 = vmatpush1.bf16.msra.mxu1 %v9690_v43  ;;  %6242 = vmatprep.subr.bf16.mxu0 %v9695_v62  ;;  %v3951_v58 = vrot.slane %v3950_v49, 4  ;;  %v9756_v43 = vld [vmem:[#allocation11 + $0x108] ss:$16 sps:$4 sm:$0xff]   ;;  %v5412_v62 = vpack.c.bf16 %v16701_v0, %v16700_v29 }
 0x539   : > { %6355 = vmatprep.subr.bf16.mxu1 %v9698_v60  ;;  %v16778_v29 = vld [vmem:[#allocation72_spill] sm:$0xff] }
 0x53a   : > { %v3952_v3 = vadd.f32 %v3951_v58, %v3950_v49  ;;  %v16776_v49 = vld [vmem:[#allocation117_spill] sm:$0xff] }
 0x53b   : > { %6243 = vmatpush1.bf16.msra.mxu0 %v9693_v5  ;;  %v16775_v5 = vld [vmem:[#allocation113_spill] sm:$0xff] }
 0x53c   : > { %6356 = vmatpush1.bf16.msra.mxu1 %v9696_v10  ;;  %6244 = vmatprep.subr.bf16.mxu0 %v9701_v26  ;;  %v3953_v59 = vrot.slane %v3952_v3, 2  ;;  %v5415_v10 = vpack.c.bf16 %v16776_v49, %v16775_v5 }
 0x53d   : > { %6357 = vmatprep.subr.bf16.mxu1 %v9704_v2 }
 0x53e   : > { %v3954_v36 = vadd.f32 %v3953_v59, %v3952_v3  ;;  %v5416_v59 = vpack.c.bf16 %v16706_v11, %v16704_v53  ;;  %v16784_v11 = vld [vmem:[#allocation91_spill] sm:$0xff] }
 0x53f   : > { %6245 = vmatpush1.bf16.msra.mxu0 %v9699_v1 }
 0x540   : > { %6358 = vmatpush1.bf16.msra.mxu1 %v9702_v18  ;;  %6246 = vmatprep.subr.bf16.mxu0 %v9707_v31  ;;  %v3955_v33 = vrot.slane %v3954_v36, 1  ;;  %v5414_v31 = vpack.c.bf16 %v16703_v40, %v16702_v38  ;;  %v5418_v38 = vpack.c.bf16 %v16708_v50, %v16707_v9  ;;  %v16781_v40 = vld [vmem:[#allocation83_spill] sm:$0xff]  ;;  %v16788_v50 = vld [vmem:[#allocation98_spill] sm:$0xff] }
 0x541   : > { %6359 = vmatprep.subr.bf16.mxu1 %v9710_v24  ;;  %v16777_v24 = vld [vmem:[#allocation69_spill] sm:$0xff] }
 0x542   : > { %v3956_v15 = vadd.f32 %v3955_v33, %v3954_v36  ;;  %v5417_v0 = vpack.c.bf16 %v16778_v29, %v16777_v24  ;;  %v16780_v36 = vld [vmem:[#allocation79_spill] sm:$0xff]  ;;  %v16783_v33 = vld [vmem:[#allocation85_spill] sm:$0xff] }
 0x543   : > { %6247 = vmatpush1.bf16.msra.mxu0 %v9705_v16  ;;  %v16779_v16 = vld [vmem:[#allocation76_spill] sm:$0xff]  ;;  %v5420_v53 = vpack.c.bf16 %v16783_v33, %v16709_v7 }
 0x544   : > { %6360 = vmatpush1.bf16.msra.mxu1 %v9708_v20  ;;  %6248 = vmatprep.subr.bf16.mxu0 %v9713_v61  ;;  %v13112_v52 = vadd.f32 %v3956_v15, %v12911_v44  ;;  %v9732_v44 = vld [vmem:[#allocation11 + $0x188] ss:$16 sps:$4 sm:$0xff]   ;;  %v5419_v20 = vpack.c.bf16 %v16780_v36, %v16779_v16 }
 0x545   : > { %6361 = vmatprep.subr.bf16.mxu1 %v9716_v25  ;;  %v16782_v61 = vld [vmem:[#allocation86_spill] sm:$0xff] }
 0x546   : > { %16774 = vst [vmem:[#allocation63_spill] sm:$0xff] %v13112_v52  ;;  %v5421_v25 = vpack.c.bf16 %v16782_v61, %v16781_v40 }
 0x547   : > { %6249 = vmatpush2.bf16.msra.mxu0 %v9711_v56  ;;  %v16785_v56 = vld [vmem:[#allocation95_spill] sm:$0xff] }
 0x548   : > { %6362 = vmatpush2.bf16.msra.mxu1 %v9714_v30  ;;  %6250 = vmatprep.subr.bf16.mxu0 %v9719_v28  ;;  %v5423_v15 = vpack.c.bf16 %v16785_v56, %v16784_v11  ;;  %v16786_v30 = vld [vmem:[#allocation89_spill] sm:$0xff]  ;;  %v16787_v28 = vld [vmem:[#allocation92_spill] sm:$0xff] }
 0x549   : > { %6363 = vmatprep.subr.bf16.mxu1 %v9722_v45  ;;  %v5422_v9 = vpack.c.bf16 %v16787_v28, %v16786_v30  ;;  %v16789_v45 = vld [vmem:[#allocation102_spill] sm:$0xff] }
 0x54b   : > { %6251 = vmatpush2.bf16.msra.mxu0 %v9717_v57  ;;  %v5425_v57 = vpack.c.bf16 %v16789_v45, %v16788_v50 }
 0x54c   : > { %6364 = vmatpush2.bf16.msra.mxu1 %v9720_v21  ;;  %6252 = vmatprep.subr.bf16.mxu0 %v9725_v47  ;;  %v16790_v21 = vld [vmem:[#allocation97_spill] sm:$0xff]  ;;  %v16791_v47 = vld [vmem:[#allocation100_spill] sm:$0xff] }
 0x54d   : > { %6365 = vmatprep.subr.bf16.mxu1 %v9728_v51  ;;  %v5424_v7 = vpack.c.bf16 %v16791_v47, %v16790_v21  ;;  %v16792_v51 = vld [vmem:[#allocation106_spill] sm:$0xff] }
 0x54f   : > { %6253 = vmatpush2.bf16.msra.mxu0 %v9723_v54  ;;  %v16793_v54 = vld [vmem:[#allocation114_spill] sm:$0xff] }
 0x550   : > { %6366 = vmatpush2.bf16.msra.mxu1 %v9726_v8  ;;  %6254 = vmatprep.subr.bf16.mxu0 %v9731_v34  ;;  %v5427_v8 = vpack.c.bf16 %v16793_v54, %v16792_v51  ;;  %v16794_v34 = vld [vmem:[#allocation103_spill] sm:$0xff] }
 0x551   : > { %6367 = vmatprep.subr.bf16.mxu1 %v9734_v55  ;;  %v16795_v55 = vld [vmem:[#allocation111_spill] sm:$0xff] }
 0x553   : > { %6255 = vmatpush2.bf16.msra.mxu0 %v9729_v12  ;;  %v5426_v12 = vpack.c.bf16 %v16795_v55, %v16794_v34 }
 0x554   : > { %6368 = vmatpush2.bf16.msra.mxu1 %v9732_v44  ;;  %6256 = vmatprep.subr.bf16.mxu0 %v9737_v35  ;;  %v5070_v44 = vld [vmem:[#allocation14 + $0x5] ss:$8 sm:$0xf] }
 0x555   : > { %6369 = vmatprep.subr.bf16.mxu1 %v9740_v41  ;;  %v16796_v35 = vld [vmem:[#allocation36_spill] sm:$0xff] }
 0x556   : > { %v16278_v41 = vsub.s32 2, %v16796_v35 }
 0x557   : > { %6257 = vmatpush2.bf16.msra.mxu0 %v9735_v19  ;;  %v16277_v19 = vsub.s32 3, %v16796_v35 }
 0x558   : > { %6370 = vmatpush2.bf16.msra.mxu1 %v9738_v37  ;;  %6258 = vmatprep.subr.bf16.mxu0 %v9743_v17  ;;  %v16797_v37 = vld [vmem:[#allocation55_spill] sm:$0xff] }
 0x559   : > { %6371 = vmatprep.subr.bf16.mxu1 %v9746_v22  ;;  %v13150_v22 = vrot.slane %v5070_v44, %v16797_v37 }
 0x55b   : > { %6259 = vmatpush2.bf16.msra.mxu0 %v9741_v14 }
 0x55c   : > { %6372 = vmatpush2.bf16.msra.mxu1 %v9744_v46  ;;  %6260 = vmatprep.subr.bf16.mxu0 %v9749_v27  ;;  %v13157_v27 = vrot.slane %v5070_v44, %v16278_v41 }
 0x55d   : > { %6373 = vmatprep.subr.bf16.mxu1 %v9752_v23 }
 0x55f   : > { %6261 = vmatpush2.bf16.msra.mxu0 %v9747_v32 }
 0x560   : > { %6374 = vmatpush2.bf16.msra.mxu1 %v9750_v6  ;;  %6262 = vmatprep.subr.bf16.mxu0 %v9755_v42  ;;  %v16798_v42 = vld [vmem:[#allocation56_spill] sm:$0xff] }
 0x561   : > { %6375 = vmatprep.subr.bf16.mxu1 %v9758_v13  ;;  %v13164_v13 = vrot.slane %v5070_v44, %v16798_v42 }
 0x563   : > { %6263 = vmatpush2.bf16.msra.mxu0 %v9753_v63 }
 0x564   : > { %6376 = vmatpush2.bf16.msra.mxu1 %v9756_v43 }
 0x565   : > { %v4459_v60 = vpop.f32.mrf.mxu0  ;;  %v4500_v4 = vpop.f32.mrf.mxu1 }
 0x566   : > { %6265 = vmatmul.mubr.bf16.vlgmr.msra.gmra.mxu0 %v5412_v62  ;;  %v13147_v17 = vrot.slane %v4459_v60, %v16797_v37  ;;  %v13153_v14 = vrot.slane %v4500_v4, %v16797_v37  ;;  %v13172_v60 = vrot.slane %v5070_v44, %v16277_v19 }
 0x567   : > { %6378 = vmatmul.mubr.bf16.vlgmr.msra.gmra.mxu1 %v5412_v62  ;;  %6274 = vmatprep.mubr.bf16.mxu0 %v5415_v10  ;;  %v4461_v26 = vpop.f32.mrf.mxu0  ;;  %v4502_v2 = vpop.f32.mrf.mxu1 }
 0x568   : > { %6387 = vmatprep.mubr.bf16.mxu1 %v5415_v10  ;;  %v13160_v23 = vrot.slane %v4461_v26, %v16797_v37  ;;  %v13167_v63 = vrot.slane %v4502_v2, %v16797_v37 }
 0x569   : > { %v4463_v58 = vpop.f32.mrf.mxu0  ;;  %v4504_v1 = vpop.f32.mrf.mxu1 }
 0x56b   : > { %v4464_v3 = vpop.f32.mrf.mxu0  ;;  %v4505_v18 = vpop.f32.mrf.mxu1 }
 0x56e   : > { %6275 = vmatmul.mubr.bf16.gmra.mxu0 %v5414_v31 }
 0x56f   : > { %6388 = vmatmul.mubr.bf16.gmra.mxu1 %v5414_v31  ;;  %6284 = vmatprep.mubr.bf16.mxu0 %v5417_v0 }
 0x570   : > { %6397 = vmatprep.mubr.bf16.mxu1 %v5417_v0 }
 0x576   : > { %6285 = vmatmul.mubr.bf16.gmra.mxu0 %v5416_v59 }
 0x577   : > { %6398 = vmatmul.mubr.bf16.gmra.mxu1 %v5416_v59  ;;  %6294 = vmatprep.mubr.bf16.mxu0 %v5419_v20 }
 0x578   : > { %6407 = vmatprep.mubr.bf16.mxu1 %v5419_v20 }
 0x57e   : > { %6295 = vmatmul.mubr.bf16.gmra.mxu0 %v5418_v38 }
 0x57f   : > { %6408 = vmatmul.mubr.bf16.gmra.mxu1 %v5418_v38  ;;  %6304 = vmatprep.mubr.bf16.mxu0 %v5421_v25 }
 0x580   : > { %6417 = vmatprep.mubr.bf16.mxu1 %v5421_v25 }
 0x586   : > { %6305 = vmatmul.mubr.bf16.gmra.mxu0 %v5420_v53 }
 0x587   : > { %6418 = vmatmul.mubr.bf16.gmra.mxu1 %v5420_v53  ;;  %6314 = vmatprep.mubr.bf16.mxu0 %v5423_v15 }
 0x588   : > { %6427 = vmatprep.mubr.bf16.mxu1 %v5423_v15 }
 0x58e   : > { %6315 = vmatmul.mubr.bf16.gmra.mxu0 %v5422_v9 }
 0x58f   : > { %6428 = vmatmul.mubr.bf16.gmra.mxu1 %v5422_v9  ;;  %6324 = vmatprep.mubr.bf16.mxu0 %v5425_v57 }
 0x590   : > { %6437 = vmatprep.mubr.bf16.mxu1 %v5425_v57 }
 0x596   : > { %6325 = vmatmul.mubr.bf16.gmra.mxu0 %v5424_v7 }
 0x597   : > { %6438 = vmatmul.mubr.bf16.gmra.mxu1 %v5424_v7  ;;  %6334 = vmatprep.mubr.bf16.mxu0 %v5427_v8 }
 0x598   : > { %6447 = vmatprep.mubr.bf16.mxu1 %v5427_v8 }
 0x59e   : > { %6335 = vmatmul.mubr.bf16.gmra.mxu0 %v5426_v12 }
 0x59f   : > { %6448 = vmatmul.mubr.bf16.gmra.mxu1 %v5426_v12 }
 0x5a5   : > { %v4877_v46 = vpop.f32.mrf.mxu0 }
 0x5a6   : > { %v4878_v32 = vadd.f32 %v4877_v46, %v13147_v17  ;;  %v4990_v6 = vpop.f32.mrf.mxu1 }
 0x5a7   : > { %v4991_v43 = vadd.f32 %v4990_v6, %v13153_v14  ;;  %v4879_v62 = vpop.f32.mrf.mxu0 }
 0x5a8   : > { %v5092_v4 = vadd.f32 %v13150_v22, %v4878_v32  ;;  %v4880_v5 = vadd.f32 %v4879_v62, %v13160_v23  ;;  %v4992_v49 = vpop.f32.mrf.mxu1 }
 0x5a9   : > { %v13177_v10 = vadd.f32 %v13157_v27, %v4991_v43  ;;  %v4993_v26 = vadd.f32 %v4992_v49, %v13167_v63  ;;  %v4881_v58 = vpop.f32.mrf.mxu0 }
 0x5aa   : > { %v5093_v2 = vadd.f32 %v13164_v13, %v4880_v5  ;;  %v4882_v1 = vadd.f32 %v4881_v58, %v13147_v17  ;;  %v4994_v3 = vpop.f32.mrf.mxu1  ;;  %vm5156_vm4 = vcmp.gt.f32.partialorder %v5092_v4, 0.0  ;;  %v5220_v18 = vmul.f32 0.1, %v5092_v4 }
 0x5ab   : > { %v13183_v31 = vadd.f32 %v13172_v60, %v4993_v26  ;;  %v4995_v24 = vadd.f32 %v4994_v3, %v13153_v14  ;;  %v4883_v29 = vpop.f32.mrf.mxu0 }
 0x5ac   : > { %v5096_v0 = vadd.f32 %v13150_v22, %v4882_v1  ;;  %v4884_v59 = vadd.f32 %v4883_v29, %v13160_v23  ;;  %v4996_v16 = vpop.f32.mrf.mxu1  ;;  %v13188_v36 = vsel %vm5156_vm4, %v5092_v4, %v5220_v18  ;;  %vm5157_vm12 = vcmp.gt.f32.partialorder %v5093_v2, 0.0 }
 0x5ad   : > { %16799 = vst [vmem:[#allocation112_spill] sm:$0xff] %v13183_v31  ;;  %v13191_v20 = vadd.f32 %v13157_v27, %v4995_v24  ;;  %v4997_v38 = vadd.f32 %v4996_v16, %v13167_v63  ;;  %v4887_v40 = vpop.f32.mrf.mxu0  ;;  %6737 = vxpose.xlu1.b32.start [1/16] %v13188_v36, 128  ;;  %v5221_v61 = vmul.f32 0.1, %v5093_v2 }
 0x5ae   : > { %v5097_v25 = vadd.f32 %v13164_v13, %v4884_v59  ;;  %v4888_v33 = vadd.f32 %v4887_v40, %v13147_v17  ;;  %v5000_v53 = vpop.f32.mrf.mxu1  ;;  %vm5160_vm10 = vcmp.gt.f32.partialorder %v5096_v0, 0.0  ;;  %v5224_v11 = vmul.f32 0.1, %v5096_v0 }
 0x5af   : > { %v13198_v56 = vadd.f32 %v13172_v60, %v4997_v38  ;;  %v5001_v15 = vadd.f32 %v5000_v53, %v13153_v14  ;;  %v4889_v30 = vpop.f32.mrf.mxu0  ;;  %v13201_v28 = vsel %vm5157_vm12, %v5093_v2, %v5221_v61 }
 0x5b0   : > { %v5100_v9 = vadd.f32 %v13150_v22, %v4888_v33  ;;  %v4890_v50 = vadd.f32 %v4889_v30, %v13160_v23  ;;  %v5002_v45 = vpop.f32.mrf.mxu1  ;;  %6769 = vxpose.xlu0.b32.start [1/16] %v13201_v28, 128  ;;  %v13206_v57 = vsel %vm5160_vm10, %v5096_v0, %v5224_v11  ;;  %vm5161_vm13 = vcmp.gt.f32.partialorder %v5097_v25, 0.0 }
 0x5b1   : > { %16800 = vst [vmem:[#allocation116_spill] sm:$0xff] %v13198_v56  ;;  %v13209_v21 = vadd.f32 %v13157_v27, %v5001_v15  ;;  %v5003_v47 = vadd.f32 %v5002_v45, %v13167_v63  ;;  %v4891_v7 = vpop.f32.mrf.mxu0  ;;  %6738 = vxpose.xlu1.b32.cont [2/16] %v13206_v57, 128  ;;  %v5225_v51 = vmul.f32 0.1, %v5097_v25  ;;  %v6929_v43 = vmax.f32 %v13188_v36, %v13206_v57 }
 0x5b2   : > { %v5101_v54 = vadd.f32 %v13164_v13, %v4890_v50  ;;  %v4892_v8 = vadd.f32 %v4891_v7, %v13147_v17  ;;  %v5004_v34 = vpop.f32.mrf.mxu1  ;;  %vm5164_vm9 = vcmp.gt.f32.partialorder %v5100_v9, 0.0  ;;  %v5228_v55 = vmul.f32 0.1, %v5100_v9 }
 0x5b3   : > { %v13216_v12 = vadd.f32 %v13172_v60, %v5003_v47  ;;  %v5005_v44 = vadd.f32 %v5004_v34, %v13153_v14  ;;  %v4893_v46 = vpop.f32.mrf.mxu0  ;;  %v13219_v32 = vsel %vm5161_vm13, %v5097_v25, %v5225_v51 }
 0x5b4   : > { %v5104_v6 = vadd.f32 %v13150_v22, %v4892_v8  ;;  %v4894_v62 = vadd.f32 %v4893_v46, %v13160_v23  ;;  %v5006_v4 = vpop.f32.mrf.mxu1  ;;  %6770 = vxpose.xlu0.b32.cont [2/16] %v13219_v32, 128  ;;  %v13226_v5 = vsel %vm5164_vm9, %v5100_v9, %v5228_v55  ;;  %v6950_v58 = vmax.f32 %v13201_v28, %v13219_v32 }
 0x5b5   : > { %16801 = vst [vmem:[#allocation120_spill] sm:$0xff] %v13216_v12  ;;  %v13229_v49 = vadd.f32 %v13157_v27, %v5005_v44  ;;  %v5007_v26 = vadd.f32 %v5006_v4, %v13167_v63  ;;  %v4897_v2 = vpop.f32.mrf.mxu0  ;;  %6739 = vxpose.xlu1.b32.cont [3/16] %v13226_v5, 128  ;;  %vm5165_vm14 = vcmp.gt.f32.partialorder %v5101_v54, 0.0  ;;  %v5229_v24 = vmul.f32 0.1, %v5101_v54 }
 0x5b6   : > { %v5105_v1 = vadd.f32 %v13164_v13, %v4894_v62  ;;  %v4898_v3 = vadd.f32 %v4897_v2, %v13147_v17  ;;  %v5010_v18 = vpop.f32.mrf.mxu1  ;;  %vm5168_vm6 = vcmp.gt.f32.partialorder %v5104_v6, 0.0  ;;  %v6930_v59 = vmax.f32 %v6929_v43, %v13226_v5 }
 0x5b7   : > { %v13238_v29 = vadd.f32 %v13172_v60, %v5007_v26  ;;  %v5011_v0 = vadd.f32 %v5010_v18, %v13153_v14  ;;  %v4899_v16 = vpop.f32.mrf.mxu0  ;;  %v5232_v38 = vmul.f32 0.1, %v5104_v6  ;;  %v13244_v33 = vsel %vm5165_vm14, %v5101_v54, %v5229_v24 }
 0x5b8   : > { %v5108_v40 = vadd.f32 %v13150_v22, %v4898_v3  ;;  %v4900_v61 = vadd.f32 %v4899_v16, %v13160_v23  ;;  %v5012_v25 = vpop.f32.mrf.mxu1  ;;  %vm5169_vm7 = vcmp.gt.f32.partialorder %v5105_v1, 0.0  ;;  %v6951_v15 = vmax.f32 %v6950_v58, %v13244_v33  ;;  %6771 = vxpose.xlu0.b32.cont [3/16] %v13244_v33, 128 }
 0x5b9   : > { %16802 = vst [vmem:[#allocation70_spill] sm:$0xff] %v13238_v29  ;;  %v13247_v53 = vadd.f32 %v13157_v27, %v5011_v0  ;;  %v5013_v11 = vadd.f32 %v5012_v25, %v13167_v63  ;;  %v4901_v30 = vpop.f32.mrf.mxu0  ;;  %v13253_v9 = vsel %vm5168_vm6, %v5104_v6, %v5232_v38  ;;  %v5233_v51 = vmul.f32 0.1, %v5105_v1 }
 0x5ba   : > { %v5109_v50 = vadd.f32 %v13164_v13, %v4900_v61  ;;  %v4902_v45 = vadd.f32 %v4901_v30, %v13147_v17  ;;  %v5014_v47 = vpop.f32.mrf.mxu1  ;;  %v6931_v7 = vmax.f32 %v6930_v59, %v13253_v9  ;;  %6740 = vxpose.xlu1.b32.cont [4/16] %v13253_v9, 128  ;;  %vm5172_vm11 = vcmp.gt.f32.partialorder %v5108_v40, 0.0 }
 0x5bb   : > { %v13260_v54 = vadd.f32 %v13172_v60, %v5013_v11  ;;  %v5015_v8 = vadd.f32 %v5014_v47, %v13153_v14  ;;  %v4903_v34 = vpop.f32.mrf.mxu0  ;;  %v5236_v55 = vmul.f32 0.1, %v5108_v40  ;;  %v13266_v43 = vsel %vm5169_vm7, %v5105_v1, %v5233_v51 }
 0x5bc   : > { %v5112_v44 = vadd.f32 %v13150_v22, %v4902_v45  ;;  %v4904_v46 = vadd.f32 %v4903_v34, %v13160_v23  ;;  %v5016_v6 = vpop.f32.mrf.mxu1  ;;  %vm5173_vm8 = vcmp.gt.f32.partialorder %v5109_v50, 0.0  ;;  %v6952_v26 = vmax.f32 %v6951_v15, %v13266_v43  ;;  %6772 = vxpose.xlu0.b32.cont [4/16] %v13266_v43, 128 }
 0x5bd   : > { %16803 = vst [vmem:[#allocation73_spill] sm:$0xff] %v13260_v54  ;;  %v13269_v62 = vadd.f32 %v13157_v27, %v5015_v8  ;;  %v5017_v4 = vadd.f32 %v5016_v6, %v13167_v63  ;;  %v4907_v58 = vpop.f32.mrf.mxu0  ;;  %v13274_v2 = vsel %vm5172_vm11, %v5108_v40, %v5236_v55  ;;  %v5237_v0 = vmul.f32 0.1, %v5109_v50 }
 0x5be   : > { %v5113_v3 = vadd.f32 %v13164_v13, %v4904_v46  ;;  %v4908_v18 = vadd.f32 %v4907_v58, %v13147_v17  ;;  %v5020_v24 = vpop.f32.mrf.mxu1  ;;  %v6932_v1 = vmax.f32 %v6931_v7, %v13274_v2  ;;  %6741 = vxpose.xlu1.b32.cont [5/16] %v13274_v2, 128  ;;  %vm5176_vm0 = vcmp.gt.f32.partialorder %v5112_v44, 0.0 }
 0x5bf   : > { %v13281_v59 = vadd.f32 %v13172_v60, %v5017_v4  ;;  %v5021_v16 = vadd.f32 %v5020_v24, %v13153_v14  ;;  %v4909_v38 = vpop.f32.mrf.mxu0  ;;  %v5240_v61 = vmul.f32 0.1, %v5112_v44  ;;  %v13287_v15 = vsel %vm5173_vm8, %v5109_v50, %v5237_v0 }
 0x5c0   : > { %v5116_v40 = vadd.f32 %v13150_v22, %v4908_v18  ;;  %v4910_v25 = vadd.f32 %v4909_v38, %v13160_v23  ;;  %v5022_v11 = vpop.f32.mrf.mxu1  ;;  %vm5177_vm5 = vcmp.gt.f32.partialorder %v5113_v3, 0.0  ;;  %v6953_v47 = vmax.f32 %v6952_v26, %v13287_v15  ;;  %6773 = vxpose.xlu0.b32.cont [5/16] %v13287_v15, 128 }
 0x5c1   : > { %16804 = vst [vmem:[#allocation77_spill] sm:$0xff] %v13281_v59  ;;  %v13290_v30 = vadd.f32 %v13157_v27, %v5021_v16  ;;  %v5023_v45 = vadd.f32 %v5022_v11, %v13167_v63  ;;  %v4911_v7 = vpop.f32.mrf.mxu0  ;;  %v13295_v51 = vsel %vm5176_vm0, %v5112_v44, %v5240_v61  ;;  %v5241_v46 = vmul.f32 0.1, %v5113_v3 }
 0x5c2   : > { %v5117_v8 = vadd.f32 %v13164_v13, %v4910_v25  ;;  %v4912_v34 = vadd.f32 %v4911_v7, %v13147_v17  ;;  %v5024_v55 = vpop.f32.mrf.mxu1  ;;  %v6933_v50 = vmax.f32 %v6932_v1, %v13295_v51  ;;  %6742 = vxpose.xlu1.b32.cont [6/16] %v13295_v51, 128  ;;  %vm5180_vm15 = vcmp.gt.f32.partialorder %v5116_v40, 0.0 }
 0x5c3   : > { %v13302_v6 = vadd.f32 %v13172_v60, %v5023_v45  ;;  %v5025_v4 = vadd.f32 %v5024_v55, %v13153_v14  ;;  %v4913_v26 = vpop.f32.mrf.mxu0  ;;  %v5244_v58 = vmul.f32 0.1, %v5116_v40  ;;  %v13308_v0 = vsel %vm5177_vm5, %v5113_v3, %v5241_v46 }
 0x5c4   : > { %v5120_v44 = vadd.f32 %v13150_v22, %v4912_v34  ;;  %v4914_v18 = vadd.f32 %v4913_v26, %v13160_v23  ;;  %v5026_v24 = vpop.f32.mrf.mxu1  ;;  %vm5181_vm2 = vcmp.gt.f32.partialorder %v5117_v8, 0.0  ;;  %v6954_v38 = vmax.f32 %v6953_v47, %v13308_v0  ;;  %6774 = vxpose.xlu0.b32.cont [6/16] %v13308_v0, 128 }
 0x5c5   : > { %16805 = vst [vmem:[#allocation80_spill] sm:$0xff] %v13302_v6  ;;  %v13311_v1 = vadd.f32 %v13157_v27, %v5025_v4  ;;  %v5027_v16 = vadd.f32 %v5026_v24, %v13167_v63  ;;  %v4917_v61 = vpop.f32.mrf.mxu0  ;;  %v13316_v25 = vsel %vm5180_vm15, %v5116_v40, %v5244_v58  ;;  %v5245_v34 = vmul.f32 0.1, %v5117_v8 }
 0x5c6   : > { %v5121_v11 = vadd.f32 %v13164_v13, %v4914_v18  ;;  %v4918_v45 = vadd.f32 %v4917_v61, %v13147_v17  ;;  %v5030_v7 = vpop.f32.mrf.mxu1  ;;  %v6934_v3 = vmax.f32 %v6933_v50, %v13316_v25  ;;  %6743 = vxpose.xlu1.b32.cont [7/16] %v13316_v25, 128  ;;  %vm5184_vm3 = vcmp.gt.f32.partialorder %v5120_v44, 0.0 }
 0x5c7   : > { %v13323_v55 = vadd.f32 %v13172_v60, %v5027_v16  ;;  %v5031_v47 = vadd.f32 %v5030_v7, %v13153_v14  ;;  %v4919_v46 = vpop.f32.mrf.mxu0  ;;  %v5248_v4 = vmul.f32 0.1, %v5120_v44  ;;  %v13329_v18 = vsel %vm5181_vm2, %v5117_v8, %v5245_v34 }
 0x5c8   : > { %v5124_v40 = vadd.f32 %v13150_v22, %v4918_v45  ;;  %v4920_v26 = vadd.f32 %v4919_v46, %v13160_v23  ;;  %v5032_v58 = vpop.f32.mrf.mxu1  ;;  %vm5185_vm1 = vcmp.gt.f32.partialorder %v5121_v11, 0.0  ;;  %v6955_v16 = vmax.f32 %v6954_v38, %v13329_v18  ;;  %6775 = vxpose.xlu0.b32.cont [7/16] %v13329_v18, 128 }
 0x5c9   : > { %16806 = vst [vmem:[#allocation127_spill] sm:$0xff] %v13323_v55  ;;  %v13332_v50 = vadd.f32 %v13157_v27, %v5031_v47  ;;  %v5033_v24 = vadd.f32 %v5032_v58, %v13167_v63  ;;  %v4921_v61 = vpop.f32.mrf.mxu0  ;;  %v13337_v7 = vsel %vm5184_vm3, %v5120_v44, %v5248_v4  ;;  %v5249_v34 = vmul.f32 0.1, %v5121_v11 }
 0x5ca   : > { %v5125_v45 = vadd.f32 %v13164_v13, %v4920_v26  ;;  %v4922_v46 = vadd.f32 %v4921_v61, %v13147_v17  ;;  %v5034_v19 = vpop.f32.mrf.mxu1  ;;  %v6935_v8 = vmax.f32 %v6934_v3, %v13337_v7  ;;  %6744 = vxpose.xlu1.b32.cont [8/16] %v13337_v7, 128  ;;  %vm5188_vm4 = vcmp.gt.f32.partialorder %v5124_v40, 0.0 }
 0x5cb   : > { %16807 = vst [vmem:[#allocation128_spill] sm:$0xff] %v13332_v50  ;;  %v13344_v47 = vadd.f32 %v13172_v60, %v5033_v24  ;;  %v5035_v38 = vadd.f32 %v5034_v19, %v13153_v14  ;;  %v4923_v58 = vpop.f32.mrf.mxu0  ;;  %v5252_v41 = vmul.f32 0.1, %v5124_v40  ;;  %v13350_v61 = vsel %vm5185_vm1, %v5121_v11, %v5249_v34 }
 0x5cc   : > { %v5128_v44 = vadd.f32 %v13150_v22, %v4922_v46  ;;  %v4924_v4 = vadd.f32 %v4923_v58, %v13160_v23  ;;  %v5036_v26 = vpop.f32.mrf.mxu1  ;;  %vm5189_vm12 = vcmp.gt.f32.partialorder %v5125_v45, 0.0  ;;  %v6956_v52 = vmax.f32 %v6955_v16, %v13350_v61  ;;  %6776 = vxpose.xlu0.b32.cont [8/16] %v13350_v61, 128 }
 0x5cd   : > { %16808 = vst [vmem:[#allocation126_spill] sm:$0xff] %v13344_v47  ;;  %v13353_v3 = vadd.f32 %v13157_v27, %v5035_v38  ;;  %v5037_v24 = vadd.f32 %v5036_v26, %v13167_v63  ;;  %v4927_v19 = vpop.f32.mrf.mxu0  ;;  %v13358_v39 = vsel %vm5188_vm4, %v5124_v40, %v5252_v41  ;;  %v5253_v34 = vmul.f32 0.1, %v5125_v45 }
 0x5ce   : > { %v5129_v46 = vadd.f32 %v13164_v13, %v4924_v4  ;;  %v4928_v58 = vadd.f32 %v4927_v19, %v13147_v17  ;;  %v5040_v48 = vpop.f32.mrf.mxu1  ;;  %v6936_v11 = vmax.f32 %v6935_v8, %v13358_v39  ;;  %6745 = vxpose.xlu1.b32.cont [9/16] %v13358_v39, 128  ;;  %vm5192_vm10 = vcmp.gt.f32.partialorder %v5128_v44, 0.0 }
 0x5cf   : > { %16809 = vst [vmem:[#allocation129_spill] sm:$0xff] %v13353_v3  ;;  %v13365_v38 = vadd.f32 %v13172_v60, %v5037_v24  ;;  %v5041_v16 = vadd.f32 %v5040_v48, %v13153_v14  ;;  %v4929_v26 = vpop.f32.mrf.mxu0  ;;  %v5256_v47 = vmul.f32 0.1, %v5128_v44  ;;  %v13371_v19 = vsel %vm5189_vm12, %v5125_v45, %v5253_v34 }
 0x5d0   : > { %v5132_v41 = vadd.f32 %v13150_v22, %v4928_v58  ;;  %v4930_v40 = vadd.f32 %v4929_v26, %v13160_v23  ;;  %v5042_v4 = vpop.f32.mrf.mxu1  ;;  %vm5193_vm13 = vcmp.gt.f32.partialorder %v5129_v46, 0.0  ;;  %6777 = vxpose.xlu0.b32.cont [9/16] %v13371_v19, 128  ;;  %v5257_v34 = vmul.f32 0.1, %v5129_v46 }
 0x5d1   : > { %16810 = vst [vmem:[#allocation125_spill] sm:$0xff] %v13365_v38  ;;  %v13374_v8 = vadd.f32 %v13157_v27, %v5041_v16  ;;  %v5043_v24 = vadd.f32 %v5042_v4, %v13167_v63  ;;  %v6957_v38 = vmax.f32 %v6956_v52, %v13371_v19  ;;  %v4931_v48 = vpop.f32.mrf.mxu0  ;;  %v13379_v55 = vsel %vm5192_vm10, %v5128_v44, %v5256_v47 }
 0x5d2   : > { %v5133_v58 = vadd.f32 %v13164_v13, %v4930_v40  ;;  %v4932_v26 = vadd.f32 %v4931_v48, %v13147_v17  ;;  %v5044_v6 = vpop.f32.mrf.mxu1  ;;  %v6937_v45 = vmax.f32 %v6936_v11, %v13379_v55  ;;  %6746 = vxpose.xlu1.b32.cont [10/16] %v13379_v55, 128  ;;  %vm5196_vm9 = vcmp.gt.f32.partialorder %v5132_v41, 0.0 }
 0x5d3   : > { %16811 = vst [vmem:[#allocation130_spill] sm:$0xff] %v13374_v8  ;;  %v13386_v16 = vadd.f32 %v13172_v60, %v5043_v24  ;;  %v5045_v52 = vadd.f32 %v5044_v6, %v13153_v14  ;;  %v4933_v4 = vpop.f32.mrf.mxu0  ;;  %v5260_v59 = vmul.f32 0.1, %v5132_v41  ;;  %v13392_v48 = vsel %vm5193_vm13, %v5129_v46, %v5257_v34 }
 0x5d4   : > { %v5136_v47 = vadd.f32 %v13150_v22, %v4932_v26  ;;  %v4934_v44 = vadd.f32 %v4933_v4, %v13160_v23  ;;  %v5046_v40 = vpop.f32.mrf.mxu1  ;;  %vm5197_vm14 = vcmp.gt.f32.partialorder %v5133_v58, 0.0  ;;  %6778 = vxpose.xlu0.b32.cont [10/16] %v13392_v48, 128  ;;  %v5261_v34 = vmul.f32 0.1, %v5133_v58 }
 0x5d5   : > { %16812 = vst [vmem:[#allocation104_spill] sm:$0xff] %v13386_v16  ;;  %v13395_v11 = vadd.f32 %v13157_v27, %v5045_v52  ;;  %v5047_v24 = vadd.f32 %v5046_v40, %v13167_v63  ;;  %v6958_v16 = vmax.f32 %v6957_v38, %v13392_v48  ;;  %v4937_v6 = vpop.f32.mrf.mxu0  ;;  %v13400_v54 = vsel %vm5196_vm9, %v5132_v41, %v5260_v59 }
 0x5d6   : > { %v5137_v26 = vadd.f32 %v13164_v13, %v4934_v44  ;;  %v4938_v4 = vadd.f32 %v4937_v6, %v13147_v17  ;;  %v5050_v29 = vpop.f32.mrf.mxu1  ;;  %v6938_v46 = vmax.f32 %v6937_v45, %v13400_v54  ;;  %6747 = vxpose.xlu1.b32.cont [11/16] %v13400_v54, 128  ;;  %vm5200_vm6 = vcmp.gt.f32.partialorder %v5136_v47, 0.0 }
 0x5d7   : > { %16813 = vst [vmem:[#allocation108_spill] sm:$0xff] %v13395_v11  ;;  %v13407_v52 = vadd.f32 %v13172_v60, %v5047_v24  ;;  %v5051_v38 = vadd.f32 %v5050_v29, %v13153_v14  ;;  %v4939_v40 = vpop.f32.mrf.mxu0  ;;  %v5264_v12 = vmul.f32 0.1, %v5136_v47  ;;  %v13413_v6 = vsel %vm5197_vm14, %v5133_v58, %v5261_v34 }
 0x5d8   : > { %v5140_v59 = vadd.f32 %v13150_v22, %v4938_v4  ;;  %v4940_v41 = vadd.f32 %v4939_v40, %v13160_v23  ;;  %v5052_v44 = vpop.f32.mrf.mxu1  ;;  %vm5201_vm7 = vcmp.gt.f32.partialorder %v5137_v26, 0.0  ;;  %6779 = vxpose.xlu0.b32.cont [11/16] %v13413_v6, 128  ;;  %v5265_v34 = vmul.f32 0.1, %v5137_v26 }
 0x5d9   : > { %16814 = vst [vmem:[#allocation110_spill] sm:$0xff] %v13407_v52  ;;  %v13416_v45 = vadd.f32 %v13157_v27, %v5051_v38  ;;  %v5053_v24 = vadd.f32 %v5052_v44, %v13167_v63  ;;  %v6959_v52 = vmax.f32 %v6958_v16, %v13413_v6  ;;  %v4941_v29 = vpop.f32.mrf.mxu0  ;;  %v13421_v31 = vsel %vm5200_vm6, %v5136_v47, %v5264_v12 }
 0x5da   : > { %v5141_v4 = vadd.f32 %v13164_v13, %v4940_v41  ;;  %v4942_v40 = vadd.f32 %v4941_v29, %v13147_v17  ;;  %v5054_v56 = vpop.f32.mrf.mxu1  ;;  %v6939_v58 = vmax.f32 %v6938_v46, %v13421_v31  ;;  %6748 = vxpose.xlu1.b32.cont [12/16] %v13421_v31, 128  ;;  %vm5204_vm11 = vcmp.gt.f32.partialorder %v5140_v59, 0.0 }
 0x5db   : > { %16815 = vst [vmem:[#allocation115_spill] sm:$0xff] %v13416_v45  ;;  %v13428_v38 = vadd.f32 %v13172_v60, %v5053_v24  ;;  %v5055_v16 = vadd.f32 %v5054_v56, %v13153_v14  ;;  %v4943_v44 = vpop.f32.mrf.mxu0  ;;  %v5268_v45 = vmul.f32 0.1, %v5140_v59  ;;  %v13434_v29 = vsel %vm5201_vm7, %v5137_v26, %v5265_v34 }
 0x5dc   : > { %v5144_v12 = vadd.f32 %v13150_v22, %v4942_v40  ;;  %v4944_v47 = vadd.f32 %v4943_v44, %v13160_v23  ;;  %v5056_v41 = vpop.f32.mrf.mxu1  ;;  %vm5205_vm8 = vcmp.gt.f32.partialorder %v5141_v4, 0.0  ;;  %6780 = vxpose.xlu0.b32.cont [12/16] %v13434_v29, 128  ;;  %v5269_v34 = vmul.f32 0.1, %v5141_v4 }
 0x5dd   : > { %16816 = vst [vmem:[#allocation118_spill] sm:$0xff] %v13428_v38  ;;  %v13437_v46 = vadd.f32 %v13157_v27, %v5055_v16  ;;  %v5057_v24 = vadd.f32 %v5056_v41, %v13167_v63  ;;  %v6960_v38 = vmax.f32 %v6959_v52, %v13434_v29  ;;  %v4947_v56 = vpop.f32.mrf.mxu0  ;;  %v13442_v11 = vsel %vm5204_vm11, %v5140_v59, %v5268_v45 }
 0x5de   : > { %v5145_v40 = vadd.f32 %v13164_v13, %v4944_v47  ;;  %v4948_v44 = vadd.f32 %v4947_v56, %v13147_v17  ;;  %v5060_v8 = vpop.f32.mrf.mxu1  ;;  %v6940_v26 = vmax.f32 %v6939_v58, %v13442_v11  ;;  %6749 = vxpose.xlu1.b32.cont [13/16] %v13442_v11, 128  ;;  %vm5208_vm0 = vcmp.gt.f32.partialorder %v5144_v12, 0.0 }
 0x5df   : > { %16817 = vst [vmem:[#allocation119_spill] sm:$0xff] %v13437_v46  ;;  %v13449_v16 = vadd.f32 %v13172_v60, %v5057_v24  ;;  %v5061_v52 = vadd.f32 %v5060_v8, %v13153_v14  ;;  %v4949_v41 = vpop.f32.mrf.mxu0  ;;  %v5272_v46 = vmul.f32 0.1, %v5144_v12  ;;  %v13455_v56 = vsel %vm5205_vm8, %v5141_v4, %v5269_v34 }
 0x5e0   : > { %v5148_v59 = vadd.f32 %v13150_v22, %v4948_v44  ;;  %v4950_v45 = vadd.f32 %v4949_v41, %v13160_v23  ;;  %v5062_v47 = vpop.f32.mrf.mxu1  ;;  %vm5209_vm5 = vcmp.gt.f32.partialorder %v5145_v40, 0.0  ;;  %6781 = vxpose.xlu0.b32.cont [13/16] %v13455_v56, 128  ;;  %v5273_v34 = vmul.f32 0.1, %v5145_v40 }
 0x5e1   : > { %16818 = vst [vmem:[#allocation122_spill] sm:$0xff] %v13449_v16  ;;  %v13458_v58 = vadd.f32 %v13157_v27, %v5061_v52  ;;  %v5063_v24 = vadd.f32 %v5062_v47, %v13167_v63  ;;  %v6961_v16 = vmax.f32 %v6960_v38, %v13455_v56  ;;  %v4951_v8 = vpop.f32.mrf.mxu0  ;;  %v13463_v3 = vsel %vm5208_vm0, %v5144_v12, %v5272_v46 }
 0x5e2   : > { %v5149_v44 = vadd.f32 %v13164_v13, %v4950_v45  ;;  %v4952_v41 = vadd.f32 %v4951_v8, %v13147_v17  ;;  %v5064_v50 = vpop.f32.mrf.mxu1  ;;  %v6941_v4 = vmax.f32 %v6940_v26, %v13463_v3  ;;  %6750 = vxpose.xlu1.b32.cont [14/16] %v13463_v3, 128  ;;  %vm5212_vm15 = vcmp.gt.f32.partialorder %v5148_v59, 0.0 }
 0x5e3   : > { %16819 = vst [vmem:[#allocation121_spill] sm:$0xff] %v13458_v58  ;;  %v13470_v52 = vadd.f32 %v13172_v60, %v5063_v24  ;;  %v5065_v38 = vadd.f32 %v5064_v50, %v13153_v14  ;;  %v4953_v47 = vpop.f32.mrf.mxu0  ;;  %v5276_v58 = vmul.f32 0.1, %v5148_v59  ;;  %v13476_v17 = vsel %vm5209_vm5, %v5145_v40, %v5273_v34 }
 0x5e4   : > { %v5152_v12 = vadd.f32 %v13150_v22, %v4952_v41  ;;  %v4954_v46 = vadd.f32 %v4953_v47, %v13160_v23  ;;  %v5066_v45 = vpop.f32.mrf.mxu1  ;;  %vm5213_vm2 = vcmp.gt.f32.partialorder %v5149_v44, 0.0  ;;  %v6962_v8 = vmax.f32 %v6961_v16, %v13476_v17  ;;  %6782 = vxpose.xlu0.b32.cont [14/16] %v13476_v17, 128 }
 0x5e5   : > { %16820 = vst [vmem:[#allocation132_spill] sm:$0xff] %v13470_v52  ;;  %v13479_v26 = vadd.f32 %v13157_v27, %v5065_v38  ;;  %v5067_v24 = vadd.f32 %v5066_v45, %v13167_v63  ;;  %v13484_v14 = vsel %vm5212_vm15, %v5148_v59, %v5276_v58  ;;  %v5277_v40 = vmul.f32 0.1, %v5149_v44 }
 0x5e6   : > { %v5153_v22 = vadd.f32 %v13164_v13, %v4954_v46  ;;  %v13487_v50 = vpop.f32.mrf.mxu0  ;;  %v6942_v23 = vmax.f32 %v6941_v4, %v13484_v14  ;;  %6751 = vxpose.xlu1.b32.cont [15/16] %v13484_v14, 128  ;;  %vm5216_vm3 = vcmp.gt.f32.partialorder %v5152_v12, 0.0  ;;  %v5280_v41 = vmul.f32 0.1, %v5152_v12 }
 0x5e7   : > { %16821 = vst [vmem:[#allocation124_spill] sm:$0xff] %v13479_v26  ;;  %v13492_v27 = vadd.f32 %v13172_v60, %v5067_v24  ;;  %v5889_v63 = vpop.f32.mrf.mxu1  ;;  %v13495_v34 = vsel %vm5213_vm2, %v5149_v44, %v5277_v40  ;;  %vm5158_vm4 = vcmp.gt.f32.partialorder %v13177_v10, 0.0  ;;  %vm5162_vm12 = vcmp.gt.f32.partialorder %v13191_v20, 0.0 }
 0x5e8   : > { %v5850_v16 = vpop.f32.mrf.mxu0  ;;  %vm5217_vm1 = vcmp.gt.f32.partialorder %v5153_v22, 0.0  ;;  %v5281_v59 = vmul.f32 0.1, %v5153_v22  ;;  %v6963_v58 = vmax.f32 %v6962_v8, %v13495_v34  ;;  %6783 = vxpose.xlu0.b32.cont [15/16] %v13495_v34, 128  ;;  %v13501_v4 = vsel %vm5216_vm3, %v5152_v12, %v5280_v41 }
 0x5e9   : > { %16822 = vst [vmem:[#allocation134_spill] sm:$0xff] %v13492_v27  ;;  %v13497_v13 = vpop.f32.mrf.mxu1  ;;  %v6943_v60 = vmax.f32 %v6942_v23, %v13501_v4  ;;  %vm5166_vm3 = vcmp.gt.f32.partialorder %v13209_v21, 0.0  ;;  %vm5174_vm15 = vcmp.gt.f32.partialorder %v13247_v53, 0.0 }
 0x5ea   : > { %16823 = vst [vmem:[#allocation133_spill] sm:$0xff] %v13497_v13  ;;  %v5852_v38 = vpop.f32.mrf.mxu0  ;;  %6752 = vxpose.xlu1.b32.end [16/16] %v13501_v4, 128  ;;  %v13505_v47 = vsel %vm5217_vm1, %v5153_v22, %v5281_v59  ;;  %v5222_v22 = vmul.f32 0.1, %v13177_v10  ;;  %v5226_v59 = vmul.f32 0.1, %v13191_v20 }
 0x5eb   : > { %v5893_v46 = vpop.f32.mrf.mxu1  ;;  %v6964_v44 = vmax.f32 %v6963_v58, %v13505_v47  ;;  %v6944_v45 = vrot.slane %v6943_v60, 4  ;;  %v5230_v58 = vmul.f32 0.1, %v13209_v21 }
 0x5ec   : > { %v5853_v24 = vpop.f32.mrf.mxu0  ;;  %6784 = vxpose.xlu0.b32.end [16/16] %v13505_v47, 128  ;;  %v13558_v46 = vsel %vm5162_vm12, %v13191_v20, %v5226_v59  ;;  %v13577_v20 = vrot.slane %v13487_v50, %v16797_v37  ;;  %v5234_v50 = vmul.f32 0.1, %v13229_v49 }
 0x5ed   : > { %v5894_v40 = vpop.f32.mrf.mxu1  ;;  %v6965_v27 = vrot.slane %v6964_v44, 4  ;;  %v6945_v8 = vmax.f32 %v6943_v60, %v6944_v45  ;;  %v13553_v60 = vsel %vm5158_vm4, %v13177_v10, %v5222_v22  ;;  %16827 = vst [vmem:[#allocation138_spill] sm:$0xff] %v13558_v46  ;;  %v16828_v45 = vld [vmem:[#allocation37_spill] sm:$0xff]  ;;  %vm5170_vm4 = vcmp.gt.f32.partialorder %v13229_v49, 0.0 }
 0x5ee   : > { %16826 = vst [vmem:[#allocation137_spill] sm:$0xff] %v13553_v60  ;;  %v13583_v40 = vrot.slane %v5850_v16, %v16797_v37 }
 0x5ef   : > { %v6966_v52 = vmax.f32 %v6964_v44, %v6965_v27  ;;  %v6946_v12 = vrot.slane %v6945_v8, 2 }
 0x5f1   : > { %v6967_v41 = vrot.slane %v6966_v52, 2  ;;  %v6947_v38 = vmax.f32 %v6945_v8, %v6946_v12  ;;  %v13593_v12 = vsel %vm5166_vm3, %v13209_v21, %v5230_v58  ;;  %v5238_v58 = vmul.f32 0.1, %v13247_v53 }
 0x5f2   : > { %16830 = vst [vmem:[#allocation139_spill] sm:$0xff] %v13593_v12 }
 0x5f3   : > { %v6948_v26 = vrot.slane %v6947_v38, 1  ;;  %v6968_v23 = vmax.f32 %v6966_v52, %v6967_v41 }
 0x5f5   : > { %v13509_v13 = vmax.f32 %v6947_v38, %v6948_v26  ;;  %v6969_v52 = vrot.slane %v6968_v23, 1  ;;  %v13538_v26 = vld [vmem:[#allocation14 + $0x6] ss:$8 sm:$0xf] }
 0x5f6   : > { %v13573_v24 = vrot.slane %v13538_v26, %v16797_v37  ;;  %v16832_v38 = vld [vmem:[#allocation46_spill] sm:$0xff] }
 0x5f7   : > { %16824 = vst [vmem:[#allocation136_spill] sm:$0xff] %v13509_v13  ;;  %vm7013_vm10 = vcmp.eq.f32.partialorder %v13188_v36, %v13509_v13  ;;  %vm7017_vm13 = vcmp.eq.f32.partialorder %v13206_v57, %v13509_v13  ;;  %vm7025_vm9 = vcmp.eq.f32.partialorder %v13253_v9, %v13509_v13  ;;  %vm7029_vm14 = vcmp.eq.f32.partialorder %v13274_v2, %v13509_v13  ;;  %v16833_v9 = vld [vmem:[#allocation38_spill] sm:$0xff] }
 0x5f8   : > { %vm7033_vm6 = vcmp.eq.f32.partialorder %v13295_v51, %v13509_v13  ;;  %vm7037_vm7 = vcmp.eq.f32.partialorder %v13316_v25, %v13509_v13  ;;  %vm7041_vm11 = vcmp.eq.f32.partialorder %v13337_v7, %v13509_v13  ;;  %vm7045_vm8 = vcmp.eq.f32.partialorder %v13358_v39, %v13509_v13  ;;  %v16839_v7 = vld [vmem:[#allocation40_spill] sm:$0xff] }
 0x5f9   : > { %v13548_v27 = vmax.f32 %v6968_v23, %v6969_v52  ;;  %vm7021_vm1 = vcmp.eq.f32.partialorder %v13226_v5, %v13509_v13  ;;  %v7077_v44 = vsel %vm7013_vm10, %v16796_v35, 128  ;;  %v7081_v10 = vsel %vm7017_vm13, %v16828_v45, 128 }
 0x5fa   : > { %v13580_v5 = vrot.slane %v5889_v63, %v16797_v37  ;;  %v16829_v36 = vsub.s32 2, %v16796_v35  ;;  %v6971_v57 = vmax.f32 %v13553_v60, %v13558_v46  ;;  %v16831_v63 = vld [vmem:[#allocation45_spill] sm:$0xff]  ;;  %v7089_v16 = vsel %vm7025_vm9, %v16832_v38, 128 }
 0x5fb   : > { %16825 = vst [vmem:[#allocation135_spill] sm:$0xff] %v13548_v27  ;;  %v7085_v41 = vsel %vm7021_vm1, %v16831_v63, 128  ;;  %vm7141_vm12 = vcmp.lt.s32.totalorder %v7077_v44, %v7081_v10  ;;  %vm7014_vm10 = vcmp.eq.f32.partialorder %v13201_v28, %v13548_v27  ;;  %vm7018_vm13 = vcmp.eq.f32.partialorder %v13219_v32, %v13548_v27 }
 0x5fc   : > { %v13588_v8 = vrot.slane %v13538_v26, %v16829_v36  ;;  %v7142_v23 = vsel %vm7141_vm12, %v7077_v44, %v7081_v10  ;;  %vm7050_vm12 = vcmp.eq.f32.partialorder %v13392_v48, %v13548_v27  ;;  %vm7054_vm5 = vcmp.eq.f32.partialorder %v13413_v6, %v13548_v27  ;;  %v16834_v10 = vld [vmem:[#allocation39_spill] sm:$0xff] }
 0x5fd   : > { %vm7143_vm1 = vcmp.lt.s32.totalorder %v7142_v23, %v7085_v41  ;;  %vm7062_vm2 = vcmp.eq.f32.partialorder %v13455_v56, %v13548_v27  ;;  %vm7066_vm9 = vcmp.eq.f32.partialorder %v13476_v17, %v13548_v27  ;;  %v7093_v22 = vsel %vm7029_vm14, %v16833_v9, 128 }
 0x5fe   : > { %v7144_v21 = vsel %vm7143_vm1, %v7142_v23, %v7085_v41  ;;  %vm7074_vm1 = vcmp.eq.f32.partialorder %v13505_v47, %v13548_v27  ;;  %v13637_v52 = vrot.slane %v13538_v26, %v16798_v42  ;;  %v6972_v44 = vmax.f32 %v6971_v57, %v13593_v12  ;;  %v16836_v57 = vld [vmem:[#allocation47_spill] sm:$0xff] }
 0x5ff   : > { %vm7145_vm3 = vcmp.lt.s32.totalorder %v7144_v21, %v7089_v16  ;;  %v7097_v2 = vsel %vm7033_vm6, %v16834_v10, 128  ;;  %v7078_v41 = vsel %vm7014_vm10, %v16796_v35, 128  ;;  %v7082_v42 = vsel %vm7018_vm13, %v16828_v45, 128 }
 0x600   : > { %v7146_v59 = vsel %vm7145_vm3, %v7144_v21, %v7089_v16  ;;  %vm7022_vm3 = vcmp.eq.f32.partialorder %v13244_v33, %v13548_v27  ;;  %v13658_v51 = vsel %vm5170_vm4, %v13229_v49, %v5234_v50  ;;  %vm5178_vm6 = vcmp.gt.f32.partialorder %v13269_v62, 0.0  ;;  %v16838_v21 = vld [vmem:[#allocation48_spill] sm:$0xff] }
 0x601   : > { %vm7147_vm0 = vcmp.lt.s32.totalorder %v7146_v59, %v7093_v22  ;;  %16835 = vst [vmem:[#allocation140_spill] sm:$0xff] %v13658_v51  ;;  %v7101_v28 = vsel %vm7037_vm7, %v16836_v57, 128  ;;  %v13666_v32 = vsel %vm5174_vm15, %v13247_v53, %v5238_v58  ;;  %v5242_v23 = vmul.f32 0.1, %v13269_v62 }
 0x602   : > { %v7148_v36 = vsel %vm7147_vm0, %v7146_v59, %v7093_v22  ;;  %16837 = vst [vmem:[#allocation57_spill] sm:$0xff] %v13666_v32  ;;  %v7105_v33 = vsel %vm7041_vm11, %v16838_v21, 128  ;;  %vm7026_vm4 = vcmp.eq.f32.partialorder %v13266_v43, %v13548_v27  ;;  %vm7180_vm10 = vcmp.lt.s32.totalorder %v7078_v41, %v7082_v42 }
 0x603   : > { %vm7149_vm14 = vcmp.lt.s32.totalorder %v7148_v36, %v7097_v2  ;;  %v7086_v25 = vsel %vm7022_vm3, %v16831_v63, 128  ;;  %v7181_v50 = vsel %vm7180_vm10, %v7078_v41, %v7082_v42  ;;  %v6973_v22 = vmax.f32 %v6972_v44, %v13658_v51  ;;  %v16840_v41 = vld [vmem:[#allocation41_spill] sm:$0xff] }
 0x604   : > { %v7150_v16 = vsel %vm7149_vm14, %v7148_v36, %v7097_v2  ;;  %vm7182_vm15 = vcmp.lt.s32.totalorder %v7181_v50, %v7086_v25  ;;  %vm5182_vm13 = vcmp.gt.f32.partialorder %v13290_v30, 0.0  ;;  %v7109_v59 = vsel %vm7045_vm8, %v16839_v7, 128 }
 0x605   : > { %vm7151_vm0 = vcmp.lt.s32.totalorder %v7150_v16, %v7101_v28  ;;  %v7090_v58 = vsel %vm7026_vm4, %v16832_v38, 128  ;;  %v7183_v2 = vsel %vm7182_vm15, %v7181_v50, %v7086_v25  ;;  %v5246_v36 = vmul.f32 0.1, %v13290_v30 }
 0x606   : > { %v7152_v49 = vsel %vm7151_vm0, %v7150_v16, %v7101_v28  ;;  %vm7184_vm14 = vcmp.lt.s32.totalorder %v7183_v2, %v7090_v58  ;;  %vm5186_vm3 = vcmp.gt.f32.partialorder %v13311_v1, 0.0  ;;  %vm16841_vm0 = vcmp.eq.f32.partialorder %v13379_v55, %v13509_v13 }
 0x607   : > { %vm7153_vm7 = vcmp.lt.s32.totalorder %v7152_v49, %v7105_v33  ;;  %v7113_v44 = vsel %vm16841_vm0, %v16840_v41, 128  ;;  %vm16842_vm8 = vcmp.eq.f32.partialorder %v13287_v15, %v13548_v27  ;;  %v7185_v28 = vsel %vm7184_vm14, %v7183_v2, %v7090_v58 }
 0x608   : > { %v7154_v43 = vsel %vm7153_vm7, %v7152_v49, %v7105_v33  ;;  %v7094_v39 = vsel %vm16842_vm8, %v16833_v9, 128  ;;  %v13698_v16 = vsel %vm5178_vm6, %v13269_v62, %v5242_v23  ;;  %v5250_v33 = vmul.f32 0.1, %v13311_v1  ;;  %v16844_v49 = vld [vmem:[#allocation49_spill] sm:$0xff]  ;;  %v16847_v62 = vld [vmem:[#allocation128_spill] sm:$0xff]  ;;  %v16848_v23 = vld [vmem:[#allocation50_spill] sm:$0xff] }
 0x609   : > { %vm7155_vm11 = vcmp.lt.s32.totalorder %v7154_v43, %v7109_v59  ;;  %vm7186_vm10 = vcmp.lt.s32.totalorder %v7185_v28, %v7094_v39  ;;  %16843 = vst [vmem:[#allocation59_spill] sm:$0xff] %v13698_v16  ;;  %vm16845_vm7 = vcmp.eq.f32.partialorder %v13400_v54, %v13509_v13  ;;  %vm16846_vm15 = vcmp.eq.f32.partialorder %v13308_v0, %v13548_v27 }
 0x60a   : > { %v7156_v42 = vsel %vm7155_vm11, %v7154_v43, %v7109_v59  ;;  %v7117_v55 = vsel %vm16845_vm7, %v16844_v49, 128  ;;  %v7098_v15 = vsel %vm16846_vm15, %v16834_v10, 128  ;;  %v7187_v50 = vsel %vm7186_vm10, %v7185_v28, %v7094_v39  ;;  %v16857_v28 = vld [vmem:[#allocation43_spill] sm:$0xff] }
 0x60b   : > { %vm7157_vm4 = vcmp.lt.s32.totalorder %v7156_v42, %v7113_v44  ;;  %vm7188_vm14 = vcmp.lt.s32.totalorder %v7187_v50, %v7098_v15  ;;  %v6974_v59 = vmax.f32 %v6973_v22, %v13666_v32  ;;  %vm5190_vm6 = vcmp.gt.f32.partialorder %v16847_v62, 0.0 }
 0x60c   : > { %v7158_v25 = vsel %vm7157_vm4, %v7156_v42, %v7113_v44  ;;  %vm16849_vm0 = vcmp.eq.f32.partialorder %v13421_v31, %v13509_v13  ;;  %vm16850_vm8 = vcmp.eq.f32.partialorder %v13329_v18, %v13548_v27  ;;  %v7189_v0 = vsel %vm7188_vm14, %v7187_v50, %v7098_v15  ;;  %v16852_v44 = vld [vmem:[#allocation42_spill] sm:$0xff] }
 0x60d   : > { %vm7159_vm11 = vcmp.lt.s32.totalorder %v7158_v25, %v7117_v55  ;;  %v7121_v43 = vsel %vm16849_vm0, %v16848_v23, 128  ;;  %v7102_v58 = vsel %vm16850_vm8, %v16836_v57, 128  ;;  %v13722_v22 = vsel %vm5182_vm13, %v13290_v30, %v5246_v36  ;;  %v16856_v36 = vld [vmem:[#allocation129_spill] sm:$0xff] }
 0x60e   : > { %v7160_v54 = vsel %vm7159_vm11, %v7158_v25, %v7117_v55  ;;  %vm7190_vm10 = vcmp.lt.s32.totalorder %v7189_v0, %v7102_v58  ;;  %16851 = vst [vmem:[#allocation58_spill] sm:$0xff] %v13722_v22  ;;  %v5254_v2 = vmul.f32 0.1, %v16847_v62  ;;  %vm16853_vm7 = vcmp.eq.f32.partialorder %v13442_v11, %v13509_v13 }
 0x60f   : > { %vm7161_vm4 = vcmp.lt.s32.totalorder %v7160_v54, %v7121_v43  ;;  %v7125_v31 = vsel %vm16853_vm7, %v16852_v44, 128  ;;  %vm16854_vm15 = vcmp.eq.f32.partialorder %v13350_v61, %v13548_v27  ;;  %v7191_v39 = vsel %vm7190_vm10, %v7189_v0, %v7102_v58  ;;  %v16864_v58 = vld [vmem:[#allocation52_spill] sm:$0xff] }
 0x610   : > { %v7162_v42 = vsel %vm7161_vm4, %v7160_v54, %v7121_v43  ;;  %v7106_v18 = vsel %vm16854_vm15, %v16838_v21, 128  ;;  %v13736_v30 = vsel %vm5186_vm3, %v13311_v1, %v5250_v33  ;;  %vm5194_vm13 = vcmp.gt.f32.partialorder %v16856_v36, 0.0  ;;  %v16860_v33 = vld [vmem:[#allocation51_spill] sm:$0xff]  ;;  %v16863_v54 = vld [vmem:[#allocation130_spill] sm:$0xff] }
 0x611   : > { %vm7163_vm11 = vcmp.lt.s32.totalorder %v7162_v42, %v7125_v31  ;;  %vm7192_vm14 = vcmp.lt.s32.totalorder %v7191_v39, %v7106_v18  ;;  %16855 = vst [vmem:[#allocation53_spill] sm:$0xff] %v13736_v30  ;;  %vm16858_vm0 = vcmp.eq.f32.partialorder %v13463_v3, %v13509_v13  ;;  %vm16859_vm8 = vcmp.eq.f32.partialorder %v13371_v19, %v13548_v27 }
 0x612   : > { %v7129_v11 = vsel %vm16858_vm0, %v16857_v28, 128  ;;  %v7164_v55 = vsel %vm7163_vm11, %v7162_v42, %v7125_v31  ;;  %v7110_v61 = vsel %vm16859_vm8, %v16839_v7, 128  ;;  %v7193_v25 = vsel %vm7192_vm14, %v7191_v39, %v7106_v18 }
 0x613   : > { %vm7165_vm4 = vcmp.lt.s32.totalorder %v7164_v55, %v7129_v11  ;;  %vm7194_vm10 = vcmp.lt.s32.totalorder %v7193_v25, %v7110_v61  ;;  %v6975_v15 = vmax.f32 %v6974_v59, %v13698_v16  ;;  %v5258_v1 = vmul.f32 0.1, %v16856_v36 }
 0x614   : > { %vm16861_vm3 = vcmp.eq.f32.partialorder %v13484_v14, %v13509_v13  ;;  %v7166_v3 = vsel %vm7165_vm4, %v7164_v55, %v7129_v11  ;;  %v7114_v43 = vsel %vm7050_vm12, %v16840_v41, 128  ;;  %v7195_v19 = vsel %vm7194_vm10, %v7193_v25, %v7110_v61  ;;  %v16868_v55 = vld [vmem:[#allocation108_spill] sm:$0xff] }
 0x615   : > { %v7133_v50 = vsel %vm16861_vm3, %v16860_v33, 128  ;;  %vm7196_vm15 = vcmp.lt.s32.totalorder %v7195_v19, %v7114_v43  ;;  %v13760_v59 = vsel %vm5190_vm6, %v16847_v62, %v5254_v2  ;;  %vm5198_vm11 = vcmp.gt.f32.partialorder %v16863_v54, 0.0 }
 0x616   : > { %vm7167_vm7 = vcmp.lt.s32.totalorder %v7166_v3, %v7133_v50  ;;  %16862 = vst [vmem:[#allocation65_spill] sm:$0xff] %v13760_v59  ;;  %vm16865_vm14 = vcmp.eq.f32.partialorder %v13501_v4, %v13509_v13  ;;  %v7118_v48 = vsel %vm7054_vm5, %v16844_v49, 128  ;;  %v7197_v31 = vsel %vm7196_vm15, %v7195_v19, %v7114_v43 }
 0x617   : > { %v7137_v14 = vsel %vm16865_vm14, %v16864_v58, 128  ;;  %v7168_v0 = vsel %vm7167_vm7, %v7166_v3, %v7133_v50  ;;  %vm7198_vm0 = vcmp.lt.s32.totalorder %v7197_v31, %v7118_v48  ;;  %v6976_v42 = vmax.f32 %v6975_v15, %v13722_v22  ;;  %v16869_v15 = vld [vmem:[#allocation115_spill] sm:$0xff] }
 0x618   : > { %vm7169_vm12 = vcmp.lt.s32.totalorder %v7168_v0, %v7137_v14  ;;  %v5262_v62 = vmul.f32 0.1, %v16863_v54  ;;  %vm16866_vm6 = vcmp.eq.f32.partialorder %v13434_v29, %v13548_v27  ;;  %v7199_v18 = vsel %vm7198_vm0, %v7197_v31, %v7118_v48 }
 0x619   : > { %v7170_v2 = vsel %vm7169_vm12, %v7168_v0, %v7137_v14  ;;  %v7122_v4 = vsel %vm16866_vm6, %v16848_v23, 128  ;;  %v13780_v39 = vsel %vm5194_vm13, %v16856_v36, %v5258_v1  ;;  %v6977_v11 = vmax.f32 %v6976_v42, %v13736_v30  ;;  %v16871_v0 = vld [vmem:[#allocation119_spill] sm:$0xff] }
 0x61a   : > { %16867 = vst [vmem:[#allocation60_spill] sm:$0xff] %v13780_v39  ;;  %v7171_v6 = vrot.slane %v7170_v2, 4  ;;  %vm7200_vm5 = vcmp.lt.s32.totalorder %v7199_v18, %v7122_v4  ;;  %vm5202_vm8 = vcmp.gt.f32.partialorder %v16868_v55, 0.0  ;;  %v7126_v61 = vsel %vm7062_vm2, %v16852_v44, 128 }
 0x61b   : > { %v7201_v25 = vsel %vm7200_vm5, %v7199_v18, %v7122_v4  ;;  %v5266_v29 = vmul.f32 0.1, %v16868_v55  ;;  %vm5206_vm4 = vcmp.gt.f32.partialorder %v16869_v15, 0.0  ;;  %v6978_v36 = vmax.f32 %v6977_v11, %v13760_v59  ;;  %v16875_v18 = vld [vmem:[#allocation121_spill] sm:$0xff] }
 0x61c   : > { %vm7172_vm10 = vcmp.lt.s32.totalorder %v7170_v2, %v7171_v6  ;;  %vm7202_vm3 = vcmp.lt.s32.totalorder %v7201_v25, %v7126_v61  ;;  %v13794_v1 = vsel %vm5198_vm11, %v16863_v54, %v5262_v62  ;;  %v7130_v56 = vsel %vm7066_vm9, %v16857_v28, 128  ;;  %v16876_v11 = vld [vmem:[#allocation133_spill] sm:$0xff] }
 0x61d   : > { %16870 = vst [vmem:[#allocation61_spill] sm:$0xff] %v13794_v1  ;;  %v7173_v50 = vsel %vm7172_vm10, %v7170_v2, %v7171_v6  ;;  %v7203_v3 = vsel %vm7202_vm3, %v7201_v25, %v7126_v61  ;;  %v5270_v43 = vmul.f32 0.1, %v16869_v15  ;;  %v6979_v14 = vmax.f32 %v6978_v36, %v13780_v39 }
 0x61e   : > { %v7174_v19 = vrot.slane %v7173_v50, 2  ;;  %vm7204_vm2 = vcmp.lt.s32.totalorder %v7203_v3, %v7130_v56  ;;  %vm5210_vm13 = vcmp.gt.f32.partialorder %v16871_v0, 0.0  ;;  %vm16872_vm7 = vcmp.eq.f32.partialorder %v13495_v34, %v13548_v27 }
 0x61f   : > { %v7134_v54 = vsel %vm16872_vm7, %v16860_v33, 128  ;;  %v7205_v48 = vsel %vm7204_vm2, %v7203_v3, %v7130_v56  ;;  %v13810_v17 = vsel %vm5202_vm8, %v16868_v55, %v5266_v29  ;;  %v5274_v31 = vmul.f32 0.1, %v16871_v0 }
 0x620   : > { %16873 = vst [vmem:[#allocation67_spill] sm:$0xff] %v13810_v17  ;;  %vm7175_vm9 = vcmp.lt.s32.totalorder %v7173_v50, %v7174_v19  ;;  %v7138_v42 = vsel %vm7074_vm1, %v16864_v58, 128  ;;  %vm7206_vm15 = vcmp.lt.s32.totalorder %v7205_v48, %v7134_v54  ;;  %v6980_v62 = vmax.f32 %v6979_v14, %v13794_v1 }
 0x621   : > { %v13818_v2 = vsel %vm7175_vm9, %v7173_v50, %v7174_v19  ;;  %v7207_v34 = vsel %vm7206_vm15, %v7205_v48, %v7134_v54  ;;  %v13823_v4 = vsel %vm5206_vm4, %v16869_v15, %v5270_v43  ;;  %v5278_v6 = vmul.f32 0.1, %v16875_v18 }
 0x622   : > { %16874 = vst [vmem:[#allocation71_spill] sm:$0xff] %v13823_v4  ;;  %v13828_v55 = vrot.slane %v16876_v11, %v16797_v37  ;;  %vm7208_vm11 = vcmp.lt.s32.totalorder %v7207_v34, %v7138_v42  ;;  %v6981_v61 = vmax.f32 %v6980_v62, %v13810_v17  ;;  %vm5214_vm1 = vcmp.gt.f32.partialorder %v16875_v18, 0.0 }
 0x623   : > { %v16304_v25 = vrot.slane %v13818_v2, 1  ;;  %v7209_v29 = vsel %vm7208_vm11, %v7207_v34, %v7138_v42  ;;  %v13837_v15 = vsel %vm5210_vm13, %v16871_v0, %v5274_v31  ;;  %v16878_v43 = vsub.s32 3, %v16796_v35  ;;  %v16880_v31 = vld [vmem:[#allocation124_spill] sm:$0xff] }
 0x624   : > { %16877 = vst [vmem:[#allocation66_spill] sm:$0xff] %v13837_v15  ;;  %v7210_v56 = vrot.slane %v7209_v29, 4  ;;  %v13846_v14 = vmax.f32 %v6981_v61, %v13823_v4  ;;  %v13851_v0 = vsel %vm5214_vm1, %v16875_v18, %v5278_v6  ;;  %v13854_v62 = vmul.f32 0.1, %v16880_v31 }
 0x625   : > { %v13843_v19 = vrot.slane %v13538_v26, %v16878_v43  ;;  %16879 = vst [vmem:[#allocation68_spill] sm:$0xff] %v13851_v0  ;;  %vm13863_vm12 = vcmp.lt.s32.totalorder %v13818_v2, %v16304_v25  ;;  %vm5218_vm0 = vcmp.gt.f32.partialorder %v16880_v31, 0.0 }
 0x626   : > { %v6266_v47 = vpop.f32.mrf.mxu0  ;;  %vm7211_vm14 = vcmp.lt.s32.totalorder %v7209_v29, %v7210_v56 }
 0x627   : > { %v6267_v36 = vadd.f32 %v6266_v47, %v13577_v20  ;;  %v6379_v50 = vpop.f32.mrf.mxu1  ;;  %v7212_v18 = vsel %vm7211_vm14, %v7209_v29, %v7210_v56 }
 0x628   : > { %v6380_v37 = vadd.f32 %v6379_v50, %v13580_v5  ;;  %v6268_v3 = vpop.f32.mrf.mxu0 }
 0x629   : > { %v6481_v54 = vadd.f32 %v13573_v24, %v6267_v36  ;;  %v6269_v48 = vadd.f32 %v6268_v3, %v13583_v40  ;;  %v6381_v42 = vpop.f32.mrf.mxu1  ;;  %v7213_v3 = vrot.slane %v7212_v18, 2 }
 0x62a   : > { %v6483_v34 = vadd.f32 %v13588_v8, %v6380_v37  ;;  %v6382_v26 = vadd.f32 %v6381_v42, %v13828_v55  ;;  %v6270_v11 = vpop.f32.mrf.mxu0  ;;  %v6753_v47 = vpop.trf.xlu1 }
 0x62b   : > { %v13868_v6 = vadd.f32 %v13637_v52, %v6269_v48  ;;  %v6271_v50 = vadd.f32 %v6270_v11, %v13577_v20  ;;  %v6383_v37 = vpop.f32.mrf.mxu1  ;;  %6865 = vst [vmem:[%s10824_s20 + $0x200] sm:$0xff] %v6753_v47  ;;  %v7354_v48 = vmul.f32 %v6753_v47, %v6753_v47  ;;  %vm6545_vm5 = vcmp.gt.f32.partialorder %v6481_v54, 0.0 }
 0x62c   : > { %v13874_v43 = vadd.f32 %v13843_v19, %v6382_v26  ;;  %v6384_v42 = vadd.f32 %v6383_v37, %v13580_v5  ;;  %v6272_v53 = vpop.f32.mrf.mxu0  ;;  %vm6547_vm6 = vcmp.gt.f32.partialorder %v6483_v34, 0.0  ;;  %v6611_v61 = vmul.f32 0.1, %v6483_v34  ;;  %v13878_v11 = vpop.trf.xlu0 }
 0x62d   : > { %v6273_v29 = vadd.f32 %v6272_v53, %v13583_v40  ;;  %v6385_v56 = vpop.f32.mrf.mxu1  ;;  %vm7214_vm8 = vcmp.lt.s32.totalorder %v7212_v18, %v7213_v3  ;;  %v6609_v13 = vmul.f32 0.1, %v6481_v54  ;;  %6881 = vst [vmem:[%s10824_s20 + $0x280] sm:$0xff] %v13878_v11  ;;  %v6485_v53 = vadd.f32 %v13573_v24, %v6271_v50 }
 0x62e   : > { %16883 = vst [vmem:[#allocation75_spill] sm:$0xff] %v13874_v43  ;;  %v6487_v25 = vadd.f32 %v13588_v8, %v6384_v42  ;;  %v6386_v26 = vadd.f32 %v6385_v56, %v13828_v55  ;;  %v6276_v27 = vpop.f32.mrf.mxu0  ;;  %v6754_v43 = vpop.trf.xlu1  ;;  %v7215_v37 = vsel %vm7214_vm8, %v7212_v18, %v7213_v3  ;;  %v13889_v17 = vsel %vm6547_vm6, %v6483_v34, %v6611_v61 }
 0x62f   : > { %v13886_v47 = vadd.f32 %v13637_v52, %v6273_v29  ;;  %v6389_v4 = vpop.f32.mrf.mxu1  ;;  %6866 = vst [vmem:[%s10824_s20 + $0x208] sm:$0xff] %v6754_v43  ;;  %v7216_v1 = vrot.slane %v7215_v37, 1  ;;  %7551 = vxpose.xlu0.b32.start [1/16] %v13889_v17, 128  ;;  %v13898_v18 = vsel %vm6545_vm5, %v6481_v54, %v6609_v13  ;;  %v6277_v3 = vadd.f32 %v6276_v27, %v13577_v20 }
 0x630   : > { %v13893_v42 = vadd.f32 %v13843_v19, %v6386_v26  ;;  %v6390_v56 = vadd.f32 %v6389_v4, %v13580_v5  ;;  %16885 = vst [vmem:[#allocation74_spill] sm:$0xff] %v13898_v18  ;;  %v6278_v50 = vpop.f32.mrf.mxu0  ;;  %7487 = vxpose.xlu1.b32.start [1/16] %v13898_v18, 128  ;;  %v7355_v29 = vmul.f32 %v6754_v43, %v6754_v43  ;;  %vm6551_vm4 = vcmp.gt.f32.partialorder %v6487_v25, 0.0  ;;  %v13903_v26 = vpop.trf.xlu0 }
 0x631   : > { %v6279_v34 = vadd.f32 %v6278_v50, %v13583_v40  ;;  %v6391_v61 = vpop.f32.mrf.mxu1  ;;  %v16886_v4 = vrot.slane %v13818_v2, 1  ;;  %vm7217_vm10 = vcmp.lt.s32.totalorder %v7215_v37, %v7216_v1  ;;  %6882 = vst [vmem:[%s10824_s20 + $0x288] sm:$0xff] %v13903_v26  ;;  %vm6549_vm3 = vcmp.gt.f32.partialorder %v6485_v53, 0.0 }
 0x632   : > { %16884 = vst [vmem:[#allocation81_spill] sm:$0xff] %v13893_v42  ;;  %v6392_v27 = vadd.f32 %v6391_v61, %v13828_v55  ;;  %v6280_v54 = vpop.f32.mrf.mxu0  ;;  %v6615_v42 = vmul.f32 0.1, %v6487_v25  ;;  %v6755_v39 = vpop.trf.xlu1  ;;  %v13915_v50 = vsel %vm7217_vm10, %v7215_v37, %v7216_v1  ;;  %v7418_v59 = vadd.f32 %v7355_v29, %v7354_v48 }
 0x633   : > { %v13910_v13 = vsel %vm13863_vm12, %v13818_v2, %v16886_v4  ;;  %16888 = vst [vmem:[#allocation84_spill] sm:$0xff] %v13915_v50  ;;  %v13918_v43 = vadd.f32 %v13637_v52, %v6279_v34  ;;  %v6281_v30 = vadd.f32 %v6280_v54, %v13577_v20  ;;  %v6393_v22 = vpop.f32.mrf.mxu1  ;;  %6867 = vst [vmem:[%s10824_s20 + $0x210] sm:$0xff] %v6755_v39  ;;  %v6613_v29 = vmul.f32 0.1, %v6485_v53 }
 0x634   : > { %16887 = vst [vmem:[#allocation78_spill] sm:$0xff] %v13910_v13  ;;  %v6491_v36 = vadd.f32 %v13588_v8, %v6390_v56  ;;  %v13926_v61 = vadd.f32 %v13843_v19, %v6392_v27  ;;  %v13929_v1 = vsel %vm6551_vm4, %v6487_v25, %v6615_v42  ;;  %v6282_v37 = vpop.f32.mrf.mxu0  ;;  %v6489_v34 = vadd.f32 %v13573_v24, %v6277_v3  ;;  %v13934_v54 = vpop.trf.xlu0 }
 0x635   : > { %v6394_v48 = vadd.f32 %v6393_v22, %v13580_v5  ;;  %7552 = vxpose.xlu0.b32.cont [2/16] %v13929_v1, 128  ;;  %v6395_v4 = vpop.f32.mrf.mxu1  ;;  %v6283_v56 = vadd.f32 %v6282_v37, %v13583_v40  ;;  %6883 = vst [vmem:[%s10824_s20 + $0x290] sm:$0xff] %v13934_v54  ;;  %v16890_v22 = vmax.f32 %v13846_v14, %v13837_v15 }
 0x636   : > { %16889 = vst [vmem:[#allocation88_spill] sm:$0xff] %v13926_v61  ;;  %v6396_v27 = vadd.f32 %v6395_v4, %v13828_v55  ;;  %v6286_v2 = vpop.f32.mrf.mxu0  ;;  %v6756_v25 = vpop.trf.xlu1  ;;  %v13950_v3 = vsel %vm5218_vm0, %v16880_v31, %v13854_v62  ;;  %v6493_v37 = vadd.f32 %v13573_v24, %v6281_v30  ;;  %v13953_v50 = vsel %vm6549_vm3, %v6485_v53, %v6613_v29 }
 0x637   : > { %v13944_v42 = vmax.f32 %v16890_v22, %v13851_v0  ;;  %16891 = vst [vmem:[#allocation82_spill] sm:$0xff] %v13950_v3  ;;  %16892 = vst [vmem:[#allocation87_spill] sm:$0xff] %v13953_v50  ;;  %v7356_v4 = vmul.f32 %v6755_v39, %v6755_v39  ;;  %v6287_v13 = vadd.f32 %v6286_v2, %v13577_v20  ;;  %v6399_v61 = vpop.f32.mrf.mxu1  ;;  %7488 = vxpose.xlu1.b32.cont [2/16] %v13953_v50, 128 }
 0x638   : > { %6868 = vst [vmem:[%s10824_s20 + $0x218] sm:$0xff] %v6756_v25  ;;  %v13959_v14 = vadd.f32 %v13637_v52, %v6283_v56  ;;  %v13962_v22 = vadd.f32 %v13843_v19, %v6396_v27  ;;  %v6400_v31 = vadd.f32 %v6399_v61, %v13580_v5  ;;  %vm6555_vm2 = vcmp.gt.f32.partialorder %v6491_v36, 0.0  ;;  %v6288_v30 = vpop.f32.mrf.mxu0  ;;  %v13966_v29 = vpop.trf.xlu0 }
 0x639   : > { %v6495_v62 = vadd.f32 %v13588_v8, %v6394_v48  ;;  %v7419_v39 = vadd.f32 %v7418_v59, %v7356_v4  ;;  %v6619_v53 = vmul.f32 0.1, %v6491_v36  ;;  %vm6553_vm13 = vcmp.gt.f32.partialorder %v6489_v34, 0.0  ;;  %v6401_v2 = vpop.f32.mrf.mxu1  ;;  %6884 = vst [vmem:[%s10824_s20 + $0x298] sm:$0xff] %v13966_v29 }
 0x63a   : > { %16893 = vst [vmem:[#allocation93_spill] sm:$0xff] %v13962_v22  ;;  %v7721_v56 = vmax.f32 %v13889_v17, %v13929_v1  ;;  %v6617_v0 = vmul.f32 0.1, %v6489_v34  ;;  %v6289_v27 = vadd.f32 %v6288_v30, %v13583_v40  ;;  %v6402_v22 = vadd.f32 %v6401_v2, %v13828_v55  ;;  %v6290_v61 = vpop.f32.mrf.mxu0  ;;  %v6757_v15 = vpop.trf.xlu1 }
 0x63b   : > { %v7679_v59 = vmax.f32 %v13898_v18, %v13953_v50  ;;  %v13977_v48 = vadd.f32 %v13573_v24, %v6287_v13  ;;  %v13980_v4 = vsel %vm6555_vm2, %v6491_v36, %v6619_v53  ;;  %v7357_v58 = vmul.f32 %v6756_v25, %v6756_v25  ;;  %v6403_v33 = vpop.f32.mrf.mxu1  ;;  %6869 = vst [vmem:[%s10824_s20 + $0x220] sm:$0xff] %v6757_v15 }
 0x63c   : > { %v6499_v30 = vadd.f32 %v13588_v8, %v6400_v31  ;;  %7553 = vxpose.xlu0.b32.cont [3/16] %v13980_v4, 128  ;;  %v13986_v2 = vsel %vm6553_vm13, %v6489_v34, %v6617_v0  ;;  %v13989_v28 = vadd.f32 %v13637_v52, %v6289_v27  ;;  %v13992_v13 = vadd.f32 %v13843_v19, %v6402_v22  ;;  %v6292_v16 = vpop.f32.mrf.mxu0  ;;  %v13997_v0 = vpop.trf.xlu0 }
 0x63d   : > { %16894 = vst [vmem:[#allocation96_spill] sm:$0xff] %v13986_v2  ;;  %7489 = vxpose.xlu1.b32.cont [3/16] %v13986_v2, 128  ;;  %v7420_v36 = vadd.f32 %v7419_v39, %v7357_v58  ;;  %v6291_v25 = vadd.f32 %v6290_v61, %v13577_v20  ;;  %v6404_v31 = vadd.f32 %v6403_v33, %v13580_v5  ;;  %vm6559_vm7 = vcmp.gt.f32.partialorder %v6495_v62, 0.0  ;;  %v6405_v53 = vpop.f32.mrf.mxu1 }
 0x63e   : > { %16895 = vst [vmem:[#allocation90_spill] sm:$0xff] %v13992_v13  ;;  %v6623_v34 = vmul.f32 0.1, %v6495_v62  ;;  %vm6557_vm9 = vcmp.gt.f32.partialorder %v6493_v37, 0.0  ;;  %v6621_v27 = vmul.f32 0.1, %v6493_v37  ;;  %v6293_v50 = vadd.f32 %v6292_v16, %v13583_v40  ;;  %v6296_v22 = vpop.f32.mrf.mxu0  ;;  %v6758_v13 = vpop.trf.xlu1 }
 0x63f   : > { %6885 = vst [vmem:[%s10824_s20 + $0x2a0] sm:$0xff] %v13997_v0  ;;  %v7722_v58 = vmax.f32 %v7721_v56, %v13980_v4  ;;  %v7680_v39 = vmax.f32 %v7679_v59, %v13986_v2  ;;  %v6406_v33 = vadd.f32 %v6405_v53, %v13828_v55  ;;  %v7358_v61 = vmul.f32 %v6757_v15, %v6757_v15  ;;  %v6409_v32 = vpop.f32.mrf.mxu1 }
 0x640   : > { %6870 = vst [vmem:[%s10824_s20 + $0x228] sm:$0xff] %v6758_v13  ;;  %v14007_v18 = vsel %vm6559_vm7, %v6495_v62, %v6623_v34  ;;  %v14009_v44 = vsel %vm6557_vm9, %v6493_v37, %v6621_v27  ;;  %v14012_v16 = vadd.f32 %v13637_v52, %v6293_v50  ;;  %v6410_v23 = vadd.f32 %v6409_v32, %v13580_v5  ;;  %v6298_v49 = vpop.f32.mrf.mxu0  ;;  %v14022_v50 = vpop.trf.xlu0 }
 0x641   : > { %16896 = vst [vmem:[#allocation94_spill] sm:$0xff] %v14009_v44  ;;  %v6501_v56 = vadd.f32 %v13573_v24, %v6291_v25  ;;  %v6503_v59 = vadd.f32 %v13588_v8, %v6404_v31  ;;  %7554 = vxpose.xlu0.b32.cont [4/16] %v14007_v18, 128  ;;  %7490 = vxpose.xlu1.b32.cont [4/16] %v14009_v44, 128  ;;  %vm6563_vm15 = vcmp.gt.f32.partialorder %v6499_v30, 0.0  ;;  %v6411_v37 = vpop.f32.mrf.mxu1  ;;  %v6627_v25 = vmul.f32 0.1, %v6499_v30 }
 0x642   : > { %v14020_v15 = vadd.f32 %v13843_v19, %v6406_v33  ;;  %v7723_v32 = vmax.f32 %v7722_v58, %v14007_v18  ;;  %v7421_v62 = vadd.f32 %v7420_v36, %v7358_v61  ;;  %v6297_v53 = vadd.f32 %v6296_v22, %v13577_v20  ;;  %v6300_v34 = vpop.f32.mrf.mxu0  ;;  %v6759_v31 = vpop.trf.xlu1  ;;  %6886 = vst [vmem:[%s10824_s20 + $0x2a8] sm:$0xff] %v14022_v50 }
 0x643   : > { %vm6561_vm11 = vcmp.gt.f32.partialorder %v13977_v48, 0.0  ;;  %v6625_v27 = vmul.f32 0.1, %v13977_v48  ;;  %v6299_v33 = vadd.f32 %v6298_v49, %v13583_v40  ;;  %v6413_v2 = vpop.f32.mrf.mxu1  ;;  %6871 = vst [vmem:[%s10824_s20 + $0x230] sm:$0xff] %v6759_v31  ;;  %v7681_v58 = vmax.f32 %v7680_v39, %v14009_v44 }
 0x644   : > { %16897 = vst [vmem:[#allocation99_spill] sm:$0xff] %v14020_v15  ;;  %v6412_v15 = vadd.f32 %v6411_v37, %v13828_v55  ;;  %v6507_v36 = vadd.f32 %v13588_v8, %v6410_v23  ;;  %v14036_v22 = vsel %vm6563_vm15, %v6499_v30, %v6627_v25  ;;  %v7359_v61 = vmul.f32 %v6758_v13, %v6758_v13  ;;  %v6302_v41 = vpop.f32.mrf.mxu0  ;;  %v14049_v30 = vpop.trf.xlu0 }
 0x645   : > { %7555 = vxpose.xlu0.b32.cont [5/16] %v14036_v22, 128  ;;  %v14040_v7 = vsel %vm6561_vm11, %v13977_v48, %v6625_v27  ;;  %v14043_v49 = vadd.f32 %v13637_v52, %v6299_v33  ;;  %v6301_v39 = vadd.f32 %v6300_v34, %v13577_v20  ;;  %v6415_v23 = vpop.f32.mrf.mxu1  ;;  %v6505_v13 = vadd.f32 %v13573_v24, %v6297_v53 }
 0x646   : > { %16898 = vst [vmem:[#allocation101_spill] sm:$0xff] %v14040_v7  ;;  %v14046_v37 = vadd.f32 %v13843_v19, %v6412_v15  ;;  %v7724_v25 = vmax.f32 %v7723_v32, %v14036_v22  ;;  %7491 = vxpose.xlu1.b32.cont [5/16] %v14040_v7, 128  ;;  %v7422_v48 = vadd.f32 %v7421_v62, %v7359_v61  ;;  %v6306_v33 = vpop.f32.mrf.mxu0  ;;  %v6760_v44 = vpop.trf.xlu1  ;;  %6887 = vst [vmem:[%s10824_s20 + $0x2b0] sm:$0xff] %v14049_v30 }
 0x647   : > { %v6414_v27 = vadd.f32 %v6413_v2, %v13580_v5  ;;  %vm6567_vm1 = vcmp.gt.f32.partialorder %v6503_v59, 0.0  ;;  %v6631_v15 = vmul.f32 0.1, %v6503_v59  ;;  %vm6565_vm14 = vcmp.gt.f32.partialorder %v6501_v56, 0.0  ;;  %6872 = vst [vmem:[%s10824_s20 + $0x238] sm:$0xff] %v6760_v44 }
 0x648   : > { %16899 = vst [vmem:[#allocation109_spill] sm:$0xff] %v14046_v37  ;;  %v6629_v34 = vmul.f32 0.1, %v6501_v56  ;;  %v6419_v37 = vpop.f32.mrf.mxu1  ;;  %v7682_v21 = vmax.f32 %v7681_v58, %v14040_v7  ;;  %v6303_v53 = vadd.f32 %v6302_v41, %v13583_v40  ;;  %v6416_v32 = vadd.f32 %v6415_v23, %v13828_v55  ;;  %v6308_v62 = vpop.f32.mrf.mxu0 }
 0x649   : > { %v7360_v57 = vmul.f32 %v6759_v31, %v6759_v31  ;;  %v6509_v2 = vadd.f32 %v13573_v24, %v6301_v39  ;;  %v14062_v61 = vsel %vm6567_vm1, %v6503_v59, %v6631_v15  ;;  %vm6571_vm12 = vcmp.gt.f32.partialorder %v6507_v36, 0.0  ;;  %v14066_v38 = vpop.trf.xlu0 }
 0x64a   : > { %16900 = vst [vmem:[#allocation105_spill] sm:$0xff] %v14062_v61  ;;  %v14064_v10 = vsel %vm6565_vm14, %v6501_v56, %v6629_v34  ;;  %v6421_v9 = vpop.f32.mrf.mxu1  ;;  %v7725_v58 = vmax.f32 %v7724_v25, %v14062_v61  ;;  %7556 = vxpose.xlu0.b32.cont [6/16] %v14062_v61, 128  ;;  %v14072_v41 = vadd.f32 %v13637_v52, %v6303_v53  ;;  %v6635_v59 = vmul.f32 0.1, %v6507_v36  ;;  %v6310_v39 = vpop.f32.mrf.mxu0 }
 0x64b   : > { %16901 = vst [vmem:[#allocation107_spill] sm:$0xff] %v14064_v10  ;;  %7492 = vxpose.xlu1.b32.cont [6/16] %v14064_v10, 128  ;;  %v6307_v31 = vadd.f32 %v6306_v33, %v13577_v20  ;;  %v6761_v56 = vpop.trf.xlu1  ;;  %6888 = vst [vmem:[%s10824_s20 + $0x2b8] sm:$0xff] %v14066_v38  ;;  %v6511_v23 = vadd.f32 %v13588_v8, %v6414_v27  ;;  %v14079_v15 = vadd.f32 %v13843_v19, %v6416_v32 }
 0x64c   : > { %16902 = vst [vmem:[#allocation131_spill] sm:$0xff] %v14072_v41  ;;  %v7423_v25 = vadd.f32 %v7422_v48, %v7360_v57  ;;  %v6420_v34 = vadd.f32 %v6419_v37, %v13580_v5  ;;  %v6423_v7 = vpop.f32.mrf.mxu1  ;;  %6873 = vst [vmem:[%s10824_s20 + $0x240] sm:$0xff] %v6761_v56  ;;  %v14084_v53 = vsel %vm6571_vm12, %v6507_v36, %v6635_v59  ;;  %vm6569_vm0 = vcmp.gt.f32.partialorder %v6505_v13, 0.0  ;;  %v6312_v63 = vpop.f32.mrf.mxu0 }
 0x64d   : > { %16903 = vst [vmem:[#allocation123_spill] sm:$0xff] %v14079_v15  ;;  %16904 = vst [vmem:[#allocation62_spill] sm:$0xff] %v14084_v53  ;;  %v6633_v33 = vmul.f32 0.1, %v6505_v13  ;;  %v6309_v41 = vadd.f32 %v6308_v62, %v13583_v40  ;;  %v7683_v51 = vmax.f32 %v7682_v21, %v14064_v10  ;;  %v14089_v27 = vmax.f32 %v7725_v58, %v14084_v53  ;;  %v14092_v32 = vpop.trf.xlu0 }
 0x64e   : > { %v6422_v57 = vadd.f32 %v6421_v9, %v13828_v55  ;;  %v7361_v48 = vmul.f32 %v6760_v44, %v6760_v44  ;;  %v6425_v37 = vpop.f32.mrf.mxu1  ;;  %v6513_v36 = vadd.f32 %v13573_v24, %v6307_v31  ;;  %7557 = vxpose.xlu0.b32.cont [7/16] %v14084_v53, 128  ;;  %v6424_v21 = vadd.f32 %v6423_v7, %v13580_v5  ;;  %v6316_v58 = vpop.f32.mrf.mxu0 }
 0x64f   : > { %v14096_v59 = vsel %vm6569_vm0, %v6505_v13, %v6633_v33  ;;  %v14099_v62 = vadd.f32 %v13637_v52, %v6309_v41  ;;  %v6762_v15 = vpop.trf.xlu1  ;;  %6889 = vst [vmem:[%s10824_s20 + $0x2c0] sm:$0xff] %v14092_v32  ;;  %v6515_v9 = vadd.f32 %v13588_v8, %v6420_v34  ;;  %vm6575_vm6 = vcmp.gt.f32.partialorder %v6511_v23, 0.0 }
 0x650   : > { %16905 = vst [vmem:[#allocation64_spill] sm:$0xff] %v14096_v59  ;;  %7493 = vxpose.xlu1.b32.cont [7/16] %v14096_v59, 128  ;;  %v14107_v44 = vadd.f32 %v13843_v19, %v6422_v57  ;;  %v7424_v31 = vadd.f32 %v7423_v25, %v7361_v48  ;;  %v6429_v13 = vpop.f32.mrf.mxu1  ;;  %6874 = vst [vmem:[%s10824_s20 + $0x248] sm:$0xff] %v6762_v15  ;;  %v6311_v41 = vadd.f32 %v6310_v39, %v13577_v20  ;;  %v6318_v10 = vpop.f32.mrf.mxu0 }
 0x651   : > { %16906 = vst [vmem:[#allocation113_spill] sm:$0xff] %v14099_v62  ;;  %v6639_v33 = vmul.f32 0.1, %v6511_v23  ;;  %vm6573_vm5 = vcmp.gt.f32.partialorder %v6509_v2, 0.0  ;;  %v6637_v7 = vmul.f32 0.1, %v6509_v2  ;;  %v7684_v62 = vmax.f32 %v7683_v51, %v14096_v59  ;;  %v14114_v25 = vpop.trf.xlu0 }
 0x652   : > { %16907 = vst [vmem:[#allocation117_spill] sm:$0xff] %v14107_v44  ;;  %v6313_v34 = vadd.f32 %v6312_v63, %v13583_v40  ;;  %v6426_v45 = vadd.f32 %v6425_v37, %v13828_v55  ;;  %v7362_v35 = vmul.f32 %v6761_v56, %v6761_v56  ;;  %v6431_v57 = vpop.f32.mrf.mxu1  ;;  %v6519_v48 = vadd.f32 %v13588_v8, %v6424_v21  ;;  %v6320_v53 = vpop.f32.mrf.mxu0 }
 0x653   : > { %v14117_v44 = vsel %vm6575_vm6, %v6511_v23, %v6639_v33  ;;  %v14119_v39 = vsel %vm6573_vm5, %v6509_v2, %v6637_v7  ;;  %v6317_v12 = vadd.f32 %v6316_v58, %v13577_v20  ;;  %v6763_v61 = vpop.trf.xlu1  ;;  %6890 = vst [vmem:[%s10824_s20 + $0x2c8] sm:$0xff] %v14114_v25  ;;  %v6430_v21 = vadd.f32 %v6429_v13, %v13580_v5 }
 0x654   : > { %16908 = vst [vmem:[#allocation69_spill] sm:$0xff] %v14117_v44  ;;  %16909 = vst [vmem:[#allocation72_spill] sm:$0xff] %v14119_v39  ;;  %v7727_v63 = vmax.f32 %v14089_v27, %v14117_v44  ;;  %7558 = vxpose.xlu0.b32.cont [8/16] %v14117_v44, 128  ;;  %v7685_v51 = vmax.f32 %v7684_v62, %v14119_v39  ;;  %7494 = vxpose.xlu1.b32.cont [8/16] %v14119_v39, 128  ;;  %v6433_v2 = vpop.f32.mrf.mxu1  ;;  %vm6579_vm8 = vcmp.gt.f32.partialorder %v6515_v9, 0.0  ;;  %v6322_v27 = vpop.f32.mrf.mxu0 }
 0x655   : > { %v14130_v56 = vadd.f32 %v13637_v52, %v6313_v34  ;;  %6875 = vst [vmem:[%s10824_s20 + $0x250] sm:$0xff] %v6763_v61  ;;  %v14134_v23 = vadd.f32 %v13843_v19, %v6426_v45  ;;  %v7425_v37 = vadd.f32 %v7424_v31, %v7362_v35  ;;  %v6643_v58 = vmul.f32 0.1, %v6515_v9  ;;  %v14138_v34 = vpop.trf.xlu0 }
 0x656   : > { %vm6577_vm4 = vcmp.gt.f32.partialorder %v6513_v36, 0.0  ;;  %v6641_v33 = vmul.f32 0.1, %v6513_v36  ;;  %v6319_v62 = vadd.f32 %v6318_v10, %v13583_v40  ;;  %v6435_v7 = vpop.f32.mrf.mxu1  ;;  %16912 = vst [vmem:[#allocation83_spill] sm:$0xff] %v14138_v34  ;;  %v14142_v45 = vadd.f32 %v13573_v24, %v6317_v12  ;;  %v6326_v13 = vpop.f32.mrf.mxu0  ;;  %6891 = vst [vmem:[%s10824_s20 + $0x2d0] sm:$0xff] %v14138_v34 }
 0x657   : > { %16910 = vst [vmem:[#allocation76_spill] sm:$0xff] %v14130_v56  ;;  %16911 = vst [vmem:[#allocation79_spill] sm:$0xff] %v14134_v23  ;;  %v6517_v56 = vadd.f32 %v13573_v24, %v6311_v41  ;;  %v6432_v35 = vadd.f32 %v6431_v57, %v13828_v55  ;;  %v7363_v31 = vmul.f32 %v6762_v15, %v6762_v15  ;;  %v14145_v23 = vpop.trf.xlu1  ;;  %vm6583_vm10 = vcmp.gt.f32.partialorder %v6519_v48, 0.0 }
 0x658   : > { %v14149_v39 = vsel %vm6579_vm8, %v6515_v9, %v6643_v58  ;;  %v14151_v59 = vsel %vm6577_vm4, %v6513_v36, %v6641_v33  ;;  %v14154_v10 = vadd.f32 %v13637_v52, %v6319_v62  ;;  %v6321_v41 = vadd.f32 %v6320_v53, %v13577_v20  ;;  %v6439_v44 = vpop.f32.mrf.mxu1  ;;  %6876 = vst [vmem:[%s10824_s20 + $0x258] sm:$0xff] %v14145_v23  ;;  %v6328_v9 = vpop.f32.mrf.mxu0 }
 0x659   : > { %16913 = vst [vmem:[#allocation86_spill] sm:$0xff] %v14151_v59  ;;  %v7728_v12 = vmax.f32 %v7727_v63, %v14149_v39  ;;  %7559 = vxpose.xlu0.b32.cont [9/16] %v14149_v39, 128  ;;  %v7686_v15 = vmax.f32 %v7685_v51, %v14151_v59  ;;  %7495 = vxpose.xlu1.b32.cont [9/16] %v14151_v59, 128  ;;  %v6647_v33 = vmul.f32 0.1, %v6519_v48  ;;  %v14168_v62 = vpop.trf.xlu0  ;;  %vm6581_vm3 = vcmp.gt.f32.partialorder %v6517_v56, 0.0 }
 0x65a   : > { %16914 = vst [vmem:[#allocation85_spill] sm:$0xff] %v14154_v10  ;;  %v14164_v36 = vadd.f32 %v13843_v19, %v6432_v35  ;;  %v6523_v57 = vadd.f32 %v13588_v8, %v6430_v21  ;;  %v7426_v53 = vadd.f32 %v7425_v37, %v7363_v31  ;;  %v6434_v58 = vadd.f32 %v6433_v2, %v13580_v5  ;;  %v6441_v63 = vpop.f32.mrf.mxu1  ;;  %v6330_v35 = vpop.f32.mrf.mxu0 }
 0x65b   : > { %16916 = vst [vmem:[#allocation95_spill] sm:$0xff] %v14168_v62  ;;  %v6645_v51 = vmul.f32 0.1, %v6517_v56  ;;  %v6323_v10 = vadd.f32 %v6322_v27, %v13583_v40  ;;  %v6436_v59 = vadd.f32 %v6435_v7, %v13828_v55  ;;  %6892 = vst [vmem:[%s10824_s20 + $0x2d8] sm:$0xff] %v14168_v62  ;;  %v6525_v21 = vadd.f32 %v13573_v24, %v6321_v41 }
 0x65c   : > { %16915 = vst [vmem:[#allocation91_spill] sm:$0xff] %v14164_v36  ;;  %v6765_v36 = vpop.trf.xlu1  ;;  %v14176_v37 = vsel %vm6583_vm10, %v6519_v48, %v6647_v33  ;;  %v7364_v2 = vmul.f32 %v6763_v61, %v6763_v61  ;;  %v6443_v31 = vpop.f32.mrf.mxu1  ;;  %v14181_v34 = vmax.f32 %v13944_v42, %v13950_v3  ;;  %v6527_v41 = vadd.f32 %v13588_v8, %v6434_v58 }
 0x65d   : > { %16917 = vst [vmem:[#allocation89_spill] sm:$0xff] %v14176_v37  ;;  %6877 = vst [vmem:[%s10824_s20 + $0x260] sm:$0xff] %v6765_v36  ;;  %v7729_v27 = vmax.f32 %v7728_v12, %v14176_v37  ;;  %7560 = vxpose.xlu0.b32.cont [10/16] %v14176_v37, 128  ;;  %v14185_v7 = vsel %vm6581_vm3, %v6517_v56, %v6645_v51  ;;  %v14188_v62 = vadd.f32 %v13637_v52, %v6323_v10  ;;  %v6332_v61 = vpop.f32.mrf.mxu0  ;;  %v14197_v51 = vpop.trf.xlu0 }
 0x65e   : > { %16918 = vst [vmem:[#allocation92_spill] sm:$0xff] %v14185_v7  ;;  %v14191_v48 = vadd.f32 %v13843_v19, %v6436_v59  ;;  %v7687_v33 = vmax.f32 %v7686_v15, %v14185_v7  ;;  %7496 = vxpose.xlu1.b32.cont [10/16] %v14185_v7, 128  ;;  %v7427_v42 = vadd.f32 %v7426_v53, %v7364_v2  ;;  %v6445_v56 = vpop.f32.mrf.mxu1  ;;  %16921 = vst [vmem:[#allocation97_spill] sm:$0xff] %v14197_v51 }
 0x65f   : > { %16919 = vst [vmem:[#allocation98_spill] sm:$0xff] %v14188_v62  ;;  %v6440_v12 = vadd.f32 %v6439_v44, %v13580_v5  ;;  %vm6587_vm2 = vcmp.gt.f32.partialorder %v6523_v57, 0.0  ;;  %v6651_v10 = vmul.f32 0.1, %v6523_v57  ;;  %vm6585_vm13 = vcmp.gt.f32.partialorder %v14142_v45, 0.0  ;;  %6893 = vst [vmem:[%s10824_s20 + $0x2e0] sm:$0xff] %v14197_v51 }
 0x660   : > { %16920 = vst [vmem:[#allocation102_spill] sm:$0xff] %v14191_v48  ;;  %v6649_v59 = vmul.f32 0.1, %v14142_v45  ;;  %v6336_v48 = vpop.f32.mrf.mxu0  ;;  %v14201_v3 = vpop.trf.xlu1  ;;  %v6327_v15 = vadd.f32 %v6326_v13, %v13577_v20  ;;  %v6329_v44 = vadd.f32 %v6328_v9, %v13583_v40  ;;  %v6442_v58 = vadd.f32 %v6441_v63, %v13828_v55 }
 0x661   : > { %v6531_v53 = vadd.f32 %v13588_v8, %v6440_v12  ;;  %v6449_v2 = vpop.f32.mrf.mxu1  ;;  %6878 = vst [vmem:[%s10824_s20 + $0x268] sm:$0xff] %v14201_v3  ;;  %v14211_v62 = vsel %vm6587_vm2, %v6523_v57, %v6651_v10  ;;  %v7365_v37 = vmul.f32 %v14145_v23, %v14145_v23  ;;  %v6331_v13 = vadd.f32 %v6330_v35, %v13577_v20  ;;  %v14226_v63 = vpop.trf.xlu0 }
 0x662   : > { %16922 = vst [vmem:[#allocation100_spill] sm:$0xff] %v14211_v62  ;;  %v14214_v7 = vsel %vm6585_vm13, %v14142_v45, %v6649_v59  ;;  %v7730_v12 = vmax.f32 %v7729_v27, %v14211_v62  ;;  %7561 = vxpose.xlu0.b32.cont [11/16] %v14211_v62, 128  ;;  %v14224_v57 = vadd.f32 %v13637_v52, %v6329_v44  ;;  %v6338_v45 = vpop.f32.mrf.mxu0  ;;  %16925 = vst [vmem:[#allocation103_spill] sm:$0xff] %v14226_v63 }
 0x663   : > { %16923 = vst [vmem:[#allocation106_spill] sm:$0xff] %v14214_v7  ;;  %v7688_v9 = vmax.f32 %v7687_v33, %v14214_v7  ;;  %7497 = vxpose.xlu1.b32.cont [11/16] %v14214_v7, 128  ;;  %v14230_v10 = vadd.f32 %v13843_v19, %v6442_v58  ;;  %v7428_v35 = vadd.f32 %v7427_v42, %v7365_v37  ;;  %vm6591_vm7 = vcmp.gt.f32.partialorder %v6527_v41, 0.0  ;;  %v6451_v59 = vpop.f32.mrf.mxu1 }
 0x664   : > { %16924 = vst [vmem:[#allocation114_spill] sm:$0xff] %v14224_v57  ;;  %v6444_v27 = vadd.f32 %v6443_v31, %v13580_v5  ;;  %v14233_v33 = vpop.trf.xlu1  ;;  %6894 = vst [vmem:[%s10824_s20 + $0x2e8] sm:$0xff] %v14226_v63  ;;  %v6655_v7 = vmul.f32 0.1, %v6527_v41  ;;  %vm6589_vm9 = vcmp.gt.f32.partialorder %v6525_v21, 0.0  ;;  %v6333_v57 = vadd.f32 %v6332_v61, %v13583_v40  ;;  %v6340_v61 = vpop.f32.mrf.mxu0 }
 0x665   : > { %16926 = vst [vmem:[#allocation111_spill] sm:$0xff] %v14230_v10  ;;  %v6653_v44 = vmul.f32 0.1, %v6525_v21  ;;  %6879 = vst [vmem:[%s10824_s20 + $0x270] sm:$0xff] %v14233_v33  ;;  %v6529_v23 = vadd.f32 %v13573_v24, %v6327_v15  ;;  %v6533_v58 = vadd.f32 %v13573_v24, %v6331_v13  ;;  %v6446_v37 = vadd.f32 %v6445_v56, %v13828_v55  ;;  %v6799_v62 = vpop.trf.xlu0 }
 0x666   : > { %v7366_v31 = vmul.f32 %v6765_v36, %v6765_v36  ;;  %v14243_v42 = vsel %vm6591_vm7, %v6527_v41, %v6655_v7  ;;  %v14248_v63 = vadd.f32 %v13637_v52, %v6333_v57  ;;  %v6337_v51 = vadd.f32 %v6336_v48, %v13577_v20  ;;  %6895 = vst [vmem:[%s10824_s20 + $0x2f0] sm:$0xff] %v6799_v62 }
 0x667   : > { %v14245_v10 = vsel %vm6589_vm9, %v6525_v21, %v6653_v44  ;;  %v7731_v15 = vmax.f32 %v7730_v12, %v14243_v42  ;;  %7562 = vxpose.xlu0.b32.cont [12/16] %v14243_v42, 128  ;;  %v14256_v36 = vadd.f32 %v13843_v19, %v6446_v37  ;;  %vm6595_vm15 = vcmp.gt.f32.partialorder %v6531_v53, 0.0  ;;  %v6453_v21 = vpop.f32.mrf.mxu1 }
 0x668   : > { %16927 = vst [vmem:[#allocation55_spill] sm:$0xff] %v14248_v63  ;;  %v7689_v56 = vmax.f32 %v7688_v9, %v14245_v10  ;;  %7498 = vxpose.xlu1.b32.cont [12/16] %v14245_v10, 128  ;;  %v6768_v7 = vpop.trf.xlu1  ;;  %v6535_v48 = vadd.f32 %v13588_v8, %v6444_v27  ;;  %v7429_v41 = vadd.f32 %v7428_v35, %v7366_v31  ;;  %v6659_v57 = vmul.f32 0.1, %v6531_v53 }
 0x669   : > { %16928 = vst [vmem:[#allocation56_spill] sm:$0xff] %v14256_v36  ;;  %v6450_v13 = vadd.f32 %v6449_v2, %v13580_v5  ;;  %6880 = vst [vmem:[%s10824_s20 + $0x278] sm:$0xff] %v6768_v7  ;;  %vm6593_vm11 = vcmp.gt.f32.partialorder %v6529_v23, 0.0  ;;  %v6657_v12 = vmul.f32 0.1, %v6529_v23  ;;  %v6339_v9 = vadd.f32 %v6338_v45, %v13583_v40  ;;  %v6800_v35 = vpop.trf.xlu0  ;;  %v6455_v31 = vpop.f32.mrf.mxu1 }
 0x66a   : > { %v6452_v44 = vadd.f32 %v6451_v59, %v13828_v55  ;;  %v6537_v37 = vadd.f32 %v13573_v24, %v6337_v51  ;;  %v14266_v63 = vsel %vm6595_vm15, %v6531_v53, %v6659_v57  ;;  %v7367_v62 = vmul.f32 %v14201_v3, %v14201_v3  ;;  %v6342_v51 = vpop.f32.mrf.mxu0  ;;  %6896 = vst [vmem:[%s10824_s20 + $0x2f8] sm:$0xff] %v6800_v35 }
 0x66b   : > { %v6539_v36 = vadd.f32 %v13588_v8, %v6450_v13  ;;  %v7732_v2 = vmax.f32 %v7731_v15, %v14266_v63  ;;  %7563 = vxpose.xlu0.b32.cont [13/16] %v14266_v63, 128  ;;  %v14272_v27 = vsel %vm6593_vm11, %v6529_v23, %v6657_v12  ;;  %v14275_v45 = vadd.f32 %v13637_v52, %v6339_v9 }
 0x66c   : > { %v14278_v59 = vadd.f32 %v13843_v19, %v6452_v44  ;;  %v7690_v53 = vmax.f32 %v7689_v56, %v14272_v27  ;;  %7499 = vxpose.xlu1.b32.cont [13/16] %v14272_v27, 128  ;;  %v7430_v3 = vadd.f32 %v7429_v41, %v7367_v62  ;;  %v6341_v15 = vadd.f32 %v6340_v61, %v13577_v20 }
 0x66d   : > { %v6454_v13 = vadd.f32 %v6453_v21, %v13580_v5  ;;  %vm6599_vm1 = vcmp.gt.f32.partialorder %v6535_v48, 0.0  ;;  %v6663_v23 = vmul.f32 0.1, %v6535_v48  ;;  %vm6597_vm14 = vcmp.gt.f32.partialorder %v6533_v58, 0.0 }
 0x66e   : > { %16929 = vst [vmem:[#allocation128_spill] sm:$0xff] %v14278_v59  ;;  %v6661_v57 = vmul.f32 0.1, %v6533_v58  ;;  %v6343_v9 = vadd.f32 %v6342_v51, %v13583_v40  ;;  %v6456_v44 = vadd.f32 %v6455_v31, %v13828_v55  ;;  %v16930_v35 = vrot.slane %v14181_v34, 4 }
 0x66f   : > { %v6543_v12 = vadd.f32 %v13588_v8, %v6454_v13  ;;  %v6541_v41 = vadd.f32 %v13573_v24, %v6341_v15  ;;  %v14294_v20 = vsel %vm6599_vm1, %v6535_v48, %v6663_v23  ;;  %v7368_v61 = vmul.f32 %v14233_v33, %v14233_v33 }
 0x670   : > { %v14291_v56 = vmax.f32 %v14181_v34, %v16930_v35  ;;  %v14296_v5 = vsel %vm6597_vm14, %v6533_v58, %v6661_v57  ;;  %v7733_v8 = vmax.f32 %v7732_v2, %v14294_v20  ;;  %7564 = vxpose.xlu0.b32.cont [14/16] %v14294_v20, 128  ;;  %v14305_v55 = vadd.f32 %v13637_v52, %v6343_v9 }
 0x671   : > { %v7691_v40 = vmax.f32 %v7690_v53, %v14296_v5  ;;  %7500 = vxpose.xlu1.b32.cont [14/16] %v14296_v5, 128  ;;  %vm6603_vm12 = vcmp.gt.f32.partialorder %v6539_v36, 0.0  ;;  %v14308_v24 = vadd.f32 %v13843_v19, %v6456_v44  ;;  %v7431_v34 = vadd.f32 %v7430_v3, %v7368_v61 }
 0x672   : > { %v6667_v58 = vmul.f32 0.1, %v6539_v36  ;;  %vm6601_vm0 = vcmp.gt.f32.partialorder %v6537_v37, 0.0  ;;  %v7370_v33 = vmul.f32 %v13878_v11, %v13878_v11  ;;  %v6665_v21 = vmul.f32 0.1, %v6537_v37 }
 0x673   : > { %16931 = vst [vmem:[#allocation129_spill] sm:$0xff] %v14308_v24  ;;  %v7369_v48 = vmul.f32 %v6768_v7, %v6768_v7  ;;  %vm6607_vm6 = vcmp.gt.f32.partialorder %v6543_v12, 0.0  ;;  %v6671_v2 = vmul.f32 0.1, %v6543_v12  ;;  %vm6605_vm5 = vcmp.gt.f32.partialorder %v6541_v41, 0.0  ;;  %v16965_v24 = vld [vmem:[#allocation42_spill] sm:$0xff] }
 0x674   : > { %v14312_v62 = vsel %vm6603_vm12, %v6539_v36, %v6667_v58  ;;  %v6669_v51 = vmul.f32 0.1, %v6541_v41  ;;  %v7371_v52 = vmul.f32 %v13903_v26, %v13903_v26  ;;  %v14318_v31 = vsel %vm6601_vm0, %v6537_v37, %v6665_v21 }
 0x675   : > { %v7734_v19 = vmax.f32 %v7733_v8, %v14312_v62  ;;  %7565 = vxpose.xlu0.b32.cont [15/16] %v14312_v62, 128  ;;  %v7432_v53 = vadd.f32 %v7431_v34, %v7369_v48  ;;  %v7372_v11 = vmul.f32 %v13934_v54, %v13934_v54  ;;  %v7692_v7 = vmax.f32 %v7691_v40, %v14318_v31 }
 0x676   : > { %7501 = vxpose.xlu1.b32.cont [15/16] %v14318_v31, 128  ;;  %v14324_v36 = vsel %vm6607_vm6, %v6543_v12, %v6671_v2  ;;  %v14326_v3 = vsel %vm6605_vm5, %v6541_v41, %v6669_v51  ;;  %vm6546_vm8 = vcmp.gt.f32.partialorder %v13868_v6, 0.0  ;;  %v6610_v37 = vmul.f32 0.1, %v13868_v6 }
 0x677   : > { %16932 = vst [vmem:[#allocation130_spill] sm:$0xff] %v14326_v3  ;;  %v7433_v15 = vadd.f32 %v7432_v53, %v7370_v33  ;;  %v7735_v26 = vmax.f32 %v7734_v19, %v14324_v36  ;;  %v7373_v13 = vmul.f32 %v13966_v29, %v13966_v29  ;;  %v7693_v54 = vmax.f32 %v7692_v7, %v14326_v3 }
 0x678   : > { %vm6550_vm4 = vcmp.gt.f32.partialorder %v13886_v47, 0.0  ;;  %v6614_v23 = vmul.f32 0.1, %v13886_v47  ;;  %v7374_v57 = vmul.f32 %v13997_v0, %v13997_v0  ;;  %vm6554_vm10 = vcmp.gt.f32.partialorder %v13918_v43, 0.0 }
 0x679   : > { %v7434_v12 = vadd.f32 %v7433_v15, %v7371_v52  ;;  %v7736_v9 = vrot.slane %v7735_v26, 4  ;;  %7566 = vxpose.xlu0.b32.end [16/16] %v14324_v36, 128  ;;  %v7694_v44 = vrot.slane %v7693_v54, 4  ;;  %v14342_v29 = vsel %vm6546_vm8, %v13868_v6, %v6610_v37 }
 0x67a   : > { %7502 = vxpose.xlu1.b32.end [16/16] %v14326_v3, 128  ;;  %16933 = vst [vmem:[#allocation108_spill] sm:$0xff] %v14342_v29  ;;  %v14345_v35 = vsel %vm6550_vm4, %v13886_v47, %v6614_v23  ;;  %v6618_v41 = vmul.f32 0.1, %v13918_v43  ;;  %vm6558_vm3 = vcmp.gt.f32.partialorder %v13959_v14, 0.0  ;;  %v7375_v40 = vmul.f32 %v14022_v50, %v14022_v50  ;;  %v16963_v23 = vld [vmem:[#allocation49_spill] sm:$0xff] }
 0x67b   : > { %16934 = vst [vmem:[#allocation115_spill] sm:$0xff] %v14345_v35  ;;  %v7435_v61 = vadd.f32 %v7434_v12, %v7372_v11  ;;  %v7737_v8 = vmax.f32 %v7735_v26, %v7736_v9  ;;  %v7700_v0 = vmax.f32 %v14342_v29, %v14345_v35  ;;  %v7695_v34 = vmax.f32 %v7693_v54, %v7694_v44  ;;  %v16941_v44 = vld [vmem:[#allocation139_spill] sm:$0xff] }
 0x67c   : > { %v14354_v58 = vsel %vm6554_vm10, %v13918_v43, %v6618_v41  ;;  %v6622_v6 = vmul.f32 0.1, %v13959_v14  ;;  %vm6562_vm2 = vcmp.gt.f32.partialorder %v13989_v28, 0.0  ;;  %v7376_v48 = vmul.f32 %v14049_v30, %v14049_v30  ;;  %v16942_v41 = vld [vmem:[#allocation69_spill] sm:$0xff] }
 0x67d   : > { %16935 = vst [vmem:[#allocation119_spill] sm:$0xff] %v14354_v58  ;;  %v7436_v47 = vadd.f32 %v7435_v61, %v7373_v13  ;;  %v7738_v33 = vrot.slane %v7737_v8, 2  ;;  %7519 = vxpose.xlu0.b32.start [1/16] %v14342_v29, 128  ;;  %v7701_v21 = vmax.f32 %v7700_v0, %v14354_v58  ;;  %v7696_v2 = vrot.slane %v7695_v34, 2  ;;  %v16943_v61 = vld [vmem:[#allocation89_spill] sm:$0xff]  ;;  %v16945_v0 = vld [vmem:[#allocation83_spill] sm:$0xff]  ;;  %v16973_v29 = vld [vmem:[#allocation106_spill] sm:$0xff] }
 0x67e   : > { %6801 = vxpose.xlu1.b32.start [1/16] %v13553_v60, 128  ;;  %v14364_v50 = vsel %vm6558_vm3, %v13959_v14, %v6622_v6  ;;  %v6626_v43 = vmul.f32 0.1, %v13989_v28  ;;  %vm6566_vm13 = vcmp.gt.f32.partialorder %v14012_v16, 0.0  ;;  %v6630_v30 = vmul.f32 0.1, %v14012_v16  ;;  %v16982_v60 = vld [vmem:[#allocation52_spill] sm:$0xff] }
 0x67f   : > { %16936 = vst [vmem:[#allocation121_spill] sm:$0xff] %v14364_v50  ;;  %v7437_v51 = vadd.f32 %v7436_v47, %v7374_v57  ;;  %v7739_v52 = vmax.f32 %v7737_v8, %v7738_v33  ;;  %v7702_v19 = vmax.f32 %v7701_v21, %v14364_v50  ;;  %v7697_v53 = vmax.f32 %v7695_v34, %v7696_v2  ;;  %v16944_v8 = vld [vmem:[#allocation100_spill] sm:$0xff]  ;;  %v16946_v34 = vld [vmem:[#allocation95_spill] sm:$0xff]  ;;  %v16947_v47 = vld [vmem:[#allocation97_spill] sm:$0xff] }
 0x680   : > { %v14370_v11 = vsel %vm6562_vm2, %v13989_v28, %v6626_v43  ;;  %v7377_v7 = vmul.f32 %v14066_v38, %v14066_v38  ;;  %v14381_v37 = vsel %vm6566_vm13, %v14012_v16, %v6630_v30  ;;  %v14388_v38 = vmul.f32 %v14092_v32, %v14092_v32  ;;  %v16939_v32 = vld [vmem:[#allocation105_spill] sm:$0xff]  ;;  %v16948_v21 = vld [vmem:[#allocation36_spill] sm:$0xff] }
 0x681   : > { %16937 = vst [vmem:[#allocation133_spill] sm:$0xff] %v14370_v11  ;;  %v7438_v15 = vadd.f32 %v7437_v51, %v7375_v40  ;;  %v7740_v14 = vrot.slane %v7739_v52, 1  ;;  %7520 = vxpose.xlu0.b32.cont [2/16] %v14345_v35, 128  ;;  %v14377_v26 = vmax.f32 %v7702_v19, %v14370_v11  ;;  %v7698_v57 = vrot.slane %v7697_v53, 1  ;;  %v16949_v2 = vld [vmem:[#allocation37_spill] sm:$0xff]  ;;  %v16952_v19 = vld [vmem:[#allocation103_spill] sm:$0xff] }
 0x682   : > { %6802 = vxpose.xlu1.b32.cont [2/16] %v13558_v46, 128  ;;  %v14394_v12 = vmul.f32 %v14114_v25, %v14114_v25  ;;  %vm6570_vm7 = vcmp.gt.f32.partialorder %v14043_v49, 0.0  ;;  %v6634_v16 = vmul.f32 0.1, %v14043_v49  ;;  %v16940_v25 = vld [vmem:[#allocation62_spill] sm:$0xff]  ;;  %v14436_v40 = vmul.f32 %v16945_v0, %v16945_v0  ;;  %v16962_v28 = vld [vmem:[#allocation41_spill] sm:$0xff]  ;;  %v16981_v46 = vld [vmem:[#allocation51_spill] sm:$0xff] }
 0x683   : > { %v7439_v13 = vadd.f32 %v7438_v15, %v7376_v48  ;;  %v14384_v54 = vmax.f32 %v7739_v52, %v7740_v14  ;;  %v14440_v6 = vmul.f32 %v16946_v34, %v16946_v34  ;;  %v14445_v33 = vmul.f32 %v16947_v47, %v16947_v47  ;;  %v16951_v52 = vld [vmem:[#allocation140_spill] sm:$0xff]  ;;  %v16967_v35 = vld [vmem:[#allocation57_spill] sm:$0xff] }
 0x684   : > { %v14455_v51 = vmax.f32 %v7697_v53, %v7698_v57  ;;  %v14460_v30 = vmul.f32 %v16952_v19, %v16952_v19  ;;  %v16955_v53 = vld [vmem:[#allocation131_spill] sm:$0xff]  ;;  %v16956_v57 = vld [vmem:[#allocation38_spill] sm:$0xff]  ;;  %v16960_v19 = vld [vmem:[#allocation40_spill] sm:$0xff] }
 0x685   : > { %16938 = vst [vmem:[#allocation124_spill] sm:$0xff] %v14384_v54  ;;  %v14398_v9 = vadd.f32 %v7439_v13, %v7377_v7  ;;  %vm7765_vm9 = vcmp.eq.f32.partialorder %v13889_v17, %v14384_v54  ;;  %vm7769_vm15 = vcmp.eq.f32.partialorder %v13929_v1, %v14384_v54  ;;  %vm7773_vm11 = vcmp.eq.f32.partialorder %v13980_v4, %v14384_v54  ;;  %v16953_v7 = vld [vmem:[#allocation45_spill] sm:$0xff]  ;;  %v16954_v17 = vld [vmem:[#allocation46_spill] sm:$0xff]  ;;  %v16957_v4 = vld [vmem:[#allocation39_spill] sm:$0xff] }
 0x686   : > { %7521 = vxpose.xlu0.b32.cont [3/16] %v14354_v58, 128  ;;  %vm7777_vm1 = vcmp.eq.f32.partialorder %v14007_v18, %v14384_v54  ;;  %vm7781_vm14 = vcmp.eq.f32.partialorder %v14036_v22, %v14384_v54  ;;  %vm7785_vm12 = vcmp.eq.f32.partialorder %v16939_v32, %v14384_v54  ;;  %vm7789_vm0 = vcmp.eq.f32.partialorder %v16940_v25, %v14384_v54  ;;  %v16958_v18 = vld [vmem:[#allocation47_spill] sm:$0xff] }
 0x687   : > { %6803 = vxpose.xlu1.b32.cont [3/16] %v16941_v44, 128  ;;  %vm7793_vm6 = vcmp.eq.f32.partialorder %v16942_v41, %v14384_v54  ;;  %vm7801_vm8 = vcmp.eq.f32.partialorder %v16943_v61, %v14384_v54  ;;  %vm7805_vm4 = vcmp.eq.f32.partialorder %v16944_v8, %v14384_v54  ;;  %vm7809_vm10 = vcmp.eq.f32.partialorder %v14243_v42, %v14384_v54  ;;  %v16964_v41 = vld [vmem:[#allocation50_spill] sm:$0xff]  ;;  %v16969_v42 = vld [vmem:[#allocation64_spill] sm:$0xff]  ;;  %v16976_v58 = vld [vmem:[#allocation59_spill] sm:$0xff] }
 0x688   : > { %vm7813_vm3 = vcmp.eq.f32.partialorder %v14266_v63, %v14384_v54  ;;  %vm7817_vm2 = vcmp.eq.f32.partialorder %v14294_v20, %v14384_v54  ;;  %vm7821_vm13 = vcmp.eq.f32.partialorder %v14312_v62, %v14384_v54  ;;  %vm7825_vm5 = vcmp.eq.f32.partialorder %v14324_v36, %v14384_v54  ;;  %16950 = vst [vmem:[#allocation105_spill] sm:$0xff] %v14455_v51  ;;  %v16966_v8 = vld [vmem:[#allocation74_spill] sm:$0xff]  ;;  %v16978_v44 = vld [vmem:[#allocation101_spill] sm:$0xff] }
 0x689   : > { %v7829_v48 = vsel %vm7765_vm9, %v16948_v21, 128  ;;  %v7833_v43 = vsel %vm7769_vm15, %v16949_v2, 128  ;;  %v7837_v15 = vsel %vm7773_vm11, %v16953_v7, 128  ;;  %v7841_v14 = vsel %vm7777_vm1, %v16954_v17, 128 }
 0x68a   : > { %7522 = vxpose.xlu0.b32.cont [4/16] %v14364_v50, 128  ;;  %v14473_v1 = vsel %vm6570_vm7, %v14043_v49, %v6634_v16  ;;  %v14476_v13 = vmul.f32 0.1, %v16955_v53  ;;  %v7845_v0 = vsel %vm7781_vm14, %v16956_v57, 128  ;;  %v7849_v34 = vsel %vm7785_vm12, %v16957_v4, 128  ;;  %v16959_v49 = vld [vmem:[#allocation48_spill] sm:$0xff] }
 0x68b   : > { %6804 = vxpose.xlu1.b32.cont [4/16] %v16951_v52, 128  ;;  %v7853_v47 = vsel %vm7789_vm0, %v16958_v18, 128  ;;  %v7857_v16 = vsel %vm7793_vm6, %v16959_v49, 128  ;;  %vm16961_vm7 = vcmp.eq.f32.partialorder %v14149_v39, %v14384_v54  ;;  %v14504_v32 = vsel %vm7801_vm8, %v16962_v28, 128  ;;  %v16970_v50 = vld [vmem:[#allocation72_spill] sm:$0xff]  ;;  %v16977_v52 = vld [vmem:[#allocation94_spill] sm:$0xff] }
 0x68c   : > { %v14498_v22 = vsel %vm16961_vm7, %v16960_v19, 128  ;;  %v14510_v25 = vsel %vm7805_vm4, %v16963_v23, 128  ;;  %vm7969_vm9 = vcmp.lt.s32.totalorder %v7829_v48, %v7833_v43  ;;  %v14517_v39 = vsel %vm7809_vm10, %v16964_v41, 128  ;;  %v16983_v54 = vld [vmem:[#allocation58_spill] sm:$0xff] }
 0x68d   : > { %v14523_v61 = vsel %vm7813_vm3, %v16965_v24, 128  ;;  %v7970_v59 = vsel %vm7969_vm9, %v7829_v48, %v7833_v43  ;;  %vm7763_vm15 = vcmp.eq.f32.partialorder %v16966_v8, %v14455_v51  ;;  %vm6574_vm11 = vcmp.gt.f32.partialorder %v16955_v53, 0.0  ;;  %v16971_v48 = vld [vmem:[#allocation86_spill] sm:$0xff]  ;;  %v16972_v43 = vld [vmem:[#allocation92_spill] sm:$0xff] }
 0x68e   : > { %7523 = vxpose.xlu0.b32.cont [5/16] %v14370_v11, 128  ;;  %vm7971_vm1 = vcmp.lt.s32.totalorder %v7970_v59, %v7837_v15  ;;  %v16968_v11 = vld [vmem:[#allocation87_spill] sm:$0xff]  ;;  %vm7787_vm12 = vcmp.eq.f32.partialorder %v16969_v42, %v14455_v51  ;;  %vm7791_vm0 = vcmp.eq.f32.partialorder %v16970_v50, %v14455_v51  ;;  %vm7795_vm6 = vcmp.eq.f32.partialorder %v16971_v48, %v14455_v51 }
 0x68f   : > { %6805 = vxpose.xlu1.b32.cont [5/16] %v16967_v35, 128  ;;  %vm7767_vm14 = vcmp.eq.f32.partialorder %v16968_v11, %v14455_v51  ;;  %v7972_v63 = vsel %vm7971_vm1, %v7970_v59, %v7837_v15  ;;  %v16974_v35 = vld [vmem:[#allocation113_spill] sm:$0xff]  ;;  %v16975_v15 = vld [vmem:[#allocation96_spill] sm:$0xff]  ;;  %vm7819_vm4 = vcmp.eq.f32.partialorder %v14318_v31, %v14455_v51  ;;  %vm7775_vm9 = vcmp.eq.f32.partialorder %v16977_v52, %v14455_v51 }
 0x690   : > { %vm7973_vm3 = vcmp.lt.s32.totalorder %v7972_v63, %v7841_v14  ;;  %vm7771_vm8 = vcmp.eq.f32.partialorder %v16975_v15, %v14455_v51  ;;  %vm7779_vm1 = vcmp.eq.f32.partialorder %v16978_v44, %v14455_v51  ;;  %v14578_v44 = vsel %vm7825_vm5, %v16982_v60, 128 }
 0x691   : > { %v7974_v59 = vsel %vm7973_vm3, %v7972_v63, %v7841_v14  ;;  %v16979_v14 = vld [vmem:[#allocation107_spill] sm:$0xff]  ;;  %v7827_v20 = vsel %vm7763_vm15, %v16948_v21, 128  ;;  %v7831_v62 = vsel %vm7767_vm14, %v16949_v2, 128  ;;  %v7839_v36 = vsel %vm7775_vm9, %v16954_v17, 128 }
 0x692   : > { %7524 = vxpose.xlu0.b32.cont [6/16] %v14381_v37, 128  ;;  %vm7975_vm7 = vcmp.lt.s32.totalorder %v7974_v59, %v7845_v0  ;;  %vm7783_vm3 = vcmp.eq.f32.partialorder %v16979_v14, %v14455_v51  ;;  %v16980_v63 = vld [vmem:[#allocation43_spill] sm:$0xff]  ;;  %v7835_v14 = vsel %vm7771_vm8, %v16953_v7, 128  ;;  %v7851_v11 = vsel %vm7787_vm12, %v16958_v18, 128 }
 0x693   : > { %6806 = vxpose.xlu1.b32.cont [6/16] %v16976_v58, 128  ;;  %v14566_v15 = vsel %vm7817_vm2, %v16980_v63, 128  ;;  %v14572_v58 = vsel %vm7821_vm13, %v16981_v46, 128  ;;  %v7976_v52 = vsel %vm7975_vm7, %v7974_v59, %v7845_v0  ;;  %v7843_v0 = vsel %vm7779_vm1, %v16956_v57, 128 }
 0x694   : > { %vm7977_vm10 = vcmp.lt.s32.totalorder %v7976_v52, %v7849_v34  ;;  %v7847_v59 = vsel %vm7783_vm3, %v16957_v4, 128  ;;  %v7855_v8 = vsel %vm7791_vm0, %v16959_v49, 128  ;;  %vm7891_vm2 = vcmp.lt.s32.totalorder %v7827_v20, %v7831_v62 }
 0x695   : > { %v7978_v3 = vsel %vm7977_vm10, %v7976_v52, %v7849_v34  ;;  %v14606_v34 = vsel %vm7795_vm6, %v16960_v19, 128  ;;  %v7441_v4 = vadd.f32 %v14398_v9, %v14388_v38  ;;  %v16984_v42 = vmax.f32 %v14377_v26, %v14381_v37  ;;  %v16985_v9 = vld [vmem:[#allocation53_spill] sm:$0xff] }
 0x696   : > { %7525 = vxpose.xlu0.b32.cont [7/16] %v14473_v1, 128  ;;  %vm7979_vm5 = vcmp.lt.s32.totalorder %v7978_v3, %v7853_v47  ;;  %v7892_v57 = vsel %vm7891_vm2, %v7827_v20, %v7831_v62  ;;  %v14618_v50 = vsel %vm6574_vm11, %v16955_v53, %v14476_v13  ;;  %v6642_v48 = vmul.f32 0.1, %v16974_v35  ;;  %v16987_v13 = vld [vmem:[#allocation76_spill] sm:$0xff]  ;;  %v16988_v20 = vld [vmem:[#allocation85_spill] sm:$0xff] }
 0x697   : > { %6807 = vxpose.xlu1.b32.cont [7/16] %v16983_v54, 128  ;;  %v7980_v52 = vsel %vm7979_vm5, %v7978_v3, %v7853_v47  ;;  %v7705_v18 = vmax.f32 %v16984_v42, %v14473_v1  ;;  %vm7893_vm15 = vcmp.lt.s32.totalorder %v7892_v57, %v7835_v14  ;;  %v7442_v47 = vadd.f32 %v7441_v4, %v14394_v12 }
 0x698   : > { %vm7981_vm13 = vcmp.lt.s32.totalorder %v7980_v52, %v7857_v16  ;;  %v7894_v26 = vsel %vm7893_vm15, %v7892_v57, %v7835_v14  ;;  %vm16986_vm12 = vcmp.gt.f32.partialorder %v16974_v35, 0.0  ;;  %vm6582_vm11 = vcmp.gt.f32.partialorder %v16987_v13, 0.0  ;;  %v16989_v14 = vld [vmem:[#allocation65_spill] sm:$0xff] }
 0x699   : > { %v7982_v3 = vsel %vm7981_vm13, %v7980_v52, %v7857_v16  ;;  %v7706_v38 = vmax.f32 %v7705_v18, %v14618_v50  ;;  %v14629_v53 = vsel %vm16986_vm12, %v16974_v35, %v6642_v48  ;;  %vm7895_vm0 = vcmp.lt.s32.totalorder %v7894_v26, %v7839_v36  ;;  %v16990_v52 = vld [vmem:[#allocation98_spill] sm:$0xff] }
 0x69a   : > { %7526 = vxpose.xlu0.b32.cont [8/16] %v14618_v50, 128  ;;  %vm7983_vm14 = vcmp.lt.s32.totalorder %v7982_v3, %v14498_v22  ;;  %v7443_v12 = vadd.f32 %v7442_v47, %v14436_v40  ;;  %v7896_v18 = vsel %vm7895_vm0, %v7894_v26, %v7839_v36  ;;  %v6646_v57 = vmul.f32 0.1, %v16987_v13  ;;  %v16993_v26 = vld [vmem:[#allocation60_spill] sm:$0xff] }
 0x69b   : > { %6808 = vxpose.xlu1.b32.cont [8/16] %v16985_v9, 128  ;;  %v7984_v16 = vsel %vm7983_vm14, %v7982_v3, %v14498_v22  ;;  %v7707_v4 = vmax.f32 %v7706_v38, %v14629_v53  ;;  %vm6586_vm8 = vcmp.gt.f32.partialorder %v16988_v20, 0.0  ;;  %vm7897_vm10 = vcmp.lt.s32.totalorder %v7896_v18, %v7843_v0 }
 0x69c   : > { %vm7985_vm6 = vcmp.lt.s32.totalorder %v7984_v16, %v14504_v32  ;;  %v7444_v35 = vadd.f32 %v7443_v12, %v14440_v6  ;;  %v6650_v22 = vmul.f32 0.1, %v16988_v20  ;;  %v7898_v40 = vsel %vm7897_vm10, %v7896_v18, %v7843_v0 }
 0x69d   : > { %v7986_v62 = vsel %vm7985_vm6, %v7984_v16, %v14504_v32  ;;  %v14647_v36 = vsel %vm6582_vm11, %v16987_v13, %v6646_v57  ;;  %vm6590_vm9 = vcmp.gt.f32.partialorder %v16990_v52, 0.0  ;;  %vm7899_vm1 = vcmp.lt.s32.totalorder %v7898_v40, %v7847_v59  ;;  %v16994_v16 = vld [vmem:[#allocation114_spill] sm:$0xff]  ;;  %v16997_v57 = vld [vmem:[#allocation61_spill] sm:$0xff] }
 0x69e   : > { %7527 = vxpose.xlu0.b32.cont [9/16] %v14629_v53, 128  ;;  %vm7987_vm7 = vcmp.lt.s32.totalorder %v7986_v62, %v14510_v25  ;;  %v7445_v6 = vadd.f32 %v7444_v35, %v14445_v33  ;;  %v7708_v42 = vmax.f32 %v7707_v4, %v14647_v36  ;;  %v7900_v48 = vsel %vm7899_vm1, %v7898_v40, %v7847_v59 }
 0x69f   : > { %6809 = vxpose.xlu1.b32.cont [9/16] %v16989_v14, 128  ;;  %v7988_v32 = vsel %vm7987_vm7, %v7986_v62, %v14510_v25  ;;  %v14657_v0 = vsel %vm6586_vm8, %v16988_v20, %v6650_v22  ;;  %v6654_v3 = vmul.f32 0.1, %v16990_v52  ;;  %vm7901_vm5 = vcmp.lt.s32.totalorder %v7900_v48, %v7851_v11 }
 0x6a0   : > { %vm7989_vm3 = vcmp.lt.s32.totalorder %v7988_v32, %v14517_v39  ;;  %v14662_v25 = vadd.f32 %v7445_v6, %v14460_v30  ;;  %v7709_v33 = vmax.f32 %v7708_v42, %v14657_v0  ;;  %vm16992_vm13 = vcmp.eq.f32.partialorder %v16972_v43, %v14455_v51  ;;  %v17000_v6 = vld [vmem:[#allocation67_spill] sm:$0xff] }
 0x6a1   : > { %v7990_v47 = vsel %vm7989_vm3, %v7988_v32, %v14517_v39  ;;  %v7863_v59 = vsel %vm16992_vm13, %v16962_v28, 128  ;;  %v7902_v38 = vsel %vm7901_vm5, %v7900_v48, %v7851_v11  ;;  %v14675_v39 = vsel %vm6590_vm9, %v16990_v52, %v6654_v3  ;;  %v16995_v11 = vld [vmem:[#allocation55_spill] sm:$0xff] }
 0x6a2   : > { %16991 = vst [vmem:[#allocation62_spill] sm:$0xff] %v14662_v25  ;;  %7528 = vxpose.xlu0.b32.cont [10/16] %v14647_v36, 128  ;;  %vm7991_vm2 = vcmp.lt.s32.totalorder %v7990_v47, %v14523_v61  ;;  %vm7903_vm15 = vcmp.lt.s32.totalorder %v7902_v38, %v7855_v8  ;;  %v7710_v13 = vmax.f32 %v7709_v33, %v14675_v39  ;;  %vm6594_vm14 = vcmp.gt.f32.partialorder %v16994_v16, 0.0 }
 0x6a3   : > { %6810 = vxpose.xlu1.b32.cont [10/16] %v16993_v26, 128  ;;  %v7992_v30 = vsel %vm7991_vm2, %v7990_v47, %v14523_v61  ;;  %v7904_v12 = vsel %vm7903_vm15, %v7902_v38, %v7855_v8  ;;  %v6658_v43 = vmul.f32 0.1, %v16994_v16  ;;  %vm6598_vm11 = vcmp.gt.f32.partialorder %v16995_v11, 0.0 }
 0x6a4   : > { %vm7993_vm12 = vcmp.lt.s32.totalorder %v7992_v30, %v14566_v15  ;;  %vm16996_vm0 = vcmp.eq.f32.partialorder %v16973_v29, %v14455_v51  ;;  %vm7905_vm6 = vcmp.lt.s32.totalorder %v7904_v12, %v14606_v34  ;;  %v6662_v61 = vmul.f32 0.1, %v16995_v11 }
 0x6a5   : > { %v7994_v4 = vsel %vm7993_vm12, %v7992_v30, %v14566_v15  ;;  %v7867_v18 = vsel %vm16996_vm0, %v16963_v23, 128  ;;  %v7906_v8 = vsel %vm7905_vm6, %v7904_v12, %v14606_v34  ;;  %v14695_v20 = vsel %vm6594_vm14, %v16994_v16, %v6658_v43  ;;  %v17007_v12 = vld [vmem:[#allocation120_spill] sm:$0xff] }
 0x6a6   : > { %7529 = vxpose.xlu0.b32.cont [11/16] %v14657_v0, 128  ;;  %vm7995_vm8 = vcmp.lt.s32.totalorder %v7994_v4, %v14572_v58  ;;  %vm6602_vm10 = vcmp.gt.f32.partialorder %v14275_v45, 0.0  ;;  %vm7907_vm7 = vcmp.lt.s32.totalorder %v7906_v8, %v7863_v59  ;;  %v7711_v15 = vmax.f32 %v7710_v13, %v14695_v20  ;;  %v17006_v13 = vld [vmem:[#allocation112_spill] sm:$0xff] }
 0x6a7   : > { %6811 = vxpose.xlu1.b32.cont [11/16] %v16997_v57, 128  ;;  %v7996_v29 = vsel %vm7995_vm8, %v7994_v4, %v14572_v58  ;;  %v14701_v62 = vsel %vm6598_vm11, %v16995_v11, %v6662_v61  ;;  %v7908_v35 = vsel %vm7907_vm7, %v7906_v8, %v7863_v59  ;;  %v6666_v34 = vmul.f32 0.1, %v14275_v45  ;;  %v17003_v59 = vld [vmem:[#allocation116_spill] sm:$0xff]  ;;  %v17009_v8 = vld [vmem:[#allocation70_spill] sm:$0xff] }
 0x6a8   : > { %vm7997_vm9 = vcmp.lt.s32.totalorder %v7996_v29, %v14578_v44  ;;  %vm6606_vm1 = vcmp.gt.f32.partialorder %v14305_v55, 0.0  ;;  %vm7909_vm3 = vcmp.lt.s32.totalorder %v7908_v35, %v7867_v18  ;;  %v7712_v58 = vmax.f32 %v7711_v15, %v14701_v62  ;;  %v17010_v15 = vld [vmem:[#allocation130_spill] sm:$0xff] }
 0x6a9   : > { %v14707_v22 = vsel %vm7997_vm9, %v7996_v29, %v14578_v44  ;;  %v6670_v40 = vmul.f32 0.1, %v14305_v55  ;;  %vm16999_vm5 = vcmp.eq.f32.partialorder %v14245_v10, %v14455_v51  ;;  %v7910_v32 = vsel %vm7909_vm3, %v7908_v35, %v7867_v18 }
 0x6aa   : > { %16998 = vst [vmem:[#allocation69_spill] sm:$0xff] %v14707_v22  ;;  %7530 = vxpose.xlu0.b32.cont [12/16] %v14675_v39, 128  ;;  %v7871_v52 = vsel %vm16999_vm5, %v16964_v41, 128  ;;  %v14720_v44 = vsel %vm6602_vm10, %v14275_v45, %v6666_v34  ;;  %vm17001_vm13 = vcmp.eq.f32.partialorder %v14272_v27, %v14455_v51  ;;  %v17002_v47 = vrot.slane %v14291_v56, 2  ;;  %v17005_v27 = vld [vmem:[#allocation71_spill] sm:$0xff]  ;;  %v17012_v34 = vld [vmem:[#allocation66_spill] sm:$0xff] }
 0x6ab   : > { %6812 = vxpose.xlu1.b32.cont [12/16] %v17000_v6, 128  ;;  %vm7911_vm2 = vcmp.lt.s32.totalorder %v7910_v32, %v7871_v52  ;;  %v7713_v42 = vmax.f32 %v7712_v58, %v14720_v44  ;;  %v14724_v48 = vsel %vm6606_vm1, %v14305_v55, %v6670_v40  ;;  %v7875_v10 = vsel %vm17001_vm13, %v16965_v24, 128  ;;  %v17035_v22 = vld [vmem:[#allocation127_spill] sm:$0xff]  ;;  %v17040_v6 = vld [vmem:[#allocation81_spill] sm:$0xff] }
 0x6ac   : > { %v7912_v3 = vsel %vm7911_vm2, %v7910_v32, %v7871_v52  ;;  %v6989_v33 = vmax.f32 %v14291_v56, %v17002_v47  ;;  %v5227_v38 = vmul.f32 0.1, %v17003_v59  ;;  %vm17004_vm14 = vcmp.eq.f32.partialorder %v14296_v5, %v14455_v51  ;;  %v17015_v32 = vld [vmem:[#allocation73_spill] sm:$0xff] }
 0x6ad   : > { %vm7913_vm15 = vcmp.lt.s32.totalorder %v7912_v3, %v7875_v10  ;;  %v7714_v45 = vmax.f32 %v7713_v42, %v14724_v48  ;;  %v7879_v55 = vsel %vm17004_vm14, %v16980_v63, 128  ;;  %v5223_v16 = vmul.f32 0.1, %v17006_v13 }
 0x6ae   : > { %7531 = vxpose.xlu0.b32.cont [13/16] %v14695_v20, 128  ;;  %v7914_v30 = vsel %vm7913_vm15, %v7912_v3, %v7875_v10  ;;  %vm5163_vm12 = vcmp.gt.f32.partialorder %v17003_v59, 0.0  ;;  %vm5159_vm0 = vcmp.gt.f32.partialorder %v17006_v13, 0.0  ;;  %v5231_v43 = vmul.f32 0.1, %v17007_v12 }
 0x6af   : > { %6813 = vxpose.xlu1.b32.cont [13/16] %v17005_v27, 128  ;;  %vm7915_vm11 = vcmp.lt.s32.totalorder %v7914_v30, %v7879_v55  ;;  %v7715_v56 = vrot.slane %v7714_v45, 4  ;;  %v7883_v11 = vsel %vm7819_vm4, %v16981_v46, 128  ;;  %v6990_v4 = vrot.slane %v6989_v33, 1 }
 0x6b0   : > { %v7916_v5 = vsel %vm7915_vm11, %v7914_v30, %v7879_v55  ;;  %vm5167_vm6 = vcmp.gt.f32.partialorder %v17007_v12, 0.0  ;;  %v14752_v61 = vsel %vm5163_vm12, %v17003_v59, %v5227_v38  ;;  %v5235_v29 = vmul.f32 0.1, %v17009_v8  ;;  %v17017_v38 = vld [vmem:[#allocation68_spill] sm:$0xff]  ;;  %v17018_v30 = vld [vmem:[#allocation77_spill] sm:$0xff] }
 0x6b1   : > { %vm7917_vm8 = vcmp.lt.s32.totalorder %v7916_v5, %v7883_v11  ;;  %v7716_v18 = vmax.f32 %v7714_v45, %v7715_v56  ;;  %17008 = vst [vmem:[#allocation89_spill] sm:$0xff] %v14752_v61  ;;  %vm17011_vm10 = vcmp.eq.f32.partialorder %v17010_v15, %v14455_v51  ;;  %v14761_v58 = vsel %vm5159_vm0, %v17006_v13, %v5223_v16  ;;  %v17024_v15 = vld [vmem:[#allocation140_spill] sm:$0xff] }
 0x6b2   : > { %7532 = vxpose.xlu0.b32.cont [14/16] %v14701_v62, 128  ;;  %v7887_v35 = vsel %vm17011_vm10, %v16982_v60, 128  ;;  %v7918_v31 = vsel %vm7917_vm8, %v7916_v5, %v7883_v11  ;;  %17013 = vst [vmem:[#allocation100_spill] sm:$0xff] %v14761_v58  ;;  %vm5171_vm4 = vcmp.gt.f32.partialorder %v17009_v8, 0.0  ;;  %v14765_v52 = vsel %vm5167_vm6, %v17007_v12, %v5231_v43  ;;  %v17020_v12 = vld [vmem:[#allocation137_spill] sm:$0xff]  ;;  %v17021_v43 = vld [vmem:[#allocation138_spill] sm:$0xff] }
 0x6b3   : > { %6814 = vxpose.xlu1.b32.cont [14/16] %v17012_v34, 128  ;;  %vm7919_vm7 = vcmp.lt.s32.totalorder %v7918_v31, %v7887_v35  ;;  %v7717_v40 = vrot.slane %v7716_v18, 2  ;;  %17014 = vst [vmem:[#allocation83_spill] sm:$0xff] %v14765_v52  ;;  %v5239_v42 = vmul.f32 0.1, %v17015_v32  ;;  %v14770_v3 = vmax.f32 %v6989_v33, %v6990_v4 }
 0x6b4   : > { %v14768_v10 = vsel %vm7919_vm7, %v7918_v31, %v7887_v35  ;;  %v6992_v47 = vmax.f32 %v14761_v58, %v14752_v61  ;;  %vm5175_vm9 = vcmp.gt.f32.partialorder %v17015_v32, 0.0  ;;  %v14777_v59 = vsel %vm5171_vm4, %v17009_v8, %v5235_v29  ;;  %v17023_v29 = vld [vmem:[#allocation139_spill] sm:$0xff]  ;;  %v17025_v35 = vld [vmem:[#allocation82_spill] sm:$0xff] }
 0x6b5   : > { %v7718_v45 = vmax.f32 %v7716_v18, %v7717_v40  ;;  %17016 = vst [vmem:[#allocation95_spill] sm:$0xff] %v14777_v59  ;;  %v5243_v13 = vmul.f32 0.1, %v17018_v30  ;;  %v14783_v16 = vsel %vm5175_vm9, %v17015_v32, %v5239_v42  ;;  %vm5179_vm1 = vcmp.gt.f32.partialorder %v17018_v30, 0.0  ;;  %v17022_v18 = vld [vmem:[#allocation80_spill] sm:$0xff]  ;;  %v17027_v32 = vld [vmem:[#allocation119_spill] sm:$0xff] }
 0x6b6   : > { %7533 = vxpose.xlu0.b32.cont [15/16] %v14720_v44, 128  ;;  %v6993_v55 = vmax.f32 %v6992_v47, %v14765_v52  ;;  %17019 = vst [vmem:[#allocation97_spill] sm:$0xff] %v14783_v16  ;;  %vm7015_vm3 = vcmp.eq.f32.partialorder %v17020_v12, %v14770_v3  ;;  %vm7019_vm5 = vcmp.eq.f32.partialorder %v17021_v43, %v14770_v3  ;;  %vm5183_vm2 = vcmp.gt.f32.partialorder %v17022_v18, 0.0  ;;  %v17028_v42 = vld [vmem:[#allocation57_spill] sm:$0xff]  ;;  %v17033_v43 = vld [vmem:[#allocation59_spill] sm:$0xff] }
 0x6b7   : > { %6815 = vxpose.xlu1.b32.cont [15/16] %v17017_v38, 128  ;;  %v7719_v33 = vrot.slane %v7718_v45, 1  ;;  %v5247_v8 = vmul.f32 0.1, %v17022_v18  ;;  %vm7023_vm13 = vcmp.eq.f32.partialorder %v17023_v29, %v14770_v3  ;;  %vm7027_vm15 = vcmp.eq.f32.partialorder %v17024_v15, %v14770_v3 }
 0x6b8   : > { %v6994_v11 = vmax.f32 %v6993_v55, %v14777_v59  ;;  %v14809_v40 = vsel %vm5179_vm1, %v17018_v30, %v5243_v13  ;;  %vm7031_vm12 = vcmp.eq.f32.partialorder %v17028_v42, %v14770_v3  ;;  %v7079_v47 = vsel %vm7015_vm3, %v16948_v21, 128  ;;  %v17029_v55 = vld [vmem:[#allocation108_spill] sm:$0xff]  ;;  %v17030_v30 = vld [vmem:[#allocation121_spill] sm:$0xff]  ;;  %v17039_v42 = vld [vmem:[#allocation75_spill] sm:$0xff] }
 0x6b9   : > { %v7567_v56 = vpop.trf.xlu0  ;;  %v14791_v5 = vmax.f32 %v7718_v45, %v7719_v33  ;;  %17026 = vst [vmem:[#allocation103_spill] sm:$0xff] %v14809_v40  ;;  %v7083_v45 = vsel %vm7019_vm5, %v16949_v2, 128  ;;  %v17031_v13 = vld [vmem:[#allocation133_spill] sm:$0xff]  ;;  %vm7035_vm3 = vcmp.eq.f32.partialorder %v17033_v43, %v14770_v3  ;;  %vm7039_vm5 = vcmp.eq.f32.partialorder %v16983_v54, %v14770_v3 }
 0x6ba   : > { %7534 = vxpose.xlu0.b32.end [16/16] %v14724_v48, 128  ;;  %7647 = vst [vmem:[%s10847_s25 + $0x300] sm:$0xff] %v7567_v56  ;;  %v7503_v4 = vpop.trf.xlu1  ;;  %v14804_v31 = vmax.f32 %v6994_v11, %v14783_v16  ;;  %v17032_v56 = vld [vmem:[#allocation115_spill] sm:$0xff]  ;;  %vm7219_vm1 = vcmp.lt.s32.totalorder %v7079_v47, %v7083_v45 }
 0x6bb   : > { %6816 = vxpose.xlu1.b32.end [16/16] %v17025_v35, 128  ;;  %7615 = vst [vmem:[%s10847_s25 + $0x200] sm:$0xff] %v7503_v4  ;;  %vm7772_vm14 = vcmp.eq.f32.partialorder %v17027_v32, %v14791_v5  ;;  %vm7764_vm11 = vcmp.eq.f32.partialorder %v17029_v55, %v14791_v5  ;;  %vm7776_vm0 = vcmp.eq.f32.partialorder %v17030_v30, %v14791_v5  ;;  %v17036_v55 = vld [vmem:[#allocation38_spill] sm:$0xff]  ;;  %v6612_v32 = vmul.f32 0.1, %v17039_v42 }
 0x6bc   : > { %vm7780_vm6 = vcmp.eq.f32.partialorder %v17031_v13, %v14791_v5  ;;  %vm7784_vm8 = vcmp.eq.f32.partialorder %v14381_v37, %v14791_v5  ;;  %vm7768_vm10 = vcmp.eq.f32.partialorder %v17032_v56, %v14791_v5  ;;  %vm7812_vm4 = vcmp.eq.f32.partialorder %v14695_v20, %v14791_v5 }
 0x6bd   : > { %v7568_v33 = vpop.trf.xlu0  ;;  %vm7816_vm9 = vcmp.eq.f32.partialorder %v14701_v62, %v14791_v5  ;;  %vm7820_vm7 = vcmp.eq.f32.partialorder %v14720_v44, %v14791_v5  ;;  %v7828_v35 = vsel %vm7764_vm11, %v16948_v21, 128  ;;  %v7832_v43 = vsel %vm7768_vm10, %v16949_v2, 128  ;;  %v17038_v21 = vld [vmem:[#allocation47_spill] sm:$0xff] }
 0x6be   : > { %7648 = vst [vmem:[%s10847_s25 + $0x308] sm:$0xff] %v7568_v33  ;;  %v7504_v12 = vpop.trf.xlu1  ;;  %v14877_v33 = vmul.f32 0.1, %v17035_v22  ;;  %v7095_v56 = vsel %vm7031_vm12, %v17036_v55, 128  ;;  %v7836_v29 = vsel %vm7772_vm14, %v16953_v7, 128  ;;  %v14902_v15 = vsel %vm7039_vm5, %v17038_v21, 128 }
 0x6bf   : > { %6833 = vxpose.xlu1.b32.start [1/16] %v14761_v58, 128  ;;  %7616 = vst [vmem:[%s10847_s25 + $0x208] sm:$0xff] %v7504_v12  ;;  %v14865_v58 = vsel %vm5183_vm2, %v17022_v18, %v5247_v8  ;;  %v7087_v18 = vsel %vm7023_vm13, %v16953_v7, 128  ;;  %v7091_v8 = vsel %vm7027_vm15, %v16954_v17, 128  ;;  %v8102_v51 = vmul.f32 %v7503_v4, %v7503_v4 }
 0x6c0   : > { %17034 = vst [vmem:[#allocation131_spill] sm:$0xff] %v14865_v58  ;;  %vm6548_vm2 = vcmp.gt.f32.partialorder %v17039_v42, 0.0  ;;  %vm7930_vm13 = vcmp.lt.s32.totalorder %v7828_v35, %v7832_v43  ;;  %v7220_v34 = vsel %vm7219_vm1, %v7079_v47, %v7083_v45  ;;  %v7844_v54 = vsel %vm7780_vm6, %v17036_v55, 128 }
 0x6c1   : > { %v7569_v11 = vpop.trf.xlu0  ;;  %v7931_v4 = vsel %vm7930_vm13, %v7828_v35, %v7832_v43  ;;  %vm7221_vm15 = vcmp.lt.s32.totalorder %v7220_v34, %v7087_v18  ;;  %v8103_v25 = vmul.f32 %v7504_v12, %v7504_v12  ;;  %vm6552_vm12 = vcmp.gt.f32.partialorder %v17040_v6, 0.0 }
 0x6c2   : > { %7649 = vst [vmem:[%s10847_s25 + $0x310] sm:$0xff] %v7569_v11  ;;  %v7505_v38 = vpop.trf.xlu1  ;;  %v17037_v11 = vld [vmem:[#allocation39_spill] sm:$0xff]  ;;  %vm7932_vm14 = vcmp.lt.s32.totalorder %v7931_v4, %v7836_v29  ;;  %v7222_v30 = vsel %vm7221_vm15, %v7220_v34, %v7087_v18  ;;  %v6616_v45 = vmul.f32 0.1, %v17040_v6  ;;  %vm17041_vm6 = vcmp.eq.f32.partialorder %v14473_v1, %v14791_v5 }
 0x6c3   : > { %v7099_v2 = vsel %vm7035_vm3, %v17037_v11, 128  ;;  %6834 = vxpose.xlu1.b32.cont [2/16] %v14752_v61, 128  ;;  %7617 = vst [vmem:[%s10847_s25 + $0x210] sm:$0xff] %v7505_v38  ;;  %v7840_v61 = vsel %vm7776_vm0, %v16954_v17, 128  ;;  %v14917_v17 = vsel %vm6548_vm2, %v17039_v42, %v6612_v32  ;;  %v7933_v47 = vsel %vm7932_vm14, %v7931_v4, %v7836_v29  ;;  %v17043_v42 = vld [vmem:[#allocation93_spill] sm:$0xff] }
 0x6c4   : > { %vm7223_vm11 = vcmp.lt.s32.totalorder %v7222_v30, %v7091_v8  ;;  %7583 = vxpose.xlu0.b32.start [1/16] %v14917_v17, 128  ;;  %v8166_v35 = vadd.f32 %v8103_v25, %v8102_v51  ;;  %vm7934_vm0 = vcmp.lt.s32.totalorder %v7933_v47, %v7840_v61  ;;  %v8104_v13 = vmul.f32 %v7505_v38, %v7505_v38 }
 0x6c5   : > { %v7570_v7 = vpop.trf.xlu0  ;;  %v7224_v34 = vsel %vm7223_vm11, %v7222_v30, %v7091_v8  ;;  %v7852_v43 = vsel %vm17041_vm6, %v17038_v21, 128  ;;  %v7935_v18 = vsel %vm7934_vm0, %v7933_v47, %v7840_v61  ;;  %v14935_v51 = vsel %vm6552_vm12, %v17040_v6, %v6616_v45  ;;  %v17042_v8 = vld [vmem:[#allocation88_spill] sm:$0xff] }
 0x6c6   : > { %7650 = vst [vmem:[%s10847_s25 + $0x318] sm:$0xff] %v7570_v7  ;;  %v7506_v27 = vpop.trf.xlu1  ;;  %v7848_v7 = vsel %vm7784_vm8, %v17037_v11, 128  ;;  %vm7225_vm10 = vcmp.lt.s32.totalorder %v7224_v34, %v7095_v56  ;;  %vm7936_vm8 = vcmp.lt.s32.totalorder %v7935_v18, %v7844_v54  ;;  %v8167_v29 = vadd.f32 %v8166_v35, %v8104_v13 }
 0x6c7   : > { %6835 = vxpose.xlu1.b32.cont [3/16] %v14765_v52, 128  ;;  %7618 = vst [vmem:[%s10847_s25 + $0x218] sm:$0xff] %v7506_v27  ;;  %v7226_v25 = vsel %vm7225_vm10, %v7224_v34, %v7095_v56  ;;  %vm6556_vm1 = vcmp.gt.f32.partialorder %v17042_v8, 0.0  ;;  %v7937_v1 = vsel %vm7936_vm8, %v7935_v18, %v7844_v54  ;;  %v7742_v61 = vmax.f32 %v14917_v17, %v14935_v51 }
 0x6c8   : > { %vm7227_vm3 = vcmp.lt.s32.totalorder %v7226_v25, %v7099_v2  ;;  %7584 = vxpose.xlu0.b32.cont [2/16] %v14935_v51, 128  ;;  %v6620_v6 = vmul.f32 0.1, %v17042_v8  ;;  %vm5187_vm5 = vcmp.gt.f32.partialorder %v17035_v22, 0.0  ;;  %vm7938_vm2 = vcmp.lt.s32.totalorder %v7937_v1, %v7848_v7 }
 0x6c9   : > { %v7571_v12 = vpop.trf.xlu0  ;;  %v7228_v38 = vsel %vm7227_vm3, %v7226_v25, %v7099_v2  ;;  %v8105_v56 = vmul.f32 %v7506_v27, %v7506_v27  ;;  %vm6560_vm13 = vcmp.gt.f32.partialorder %v17043_v42, 0.0  ;;  %v7939_v4 = vsel %vm7938_vm2, %v7937_v1, %v7848_v7 }
 0x6ca   : > { %7651 = vst [vmem:[%s10847_s25 + $0x320] sm:$0xff] %v7571_v12  ;;  %v7507_v37 = vpop.trf.xlu1  ;;  %vm7229_vm15 = vcmp.lt.s32.totalorder %v7228_v38, %v14902_v15  ;;  %v14951_v54 = vsel %vm6556_vm1, %v17042_v8, %v6620_v6  ;;  %v6624_v30 = vmul.f32 0.1, %v17043_v42  ;;  %vm7940_vm14 = vcmp.lt.s32.totalorder %v7939_v4, %v7852_v43 }
 0x6cb   : > { %6836 = vxpose.xlu1.b32.cont [4/16] %v14777_v59, 128  ;;  %7619 = vst [vmem:[%s10847_s25 + $0x220] sm:$0xff] %v7507_v37  ;;  %vm7043_vm12 = vcmp.eq.f32.partialorder %v16985_v9, %v14770_v3  ;;  %v7743_v2 = vmax.f32 %v7742_v61, %v14951_v54  ;;  %v8168_v27 = vadd.f32 %v8167_v29, %v8105_v56  ;;  %v7921_v35 = vrot.slane %v14768_v10, 4  ;;  %v17046_v29 = vld [vmem:[#allocation90_spill] sm:$0xff] }
 0x6cc   : > { %vm17044_vm11 = vcmp.eq.f32.partialorder %v14618_v50, %v14791_v5  ;;  %v7941_v7 = vsel %vm7940_vm14, %v7939_v4, %v7852_v43  ;;  %7585 = vxpose.xlu0.b32.cont [3/16] %v14951_v54, 128  ;;  %v14972_v34 = vsel %vm6560_vm13, %v17043_v42, %v6624_v30  ;;  %v7230_v13 = vsel %vm7229_vm15, %v7228_v38, %v14902_v15  ;;  %v17051_v42 = vld [vmem:[#allocation99_spill] sm:$0xff] }
 0x6cd   : > { %v7572_v32 = vpop.trf.xlu0  ;;  %v7856_v45 = vsel %vm17044_vm11, %v16959_v49, 128  ;;  %v7744_v12 = vmax.f32 %v7743_v2, %v14972_v34  ;;  %v8106_v18 = vmul.f32 %v7507_v37, %v7507_v37  ;;  %vm17045_vm6 = vcmp.eq.f32.partialorder %v14629_v53, %v14791_v5  ;;  %v17047_v53 = vld [vmem:[#allocation126_spill] sm:$0xff] }
 0x6ce   : > { %7652 = vst [vmem:[%s10847_s25 + $0x328] sm:$0xff] %v7572_v32  ;;  %v14955_v47 = vpop.trf.xlu1  ;;  %vm7942_vm0 = vcmp.lt.s32.totalorder %v7941_v7, %v7856_v45  ;;  %v7860_v50 = vsel %vm17045_vm6, %v16960_v19, 128  ;;  %vm6564_vm10 = vcmp.gt.f32.partialorder %v17046_v29, 0.0  ;;  %v6628_v8 = vmul.f32 0.1, %v17046_v29 }
 0x6cf   : > { %6837 = vxpose.xlu1.b32.cont [5/16] %v14783_v16, 128  ;;  %7620 = vst [vmem:[%s10847_s25 + $0x228] sm:$0xff] %v14955_v47  ;;  %v7943_v43 = vsel %vm7942_vm0, %v7941_v7, %v7856_v45  ;;  %v7107_v15 = vsel %vm7043_vm12, %v16959_v49, 128  ;;  %v14991_v37 = vadd.f32 %v8168_v27, %v8106_v18  ;;  %vm5191_vm1 = vcmp.gt.f32.partialorder %v17047_v53, 0.0 }
 0x6d0   : > { %vm7944_vm8 = vcmp.lt.s32.totalorder %v7943_v43, %v7860_v50  ;;  %vm17048_vm3 = vcmp.eq.f32.partialorder %v14647_v36, %v14791_v5  ;;  %vm7231_vm2 = vcmp.lt.s32.totalorder %v7230_v13, %v7107_v15  ;;  %7586 = vxpose.xlu0.b32.cont [4/16] %v14972_v34, 128  ;;  %v15003_v9 = vsel %vm6564_vm10, %v17046_v29, %v6628_v8  ;;  %v17056_v29 = vld [vmem:[#allocation123_spill] sm:$0xff] }
 0x6d1   : > { %v7573_v25 = vpop.trf.xlu0  ;;  %v7864_v61 = vsel %vm17048_vm3, %v16962_v28, 128  ;;  %v7945_v6 = vsel %vm7944_vm8, %v7943_v43, %v7860_v50  ;;  %vm15006_vm13 = vcmp.lt.s32.totalorder %v14768_v10, %v7921_v35  ;;  %v7745_v56 = vmax.f32 %v7744_v12, %v15003_v9 }
 0x6d2   : > { %7653 = vst [vmem:[%s10847_s25 + $0x330] sm:$0xff] %v7573_v25  ;;  %v14985_v1 = vpop.trf.xlu1  ;;  %vm7946_vm15 = vcmp.lt.s32.totalorder %v7945_v6, %v7864_v61  ;;  %vm6568_vm14 = vcmp.gt.f32.partialorder %v17051_v42, 0.0  ;;  %vm17052_vm12 = vcmp.eq.f32.partialorder %v14657_v0, %v14791_v5  ;;  %vm7047_vm11 = vcmp.eq.f32.partialorder %v16989_v14, %v14770_v3 }
 0x6d3   : > { %6838 = vxpose.xlu1.b32.cont [6/16] %v14809_v40, 128  ;;  %7621 = vst [vmem:[%s10847_s25 + $0x230] sm:$0xff] %v14985_v1  ;;  %v7868_v32 = vsel %vm17052_vm12, %v16963_v23, 128  ;;  %v7947_v4 = vsel %vm7946_vm15, %v7945_v6, %v7864_v61  ;;  %v6632_v30 = vmul.f32 0.1, %v17051_v42  ;;  %v7232_v27 = vsel %vm7231_vm2, %v7230_v13, %v7107_v15 }
 0x6d4   : > { %vm7948_vm0 = vcmp.lt.s32.totalorder %v7947_v4, %v7868_v32  ;;  %v15029_v0 = vsel %vm5187_vm5, %v17035_v22, %v14877_v33  ;;  %v5255_v45 = vmul.f32 0.1, %v17047_v53  ;;  %v7923_v7 = vsel %vm15006_vm13, %v14768_v10, %v7921_v35  ;;  %7587 = vxpose.xlu0.b32.cont [5/16] %v15003_v9, 128  ;;  %v17055_v35 = vld [vmem:[#allocation109_spill] sm:$0xff] }
 0x6d5   : > { %v7574_v36 = vpop.trf.xlu0  ;;  %17053 = vst [vmem:[#allocation48_spill] sm:$0xff] %v15029_v0  ;;  %vm17054_vm6 = vcmp.eq.f32.partialorder %v14675_v39, %v14791_v5  ;;  %v7949_v12 = vsel %vm7948_vm0, %v7947_v4, %v7868_v32  ;;  %v15043_v22 = vsel %vm6568_vm14, %v17051_v42, %v6632_v30  ;;  %v7111_v10 = vsel %vm7047_vm11, %v16960_v19, 128 }
 0x6d6   : > { %7654 = vst [vmem:[%s10847_s25 + $0x338] sm:$0xff] %v7574_v36  ;;  %v15020_v2 = vpop.trf.xlu1  ;;  %v7872_v13 = vsel %vm17054_vm6, %v16964_v41, 128  ;;  %v7746_v33 = vmax.f32 %v7745_v56, %v15043_v22  ;;  %vm6572_vm10 = vcmp.gt.f32.partialorder %v17055_v35, 0.0  ;;  %v7876_v18 = vsel %vm7812_vm4, %v16965_v24, 128 }
 0x6d7   : > { %6839 = vxpose.xlu1.b32.cont [7/16] %v14865_v58, 128  ;;  %7622 = vst [vmem:[%s10847_s25 + $0x238] sm:$0xff] %v15020_v2  ;;  %vm7950_vm5 = vcmp.lt.s32.totalorder %v7949_v12, %v7872_v13  ;;  %vm7233_vm8 = vcmp.lt.s32.totalorder %v7232_v27, %v7111_v10  ;;  %v6636_v50 = vmul.f32 0.1, %v17055_v35  ;;  %v7924_v14 = vrot.slane %v7923_v7, 2 }
 0x6d8   : > { %v7951_v25 = vsel %vm7950_vm5, %v7949_v12, %v7872_v13  ;;  %vm7051_vm2 = vcmp.eq.f32.partialorder %v16993_v26, %v14770_v3  ;;  %vm6576_vm13 = vcmp.gt.f32.partialorder %v17056_v29, 0.0  ;;  %v7880_v20 = vsel %vm7816_vm9, %v16980_v63, 128  ;;  %7588 = vxpose.xlu0.b32.cont [6/16] %v15043_v22, 128 }
 0x6d9   : > { %v7575_v39 = vpop.trf.xlu0  ;;  %vm7952_vm3 = vcmp.lt.s32.totalorder %v7951_v25, %v7876_v18  ;;  %v15073_v15 = vsel %vm6572_vm10, %v17055_v35, %v6636_v50  ;;  %v6640_v61 = vmul.f32 0.1, %v17056_v29  ;;  %v7234_v6 = vsel %vm7233_vm8, %v7232_v27, %v7111_v10  ;;  %v17059_v27 = vld [vmem:[#allocation117_spill] sm:$0xff] }
 0x6da   : > { %7655 = vst [vmem:[%s10847_s25 + $0x340] sm:$0xff] %v7575_v39  ;;  %v15057_v43 = vpop.trf.xlu1  ;;  %v7953_v8 = vsel %vm7952_vm3, %v7951_v25, %v7876_v18  ;;  %v7747_v38 = vmax.f32 %v7746_v33, %v15073_v15  ;;  %v15083_v62 = vsel %vm5191_vm1, %v17047_v53, %v5255_v45  ;;  %v7884_v42 = vsel %vm7820_vm7, %v16981_v46, 128 }
 0x6db   : > { %6840 = vxpose.xlu1.b32.cont [8/16] %v15029_v0, 128  ;;  %7623 = vst [vmem:[%s10847_s25 + $0x240] sm:$0xff] %v15057_v43  ;;  %vm7954_vm4 = vcmp.lt.s32.totalorder %v7953_v8, %v7880_v20  ;;  %v7115_v32 = vsel %vm7051_vm2, %v16962_v28, 128  ;;  %v15096_v4 = vsel %vm6576_vm13, %v17056_v29, %v6640_v61  ;;  %vm7925_vm9 = vcmp.lt.s32.totalorder %v7923_v7, %v7924_v14 }
 0x6dc   : > { %v7955_v36 = vsel %vm7954_vm4, %v7953_v8, %v7880_v20  ;;  %vm17058_vm7 = vcmp.eq.f32.partialorder %v14724_v48, %v14791_v5  ;;  %v7748_v26 = vmax.f32 %v7747_v38, %v15096_v4  ;;  %vm7235_vm15 = vcmp.lt.s32.totalorder %v7234_v6, %v7115_v32  ;;  %7589 = vxpose.xlu0.b32.cont [7/16] %v15073_v15, 128 }
 0x6dd   : > { %v15078_v56 = vpop.trf.xlu0  ;;  %v7888_v44 = vsel %vm17058_vm7, %v16982_v60, 128  ;;  %vm7956_vm1 = vcmp.lt.s32.totalorder %v7955_v36, %v7884_v42  ;;  %vm6580_vm14 = vcmp.gt.f32.partialorder %v17059_v27, 0.0  ;;  %v6644_v45 = vmul.f32 0.1, %v17059_v27 }
 0x6de   : > { %17057 = vst [vmem:[#allocation40_spill] sm:$0xff] %v15078_v56  ;;  %7656 = vst [vmem:[%s10847_s25 + $0x348] sm:$0xff] %v15078_v56  ;;  %v15100_v53 = vpop.trf.xlu1  ;;  %v7957_v30 = vsel %vm7956_vm1, %v7955_v36, %v7884_v42  ;;  %v17060_v48 = vmax.f32 %v14804_v31, %v14809_v40  ;;  %v7926_v10 = vsel %vm7925_vm9, %v7923_v7, %v7924_v14  ;;  %v17062_v31 = vld [vmem:[#allocation79_spill] sm:$0xff]  ;;  %v17063_v14 = vld [vmem:[#allocation125_spill] sm:$0xff] }
 0x6df   : > { %6841 = vxpose.xlu1.b32.cont [9/16] %v15083_v62, 128  ;;  %7624 = vst [vmem:[%s10847_s25 + $0x248] sm:$0xff] %v15100_v53  ;;  %vm7958_vm12 = vcmp.lt.s32.totalorder %v7957_v30, %v7888_v44  ;;  %vm7055_vm11 = vcmp.eq.f32.partialorder %v16997_v57, %v14770_v3  ;;  %v15122_v35 = vsel %vm6580_vm14, %v17059_v27, %v6644_v45  ;;  %vm6584_vm0 = vcmp.gt.f32.partialorder %v17062_v31, 0.0  ;;  %v9764_v27 = vld [vmem:[%s10824_s20 + $0x2f0] sm:$0xff] }
 0x6e0   : > { %v6997_v13 = vmax.f32 %v17060_v48, %v14865_v58  ;;  %v7959_v33 = vsel %vm7958_vm12, %v7957_v30, %v7888_v44  ;;  %v7236_v25 = vsel %vm7235_vm15, %v7234_v6, %v7115_v32  ;;  %v7749_v50 = vmax.f32 %v7748_v26, %v15122_v35  ;;  %7590 = vxpose.xlu0.b32.cont [8/16] %v15096_v4, 128  ;;  %v17065_v30 = vld [vmem:[#allocation91_spill] sm:$0xff] }
 0x6e1   : > { %v15117_v12 = vpop.trf.xlu0  ;;  %v7960_v18 = vrot.slane %v7959_v33, 4  ;;  %v6648_v7 = vmul.f32 0.1, %v17062_v31  ;;  %vm5195_vm6 = vcmp.gt.f32.partialorder %v17063_v14, 0.0  ;;  %v7927_v29 = vrot.slane %v7926_v10, 1 }
 0x6e2   : > { %17061 = vst [vmem:[#allocation41_spill] sm:$0xff] %v15117_v12  ;;  %7657 = vst [vmem:[%s10847_s25 + $0x350] sm:$0xff] %v15117_v12  ;;  %v15126_v39 = vpop.trf.xlu1  ;;  %v6998_v57 = vmax.f32 %v6997_v13, %v15029_v0  ;;  %v7119_v20 = vsel %vm7055_vm11, %v16963_v23, 128  ;;  %v5259_v8 = vmul.f32 0.1, %v17063_v14  ;;  %vm6588_vm8 = vcmp.gt.f32.partialorder %v17065_v30, 0.0 }
 0x6e3   : > { %7625 = vst [vmem:[%s10847_s25 + $0x250] sm:$0xff] %v15126_v39  ;;  %vm7961_vm5 = vcmp.lt.s32.totalorder %v7959_v33, %v7960_v18  ;;  %vm7237_vm10 = vcmp.lt.s32.totalorder %v7236_v25, %v7119_v20  ;;  %v15142_v42 = vsel %vm6584_vm0, %v17062_v31, %v6648_v7  ;;  %v7384_v45 = vmul.f32 %v9764_v27, %v9764_v27  ;;  %v9765_v27 = vld [vmem:[%s10824_s20 + $0x2f8] sm:$0xff] }
 0x6e4   : > { %v7962_v6 = vsel %vm7961_vm5, %v7959_v33, %v7960_v18  ;;  %v6999_v38 = vmax.f32 %v6998_v57, %v15083_v62  ;;  %v7750_v44 = vmax.f32 %v7749_v50, %v15142_v42  ;;  %v15150_v26 = vsel %vm5195_vm6, %v17063_v14, %v5259_v8  ;;  %7591 = vxpose.xlu0.b32.cont [9/16] %v15122_v35, 128  ;;  %v17068_v18 = vld [vmem:[#allocation67_spill] sm:$0xff]  ;;  %v17069_v50 = vld [vmem:[#allocation104_spill] sm:$0xff]  ;;  %v17071_v0 = vld [vmem:[#allocation102_spill] sm:$0xff] }
 0x6e5   : > { %v15138_v61 = vpop.trf.xlu0  ;;  %v7963_v32 = vrot.slane %v7962_v6, 2  ;;  %6842 = vxpose.xlu1.b32.cont [10/16] %v15150_v26, 128  ;;  %v6652_v13 = vmul.f32 0.1, %v17065_v30  ;;  %vm15160_vm3 = vcmp.lt.s32.totalorder %v7926_v10, %v7927_v29  ;;  %vm7059_vm13 = vcmp.eq.f32.partialorder %v17068_v18, %v14770_v3 }
 0x6e6   : > { %17064 = vst [vmem:[#allocation74_spill] sm:$0xff] %v15138_v61  ;;  %7658 = vst [vmem:[%s10847_s25 + $0x358] sm:$0xff] %v15138_v61  ;;  %v15146_v36 = vpop.trf.xlu1  ;;  %v7000_v48 = vmax.f32 %v6999_v38, %v15150_v26  ;;  %vm5199_vm4 = vcmp.gt.f32.partialorder %v17069_v50, 0.0  ;;  %v7238_v7 = vsel %vm7237_vm10, %v7236_v25, %v7119_v20  ;;  %v5263_v8 = vmul.f32 0.1, %v17069_v50  ;;  %v17072_v25 = vld [vmem:[#allocation71_spill] sm:$0xff] }
 0x6e7   : > { %7626 = vst [vmem:[%s10847_s25 + $0x258] sm:$0xff] %v15146_v36  ;;  %vm7964_vm2 = vcmp.lt.s32.totalorder %v7962_v6, %v7963_v32  ;;  %v15171_v14 = vsel %vm6588_vm8, %v17065_v30, %v6652_v13  ;;  %v15179_v61 = vmul.f32 %v9765_v27, %v9765_v27  ;;  %vm6592_vm9 = vcmp.gt.f32.partialorder %v17071_v0, 0.0 }
 0x6e8   : > { %v7965_v57 = vsel %vm7964_vm2, %v7962_v6, %v7963_v32  ;;  %v7751_v56 = vmax.f32 %v7750_v44, %v15171_v14  ;;  %vm7063_vm7 = vcmp.eq.f32.partialorder %v17072_v25, %v14770_v3  ;;  %v7123_v20 = vsel %vm7059_vm13, %v16964_v41, 128  ;;  %7592 = vxpose.xlu0.b32.cont [10/16] %v15142_v42, 128 }
 0x6e9   : > { %v15167_v31 = vpop.trf.xlu0  ;;  %v7966_v12 = vrot.slane %v7965_v57, 1  ;;  %v15195_v6 = vsel %vm5199_vm4, %v17069_v50, %v5263_v8  ;;  %v6656_v32 = vmul.f32 0.1, %v17071_v0  ;;  %v15200_v44 = vsel %vm15160_vm3, %v7926_v10, %v7927_v29  ;;  %v17076_v8 = vld [vmem:[#allocation110_spill] sm:$0xff] }
 0x6ea   : > { %17070 = vst [vmem:[#allocation87_spill] sm:$0xff] %v15167_v31  ;;  %7659 = vst [vmem:[%s10847_s25 + $0x360] sm:$0xff] %v15167_v31  ;;  %v15176_v38 = vpop.trf.xlu1  ;;  %vm7239_vm15 = vcmp.lt.s32.totalorder %v7238_v7, %v7123_v20  ;;  %v7001_v30 = vmax.f32 %v7000_v48, %v15195_v6  ;;  %6843 = vxpose.xlu1.b32.cont [11/16] %v15195_v6, 128  ;;  %vm5203_vm14 = vcmp.gt.f32.partialorder %v17076_v8, 0.0  ;;  %v5267_v33 = vmul.f32 0.1, %v17076_v8  ;;  %v17077_v29 = vld [vmem:[#allocation62_spill] sm:$0xff] }
 0x6eb   : > { %7627 = vst [vmem:[%s10847_s25 + $0x260] sm:$0xff] %v15176_v38  ;;  %17073 = vst [vmem:[#allocation64_spill] sm:$0xff] %v15200_v44  ;;  %vm7967_vm1 = vcmp.lt.s32.totalorder %v7965_v57, %v7966_v12  ;;  %v15209_v50 = vsel %vm6592_vm9, %v17071_v0, %v6656_v32  ;;  %v15218_v27 = vadd.f32 %v17077_v29, %v7384_v45  ;;  %v17079_v45 = vld [vmem:[#allocation118_spill] sm:$0xff]  ;;  %v17082_v31 = vld [vmem:[#allocation56_spill] sm:$0xff] }
 0x6ec   : > { %v15206_v18 = vsel %vm7967_vm1, %v7965_v57, %v7966_v12  ;;  %v7752_v12 = vmax.f32 %v7751_v56, %v15209_v50  ;;  %v17078_v57 = vld [vmem:[#allocation111_spill] sm:$0xff]  ;;  %v7240_v0 = vsel %vm7239_vm15, %v7238_v7, %v7123_v20  ;;  %7593 = vxpose.xlu0.b32.cont [11/16] %v15171_v14, 128  ;;  %v15228_v32 = vsel %vm5203_vm14, %v17076_v8, %v5267_v33  ;;  %v17080_v29 = vld [vmem:[#allocation66_spill] sm:$0xff] }
 0x6ed   : > { %v15204_v13 = vpop.trf.xlu0  ;;  %17075 = vst [vmem:[#allocation86_spill] sm:$0xff] %v15206_v18  ;;  %vm6596_vm12 = vcmp.gt.f32.partialorder %v17078_v57, 0.0  ;;  %vm5207_vm11 = vcmp.gt.f32.partialorder %v17079_v45, 0.0  ;;  %vm7067_vm0 = vcmp.eq.f32.partialorder %v17080_v29, %v14770_v3  ;;  %v7127_v56 = vsel %vm7063_vm7, %v16965_v24, 128  ;;  %v17083_v24 = vld [vmem:[#allocation122_spill] sm:$0xff] }
 0x6ee   : > { %17074 = vst [vmem:[#allocation72_spill] sm:$0xff] %v15204_v13  ;;  %7660 = vst [vmem:[%s10847_s25 + $0x368] sm:$0xff] %v15204_v13  ;;  %v15215_v10 = vpop.trf.xlu1  ;;  %v6660_v13 = vmul.f32 0.1, %v17078_v57  ;;  %v7002_v7 = vmax.f32 %v7001_v30, %v15228_v32  ;;  %6844 = vxpose.xlu1.b32.cont [12/16] %v15228_v32, 128  ;;  %v5271_v20 = vmul.f32 0.1, %v17079_v45  ;;  %v8107_v33 = vmul.f32 %v14955_v47, %v14955_v47 }
 0x6ef   : > { %7628 = vst [vmem:[%s10847_s25 + $0x268] sm:$0xff] %v15215_v10  ;;  %vm6600_vm6 = vcmp.gt.f32.partialorder %v17082_v31, 0.0  ;;  %v6664_v25 = vmul.f32 0.1, %v17082_v31  ;;  %vm7241_vm5 = vcmp.lt.s32.totalorder %v7240_v0, %v7127_v56  ;;  %vm5211_vm10 = vcmp.gt.f32.partialorder %v17083_v24, 0.0 }
 0x6f0   : > { %v15246_v48 = vsel %vm6596_vm12, %v17078_v57, %v6660_v13  ;;  %v15256_v44 = vsel %vm5207_vm11, %v17079_v45, %v5271_v20  ;;  %v7131_v47 = vsel %vm7067_vm0, %v16980_v63, 128  ;;  %7594 = vxpose.xlu0.b32.cont [12/16] %v15209_v50, 128  ;;  %v8108_v45 = vmul.f32 %v14985_v1, %v14985_v1 }
 0x6f1   : > { %v15241_v8 = vpop.trf.xlu0  ;;  %v7753_v30 = vmax.f32 %v7752_v12, %v15246_v48  ;;  %v7003_v13 = vmax.f32 %v7002_v7, %v15256_v44  ;;  %v15268_v57 = vsel %vm6600_vm6, %v17082_v31, %v6664_v25  ;;  %v5275_v12 = vmul.f32 0.1, %v17083_v24  ;;  %v17086_v25 = vld [vmem:[#allocation132_spill] sm:$0xff] }
 0x6f2   : > { %17081 = vst [vmem:[#allocation92_spill] sm:$0xff] %v15241_v8  ;;  %7661 = vst [vmem:[%s10847_s25 + $0x370] sm:$0xff] %v15241_v8  ;;  %v15252_v18 = vpop.trf.xlu1  ;;  %6845 = vxpose.xlu1.b32.cont [13/16] %v15256_v44, 128  ;;  %v17084_v8 = vld [vmem:[#allocation128_spill] sm:$0xff]  ;;  %v7242_v7 = vsel %vm7241_vm5, %v7240_v0, %v7127_v56  ;;  %vm5215_vm3 = vcmp.gt.f32.partialorder %v17086_v25, 0.0  ;;  %v5279_v1 = vmul.f32 0.1, %v17086_v25  ;;  %v8109_v40 = vmul.f32 %v15020_v2, %v15020_v2 }
 0x6f3   : > { %7629 = vst [vmem:[%s10847_s25 + $0x270] sm:$0xff] %v15252_v18  ;;  %v7754_v20 = vmax.f32 %v7753_v30, %v15268_v57  ;;  %vm6604_vm8 = vcmp.gt.f32.partialorder %v17084_v8, 0.0  ;;  %v6668_v29 = vmul.f32 0.1, %v17084_v8  ;;  %v15281_v31 = vsel %vm5211_vm10, %v17083_v24, %v5275_v12  ;;  %v17087_v12 = vld [vmem:[#allocation129_spill] sm:$0xff] }
 0x6f4   : > { %v8170_v30 = vadd.f32 %v14991_v37, %v8107_v33  ;;  %v7004_v16 = vmax.f32 %v7003_v13, %v15281_v31  ;;  %7595 = vxpose.xlu0.b32.cont [13/16] %v15246_v48, 128  ;;  %v15301_v56 = vsel %vm5215_vm3, %v17086_v25, %v5279_v1  ;;  %vm6608_vm2 = vcmp.gt.f32.partialorder %v17087_v12, 0.0  ;;  %v17088_v33 = vld [vmem:[#allocation105_spill] sm:$0xff]  ;;  %v17089_v1 = vld [vmem:[#allocation134_spill] sm:$0xff]  ;;  %v17091_v13 = vld [vmem:[#allocation68_spill] sm:$0xff] }
 0x6f5   : > { %v15277_v63 = vpop.trf.xlu0  ;;  %v15294_v0 = vsel %vm6604_vm8, %v17084_v8, %v6668_v29  ;;  %v6672_v37 = vmul.f32 0.1, %v17087_v12  ;;  %vm7243_vm13 = vcmp.lt.s32.totalorder %v7242_v7, %v7131_v47  ;;  %vm5219_vm4 = vcmp.gt.f32.partialorder %v17089_v1, 0.0 }
 0x6f6   : > { %17085 = vst [vmem:[#allocation106_spill] sm:$0xff] %v15277_v63  ;;  %7662 = vst [vmem:[%s10847_s25 + $0x378] sm:$0xff] %v15277_v63  ;;  %v15287_v58 = vpop.trf.xlu1  ;;  %v7755_v24 = vmax.f32 %v7754_v20, %v15294_v0  ;;  %v8171_v2 = vadd.f32 %v8170_v30, %v8108_v45  ;;  %6846 = vxpose.xlu1.b32.cont [14/16] %v15281_v31, 128  ;;  %v7005_v8 = vmax.f32 %v7004_v16, %v15301_v56  ;;  %v17090_v30 = vld [vmem:[#allocation69_spill] sm:$0xff] }
 0x6f7   : > { %7630 = vst [vmem:[%s10847_s25 + $0x278] sm:$0xff] %v15287_v58  ;;  %v8110_v20 = vmul.f32 %v15057_v43, %v15057_v43  ;;  %v15312_v29 = vsel %vm6608_vm2, %v17087_v12, %v6672_v37  ;;  %v5283_v45 = vmul.f32 0.1, %v17089_v1  ;;  %v7999_v63 = vrot.slane %v17090_v30, 4 }
 0x6f8   : > { %v7448_v16 = vadd.f32 %v15218_v27, %v15179_v61  ;;  %vm7071_vm9 = vcmp.eq.f32.partialorder %v17091_v13, %v14770_v3  ;;  %v7756_v59 = vmax.f32 %v7755_v24, %v15312_v29  ;;  %v8172_v12 = vadd.f32 %v8171_v2, %v8109_v40  ;;  %7596 = vxpose.xlu0.b32.cont [14/16] %v15268_v57, 128 }
 0x6f9   : > { %v8111_v37 = vmul.f32 %v15100_v53, %v15100_v53  ;;  %v15330_v52 = vsel %vm5219_vm4, %v17089_v1, %v5283_v45  ;;  %v7244_v27 = vsel %vm7243_vm13, %v7242_v7, %v7131_v47  ;;  %v8112_v53 = vmul.f32 %v15126_v39, %v15126_v39 }
 0x6fa   : > { %v15314_v25 = vpop.trf.xlu0  ;;  %6847 = vxpose.xlu1.b32.cont [15/16] %v15301_v56, 128  ;;  %v7757_v24 = vrot.slane %v7756_v59, 4  ;;  %v7006_v41 = vmax.f32 %v7005_v8, %v15330_v52  ;;  %v8173_v40 = vadd.f32 %v8172_v12, %v8110_v20  ;;  %vm15341_vm7 = vcmp.lt.s32.totalorder %v17090_v30, %v7999_v63 }
 0x6fb   : > { %7631 = vst [vmem:[%s10847_s25 + $0x280] sm:$0xff] %v15314_v25  ;;  %v6817_v43 = vpop.trf.xlu1  ;;  %v7135_v47 = vsel %vm7071_vm9, %v16981_v46, 128  ;;  %v8113_v20 = vmul.f32 %v15146_v36, %v15146_v36  ;;  %v8114_v13 = vmul.f32 %v15176_v38, %v15176_v38  ;;  %v8001_v36 = vsel %vm15341_vm7, %v17090_v30, %v7999_v63 }
 0x6fc   : > { %6897 = vst [vmem:[%s10824_s20 + $0x300] sm:$0xff] %v6817_v43  ;;  %v7386_v61 = vmul.f32 %v6817_v43, %v6817_v43  ;;  %v7758_v7 = vmax.f32 %v7756_v59, %v7757_v24  ;;  %v7007_v45 = vrot.slane %v7006_v41, 4  ;;  %vm7245_vm1 = vcmp.lt.s32.totalorder %v7244_v27, %v7135_v47  ;;  %7597 = vxpose.xlu0.b32.cont [15/16] %v15294_v0, 128 }
 0x6fd   : > { %v8174_v39 = vadd.f32 %v8173_v40, %v8111_v37  ;;  %v17094_v37 = vld [vmem:[#allocation82_spill] sm:$0xff]  ;;  %v7246_v40 = vsel %vm7245_vm1, %v7244_v27, %v7135_v47  ;;  %v8115_v38 = vmul.f32 %v15215_v10, %v15215_v10 }
 0x6fe   : > { %v7449_v2 = vadd.f32 %v7448_v16, %v7386_v61  ;;  %v15338_v23 = vpop.trf.xlu0  ;;  %v7759_v43 = vrot.slane %v7758_v7, 2  ;;  %v7008_v12 = vmax.f32 %v7006_v41, %v7007_v45  ;;  %6848 = vxpose.xlu1.b32.end [16/16] %v15330_v52, 128  ;;  %vm7075_vm15 = vcmp.eq.f32.partialorder %v17094_v37, %v14770_v3  ;;  %v17097_v37 = vld [vmem:[#allocation36_spill] sm:$0xff] }
 0x6ff   : > { %7632 = vst [vmem:[%s10847_s25 + $0x288] sm:$0xff] %v15338_v23  ;;  %v6818_v8 = vpop.trf.xlu1  ;;  %v8175_v59 = vadd.f32 %v8174_v39, %v8112_v53  ;;  %v7139_v30 = vsel %vm7075_vm15, %v16982_v60, 128 }
 0x700   : > { %6898 = vst [vmem:[%s10824_s20 + $0x308] sm:$0xff] %v6818_v8  ;;  %v7387_v16 = vmul.f32 %v6818_v8, %v6818_v8  ;;  %v7760_v8 = vmax.f32 %v7758_v7, %v7759_v43  ;;  %7598 = vxpose.xlu0.b32.end [16/16] %v15312_v29, 128  ;;  %v8002_v7 = vrot.slane %v8001_v36, 2  ;;  %vm7247_vm14 = vcmp.lt.s32.totalorder %v7246_v40, %v7139_v30 }
 0x701   : > { %v8176_v53 = vadd.f32 %v8175_v59, %v8113_v20  ;;  %v8117_v43 = vmul.f32 %v15287_v58, %v15287_v58 }
 0x702   : > { %v7450_v61 = vadd.f32 %v7449_v2, %v7387_v16  ;;  %v15358_v24 = vpop.trf.xlu0  ;;  %v7009_v2 = vrot.slane %v7008_v12, 2  ;;  %v7761_v63 = vrot.slane %v7760_v8, 1  ;;  %v8116_v16 = vmul.f32 %v15252_v18, %v15252_v18 }
 0x703   : > { %7633 = vst [vmem:[%s10847_s25 + $0x290] sm:$0xff] %v15358_v24  ;;  %v6819_v41 = vpop.trf.xlu1  ;;  %v8177_v45 = vadd.f32 %v8176_v53, %v8114_v13  ;;  %vm8003_vm9 = vcmp.lt.s32.totalorder %v8001_v36, %v8002_v7  ;;  %v8118_v13 = vmul.f32 %v15314_v25, %v15314_v25  ;;  %v8119_v25 = vmul.f32 %v15338_v23, %v15338_v23  ;;  %v17104_v23 = vld [vmem:[#allocation124_spill] sm:$0xff] }
 0x704   : > { %6899 = vst [vmem:[%s10824_s20 + $0x310] sm:$0xff] %v6819_v41  ;;  %v7388_v1 = vmul.f32 %v6819_v41, %v6819_v41  ;;  %v15376_v39 = vmax.f32 %v7760_v8, %v7761_v63  ;;  %v7010_v59 = vmax.f32 %v7008_v12, %v7009_v2  ;;  %v17098_v41 = vld [vmem:[#allocation37_spill] sm:$0xff]  ;;  %v15441_v2 = vsel %vm7247_vm14, %v7246_v40, %v7139_v30 }
 0x705   : > { %v8178_v20 = vadd.f32 %v8177_v45, %v8115_v38  ;;  %v17100_v45 = vld [vmem:[#allocation136_spill] sm:$0xff]  ;;  %v17103_v40 = vcombine.low %v17088_v33, %v14791_v5  ;;  %v17108_v5 = vld [vmem:[#allocation45_spill] sm:$0xff] }
 0x706   : > { %v15372_v27 = vadd.f32 %v7450_v61, %v7388_v1  ;;  %v15374_v47 = vpop.trf.xlu0  ;;  %vm7766_vm12 = vcmp.eq.f32.partialorder %v14917_v17, %v15376_v39  ;;  %vm7770_vm11 = vcmp.eq.f32.partialorder %v14935_v51, %v15376_v39  ;;  %vm7774_vm0 = vcmp.eq.f32.partialorder %v14951_v54, %v15376_v39  ;;  %v17099_v17 = vld [vmem:[#allocation44_spill] sm:$0xff] }
 0x707   : > { %7634 = vst [vmem:[%s10847_s25 + $0x298] sm:$0xff] %v15374_v47  ;;  %v15380_v10 = vpop.trf.xlu1  ;;  %vm7778_vm6 = vcmp.eq.f32.partialorder %v14972_v34, %v15376_v39  ;;  %vm7782_vm5 = vcmp.eq.f32.partialorder %v15003_v9, %v15376_v39  ;;  %vm7786_vm10 = vcmp.eq.f32.partialorder %v15043_v22, %v15376_v39  ;;  %vm7790_vm8 = vcmp.eq.f32.partialorder %v15073_v15, %v15376_v39 }
 0x708   : > { %17095 = vst [vmem:[#allocation113_spill] sm:$0xff] %v15372_v27  ;;  %6900 = vst [vmem:[%s10824_s20 + $0x318] sm:$0xff] %v15380_v10  ;;  %vm7794_vm3 = vcmp.eq.f32.partialorder %v15096_v4, %v15376_v39  ;;  %vm7798_vm2 = vcmp.eq.f32.partialorder %v15122_v35, %v15376_v39  ;;  %vm7802_vm13 = vcmp.eq.f32.partialorder %v15142_v42, %v15376_v39  ;;  %v7011_v61 = vrot.slane %v7010_v59, 1 }
 0x709   : > { %vm7814_vm7 = vcmp.eq.f32.partialorder %v15246_v48, %v15376_v39  ;;  %vm7818_vm1 = vcmp.eq.f32.partialorder %v15268_v57, %v15376_v39  ;;  %vm7822_vm15 = vcmp.eq.f32.partialorder %v15294_v0, %v15376_v39  ;;  %v8179_v12 = vadd.f32 %v8178_v20, %v8116_v16  ;;  %v17101_v20 = vld [vmem:[#allocation135_spill] sm:$0xff] }
 0x70a   : > { %v15404_v58 = vpop.trf.xlu0  ;;  %v7830_v8 = vsel %vm7766_vm12, %v17097_v37, 128  ;;  %v7834_v53 = vsel %vm7770_vm11, %v17098_v41, 128  ;;  %v17102_v16 = vcombine.low %v17100_v45, %v17101_v20  ;;  %v15455_v51 = vsel %vm8003_vm9, %v8001_v36, %v8002_v7  ;;  %v17149_v7 = vld [vmem:[#allocation72_spill] sm:$0xff] }
 0x70b   : > { %7635 = vst [vmem:[%s10847_s25 + $0x2a0] sm:$0xff] %v15404_v58  ;;  %v15416_v18 = vpop.trf.xlu1  ;;  %v8180_v1 = vadd.f32 %v8179_v12, %v8117_v43  ;;  %v8059_v30 = vrot.slane %v17103_v40, %v17099_v17  ;;  %vm8008_vm14 = vcmp.lt.s32.totalorder %v7830_v8, %v7834_v53  ;;  %v8052_v43 = vcombine.low %v17104_v23, %v15376_v39  ;;  %v17109_v40 = vld [vmem:[#allocation46_spill] sm:$0xff]  ;;  %v17110_v23 = vld [vmem:[#allocation100_spill] sm:$0xff] }
 0x70c   : > { %17096 = vst [vmem:[#allocation96_spill] sm:$0xff] %v15416_v18  ;;  %6901 = vst [vmem:[%s10824_s20 + $0x320] sm:$0xff] %v15416_v18  ;;  %v15453_v27 = vrot.slane %v17102_v16, %v17099_v17  ;;  %v15465_v18 = vmax.f32 %v7010_v59, %v7011_v61  ;;  %v17105_v36 = vlaneseq  ;;  %v7838_v33 = vsel %vm7774_vm0, %v17108_v5, 128 }
 0x70d   : > { %v8181_v12 = vadd.f32 %v8180_v1, %v8118_v13  ;;  %v8009_v20 = vsel %vm8008_vm14, %v7830_v8, %v7834_v53  ;;  %v8066_v59 = vrot.slane %v8052_v43, %v17099_v17  ;;  %v8120_v61 = vmul.f32 %v15358_v24, %v15358_v24  ;;  %v17111_v43 = vld [vmem:[#allocation89_spill] sm:$0xff] }
 0x70e   : > { %v15438_v38 = vpop.trf.xlu0  ;;  %vm15469_vm12 = vcmp.lt.s32.totalorder %v17105_v36, 512  ;;  %vm8010_vm11 = vcmp.lt.s32.totalorder %v8009_v20, %v7838_v33  ;;  %v7842_v54 = vsel %vm7778_vm6, %v17109_v40, 128  ;;  %v7846_v8 = vsel %vm7782_vm5, %v17036_v55, 128 }
 0x70f   : > { %7636 = vst [vmem:[%s10847_s25 + $0x2a8] sm:$0xff] %v15438_v38  ;;  %v15447_v63 = vpop.trf.xlu1  ;;  %v8182_v13 = vadd.f32 %v8181_v12, %v8119_v25  ;;  %v8011_v53 = vsel %vm8010_vm11, %v8009_v20, %v7838_v33  ;;  %v8121_v25 = vmul.f32 %v15374_v47, %v15374_v47  ;;  %v7850_v24 = vsel %vm7786_vm10, %v17037_v11, 128 }
 0x710   : > { %6902 = vst [vmem:[%s10824_s20 + $0x328] sm:$0xff] %v15447_v63  ;;  %vm8012_vm0 = vcmp.lt.s32.totalorder %v8011_v53, %v7842_v54  ;;  %v8067_v34 = vcombine.low %v8059_v30, %v8066_v59  ;;  %vm7016_vm6 = vcmp.eq.f32.partialorder %v17110_v23, %v15465_v18  ;;  %vm7020_vm5 = vcmp.eq.f32.partialorder %v17111_v43, %v15465_v18  ;;  %v17118_v23 = vld [vmem:[#allocation97_spill] sm:$0xff]  ;;  %v17119_v43 = vld [vmem:[#allocation103_spill] sm:$0xff] }
 0x711   : > { %v8013_v9 = vsel %vm8012_vm0, %v8011_v53, %v7842_v54  ;;  %vm7056_vm11 = vcmp.eq.f32.partialorder %v15195_v6, %v15465_v18  ;;  %vm7064_vm4 = vcmp.eq.f32.partialorder %v15256_v44, %v15465_v18  ;;  %v7854_v36 = vsel %vm7790_vm8, %v17038_v21, 128  ;;  %v17114_v53 = vld [vmem:[#allocation50_spill] sm:$0xff] }
 0x712   : > { %v15477_v16 = vpop.trf.xlu0  ;;  %vm8014_vm10 = vcmp.lt.s32.totalorder %v8013_v9, %v7846_v8  ;;  %v8074_v22 = vrot.slane %v8067_v34, %v17099_v17  ;;  %v8183_v33 = vadd.f32 %v8182_v13, %v8120_v61  ;;  %v7858_v20 = vsel %vm7794_vm3, %v16959_v49, 128  ;;  %v17112_v13 = vld [vmem:[#allocation49_spill] sm:$0xff]  ;;  %v17116_v34 = vld [vmem:[#allocation83_spill] sm:$0xff] }
 0x713   : > { %7637 = vst [vmem:[%s10847_s25 + $0x2b0] sm:$0xff] %v15477_v16  ;;  %v15484_v1 = vpop.trf.xlu1  ;;  %v8015_v12 = vsel %vm8014_vm10, %v8013_v9, %v7846_v8  ;;  %v7862_v15 = vsel %vm7798_vm2, %v16960_v19, 128  ;;  %v7866_v59 = vsel %vm7802_vm13, %v16962_v28, 128  ;;  %vm17113_vm8 = vcmp.eq.f32.partialorder %v15171_v14, %v15376_v39 }
 0x714   : > { %6903 = vst [vmem:[%s10824_s20 + $0x330] sm:$0xff] %v15484_v1  ;;  %vm8016_vm0 = vcmp.lt.s32.totalorder %v8015_v12, %v7850_v24  ;;  %8076 = vst.msk [vmem:[%s10820_s26 + $0x4] sm:$0xf] %vm15469_vm12, %v8074_v22  ;;  %v7870_v4 = vsel %vm17113_vm8, %v17112_v13, 128  ;;  %v7080_v35 = vsel %vm7016_vm6, %v17097_v37, 128  ;;  %v7084_v42 = vsel %vm7020_vm5, %v17098_v41, 128 }
 0x715   : > { %v8017_v54 = vsel %vm8016_vm0, %v8015_v12, %v7850_v24  ;;  %vm17115_vm3 = vcmp.eq.f32.partialorder %v15209_v50, %v15376_v39  ;;  %vm7024_vm2 = vcmp.eq.f32.partialorder %v17116_v34, %v15465_v18  ;;  %v8184_v37 = vadd.f32 %v8183_v33, %v8121_v25  ;;  %v17117_v41 = vld [vmem:[#allocation95_spill] sm:$0xff] }
 0x716   : > { %v15510_v47 = vpop.trf.xlu0  ;;  %vm8018_vm10 = vcmp.lt.s32.totalorder %v8017_v54, %v7854_v36  ;;  %v7874_v14 = vsel %vm17115_vm3, %v17114_v53, 128  ;;  %vm7028_vm6 = vcmp.eq.f32.partialorder %v17117_v41, %v15465_v18  ;;  %vm7032_vm5 = vcmp.eq.f32.partialorder %v17118_v23, %v15465_v18  ;;  %v17120_v22 = vld [vmem:[#allocation131_spill] sm:$0xff]  ;;  %v17122_v23 = vld [vmem:[#allocation42_spill] sm:$0xff] }
 0x717   : > { %7638 = vst [vmem:[%s10847_s25 + $0x2b8] sm:$0xff] %v15510_v47  ;;  %v15519_v30 = vpop.trf.xlu1  ;;  %v8019_v24 = vsel %vm8018_vm10, %v8017_v54, %v7854_v36  ;;  %v8122_v9 = vmul.f32 %v15404_v58, %v15404_v58  ;;  %vm7036_vm0 = vcmp.eq.f32.partialorder %v17119_v43, %v15465_v18  ;;  %vm7040_vm10 = vcmp.eq.f32.partialorder %v17120_v22, %v15465_v18 }
 0x718   : > { %6904 = vst [vmem:[%s10824_s20 + $0x338] sm:$0xff] %v15519_v30  ;;  %vm8020_vm13 = vcmp.lt.s32.totalorder %v8019_v24, %v7858_v20  ;;  %vm7258_vm8 = vcmp.lt.s32.totalorder %v7080_v35, %v7084_v42  ;;  %v7088_v12 = vsel %vm7024_vm2, %v17108_v5, 128  ;;  %v7302_v33 = vcombine.low %v14770_v3, %v15465_v18 }
 0x719   : > { %v8021_v50 = vsel %vm8020_vm13, %v8019_v24, %v7858_v20  ;;  %v7259_v36 = vsel %vm7258_vm8, %v7080_v35, %v7084_v42  ;;  %v17121_v20 = vld [vmem:[#allocation48_spill] sm:$0xff]  ;;  %v8123_v24 = vmul.f32 %v15438_v38, %v15438_v38  ;;  %v7092_v3 = vsel %vm7028_vm6, %v17109_v40, 128 }
 0x71a   : > { %v15550_v8 = vpop.trf.xlu0  ;;  %vm8022_vm3 = vcmp.lt.s32.totalorder %v8021_v50, %v7862_v15  ;;  %vm7044_vm13 = vcmp.eq.f32.partialorder %v17121_v20, %v15465_v18  ;;  %vm7260_vm9 = vcmp.lt.s32.totalorder %v7259_v36, %v7088_v12  ;;  %v7316_v35 = vrot.slane %v7302_v33, %v17099_v17 }
 0x71b   : > { %7639 = vst [vmem:[%s10847_s25 + $0x2c0] sm:$0xff] %v15550_v8  ;;  %v15566_v61 = vpop.trf.xlu1  ;;  %v8023_v58 = vsel %vm8022_vm3, %v8021_v50, %v7862_v15  ;;  %v7261_v5 = vsel %vm7260_vm9, %v7259_v36, %v7088_v12  ;;  %v7096_v42 = vsel %vm7032_vm5, %v17036_v55, 128  ;;  %v8185_v38 = vadd.f32 %v8184_v37, %v8122_v9 }
 0x71c   : > { %6905 = vst [vmem:[%s10824_s20 + $0x340] sm:$0xff] %v15566_v61  ;;  %vm8024_vm14 = vcmp.lt.s32.totalorder %v8023_v58, %v7866_v59  ;;  %vm7262_vm2 = vcmp.lt.s32.totalorder %v7261_v5, %v7092_v3  ;;  %v7317_v45 = vcombine.low %v15453_v27, %v7316_v35  ;;  %v8124_v40 = vmul.f32 %v15477_v16, %v15477_v16 }
 0x71d   : > { %v8025_v15 = vsel %vm8024_vm14, %v8023_v58, %v7866_v59  ;;  %v7263_v50 = vsel %vm7262_vm2, %v7261_v5, %v7092_v3  ;;  %v7100_v55 = vsel %vm7036_vm0, %v17037_v11, 128  ;;  %v8186_v59 = vadd.f32 %v8185_v38, %v8123_v24 }
 0x71e   : > { %v7544_v25 = vpop.trf.xlu0  ;;  %vm8026_vm8 = vcmp.lt.s32.totalorder %v8025_v15, %v7870_v4  ;;  %vm7264_vm9 = vcmp.lt.s32.totalorder %v7263_v50, %v7096_v42  ;;  %v7324_v37 = vrot.slane %v7317_v45, %v17099_v17  ;;  %v8125_v16 = vmul.f32 %v15510_v47, %v15510_v47 }
 0x71f   : > { %7640 = vst [vmem:[%s10847_s25 + $0x2c8] sm:$0xff] %v7544_v25  ;;  %v15590_v54 = vpop.trf.xlu1  ;;  %v8027_v12 = vsel %vm8026_vm8, %v8025_v15, %v7870_v4  ;;  %v7265_v27 = vsel %vm7264_vm9, %v7263_v50, %v7096_v42  ;;  %v7878_v4 = vsel %vm7814_vm7, %v17122_v23, 128  ;;  %v7104_v11 = vsel %vm7040_vm10, %v17038_v21, 128 }
 0x720   : > { %6906 = vst [vmem:[%s10824_s20 + $0x348] sm:$0xff] %v15590_v54  ;;  %vm8028_vm14 = vcmp.lt.s32.totalorder %v8027_v12, %v7874_v14  ;;  %vm7266_vm6 = vcmp.lt.s32.totalorder %v7265_v27, %v7100_v55  ;;  %7328 = vst.msk [vmem:[%s10599_s28 + $0x4] sm:$0xf] %vm15469_vm12, %v7324_v37  ;;  %v8187_v45 = vadd.f32 %v8186_v59, %v8124_v40  ;;  %v7108_v33 = vsel %vm7044_vm13, %v16959_v49, 128  ;;  %s9047_s28 = sshll.u32 %s10296_s1, 14 }
 0x721   : > { %v8029_v9 = vsel %vm8028_vm14, %v8027_v12, %v7874_v14  ;;  %v7267_v36 = vsel %vm7266_vm6, %v7265_v27, %v7100_v55  ;;  %v8126_v47 = vmul.f32 %v15550_v8, %v15550_v8  ;;  %v17123_v14 = vld [vmem:[#allocation43_spill] sm:$0xff]  ;;  %v8127_v24 = vmul.f32 %v7544_v25, %v7544_v25  ;;  %s15858_s21 = scalar_lea.hbm %s16023_s12, %s9047_s28  ;;  %s15867_s23 = scalar_lea.hbm %s16024_s13, %s9047_s28 }
 0x722   : > { %v7545_v34 = vpop.trf.xlu0  ;;  %vm8030_vm5 = vcmp.lt.s32.totalorder %v8029_v9, %v7878_v4  ;;  %v7882_v22 = vsel %vm7818_vm1, %v17123_v14, 128  ;;  %vm7268_vm7 = vcmp.lt.s32.totalorder %v7267_v36, %v7104_v11  ;;  %v8188_v58 = vadd.f32 %v8187_v45, %v8125_v16 }
 0x723   : > { %7641 = vst [vmem:[%s10847_s25 + $0x2d0] sm:$0xff] %v7545_v34  ;;  %v15611_v41 = vpop.trf.xlu1  ;;  %v8031_v21 = vsel %vm8030_vm5, %v8029_v9, %v7878_v4  ;;  %v7269_v8 = vsel %vm7268_vm7, %v7267_v36, %v7104_v11  ;;  %v7886_v57 = vsel %vm7822_vm15, %v16981_v46, 128  ;;  %vm17124_vm1 = vcmp.eq.f32.partialorder %v15083_v62, %v15465_v18 }
 0x724   : > { %6907 = vst [vmem:[%s10824_s20 + $0x350] sm:$0xff] %v15611_v41  ;;  %vm8032_vm0 = vcmp.lt.s32.totalorder %v8031_v21, %v7882_v22  ;;  %v7112_v49 = vsel %vm17124_vm1, %v16960_v19, 128  ;;  %vm7270_vm10 = vcmp.lt.s32.totalorder %v7269_v8, %v7108_v33  ;;  %v8189_v35 = vadd.f32 %v8188_v58, %v8126_v47 }
 0x725   : > { %v8033_v3 = vsel %vm8032_vm0, %v8031_v21, %v7882_v22  ;;  %v7271_v5 = vsel %vm7270_vm10, %v7269_v8, %v7108_v33  ;;  %v8128_v15 = vmul.f32 %v7545_v34, %v7545_v34  ;;  %vm17125_vm13 = vcmp.eq.f32.partialorder %v15312_v29, %v15376_v39 }
 0x726   : > { %v7546_v43 = vpop.trf.xlu0  ;;  %vm8034_vm3 = vcmp.lt.s32.totalorder %v8033_v3, %v7886_v57  ;;  %v7890_v0 = vsel %vm17125_vm13, %v16982_v60, 128  ;;  %vm17126_vm15 = vcmp.eq.f32.partialorder %v15150_v26, %v15465_v18  ;;  %vm7272_vm2 = vcmp.lt.s32.totalorder %v7271_v5, %v7112_v49 }
 0x727   : > { %7642 = vst [vmem:[%s10847_s25 + $0x2d8] sm:$0xff] %v7546_v43  ;;  %v15636_v48 = vpop.trf.xlu1  ;;  %v8035_v42 = vsel %vm8034_vm3, %v8033_v3, %v7886_v57  ;;  %v7116_v19 = vsel %vm17126_vm15, %v16962_v28, 128  ;;  %v7273_v62 = vsel %vm7272_vm2, %v7271_v5, %v7112_v49  ;;  %v8190_v38 = vadd.f32 %v8189_v35, %v8127_v24  ;;  %v9766_v35 = vld [vmem:[%s10847_s25 + $0x300] sm:$0xff] }
 0x728   : > { %6908 = vst [vmem:[%s10824_s20 + $0x358] sm:$0xff] %v15636_v48  ;;  %vm8036_vm8 = vcmp.lt.s32.totalorder %v8035_v42, %v7890_v0  ;;  %v8129_v34 = vmul.f32 %v7546_v43, %v7546_v43  ;;  %v17127_v50 = vrot.slane %v15441_v2, 4  ;;  %v7120_v28 = vsel %vm7056_vm11, %v17112_v13, 128 }
 0x729   : > { %v8037_v39 = vsel %vm8036_vm8, %v8035_v42, %v7890_v0  ;;  %vm7274_vm14 = vcmp.lt.s32.totalorder %v7273_v62, %v7116_v19  ;;  %v8191_v55 = vadd.f32 %v8190_v38, %v8128_v15  ;;  %v8005_v37 = vrot.slane %v15455_v51, 1  ;;  %v9767_v42 = vld [vmem:[%s10847_s25 + $0x308] sm:$0xff]  ;;  %v17138_v38 = vld [vmem:[#allocation86_spill] sm:$0xff] }
 0x72a   : > { %v7547_v20 = vpop.trf.xlu0  ;;  %vm15672_vm9 = vcmp.lt.s32.totalorder %v15441_v2, %v17127_v50  ;;  %v8038_v40 = vrot.slane %v8037_v39, 4  ;;  %v7275_v12 = vsel %vm7274_vm14, %v7273_v62, %v7116_v19  ;;  %vm17130_vm6 = vcmp.eq.f32.partialorder %v15228_v32, %v15465_v18 }
 0x72b   : > { %7643 = vst [vmem:[%s10847_s25 + $0x2e0] sm:$0xff] %v7547_v20  ;;  %v15657_v25 = vpop.trf.xlu1  ;;  %v8130_v59 = vmul.f32 %v7547_v20, %v7547_v20  ;;  %v7124_v16 = vsel %vm17130_vm6, %v17114_v53, 128  ;;  %vm7276_vm5 = vcmp.lt.s32.totalorder %v7275_v12, %v7120_v28  ;;  %v8192_v13 = vadd.f32 %v8191_v55, %v8129_v34  ;;  %v9769_v55 = vld [vmem:[%s10847_s25 + $0x318] sm:$0xff] }
 0x72c   : > { %6909 = vst [vmem:[%s10824_s20 + $0x360] sm:$0xff] %v15657_v25  ;;  %vm8039_vm11 = vcmp.lt.s32.totalorder %v8037_v39, %v8038_v40  ;;  %v7277_v6 = vsel %vm7276_vm5, %v7275_v12, %v7120_v28  ;;  %v17131_v9 = vmov %v17127_v50  ;;  %v7128_v32 = vsel %vm7064_vm4, %v17122_v23, 128 }
 0x72d   : > { %v7251_v11 = vsel %vm15672_vm9, %v15441_v2, %v17131_v9  ;;  %v8040_v43 = vsel %vm8039_vm11, %v8037_v39, %v8038_v40  ;;  %vm7278_vm7 = vcmp.lt.s32.totalorder %v7277_v6, %v7124_v16  ;;  %v8193_v47 = vadd.f32 %v8192_v13, %v8130_v59  ;;  %v9770_v9 = vld [vmem:[%s10847_s25 + $0x320] sm:$0xff] }
 0x72e   : > { %v7548_v26 = vpop.trf.xlu0  ;;  %v8041_v36 = vrot.slane %v8040_v43, 2  ;;  %v7279_v45 = vsel %vm7278_vm7, %v7277_v6, %v7124_v16  ;;  %vm15703_vm0 = vcmp.lt.s32.totalorder %v15455_v51, %v8005_v37  ;;  %vm17134_vm4 = vcmp.eq.f32.partialorder %v15281_v31, %v15465_v18 }
 0x72f   : > { %7644 = vst [vmem:[%s10847_s25 + $0x2e8] sm:$0xff] %v7548_v26  ;;  %v15681_v27 = vpop.trf.xlu1  ;;  %v8131_v4 = vmul.f32 %v7548_v26, %v7548_v26  ;;  %vm7280_vm1 = vcmp.lt.s32.totalorder %v7279_v45, %v7128_v32  ;;  %v7132_v44 = vsel %vm17134_vm4, %v17123_v14, 128  ;;  %v7252_v8 = vrot.slane %v7251_v11, 2 }
 0x730   : > { %6910 = vst [vmem:[%s10824_s20 + $0x368] sm:$0xff] %v15681_v27  ;;  %vm8042_vm10 = vcmp.lt.s32.totalorder %v8040_v43, %v8041_v36  ;;  %v7281_v2 = vsel %vm7280_vm1, %v7279_v45, %v7128_v32  ;;  %vm17135_vm3 = vcmp.eq.f32.partialorder %v15301_v56, %v15465_v18  ;;  %v8007_v14 = vsel %vm15703_vm0, %v15455_v51, %v8005_v37  ;;  %v17137_v51 = vld [vmem:[#allocation64_spill] sm:$0xff] }
 0x731   : > { %v8194_v23 = vadd.f32 %v8193_v47, %v8131_v4  ;;  %v8043_v58 = vsel %vm8042_vm10, %v8040_v43, %v8041_v36  ;;  %v7136_v24 = vsel %vm17135_vm3, %v16981_v46, 128  ;;  %vm7282_vm13 = vcmp.lt.s32.totalorder %v7281_v2, %v7132_v44  ;;  %v9771_v36 = vld [vmem:[%s10847_s25 + $0x328] sm:$0xff] }
 0x732   : > { %v7549_v53 = vpop.trf.xlu0  ;;  %v8044_v3 = vrot.slane %v8043_v58, 1  ;;  %v7283_v49 = vsel %vm7282_vm13, %v7281_v2, %v7132_v44  ;;  %v8134_v15 = vmul.f32 %v9766_v35, %v9766_v35  ;;  %vm17136_vm8 = vcmp.eq.f32.partialorder %v15330_v52, %v15465_v18  ;;  %v17141_v35 = vld [vmem:[#allocation78_spill] sm:$0xff] }
 0x733   : > { %7645 = vst [vmem:[%s10847_s25 + $0x2f0] sm:$0xff] %v7549_v53  ;;  %v8132_v22 = vmul.f32 %v7549_v53, %v7549_v53  ;;  %v15700_v21 = vpop.trf.xlu1  ;;  %vm7284_vm15 = vcmp.lt.s32.totalorder %v7283_v49, %v7136_v24  ;;  %v7140_v46 = vsel %vm17136_vm8, %v16982_v60, 128  ;;  %vm7253_vm9 = vcmp.lt.s32.totalorder %v7251_v11, %v7252_v8  ;;  %v9768_v60 = vld [vmem:[%s10847_s25 + $0x310] sm:$0xff] }
 0x734   : > { %6911 = vst [vmem:[%s10824_s20 + $0x370] sm:$0xff] %v15700_v21  ;;  %vm8045_vm2 = vcmp.lt.s32.totalorder %v8043_v58, %v8044_v3  ;;  %v7285_v56 = vsel %vm7284_vm15, %v7283_v49, %v7136_v24  ;;  %v8135_v19 = vmul.f32 %v9767_v42, %v9767_v42  ;;  %v17139_v34 = vcombine.low %v17137_v51, %v17138_v38  ;;  %v17144_v42 = vld [vmem:[#allocation113_spill] sm:$0xff]  ;;  %v9774_v38 = vld [vmem:[%s10847_s25 + $0x340] sm:$0xff] }
 0x735   : > { %v8195_v20 = vadd.f32 %v8194_v23, %v8132_v22  ;;  %v8046_v62 = vsel %vm8045_vm2, %v8043_v58, %v8044_v3  ;;  %vm7286_vm14 = vcmp.lt.s32.totalorder %v7285_v56, %v7140_v46  ;;  %v7254_v52 = vsel %vm7253_vm9, %v7251_v11, %v7252_v8  ;;  %v9772_v23 = vld [vmem:[%s10847_s25 + $0x330] sm:$0xff] }
 0x736   : > { %v7550_v57 = vpop.trf.xlu0  ;;  %v8085_v50 = vrot.slane %v17139_v34, %v17099_v17  ;;  %v8078_v29 = vcombine.low %v8007_v14, %v8046_v62  ;;  %v7287_v39 = vsel %vm7286_vm14, %v7285_v56, %v7140_v46  ;;  %v8136_v18 = vmul.f32 %v9768_v60, %v9768_v60 }
 0x737   : > { %7646 = vst [vmem:[%s10847_s25 + $0x2f8] sm:$0xff] %v7550_v57  ;;  %v8133_v31 = vmul.f32 %v7550_v57, %v7550_v57  ;;  %v15718_v5 = vpop.trf.xlu1  ;;  %v7288_v26 = vrot.slane %v7287_v39, 4  ;;  %v8137_v59 = vmul.f32 %v9769_v55, %v9769_v55  ;;  %v7255_v13 = vrot.slane %v7254_v52, 1  ;;  %v17140_v57 = vld [vmem:[#allocation96_spill] sm:$0xff] }
 0x738   : > { %6912 = vst [vmem:[%s10824_s20 + $0x378] sm:$0xff] %v15718_v5  ;;  %v8092_v40 = vrot.slane %v8078_v29, %v17099_v17  ;;  %v8138_v43 = vmul.f32 %v9770_v9, %v9770_v9  ;;  %v8139_v45 = vmul.f32 %v9771_v36, %v9771_v36  ;;  %v7389_v44 = vmul.f32 %v15380_v10, %v15380_v10  ;;  %v17147_v9 = vld [vmem:[#allocation74_spill] sm:$0xff]  ;;  %v17148_v36 = vld [vmem:[#allocation87_spill] sm:$0xff] }
 0x739   : > { %v8196_v0 = vadd.f32 %v8195_v20, %v8133_v31  ;;  %vm7289_vm6 = vcmp.lt.s32.totalorder %v7287_v39, %v7288_v26  ;;  %vm7256_vm11 = vcmp.lt.s32.totalorder %v7254_v52, %v7255_v13  ;;  %v8140_v8 = vmul.f32 %v9772_v23, %v9772_v23  ;;  %v9773_v20 = vld [vmem:[%s10847_s25 + $0x338] sm:$0xff] }
 0x73a   : > { %v8093_v37 = vcombine.low %v8085_v50, %v8092_v40  ;;  %v7290_v16 = vsel %vm7289_vm6, %v7287_v39, %v7288_v26  ;;  %v7390_v3 = vmul.f32 %v17140_v57, %v17140_v57  ;;  %v7257_v49 = vsel %vm7256_vm11, %v7254_v52, %v7255_v13  ;;  %v17145_v52 = vld [vmem:[#allocation40_spill] sm:$0xff] }
 0x73b   : > { %v8197_v28 = vadd.f32 %v8196_v0, %v8134_v15  ;;  %v7291_v4 = vrot.slane %v7290_v16, 2  ;;  %v8141_v10 = vmul.f32 %v9773_v20, %v9773_v20  ;;  %v17142_v15 = vld [vmem:[#allocation84_spill] sm:$0xff]  ;;  %v7391_v62 = vmul.f32 %v15447_v63, %v15447_v63 }
 0x73c   : > { %v8100_v11 = vrot.slane %v8093_v37, %v17099_v17  ;;  %v17143_v46 = vcombine.low %v17141_v35, %v17142_v15  ;;  %v8142_v34 = vmul.f32 %v9774_v38, %v9774_v38  ;;  %v7392_v26 = vmul.f32 %v15484_v1, %v15484_v1  ;;  %v17150_v57 = vld [vmem:[#allocation92_spill] sm:$0xff] }
 0x73d   : > { %v8198_v12 = vadd.f32 %v8197_v28, %v8135_v19  ;;  %vm7292_vm5 = vcmp.lt.s32.totalorder %v7290_v16, %v7291_v4  ;;  %v7452_v19 = vadd.f32 %v17144_v42, %v7389_v44  ;;  %v8143_v63 = vmul.f32 %v17145_v52, %v17145_v52 }
 0x73e   : > { %v15740_v53 = vpop.trf.xlu1  ;;  %8101 = vst.msk [vmem:[%s10843_s9 + $0x4] sm:$0xf] %vm15469_vm12, %v8100_v11  ;;  %v7293_v47 = vsel %vm7292_vm5, %v7290_v16, %v7291_v4  ;;  %v7337_v56 = vrot.slane %v17143_v46, %v17099_v17  ;;  %v7394_v4 = vmul.f32 %v15566_v61, %v15566_v61  ;;  %v8147_v44 = vmul.f32 %v17149_v7, %v17149_v7 }
 0x73f   : > { %v8199_v6 = vadd.f32 %v8198_v12, %v8136_v18  ;;  %6913 = vst [vmem:[%s10824_s20 + $0x380] sm:$0xff] %v15740_v53  ;;  %v7294_v33 = vrot.slane %v7293_v47, 1  ;;  %v7453_v28 = vadd.f32 %v7452_v19, %v7390_v3  ;;  %v7393_v12 = vmul.f32 %v15519_v30, %v15519_v30 }
 0x740   : > { %v15750_v2 = vpop.trf.xlu0  ;;  %v8145_v30 = vmul.f32 %v17147_v9, %v17147_v9  ;;  %v8148_v3 = vmul.f32 %v17150_v57, %v17150_v57  ;;  %v7402_v52 = vmul.f32 %v15740_v53, %v15740_v53 }
 0x741   : > { %v8200_v32 = vadd.f32 %v8199_v6, %v8137_v59  ;;  %7663 = vst [vmem:[%s10847_s25 + $0x380] sm:$0xff] %v15750_v2  ;;  %vm7295_vm7 = vcmp.lt.s32.totalorder %v7293_v47, %v7294_v33  ;;  %v7454_v40 = vadd.f32 %v7453_v28, %v7391_v62  ;;  %v17146_v59 = vld [vmem:[#allocation41_spill] sm:$0xff] }
 0x742   : > { %v15755_v24 = vpop.trf.xlu1  ;;  %v7296_v31 = vsel %vm7295_vm7, %v7293_v47, %v7294_v33  ;;  %v8144_v37 = vmul.f32 %v17146_v59, %v17146_v59  ;;  %v7396_v33 = vmul.f32 %v15611_v41, %v15611_v41  ;;  %v7398_v41 = vmul.f32 %v15657_v25, %v15657_v25 }
 0x743   : > { %v8201_v22 = vadd.f32 %v8200_v32, %v8138_v43  ;;  %6914 = vst [vmem:[%s10824_s20 + $0x388] sm:$0xff] %v15755_v24  ;;  %v7330_v0 = vcombine.low %v7257_v49, %v7296_v31  ;;  %v7455_v13 = vadd.f32 %v7454_v40, %v7392_v26  ;;  %v7395_v32 = vmul.f32 %v15590_v54, %v15590_v54  ;;  %v17151_v31 = vld [vmem:[#allocation106_spill] sm:$0xff] }
 0x744   : > { %v7600_v51 = vpop.trf.xlu0  ;;  %v7397_v54 = vmul.f32 %v15636_v48, %v15636_v48  ;;  %v7399_v48 = vmul.f32 %v15681_v27, %v15681_v27  ;;  %v7400_v25 = vmul.f32 %v15700_v21, %v15700_v21  ;;  %v7401_v27 = vmul.f32 %v15718_v5, %v15718_v5 }
 0x745   : > { %v8202_v58 = vadd.f32 %v8201_v22, %v8139_v45  ;;  %7664 = vst [vmem:[%s10847_s25 + $0x388] sm:$0xff] %v7600_v51  ;;  %v7344_v39 = vrot.slane %v7330_v0, %v17099_v17  ;;  %v7456_v11 = vadd.f32 %v7455_v13, %v7393_v12  ;;  %v8146_v45 = vmul.f32 %v17148_v36, %v17148_v36 }
 0x746   : > { %v15771_v29 = vpop.trf.xlu1  ;;  %v8151_v38 = vmul.f32 %v7600_v51, %v7600_v51  ;;  %v7403_v51 = vmul.f32 %v15755_v24, %v15755_v24 }
 0x747   : > { %v8203_v14 = vadd.f32 %v8202_v58, %v8140_v8  ;;  %6915 = vst [vmem:[%s10824_s20 + $0x390] sm:$0xff] %v15771_v29  ;;  %v7345_v18 = vcombine.low %v7337_v56, %v7344_v39  ;;  %v7457_v22 = vadd.f32 %v7456_v11, %v7394_v4  ;;  %v8150_v56 = vmul.f32 %v15750_v2, %v15750_v2 }
 0x748   : > { %v7601_v55 = vpop.trf.xlu0  ;;  %v7404_v59 = vmul.f32 %v15771_v29, %v15771_v29 }
 0x749   : > { %v8204_v50 = vadd.f32 %v8203_v14, %v8141_v10  ;;  %7665 = vst [vmem:[%s10847_s25 + $0x390] sm:$0xff] %v7601_v55  ;;  %v7352_v6 = vrot.slane %v7345_v18, %v17099_v17  ;;  %v7458_v8 = vadd.f32 %v7457_v22, %v7395_v32  ;;  %v8149_v14 = vmul.f32 %v17151_v31, %v17151_v31 }
 0x74a   : > { %v15785_v1 = vpop.trf.xlu1  ;;  %v8152_v28 = vmul.f32 %v7601_v55, %v7601_v55 }
 0x74b   : > { %v8205_v60 = vadd.f32 %v8204_v50, %v8142_v34  ;;  %6916 = vst [vmem:[%s10824_s20 + $0x398] sm:$0xff] %v15785_v1  ;;  %7353 = vst.msk [vmem:[%s10736_s0 + $0x4] sm:$0xf] %vm15469_vm12, %v7352_v6  ;;  %v7459_v10 = vadd.f32 %v7458_v8, %v7396_v33  ;;  %v7405_v6 = vmul.f32 %v15785_v1, %v15785_v1  ;;  %s8312_s0 = sshll.u32 %s10847_s25, 4  ;;  %s15869_s0 = int_to_ptr.vmem [resolvable:$true] %s8312_s0 }
 0x74c   : > { %v7602_v17 = vpop.trf.xlu0 }
 0x74d   : > { %v8206_v16 = vadd.f32 %v8205_v60, %v8143_v63  ;;  %7666 = vst [vmem:[%s10847_s25 + $0x398] sm:$0xff] %v7602_v17  ;;  %v7460_v15 = vadd.f32 %v7459_v10, %v7397_v54  ;;  %v8153_v63 = vmul.f32 %v7602_v17, %v7602_v17 }
 0x74e   : > { %v6853_v61 = vpop.trf.xlu1 }
 0x74f   : > { %v8207_v43 = vadd.f32 %v8206_v16, %v8144_v37  ;;  %6917 = vst [vmem:[%s10824_s20 + $0x3a0] sm:$0xff] %v6853_v61  ;;  %v7461_v19 = vadd.f32 %v7460_v15, %v7398_v41 }
 0x750   : > { %v7603_v58 = vpop.trf.xlu0 }
 0x751   : > { %v8208_v47 = vadd.f32 %v8207_v43, %v8145_v30  ;;  %7667 = vst [vmem:[%s10847_s25 + $0x3a0] sm:$0xff] %v7603_v58  ;;  %v7462_v34 = vadd.f32 %v7461_v19, %v7399_v48  ;;  %v8154_v40 = vmul.f32 %v7603_v58, %v7603_v58  ;;  %v7406_v43 = vmul.f32 %v6853_v61, %v6853_v61 }
 0x752   : > { %v6854_v20 = vpop.trf.xlu1 }
 0x753   : > { %v8209_v23 = vadd.f32 %v8208_v47, %v8146_v45  ;;  %6918 = vst [vmem:[%s10824_s20 + $0x3a8] sm:$0xff] %v6854_v20  ;;  %v7463_v26 = vadd.f32 %v7462_v34, %v7400_v25  ;;  %v7407_v17 = vmul.f32 %v6854_v20, %v6854_v20 }
 0x754   : > { %v7604_v46 = vpop.trf.xlu0 }
 0x755   : > { %v8210_v49 = vadd.f32 %v8209_v23, %v8147_v44  ;;  %7668 = vst [vmem:[%s10847_s25 + $0x3a8] sm:$0xff] %v7604_v46  ;;  %v7464_v60 = vadd.f32 %v7463_v26, %v7401_v27  ;;  %v8155_v37 = vmul.f32 %v7604_v46, %v7604_v46 }
 0x756   : > { %v6855_v42 = vpop.trf.xlu1 }
 0x757   : > { %v8211_v35 = vadd.f32 %v8210_v49, %v8148_v3  ;;  %6919 = vst [vmem:[%s10824_s20 + $0x3b0] sm:$0xff] %v6855_v42  ;;  %v7465_v55 = vadd.f32 %v7464_v60, %v7402_v52  ;;  %v7408_v33 = vmul.f32 %v6855_v42, %v6855_v42 }
 0x758   : > { %v7605_v50 = vpop.trf.xlu0 }
 0x759   : > { %v8212_v0 = vadd.f32 %v8211_v35, %v8149_v14  ;;  %7669 = vst [vmem:[%s10847_s25 + $0x3b0] sm:$0xff] %v7605_v50  ;;  %v7466_v16 = vadd.f32 %v7465_v55, %v7403_v51  ;;  %v8156_v4 = vmul.f32 %v7605_v50, %v7605_v50 }
 0x75a   : > { %v6856_v2 = vpop.trf.xlu1 }
 0x75b   : > { %v8213_v62 = vadd.f32 %v8212_v0, %v8150_v56  ;;  %6920 = vst [vmem:[%s10824_s20 + $0x3b8] sm:$0xff] %v6856_v2  ;;  %v7467_v30 = vadd.f32 %v7466_v16, %v7404_v59  ;;  %v7409_v61 = vmul.f32 %v6856_v2, %v6856_v2 }
 0x75c   : > { %v7606_v5 = vpop.trf.xlu0 }
 0x75d   : > { %v8214_v39 = vadd.f32 %v8213_v62, %v8151_v38  ;;  %7670 = vst [vmem:[%s10847_s25 + $0x3b8] sm:$0xff] %v7606_v5  ;;  %v8157_v32 = vmul.f32 %v7606_v5, %v7606_v5  ;;  %v7468_v29 = vadd.f32 %v7467_v30, %v7405_v6 }
 0x75e   : > { %v6857_v12 = vpop.trf.xlu1 }
 0x75f   : > { %v8215_v21 = vadd.f32 %v8214_v39, %v8152_v28  ;;  %6921 = vst [vmem:[%s10824_s20 + $0x3c0] sm:$0xff] %v6857_v12  ;;  %v7469_v22 = vadd.f32 %v7468_v29, %v7406_v43  ;;  %v7410_v49 = vmul.f32 %v6857_v12, %v6857_v12 }
 0x760   : > { %v7607_v24 = vpop.trf.xlu0 }
 0x761   : > { %v8216_v18 = vadd.f32 %v8215_v21, %v8153_v63  ;;  %7671 = vst [vmem:[%s10847_s25 + $0x3c0] sm:$0xff] %v7607_v24  ;;  %v8158_v47 = vmul.f32 %v7607_v24, %v7607_v24  ;;  %v7470_v23 = vadd.f32 %v7469_v22, %v7407_v17 }
 0x762   : > { %v6858_v9 = vpop.trf.xlu1 }
 0x763   : > { %v8217_v53 = vadd.f32 %v8216_v18, %v8154_v40  ;;  %6922 = vst [vmem:[%s10824_s20 + $0x3c8] sm:$0xff] %v6858_v9  ;;  %v7471_v3 = vadd.f32 %v7470_v23, %v7408_v33  ;;  %v7411_v41 = vmul.f32 %v6858_v9, %v6858_v9 }
 0x764   : > { %v7608_v36 = vpop.trf.xlu0 }
 0x765   : > { %v8218_v13 = vadd.f32 %v8217_v53, %v8155_v37  ;;  %7672 = vst [vmem:[%s10847_s25 + $0x3c8] sm:$0xff] %v7608_v36  ;;  %v8159_v44 = vmul.f32 %v7608_v36, %v7608_v36  ;;  %v7472_v10 = vadd.f32 %v7471_v3, %v7409_v61 }
 0x766   : > { %v6859_v1 = vpop.trf.xlu1 }
 0x767   : > { %v8219_v11 = vadd.f32 %v8218_v13, %v8156_v4  ;;  %6923 = vst [vmem:[%s10824_s20 + $0x3d0] sm:$0xff] %v6859_v1  ;;  %v7473_v15 = vadd.f32 %v7472_v10, %v7410_v49  ;;  %v7412_v48 = vmul.f32 %v6859_v1, %v6859_v1 }
 0x768   : > { %v7609_v8 = vpop.trf.xlu0 }
 0x769   : > { %v8220_v45 = vadd.f32 %v8219_v11, %v8157_v32  ;;  %7673 = vst [vmem:[%s10847_s25 + $0x3d0] sm:$0xff] %v7609_v8  ;;  %v8160_v58 = vmul.f32 %v7609_v8, %v7609_v8  ;;  %v7474_v56 = vadd.f32 %v7473_v15, %v7411_v41 }
 0x76a   : > { %v6860_v57 = vpop.trf.xlu1 }
 0x76b   : > { %v8221_v7 = vadd.f32 %v8220_v45, %v8158_v47  ;;  %6924 = vst [vmem:[%s10824_s20 + $0x3d8] sm:$0xff] %v6860_v57  ;;  %v7413_v0 = vmul.f32 %v6860_v57, %v6860_v57  ;;  %v7475_v62 = vadd.f32 %v7474_v56, %v7412_v48 }
 0x76c   : > { %v7610_v31 = vpop.trf.xlu0 }
 0x76d   : > { %v8222_v54 = vadd.f32 %v8221_v7, %v8159_v44  ;;  %7674 = vst [vmem:[%s10847_s25 + $0x3d8] sm:$0xff] %v7610_v31  ;;  %v8161_v14 = vmul.f32 %v7610_v31, %v7610_v31  ;;  %v7476_v27 = vadd.f32 %v7475_v62, %v7413_v0 }
 0x76e   : > { %v6861_v35 = vpop.trf.xlu1 }
 0x76f   : > { %v8223_v20 = vadd.f32 %v8222_v54, %v8160_v58  ;;  %6925 = vst [vmem:[%s10824_s20 + $0x3e0] sm:$0xff] %v6861_v35  ;;  %v7414_v38 = vmul.f32 %v6861_v35, %v6861_v35 }
 0x770   : > { %v7611_v42 = vpop.trf.xlu0 }
 0x771   : > { %v8224_v46 = vadd.f32 %v8223_v20, %v8161_v14  ;;  %7675 = vst [vmem:[%s10847_s25 + $0x3e0] sm:$0xff] %v7611_v42  ;;  %v8162_v19 = vmul.f32 %v7611_v42, %v7611_v42  ;;  %v7477_v26 = vadd.f32 %v7476_v27, %v7414_v38 }
 0x772   : > { %v6862_v25 = vpop.trf.xlu1 }
 0x773   : > { %6926 = vst [vmem:[%s10824_s20 + $0x3e8] sm:$0xff] %v6862_v25  ;;  %v8225_v34 = vadd.f32 %v8224_v46, %v8162_v19  ;;  %v7415_v39 = vmul.f32 %v6862_v25, %v6862_v25 }
 0x774   : > { %v7612_v50 = vpop.trf.xlu0 }
 0x775   : > { %7676 = vst [vmem:[%s10847_s25 + $0x3e8] sm:$0xff] %v7612_v50  ;;  %v8163_v28 = vmul.f32 %v7612_v50, %v7612_v50  ;;  %v7478_v63 = vadd.f32 %v7477_v26, %v7415_v39 }
 0x776   : > { %v6863_v2 = vpop.trf.xlu1 }
 0x777   : > { %6927 = vst [vmem:[%s10824_s20 + $0x3f0] sm:$0xff] %v6863_v2  ;;  %v7416_v52 = vmul.f32 %v6863_v2, %v6863_v2  ;;  %v8226_v21 = vadd.f32 %v8225_v34, %v8163_v28 }
 0x778   : > { %v7613_v60 = vpop.trf.xlu0 }
 0x779   : > { %7677 = vst [vmem:[%s10847_s25 + $0x3f0] sm:$0xff] %v7613_v60  ;;  %v8164_v51 = vmul.f32 %v7613_v60, %v7613_v60  ;;  %v7479_v18 = vadd.f32 %v7478_v63, %v7416_v52 }
 0x77a   : > { %v6864_v5 = vpop.trf.xlu1 }
 0x77b   : > { %6928 = vst [vmem:[%s10824_s20 + $0x3f8] sm:$0xff] %v6864_v5  ;;  %v7417_v40 = vmul.f32 %v6864_v5, %v6864_v5  ;;  %v8227_v12 = vadd.f32 %v8226_v21, %v8164_v51 }
 0x77c   : > { %9996 = shalt.err (!%p9993_p6)
}
 0x77d   : > { %s9997_s20 = scalar_lea.hbm %s15858_s21, 16384  ;;  %s10001_s27 = scalar_lea.hbm %s16023_s12, 32768 }
 0x77e   : > { %p9998_p12 = scmp.ne.s32.totalorder %s15858_s21, %s9997_s20  ;;  %p10002_p9 = scmp.lt.s32.totalorder %s15858_s21, %s16023_s12 }
 0x77f   : > { %p10003_p4 = scmp.lt.s32.totalorder %s10001_s27, %s9997_s20 }
 0x780   : > { %p9999_p10 = pnand %p9998_p12, %p10315_p5 }
 0x781   : > { %p10004_p7 = por %p10003_p4, %p10002_p9 }
 0x782   : > { %p10000_p2 = pneg %p9999_p10 }
 0x784   : > { %p10005_p11 = pnand %p10004_p7, %p10000_p2 }
 0x786   : > { %10008 = shalt.err (!%p10005_p11)
}
 0x787   : > { %s10170_s4 = smov 128   ;;  %s10171_s24 = smov 8   ;;  %v7614_v55 = vpop.trf.xlu0  ;;  %v7480_v59 = vadd.f32 %v7479_v18, %v7417_v40 }
 0x788   : > { %s17152_s9 = scalar_lea.sflag [#allocation4], %s10813_s29  ;;  %7678 = vst [vmem:[%s10847_s25 + $0x3f8] sm:$0xff] %v7614_v55  ;;  %v8165_v53 = vmul.f32 %v7614_v55, %v7614_v55  ;;  %s17153_s2 = sand.u32 1, %s10296_s1  }
 0x789   : > { %9156 = dma.vmem_to_hbm [thread:$0]  (%p10315_p5), %s15860_s5, 16384, %s15858_s21, %s17152_s9, %s10170_s4, %s10170_s4, %s10171_s24   ;;  %v7481_v37 = vrot.slane %v7480_v59, 4 }
 0x78a   : > { %s15900_s20 = scalar_lea.sflag [#allocation18], %s17153_s2  ;;  %s10009_s28 = scalar_lea.vmem %s15869_s0, 16384 }
 0x78b   : > { %p10010_p8 = scmp.ne.s32.totalorder %s15869_s0, %s10009_s28  ;;  %s10172_s26 = smov [#allocation17]  }
 0x78c   : > { %s10013_s27 = sshll.u32 %s10172_s26, 4  ;;  %s10014_s27 = int_to_ptr.vmem [resolvable:$false] %s10013_s27 }
 0x78d   : > { %p10011_p1 = pnand %p10010_p8, %p10315_p5  ;;  %s10015_s7 = scalar_lea.vmem %s10014_s27, 32768 }
 0x78e   : > { %p10016_p0 = scmp.lt.s32.totalorder %s15869_s0, %s10014_s27  ;;  %p10017_p3 = scmp.lt.s32.totalorder %s10015_s7, %s10009_s28 }
 0x78f   : > { %p10012_p13 = pneg %p10011_p1 }
 0x790   : > { %p10018_p6 = por %p10017_p3, %p10016_p0 }
 0x792   : > { %p10019_p12 = pnand %p10018_p6, %p10012_p13 }
 0x794   : > { %10022 = shalt.err (!%p10019_p12)
}
 0x795   : > { %s10023_s25 = scalar_lea.hbm %s15867_s23, 16384  ;;  %s10027_s9 = scalar_lea.hbm %s16024_s13, 32768 }
 0x796   : > { %p10024_p10 = scmp.ne.s32.totalorder %s15867_s23, %s10023_s25  ;;  %p10028_p4 = scmp.lt.s32.totalorder %s15867_s23, %s16024_s13 }
 0x797   : > { %p10029_p7 = scmp.lt.s32.totalorder %s10027_s9, %s10023_s25 }
 0x798   : > { %p10025_p2 = pnand %p10024_p10, %p10315_p5 }
 0x799   : > { %p10030_p11 = por %p10029_p7, %p10028_p4 }
 0x79a   : > { %p10026_p9 = pneg %p10025_p2 }
 0x79c   : > { %p10031_p8 = pnand %p10030_p11, %p10026_p9 }
 0x79e   : > { %10034 = shalt.err (!%p10031_p8)
}
 0x79f   : > { %9157 = dma.vmem_to_hbm [thread:$0]  (%p10315_p5), %s15869_s0, 16384, %s15867_s23, %s15900_s20, %s10170_s4, %s10170_s4, %s10171_s24   ;;  %v8228_v16 = vadd.f32 %v8227_v12, %v8165_v53  ;;  %v7482_v6 = vadd.f32 %v7481_v37, %v7480_v59  ;;  %v17154_v17 = vld [vmem:[#allocation54_spill] sm:$0xff]  ;;  %v17155_v47 = vld [vmem:[#allocation63_spill] sm:$0xff] }
 0x7a0   : > { %s9042_s0 = sshll.u32 %s10296_s1, 4  ;;  %s754_s23 = scalar_lea.vmem [#allocation19], %s10813_s29 }
 0x7a1   : > { %v8229_v24 = vrot.slane %v8228_v16, 4  ;;  %v7483_v13 = vrot.slane %v7482_v6, 2  ;;  %s8340_s4 = sshll.u32 %s754_s23, 4  ;;  %s760_s24 = scalar_lea.vmem [#allocation20], %s10813_s29  ;;  %s15938_s4 = int_to_ptr.vmem [resolvable:$true] %s8340_s4 }
 0x7a2   : > { %s8353_s28 = sshll.u32 %s760_s24, 4  ;;  %s15936_s25 = scalar_lea.hbm %s16029_s18, %s9042_s0  ;;  %s15945_s28 = int_to_ptr.vmem [resolvable:$true] %s8353_s28 }
 0x7a3   : > { %v8230_v4 = vadd.f32 %v8229_v24, %v8228_v16  ;;  %v7484_v9 = vadd.f32 %v7483_v13, %v7482_v6  ;;  %s15943_s21 = scalar_lea.hbm %s16030_s19, %s9042_s0  ;;  %s10035_s9 = scalar_lea.vmem %s15938_s4, 16 }
 0x7a4   : > { %p10036_p1 = scmp.ne.s32.totalorder %s15938_s4, %s10035_s9  ;;  %s10173_s2 = smov [#allocation19]  }
 0x7a5   : > { %v8231_v30 = vrot.slane %v8230_v4, 2  ;;  %v7485_v43 = vrot.slane %v7484_v9, 1  ;;  %s10039_s26 = sshll.u32 %s10173_s2, 4  ;;  %s10040_s26 = int_to_ptr.vmem [resolvable:$false] %s10039_s26 }
 0x7a6   : > { %p10037_p13 = pnand %p10036_p1, %p10315_p5  ;;  %s10041_s27 = scalar_lea.vmem %s10040_s26, 32 }
 0x7a7   : > { %v8232_v11 = vadd.f32 %v8231_v30, %v8230_v4  ;;  %v7486_v32 = vadd.f32 %v7485_v43, %v7484_v9  ;;  %p10042_p3 = scmp.lt.s32.totalorder %s15938_s4, %s10040_s26  ;;  %p10043_p6 = scmp.lt.s32.totalorder %s10041_s27, %s10035_s9 }
 0x7a8   : > { %p10038_p0 = pneg %p10037_p13 }
 0x7a9   : > { %v8233_v29 = vrot.slane %v8232_v11, 1  ;;  %v8235_v36 = vadd.f32 %v7486_v32, %v17154_v17  ;;  %p10044_p12 = por %p10043_p6, %p10042_p3 }
 0x7ab   : > { %v8234_v45 = vadd.f32 %v8233_v29, %v8232_v11  ;;  %9759 = vrsqrt.f32 %v8235_v36  ;;  %vm8239_vm12 = vcmp.eq.f32.partialorder %v8235_v36, inf  ;;  %v8242_v7 = vand.u32 2147483648, %v8235_v36  ;;  %p10045_p10 = pnand %p10044_p12, %p10038_p0 }
 0x7ac   : > { %vm8241_vm0 = vcmp.eq.f32.partialorder %v8235_v36, 0.0 }
 0x7ad   : > { %v8236_v1 = vadd.f32 %v8234_v45, %v17155_v47 }
 0x7af   : > { %9761 = vrsqrt.f32 %v8236_v1  ;;  %vm8247_vm1 = vcmp.eq.f32.partialorder %v8236_v1, inf  ;;  %v8250_v54 = vand.u32 2147483648, %v8236_v1 }
 0x7b8   : > { %v9760_v22 = vpop.eup %9759 }
 0x7b9   : > { %v8238_v33 = vmul.f32 %v9760_v22, %v8235_v36 }
 0x7bb   : > { %v8240_v23 = vsel %vm8239_vm12, %v8235_v36, %v8238_v33 }
 0x7bc   : > { %v9762_v44 = vpop.eup %9761  ;;  %v8243_v61 = vsel %vm8241_vm0, %v8242_v7, %v8240_v23 }
 0x7bd   : > { %v8246_v8 = vmul.f32 %v9762_v44, %v8236_v1  ;;  %8244 = vst [vmem:[%s754_s23] sm:$0x1] %v8243_v61 }
 0x7be   : > { %10048 = shalt.err (!%p10045_p10)
}
 0x7bf   : > { %s10049_s0 = scalar_lea.hbm %s15936_s25, 16  ;;  %s10053_s1 = scalar_lea.hbm %s16029_s18, 32 }
 0x7c0   : > { %p10050_p2 = scmp.ne.s32.totalorder %s15936_s25, %s10049_s0  ;;  %p10054_p7 = scmp.lt.s32.totalorder %s15936_s25, %s16029_s18 }
 0x7c1   : > { %p10055_p11 = scmp.lt.s32.totalorder %s10053_s1, %s10049_s0 }
 0x7c2   : > { %p10051_p9 = pnand %p10050_p2, %p10315_p5 }
 0x7c3   : > { %p10056_p8 = por %p10055_p11, %p10054_p7 }
 0x7c4   : > { %p10052_p4 = pneg %p10051_p9 }
 0x7c6   : > { %p10057_p1 = pnand %p10056_p8, %p10052_p4 }
 0x7c8   : > { %10060 = shalt.err (!%p10057_p1)
}
 0x7c9   : > { %9158 = dma.vmem_to_hbm [thread:$0]  (%p10315_p5), %s15938_s4, 16, %s15936_s25, %s15900_s20   ;;  %v8248_v58 = vsel %vm8247_vm1, %v8236_v1, %v8246_v8  ;;  %vm8249_vm10 = vcmp.eq.f32.partialorder %v8236_v1, 0.0 }
 0x7ca   : > { %v8251_v57 = vsel %vm8249_vm10, %v8250_v54, %v8248_v58  ;;  %s8284_s9 = scalar_lea.sflag [#allocation21], %s10813_s29  ;;  %s10061_s26 = scalar_lea.vmem %s15945_s28, 16 }
 0x7cb   : > { %8252 = vst [vmem:[%s760_s24] sm:$0x1] %v8251_v57  ;;  %p10062_p13 = scmp.ne.s32.totalorder %s15945_s28, %s10061_s26  ;;  %s10174_s27 = smov [#allocation20]  }
 0x7cc   : > { %s10065_s0 = sshll.u32 %s10174_s27, 4  ;;  %s10066_s0 = int_to_ptr.vmem [resolvable:$false] %s10065_s0 }
 0x7cd   : > { %p10063_p0 = pnand %p10062_p13, %p10315_p5  ;;  %s10067_s23 = scalar_lea.vmem %s10066_s0, 32 }
 0x7ce   : > { %p10068_p6 = scmp.lt.s32.totalorder %s15945_s28, %s10066_s0  ;;  %p10069_p12 = scmp.lt.s32.totalorder %s10067_s23, %s10061_s26 }
 0x7cf   : > { %p10064_p3 = pneg %p10063_p0 }
 0x7d0   : > { %p10070_p10 = por %p10069_p12, %p10068_p6 }
 0x7d2   : > { %p10071_p2 = pnand %p10070_p10, %p10064_p3 }
 0x7d4   : > { %10074 = shalt.err (!%p10071_p2)
}
 0x7d5   : > { %s10075_s20 = scalar_lea.hbm %s15943_s21, 16  ;;  %s10079_s24 = scalar_lea.hbm %s16030_s19, 32 }
 0x7d6   : > { %p10076_p9 = scmp.ne.s32.totalorder %s15943_s21, %s10075_s20  ;;  %p10080_p11 = scmp.lt.s32.totalorder %s15943_s21, %s16030_s19 }
 0x7d7   : > { %p10081_p8 = scmp.lt.s32.totalorder %s10079_s24, %s10075_s20 }
 0x7d8   : > { %p10077_p4 = pnand %p10076_p9, %p10315_p5 }
 0x7d9   : > { %p10082_p1 = por %p10081_p8, %p10080_p11 }
 0x7da   : > { %p10078_p7 = pneg %p10077_p4 }
 0x7dc   : > { %p10083_p13 = pnand %p10082_p1, %p10078_p7 }
 0x7de   : > { %10086 = shalt.err (!%p10083_p13)
}
 0x7df   : > { %9159 = dma.vmem_to_hbm [thread:$0]  (%p10315_p5), %s15945_s28, 16, %s15943_s21, %s8284_s9  }
 0x7e0 PF: > { %s17156_s1 = sld [smem:[#allocation32_spill]] }
 0x7e1   : > { %s17157_s5 = sld [smem:[#allocation30_spill]] }
 0x7e2   : > { %s17158_s2 = sld [smem:[#allocation35_spill]] }
 0x7e6   : > { %p9218_p0 = scmp.ge.s32.totalorder %s17156_s1, 2 }
 0x7e7   : > { %s8365_s26 = sand.u32 1, %s17157_s5  }
 0x7e8   : > { %p17159_p3 = scmp.ne.s32.totalorder %s17158_s2, 0  ;;  %s8366_s27 = scalar_lea.sflag [#allocation4], %s8365_s26 }
 0x7ea   : > { %p9190_p6 = pnand %p9218_p0, %p17159_p3 }
 0x7ec   : > { %p9191_p12 = pneg %p9190_p6 }
 0x7ee   : > { %10124 = dma.done.wait (%p9191_p12), %s8366_s27, 16384  }
 0x7ef   : > { %10126 = vsyncadd (%p9191_p12), %s8366_s27, 4294950912  ;;  %s17160_s0 = sadd.s32 4294967294, %s17156_s1  }
 0x7f0   : > { %s8374_s23 = sand.u32 1, %s17160_s0  }
 0x7f1   : > { %s8375_s20 = scalar_lea.sflag [#allocation18], %s8374_s23 }
 0x7f2   : > { %10128 = dma.done.wait (%p9191_p12), %s8375_s20, 16400  }
 0x7f3   : > { %10130 = vsyncadd (%p9191_p12), %s8375_s20, 4294950896  ;;  %s8420_s3 = scalar_lea.sflag [#allocation21], %s8365_s26 }
 0x7f4   : > { %10132 = dma.done.wait (%p9191_p12), %s8420_s3, 16  }
 0x7f5   : > { %10134 = vsyncadd (%p9191_p12), %s8420_s3, 4294967280  ;;  %s17161_s21 = sld [smem:[#allocation33_spill]]  ;;  %s17164_s0 = smov %s10141_s30 }
 0x7f6   : > { %s17162_s28 = sld [smem:[#allocation31_spill]] }
 0x7f7   : > { %s17163_s20 = sld [smem:[#allocation34_spill]] }
 0x7fb   : > { %p41_p5 = scmp.ge.s32.totalorder %s17161_s21, 4  }
 0x7fc   : > { %s17165_s30 = smov %s17162_s28 }
 0x7fd   :  { %43 = sbr.rel (!%p41_p5) target bundleno = 21 (0x15), region = 238 }
 0x802   :  { %8424 = vsyncpa [#allocation3], 1 }
 0x803   :  { %8426 = vsyncpa [#allocation3 + $0x1], 1 }
 0x804   :  { %8427 = vsyncpa [#allocation6], 1 }
 0x805   :  { %8428 = vsyncpa [#allocation9], 1 }
 0x806   :  { %8429 = vsyncpa [#allocation12], 1 }
 0x807   :  { %8430 = vsyncpa [#allocation15], 1 }
 0x808   :  { %8431 = vsyncpa [#allocation4], 1 }
 0x809   :  { %8433 = vsyncpa [#allocation4 + $0x1], 1 }
 0x80a   :  { %8434 = vsyncpa [#allocation18], 1 }
 0x80b   :  { %8436 = vsyncpa [#allocation18 + $0x1], 1 }
 0x80c   :  { %8437 = vsyncpa [#allocation21], 1 }
 0x80d   :  { %8439 = vsyncpa [#allocation21 + $0x1], 1 }

</bundles_post_ra>
